<compile_context>
chip_gen: v7x
topology: tpu7x:2x2x1
jax: 0.10.0
libtpu: 0.0.40
codegen_flags: <defaults>
</compile_context>

<pallas_src>
import functools

import jax
import jax.numpy as jnp
from jax.experimental import pallas as pl
from jax.experimental.pallas import tpu as pltpu

N_CLASSES = 10
CHANNEL_BASE = 48
BN_EPS = 1e-5
LANES = 128      # lane-dense padded channel count for conv feature maps
CIN_PAD = 8      # padded input-channel count for conv1 (3 real + 5 zero)
OUT_PAD = 128    # lane-dense padded class count for the classifier output


def _round_up(x, m):
    return (x + m - 1) // m * m


# ---------------------------------------------------------------------------
# Kernel A: conv1 + ReLU + conv2 + BN(folded) + ReLU + MaxPool2d(2,2), fused.
# One grid step processes one image.  Feature maps never leave VMEM.
# ---------------------------------------------------------------------------
def _conv_pool_kernel(x_ref, w1_ref, b1_ref, w2_ref, scale_ref, shift_ref,
                      out_ref, y1pad_ref, acc_ref, *, H, W, G):
    Wp = W + 2                       # width-padded row length
    HWp = H * Wp                     # rows in the conv band
    Ho, Wo = H // 2, W // 2
    # Flat-row offsets of the 9 conv taps inside the guarded, width-padded buffer.
    offs = [G + (di - 1) * Wp + (dj - 1) for di in range(3) for dj in range(3)]

    # ---- conv1 (+ bias + ReLU): 9 shifted matmuls, f32 accumulation in VMEM ----
    acc_ref[...] = jnp.dot(x_ref[pl.ds(offs[0], HWp), :], w1_ref[0],
                           preferred_element_type=jnp.float32)
    for t in range(1, 9):
        acc_ref[...] += jnp.dot(x_ref[pl.ds(offs[t], HWp), :], w1_ref[t],
                                preferred_element_type=jnp.float32)
    y1 = jnp.maximum(acc_ref[...] + b1_ref[...], 0.0)              # (HWp, 128)

    # Stash y1 into the guarded scratch that conv2's shifted reads will use.
    # Guard rows and the two zero-padding columns must hold zeros (SAME padding).
    y1pad_ref[pl.ds(0, G), :] = jnp.zeros((G, LANES), jnp.float32)
    y1pad_ref[pl.ds(G + HWp, G), :] = jnp.zeros((G, LANES), jnp.float32)
    y1pad_ref[pl.ds(G, HWp), :] = y1
    z1 = jnp.zeros((1, LANES), jnp.float32)
    z2 = jnp.zeros((2, LANES), jnp.float32)
    # (col Wp-1 of row h) and (col 0 of row h+1) are adjacent flat rows -> pair them.
    y1pad_ref[pl.ds(G, 1), :] = z1                                 # col 0 of row 0
    for h in range(H - 1):
        y1pad_ref[pl.ds(G + h * Wp + Wp - 1, 2), :] = z2
    y1pad_ref[pl.ds(G + HWp - 1, 1), :] = z1                       # col Wp-1 of row H-1

    # ---- conv2 (+ folded BN + ReLU) ----
    acc_ref[...] = jnp.dot(y1pad_ref[pl.ds(offs[0], HWp), :], w2_ref[0],
                           preferred_element_type=jnp.float32)
    for t in range(1, 9):
        acc_ref[...] += jnp.dot(y1pad_ref[pl.ds(offs[t], HWp), :], w2_ref[t],
                                preferred_element_type=jnp.float32)
    acc_ref[...] = jnp.maximum(acc_ref[...] * scale_ref[...] + shift_ref[...], 0.0)

    # ---- 2x2 max-pool (stride 2) over interior columns; output rows = (ho, wo) ----
    for ho in range(Ho):
        r0 = 2 * ho * Wp + 1
        t00 = acc_ref[pl.ds(r0, Wo, stride=2), :]
        t01 = acc_ref[pl.ds(r0 + 1, Wo, stride=2), :]
        t10 = acc_ref[pl.ds(r0 + Wp, Wo, stride=2), :]
        t11 = acc_ref[pl.ds(r0 + Wp + 1, Wo, stride=2), :]
        out_ref[pl.ds(ho * Wo, Wo), :] = jnp.maximum(jnp.maximum(t00, t01),
                                                     jnp.maximum(t10, t11))


def conv_pool_call(xg, prep, *, H, W, G):
    B, ROWS, _ = xg.shape
    Wp = W + 2
    HWp = H * Wp
    Ho, Wo = H // 2, W // 2
    kern = functools.partial(_conv_pool_kernel, H=H, W=W, G=G)
    return pl.pallas_call(
        kern,
        out_shape=jax.ShapeDtypeStruct((B, Ho * Wo, LANES), jnp.float32),
        grid=(B,),
        in_specs=[
            pl.BlockSpec((None, ROWS, CIN_PAD), lambda b: (b, 0, 0)),   # guarded input
            pl.BlockSpec((9, CIN_PAD, LANES), lambda b: (0, 0, 0)),     # conv1 taps
            pl.BlockSpec((1, LANES), lambda b: (0, 0)),                 # conv1 bias
            pl.BlockSpec((9, LANES, LANES), lambda b: (0, 0, 0)),       # conv2 taps
            pl.BlockSpec((1, LANES), lambda b: (0, 0)),                 # folded BN scale
            pl.BlockSpec((1, LANES), lambda b: (0, 0)),                 # folded BN shift
        ],
        out_specs=pl.BlockSpec((None, Ho * Wo, LANES), lambda b: (b, 0, 0)),
        scratch_shapes=[
            pltpu.VMEM((ROWS, LANES), jnp.float32),   # guarded, width-padded y1
            pltpu.VMEM((HWp, LANES), jnp.float32),    # conv accumulator / y2
        ],
        compiler_params=pltpu.CompilerParams(dimension_semantics=("parallel",)),
    )(xg, prep["w1t"], prep["b1"], prep["w2t"], prep["bn_scale"], prep["bn_shift"])


# ---------------------------------------------------------------------------
# Kernel B: fc1 + ReLU + fc2 + LogSoftmax, fused (intermediate h stays in VMEM).
# ---------------------------------------------------------------------------
def _classifier_kernel(x_ref, w1_ref, b1_ref, w2_ref, b2_ref, o_ref):
    h = jnp.dot(x_ref[...], w1_ref[...], preferred_element_type=jnp.float32)
    h = jnp.maximum(h + b1_ref[...], 0.0)
    logits = jnp.dot(h, w2_ref[...], preferred_element_type=jnp.float32) + b2_ref[...]
    m = jnp.max(logits, axis=1, keepdims=True)
    z = logits - m
    lse = jnp.log(jnp.sum(jnp.exp(z), axis=1, keepdims=True))
    o_ref[...] = z - lse


def classifier_call(flat, prep):
    B, K = flat.shape
    F = prep["fc1_w"].shape[1]
    return pl.pallas_call(
        _classifier_kernel,
        out_shape=jax.ShapeDtypeStruct((B, OUT_PAD), jnp.float32),
        grid=(1,),
        in_specs=[
            pl.BlockSpec((B, K), lambda i: (0, 0)),
            pl.BlockSpec((K, F), lambda i: (0, 0)),
            pl.BlockSpec((1, F), lambda i: (0, 0)),
            pl.BlockSpec((F, OUT_PAD), lambda i: (0, 0)),
            pl.BlockSpec((1, OUT_PAD), lambda i: (0, 0)),
        ],
        out_specs=pl.BlockSpec((B, OUT_PAD), lambda i: (0, 0)),
    )(flat, prep["fc1_w"], prep["fc1_b"], prep["fc2_w"], prep["fc2_b"])


# ---------------------------------------------------------------------------
# One-time parameter preparation (off the activation path).
# ---------------------------------------------------------------------------
def _conv_taps(w_oihw, cin_pad):
    """torch (Cout, Cin, 3, 3) -> (9, cin_pad, LANES) tap matrices (zero padded)."""
    co, ci, kh, kw = w_oihw.shape
    taps = jnp.transpose(w_oihw, (2, 3, 1, 0)).reshape(kh * kw, ci, co)
    return jnp.pad(taps, ((0, 0), (0, cin_pad - ci), (0, LANES - co)))


def prepare_params(p, *, H, W):
    Ho, Wo = H // 2, W // 2
    C = p["conv1_w"].shape[0]
    fc_size = p["fc1_w"].shape[0]
    prep = {}

    prep["w1t"] = _conv_taps(p["conv1_w"], CIN_PAD)
    prep["b1"] = jnp.pad(p["conv1_b"], (0, LANES - C))[None, :]

    prep["w2t"] = _conv_taps(p["conv2_w"], LANES)
    scale = p["bn_gamma"] / jnp.sqrt(p["bn_var"] + BN_EPS)
    shift = (p["conv2_b"] - p["bn_mean"]) * scale + p["bn_beta"]
    prep["bn_scale"] = jnp.pad(scale, (0, LANES - C), constant_values=1.0)[None, :]
    prep["bn_shift"] = jnp.pad(shift, (0, LANES - C))[None, :]

    # fc1: transpose once and permute its input rows from torch's NCHW flatten
    # order (c, ho, wo) to the kernel's pooled (ho, wo, c) layout -> no activation
    # transpose is needed at runtime.
    w1 = p["fc1_w"].reshape(fc_size, C, Ho, Wo)
    prep["fc1_w"] = jnp.transpose(w1, (2, 3, 1, 0)).reshape(Ho * Wo * C, fc_size)
    prep["fc1_b"] = p["fc1_b"][None, :]

    # fc2: transpose, pad classes 10 -> 128 with a -1e30 bias so padded lanes never
    # contribute to the log-softmax (lane-dense output store).
    prep["fc2_w"] = jnp.pad(jnp.transpose(p["fc2_w"], (1, 0)),
                            ((0, 0), (0, OUT_PAD - N_CLASSES)))
    prep["fc2_b"] = jnp.concatenate(
        [p["fc2_b"], jnp.full((OUT_PAD - N_CLASSES,), -1e30, jnp.float32)])[None, :]
    return prep


# ---------------------------------------------------------------------------
# Forward pass
# ---------------------------------------------------------------------------
def digital_vgg8_forward(x_nchw, prep):
    B, Cin, H, W = x_nchw.shape
    Wp = W + 2
    Ho, Wo = H // 2, W // 2
    G = _round_up(Wp + 1, 8)        # guard rows covering the +/-(Wp+1) tap shifts

    # Layout glue only (tiny): NCHW -> flat width-padded NHWC rows with zero guard
    # rows and zero channel padding.
    x = jnp.transpose(x_nchw, (0, 2, 3, 1))                        # (B, H, W, Cin)
    x = jnp.pad(x, ((0, 0), (0, 0), (1, 1), (0, CIN_PAD - Cin)))    # (B, H, Wp, 8)
    x = x.reshape(B, H * Wp, CIN_PAD)
    x = jnp.pad(x, ((0, 0), (G, G), (0, 0)))                        # (B, ROWS, 8)

    pooled = conv_pool_call(x, prep, H=H, W=W, G=G)                 # (B, Ho*Wo, 128)
    flat = pooled[:, :, :CHANNEL_BASE].reshape(B, Ho * Wo * CHANNEL_BASE)
    return classifier_call(flat, prep)[:, :N_CLASSES]               # (B, 10)


# ---------------------------------------------------------------------------
# Reference (plain JAX, high precision) + random params
# ---------------------------------------------------------------------------
def init_params(key):
    c0 = CHANNEL_BASE
    fc_in = 16 * 3 * CHANNEL_BASE          # 2304
    fc_size = 8 * CHANNEL_BASE             # 384
    ks = jax.random.split(key, 12)
    p = {}
    p["conv1_w"] = jax.random.normal(ks[0], (c0, 3, 3, 3), jnp.float32) / jnp.sqrt(3 * 9.0)
    p["conv1_b"] = 0.01 * jax.random.normal(ks[1], (c0,), jnp.float32)
    p["conv2_w"] = jax.random.normal(ks[2], (c0, c0, 3, 3), jnp.float32) / jnp.sqrt(c0 * 9.0)
    p["conv2_b"] = 0.01 * jax.random.normal(ks[3], (c0,), jnp.float32)
    p["bn_gamma"] = 1.0 + 0.1 * jax.random.normal(ks[4], (c0,), jnp.float32)
    p["bn_beta"] = 0.1 * jax.random.normal(ks[5], (c0,), jnp.float32)
    p["bn_mean"] = 0.1 * jax.random.normal(ks[6], (c0,), jnp.float32)
    p["bn_var"] = jax.random.uniform(ks[7], (c0,), jnp.float32, minval=0.5, maxval=1.5)
    p["fc1_w"] = jax.random.normal(ks[8], (fc_size, fc_in), jnp.float32) / jnp.sqrt(float(fc_in))
    p["fc1_b"] = 0.01 * jax.random.normal(ks[9], (fc_size,), jnp.float32)
    p["fc2_w"] = jax.random.normal(ks[10], (N_CLASSES, fc_size), jnp.float32) / jnp.sqrt(float(fc_size))
    p["fc2_b"] = 0.01 * jax.random.normal(ks[11], (N_CLASSES,), jnp.float32)
    return p


def reference_forward(x_nchw, p):
    hi = jax.lax.Precision.HIGHEST
    dn = ("NCHW", "OIHW", "NCHW")
    y = jax.lax.conv_general_dilated(x_nchw, p["conv1_w"], (1, 1), "SAME",
                                     dimension_numbers=dn, precision=hi)
    y = jnp.maximum(y + p["conv1_b"][None, :, None, None], 0.0)
    y = jax.lax.conv_general_dilated(y, p["conv2_w"], (1, 1), "SAME",
                                     dimension_numbers=dn, precision=hi)
    scale = p["bn_gamma"] / jnp.sqrt(p["bn_var"] + BN_EPS)
    y = ((y + p["conv2_b"][None, :, None, None] - p["bn_mean"][None, :, None, None])
         * scale[None, :, None, None] + p["bn_beta"][None, :, None, None])
    y = jnp.maximum(y, 0.0)
    B, C, H, W = y.shape
    y = y.reshape(B, C, H // 2, 2, W // 2, 2).max(axis=(3, 5))
    flat = y.reshape(B, -1)                                     # torch x.view(B, -1)
    h = jnp.maximum(jnp.dot(flat, p["fc1_w"].T, precision=hi) + p["fc1_b"], 0.0)
    logits = jnp.dot(h, p["fc2_w"].T, precision=hi) + p["fc2_b"]
    return jax.nn.log_softmax(logits, axis=1)


if __name__ == "__main__":
    key = jax.random.PRNGKey(0)
    pkey, xkey = jax.random.split(key)
    params = init_params(pkey)

    # Classifier Linear(16*channels[2] = 2304, ...) forces 48*(H/2)*(W/2) == 2304,
    # i.e. (H/2)*(W/2) == 48.  Use H=16, W=12.
    B, H, W = 2, 16, 12
    prep = prepare_params(params, H=H, W=W)                     # one-time, off hot path
    x = jax.random.normal(xkey, (B, 3, H, W), jnp.float32)      # NCHW, as in PyTorch

    fwd = jax.jit(digital_vgg8_forward)
    out = jax.block_until_ready(fwd(x, prep))
    ref = reference_forward(x, params)

    assert out.shape == (B, N_CLASSES), out.shape
    assert bool(jnp.all(jnp.isfinite(out)))
    # log-softmax rows must exponentiate-sum to 1
    assert bool(jnp.allclose(jnp.sum(jnp.exp(out), axis=1), 1.0, atol=1e-4))
    assert bool(jnp.allclose(out, ref, rtol=2e-2, atol=2e-2))
    print("KERNEL_OK")
</pallas_src>

<mosaic_0001>
module attributes {stable_mosaic.version = 11 : i64} {
  func.func @_conv_pool_kernel(%arg0: i32, %arg1: memref<1x256x8xf32, #tpu.memory_space<vmem>>, %arg2: memref<9x8x128xf32, #tpu.memory_space<vmem>>, %arg3: memref<1x128xf32, #tpu.memory_space<vmem>>, %arg4: memref<9x128x128xf32, #tpu.memory_space<vmem>>, %arg5: memref<1x128xf32, #tpu.memory_space<vmem>>, %arg6: memref<1x128xf32, #tpu.memory_space<vmem>>, %arg7: memref<1x48x128xf32, #tpu.memory_space<vmem>>, %arg8: memref<256x128xf32, #tpu.memory_space<vmem>>, %arg9: memref<224x128xf32, #tpu.memory_space<vmem>>) attributes {dimension_semantics = [#tpu.dimension_semantics<parallel>], iteration_bounds = array<i64: 2>, scalar_prefetch = 0 : i64, scratch_operands = 2 : i64, tpu.core_type = #tpu.core_type<tc>, window_params = [{transform_indices = @transform_0, window_bounds = array<i64: 1, 256, 8>}, {pipeline_mode = #tpu.pipeline_mode<synchronous>, transform_indices = @transform_1, window_bounds = array<i64: 9, 8, 128>}, {pipeline_mode = #tpu.pipeline_mode<synchronous>, transform_indices = @transform_2, window_bounds = array<i64: 1, 128>}, {pipeline_mode = #tpu.pipeline_mode<synchronous>, transform_indices = @transform_3, window_bounds = array<i64: 9, 128, 128>}, {pipeline_mode = #tpu.pipeline_mode<synchronous>, transform_indices = @transform_4, window_bounds = array<i64: 1, 128>}, {pipeline_mode = #tpu.pipeline_mode<synchronous>, transform_indices = @transform_5, window_bounds = array<i64: 1, 128>}, {transform_indices = @transform_6, window_bounds = array<i64: 1, 48, 128>}]} {
    %c0 = arith.constant 0 : index
    %c1 = arith.constant 1 : index
    %c0_0 = arith.constant 0 : index
    %0 = vector.load %arg1[%c0, %c1, %c0_0] : memref<1x256x8xf32, #tpu.memory_space<vmem>>, vector<1x224x8xf32>
    %1 = vector.shape_cast %0 : vector<1x224x8xf32> to vector<224x8xf32>
    %c0_1 = arith.constant 0 : index
    %c0_2 = arith.constant 0 : index
    %c0_3 = arith.constant 0 : index
    %2 = vector.load %arg2[%c0_1, %c0_2, %c0_3] : memref<9x8x128xf32, #tpu.memory_space<vmem>>, vector<1x8x128xf32>
    %3 = vector.shape_cast %2 : vector<1x8x128xf32> to vector<8x128xf32>
    %cst = arith.constant dense<0.000000e+00> : vector<224x128xf32>
    %4 = tpu.matmul %1, %3, %cst {dimension_numbers = #tpu.dot_dimension_numbers<[1], [0], [0], [1], [0, 0, 1, 1], [], []>} : vector<224x8xf32>, vector<8x128xf32>, vector<224x128xf32> -> vector<224x128xf32>
    %c0_4 = arith.constant 0 : index
    %c0_5 = arith.constant 0 : index
    %5 = vector.load %arg9[%c0_4, %c0_5] : memref<224x128xf32, #tpu.memory_space<vmem>>, vector<224x128xf32>
    tpu.vector_store %arg9[%c0_4, %c0_5], %4 {strides = array<i32>} : memref<224x128xf32, #tpu.memory_space<vmem>>, vector<224x128xf32>,
    %c0_6 = arith.constant 0 : index
    %c0_7 = arith.constant 0 : index
    %6 = vector.load %arg9[%c0_6, %c0_7] : memref<224x128xf32, #tpu.memory_space<vmem>>, vector<224x128xf32>
    %c0_8 = arith.constant 0 : index
    %c2 = arith.constant 2 : index
    %c0_9 = arith.constant 0 : index
    %7 = vector.load %arg1[%c0_8, %c2, %c0_9] : memref<1x256x8xf32, #tpu.memory_space<vmem>>, vector<1x224x8xf32>
    %8 = vector.shape_cast %7 : vector<1x224x8xf32> to vector<224x8xf32>
    %c1_10 = arith.constant 1 : index
    %c0_11 = arith.constant 0 : index
    %c0_12 = arith.constant 0 : index
    %9 = vector.load %arg2[%c1_10, %c0_11, %c0_12] : memref<9x8x128xf32, #tpu.memory_space<vmem>>, vector<1x8x128xf32>
    %10 = vector.shape_cast %9 : vector<1x8x128xf32> to vector<8x128xf32>
    %cst_13 = arith.constant dense<0.000000e+00> : vector<224x128xf32>
    %11 = tpu.matmul %8, %10, %cst_13 {dimension_numbers = #tpu.dot_dimension_numbers<[1], [0], [0], [1], [0, 0, 1, 1], [], []>} : vector<224x8xf32>, vector<8x128xf32>, vector<224x128xf32> -> vector<224x128xf32>
    %12 = arith.addf %6, %11 : vector<224x128xf32>
    %c0_14 = arith.constant 0 : index
    %c0_15 = arith.constant 0 : index
    %13 = vector.load %arg9[%c0_14, %c0_15] : memref<224x128xf32, #tpu.memory_space<vmem>>, vector<224x128xf32>
    tpu.vector_store %arg9[%c0_14, %c0_15], %12 {strides = array<i32>} : memref<224x128xf32, #tpu.memory_space<vmem>>, vector<224x128xf32>,
    %c0_16 = arith.constant 0 : index
    %c0_17 = arith.constant 0 : index
    %14 = vector.load %arg9[%c0_16, %c0_17] : memref<224x128xf32, #tpu.memory_space<vmem>>, vector<224x128xf32>
    %c0_18 = arith.constant 0 : index
    %c3 = arith.constant 3 : index
    %c0_19 = arith.constant 0 : index
    %15 = vector.load %arg1[%c0_18, %c3, %c0_19] : memref<1x256x8xf32, #tpu.memory_space<vmem>>, vector<1x224x8xf32>
    %16 = vector.shape_cast %15 : vector<1x224x8xf32> to vector<224x8xf32>
    %c2_20 = arith.constant 2 : index
    %c0_21 = arith.constant 0 : index
    %c0_22 = arith.constant 0 : index
    %17 = vector.load %arg2[%c2_20, %c0_21, %c0_22] : memref<9x8x128xf32, #tpu.memory_space<vmem>>, vector<1x8x128xf32>
    %18 = vector.shape_cast %17 : vector<1x8x128xf32> to vector<8x128xf32>
    %cst_23 = arith.constant dense<0.000000e+00> : vector<224x128xf32>
    %19 = tpu.matmul %16, %18, %cst_23 {dimension_numbers = #tpu.dot_dimension_numbers<[1], [0], [0], [1], [0, 0, 1, 1], [], []>} : vector<224x8xf32>, vector<8x128xf32>, vector<224x128xf32> -> vector<224x128xf32>
    %20 = arith.addf %14, %19 : vector<224x128xf32>
    %c0_24 = arith.constant 0 : index
    %c0_25 = arith.constant 0 : index
    %21 = vector.load %arg9[%c0_24, %c0_25] : memref<224x128xf32, #tpu.memory_space<vmem>>, vector<224x128xf32>
    tpu.vector_store %arg9[%c0_24, %c0_25], %20 {strides = array<i32>} : memref<224x128xf32, #tpu.memory_space<vmem>>, vector<224x128xf32>,
    %c0_26 = arith.constant 0 : index
    %c0_27 = arith.constant 0 : index
    %22 = vector.load %arg9[%c0_26, %c0_27] : memref<224x128xf32, #tpu.memory_space<vmem>>, vector<224x128xf32>
    %c0_28 = arith.constant 0 : index
    %c15 = arith.constant 15 : index
    %c0_29 = arith.constant 0 : index
    %23 = vector.load %arg1[%c0_28, %c15, %c0_29] : memref<1x256x8xf32, #tpu.memory_space<vmem>>, vector<1x224x8xf32>
    %24 = vector.shape_cast %23 : vector<1x224x8xf32> to vector<224x8xf32>
    %c3_30 = arith.constant 3 : index
    %c0_31 = arith.constant 0 : index
    %c0_32 = arith.constant 0 : index
    %25 = vector.load %arg2[%c3_30, %c0_31, %c0_32] : memref<9x8x128xf32, #tpu.memory_space<vmem>>, vector<1x8x128xf32>
    %26 = vector.shape_cast %25 : vector<1x8x128xf32> to vector<8x128xf32>
    %cst_33 = arith.constant dense<0.000000e+00> : vector<224x128xf32>
    %27 = tpu.matmul %24, %26, %cst_33 {dimension_numbers = #tpu.dot_dimension_numbers<[1], [0], [0], [1], [0, 0, 1, 1], [], []>} : vector<224x8xf32>, vector<8x128xf32>, vector<224x128xf32> -> vector<224x128xf32>
    %28 = arith.addf %22, %27 : vector<224x128xf32>
    %c0_34 = arith.constant 0 : index
    %c0_35 = arith.constant 0 : index
    %29 = vector.load %arg9[%c0_34, %c0_35] : memref<224x128xf32, #tpu.memory_space<vmem>>, vector<224x128xf32>
    tpu.vector_store %arg9[%c0_34, %c0_35], %28 {strides = array<i32>} : memref<224x128xf32, #tpu.memory_space<vmem>>, vector<224x128xf32>,
    %c0_36 = arith.constant 0 : index
    %c0_37 = arith.constant 0 : index
    %30 = vector.load %arg9[%c0_36, %c0_37] : memref<224x128xf32, #tpu.memory_space<vmem>>, vector<224x128xf32>
    %c0_38 = arith.constant 0 : index
    %c16 = arith.constant 16 : index
    %c0_39 = arith.constant 0 : index
    %31 = vector.load %arg1[%c0_38, %c16, %c0_39] : memref<1x256x8xf32, #tpu.memory_space<vmem>>, vector<1x224x8xf32>
    %32 = vector.shape_cast %31 : vector<1x224x8xf32> to vector<224x8xf32>
    %c4 = arith.constant 4 : index
    %c0_40 = arith.constant 0 : index
    %c0_41 = arith.constant 0 : index
    %33 = vector.load %arg2[%c4, %c0_40, %c0_41] : memref<9x8x128xf32, #tpu.memory_space<vmem>>, vector<1x8x128xf32>
    %34 = vector.shape_cast %33 : vector<1x8x128xf32> to vector<8x128xf32>
    %cst_42 = arith.constant dense<0.000000e+00> : vector<224x128xf32>
    %35 = tpu.matmul %32, %34, %cst_42 {dimension_numbers = #tpu.dot_dimension_numbers<[1], [0], [0], [1], [0, 0, 1, 1], [], []>} : vector<224x8xf32>, vector<8x128xf32>, vector<224x128xf32> -> vector<224x128xf32>
    %36 = arith.addf %30, %35 : vector<224x128xf32>
    %c0_43 = arith.constant 0 : index
    %c0_44 = arith.constant 0 : index
    %37 = vector.load %arg9[%c0_43, %c0_44] : memref<224x128xf32, #tpu.memory_space<vmem>>, vector<224x128xf32>
    tpu.vector_store %arg9[%c0_43, %c0_44], %36 {strides = array<i32>} : memref<224x128xf32, #tpu.memory_space<vmem>>, vector<224x128xf32>,
    %c0_45 = arith.constant 0 : index
    %c0_46 = arith.constant 0 : index
    %38 = vector.load %arg9[%c0_45, %c0_46] : memref<224x128xf32, #tpu.memory_space<vmem>>, vector<224x128xf32>
    %c0_47 = arith.constant 0 : index
    %c17 = arith.constant 17 : index
    %c0_48 = arith.constant 0 : index
    %39 = vector.load %arg1[%c0_47, %c17, %c0_48] : memref<1x256x8xf32, #tpu.memory_space<vmem>>, vector<1x224x8xf32>
    %40 = vector.shape_cast %39 : vector<1x224x8xf32> to vector<224x8xf32>
    %c5 = arith.constant 5 : index
    %c0_49 = arith.constant 0 : index
    %c0_50 = arith.constant 0 : index
    %41 = vector.load %arg2[%c5, %c0_49, %c0_50] : memref<9x8x128xf32, #tpu.memory_space<vmem>>, vector<1x8x128xf32>
    %42 = vector.shape_cast %41 : vector<1x8x128xf32> to vector<8x128xf32>
    %cst_51 = arith.constant dense<0.000000e+00> : vector<224x128xf32>
    %43 = tpu.matmul %40, %42, %cst_51 {dimension_numbers = #tpu.dot_dimension_numbers<[1], [0], [0], [1], [0, 0, 1, 1], [], []>} : vector<224x8xf32>, vector<8x128xf32>, vector<224x128xf32> -> vector<224x128xf32>
    %44 = arith.addf %38, %43 : vector<224x128xf32>
    %c0_52 = arith.constant 0 : index
    %c0_53 = arith.constant 0 : index
    %45 = vector.load %arg9[%c0_52, %c0_53] : memref<224x128xf32, #tpu.memory_space<vmem>>, vector<224x128xf32>
    tpu.vector_store %arg9[%c0_52, %c0_53], %44 {strides = array<i32>} : memref<224x128xf32, #tpu.memory_space<vmem>>, vector<224x128xf32>,
    %c0_54 = arith.constant 0 : index
    %c0_55 = arith.constant 0 : index
    %46 = vector.load %arg9[%c0_54, %c0_55] : memref<224x128xf32, #tpu.memory_space<vmem>>, vector<224x128xf32>
    %c0_56 = arith.constant 0 : index
    %c29 = arith.constant 29 : index
    %c0_57 = arith.constant 0 : index
    %47 = vector.load %arg1[%c0_56, %c29, %c0_57] : memref<1x256x8xf32, #tpu.memory_space<vmem>>, vector<1x224x8xf32>
    %48 = vector.shape_cast %47 : vector<1x224x8xf32> to vector<224x8xf32>
    %c6 = arith.constant 6 : index
    %c0_58 = arith.constant 0 : index
    %c0_59 = arith.constant 0 : index
    %49 = vector.load %arg2[%c6, %c0_58, %c0_59] : memref<9x8x128xf32, #tpu.memory_space<vmem>>, vector<1x8x128xf32>
    %50 = vector.shape_cast %49 : vector<1x8x128xf32> to vector<8x128xf32>
    %cst_60 = arith.constant dense<0.000000e+00> : vector<224x128xf32>
    %51 = tpu.matmul %48, %50, %cst_60 {dimension_numbers = #tpu.dot_dimension_numbers<[1], [0], [0], [1], [0, 0, 1, 1], [], []>} : vector<224x8xf32>, vector<8x128xf32>, vector<224x128xf32> -> vector<224x128xf32>
    %52 = arith.addf %46, %51 : vector<224x128xf32>
    %c0_61 = arith.constant 0 : index
    %c0_62 = arith.constant 0 : index
    %53 = vector.load %arg9[%c0_61, %c0_62] : memref<224x128xf32, #tpu.memory_space<vmem>>, vector<224x128xf32>
    tpu.vector_store %arg9[%c0_61, %c0_62], %52 {strides = array<i32>} : memref<224x128xf32, #tpu.memory_space<vmem>>, vector<224x128xf32>,
    %c0_63 = arith.constant 0 : index
    %c0_64 = arith.constant 0 : index
    %54 = vector.load %arg9[%c0_63, %c0_64] : memref<224x128xf32, #tpu.memory_space<vmem>>, vector<224x128xf32>
    %c0_65 = arith.constant 0 : index
    %c30 = arith.constant 30 : index
    %c0_66 = arith.constant 0 : index
    %55 = vector.load %arg1[%c0_65, %c30, %c0_66] : memref<1x256x8xf32, #tpu.memory_space<vmem>>, vector<1x224x8xf32>
    %56 = vector.shape_cast %55 : vector<1x224x8xf32> to vector<224x8xf32>
    %c7 = arith.constant 7 : index
    %c0_67 = arith.constant 0 : index
    %c0_68 = arith.constant 0 : index
    %57 = vector.load %arg2[%c7, %c0_67, %c0_68] : memref<9x8x128xf32, #tpu.memory_space<vmem>>, vector<1x8x128xf32>
    %58 = vector.shape_cast %57 : vector<1x8x128xf32> to vector<8x128xf32>
    %cst_69 = arith.constant dense<0.000000e+00> : vector<224x128xf32>
    %59 = tpu.matmul %56, %58, %cst_69 {dimension_numbers = #tpu.dot_dimension_numbers<[1], [0], [0], [1], [0, 0, 1, 1], [], []>} : vector<224x8xf32>, vector<8x128xf32>, vector<224x128xf32> -> vector<224x128xf32>
    %60 = arith.addf %54, %59 : vector<224x128xf32>
    %c0_70 = arith.constant 0 : index
    %c0_71 = arith.constant 0 : index
    %61 = vector.load %arg9[%c0_70, %c0_71] : memref<224x128xf32, #tpu.memory_space<vmem>>, vector<224x128xf32>
    tpu.vector_store %arg9[%c0_70, %c0_71], %60 {strides = array<i32>} : memref<224x128xf32, #tpu.memory_space<vmem>>, vector<224x128xf32>,
    %c0_72 = arith.constant 0 : index
    %c0_73 = arith.constant 0 : index
    %62 = vector.load %arg9[%c0_72, %c0_73] : memref<224x128xf32, #tpu.memory_space<vmem>>, vector<224x128xf32>
    %c0_74 = arith.constant 0 : index
    %c31 = arith.constant 31 : index
    %c0_75 = arith.constant 0 : index
    %63 = vector.load %arg1[%c0_74, %c31, %c0_75] : memref<1x256x8xf32, #tpu.memory_space<vmem>>, vector<1x224x8xf32>
    %64 = vector.shape_cast %63 : vector<1x224x8xf32> to vector<224x8xf32>
    %c8 = arith.constant 8 : index
    %c0_76 = arith.constant 0 : index
    %c0_77 = arith.constant 0 : index
    %65 = vector.load %arg2[%c8, %c0_76, %c0_77] : memref<9x8x128xf32, #tpu.memory_space<vmem>>, vector<1x8x128xf32>
    %66 = vector.shape_cast %65 : vector<1x8x128xf32> to vector<8x128xf32>
    %cst_78 = arith.constant dense<0.000000e+00> : vector<224x128xf32>
    %67 = tpu.matmul %64, %66, %cst_78 {dimension_numbers = #tpu.dot_dimension_numbers<[1], [0], [0], [1], [0, 0, 1, 1], [], []>} : vector<224x8xf32>, vector<8x128xf32>, vector<224x128xf32> -> vector<224x128xf32>
    %68 = arith.addf %62, %67 : vector<224x128xf32>
    %c0_79 = arith.constant 0 : index
    %c0_80 = arith.constant 0 : index
    %69 = vector.load %arg9[%c0_79, %c0_80] : memref<224x128xf32, #tpu.memory_space<vmem>>, vector<224x128xf32>
    tpu.vector_store %arg9[%c0_79, %c0_80], %68 {strides = array<i32>} : memref<224x128xf32, #tpu.memory_space<vmem>>, vector<224x128xf32>,
    %c0_81 = arith.constant 0 : index
    %c0_82 = arith.constant 0 : index
    %70 = vector.load %arg9[%c0_81, %c0_82] : memref<224x128xf32, #tpu.memory_space<vmem>>, vector<224x128xf32>
    %c0_83 = arith.constant 0 : index
    %c0_84 = arith.constant 0 : index
    %71 = vector.load %arg3[%c0_83, %c0_84] : memref<1x128xf32, #tpu.memory_space<vmem>>, vector<1x128xf32>
    %72 = vector.broadcast %71 : vector<1x128xf32> to vector<224x128xf32>
    %73 = arith.addf %70, %72 : vector<224x128xf32>
    %cst_85 = arith.constant 0.000000e+00 : f32
    %74 = vector.broadcast %cst_85 : f32 to vector<224x128xf32>
    %75 = arith.maximumf %73, %74 : vector<224x128xf32>
    %cst_86 = arith.constant 0.000000e+00 : f32
    %76 = vector.broadcast %cst_86 : f32 to vector<16x128xf32>
    %c0_87 = arith.constant 0 : index
    %c0_88 = arith.constant 0 : index
    %77 = vector.load %arg8[%c0_87, %c0_88] : memref<256x128xf32, #tpu.memory_space<vmem>>, vector<16x128xf32>
    tpu.vector_store %arg8[%c0_87, %c0_88], %76 {strides = array<i32>} : memref<256x128xf32, #tpu.memory_space<vmem>>, vector<16x128xf32>,
    %cst_89 = arith.constant 0.000000e+00 : f32
    %78 = vector.broadcast %cst_89 : f32 to vector<16x128xf32>
    %c240 = arith.constant 240 : index
    %c0_90 = arith.constant 0 : index
    %79 = vector.load %arg8[%c240, %c0_90] : memref<256x128xf32, #tpu.memory_space<vmem>>, vector<16x128xf32>
    tpu.vector_store %arg8[%c240, %c0_90], %78 {strides = array<i32>} : memref<256x128xf32, #tpu.memory_space<vmem>>, vector<16x128xf32>,
    %c16_91 = arith.constant 16 : index
    %c0_92 = arith.constant 0 : index
    %80 = vector.load %arg8[%c16_91, %c0_92] : memref<256x128xf32, #tpu.memory_space<vmem>>, vector<224x128xf32>
    tpu.vector_store %arg8[%c16_91, %c0_92], %75 {strides = array<i32>} : memref<256x128xf32, #tpu.memory_space<vmem>>, vector<224x128xf32>,
    %cst_93 = arith.constant 0.000000e+00 : f32
    %81 = vector.broadcast %cst_93 : f32 to vector<1x128xf32>
    %cst_94 = arith.constant 0.000000e+00 : f32
    %82 = vector.broadcast %cst_94 : f32 to vector<2x128xf32>
    %c16_95 = arith.constant 16 : index
    %c0_96 = arith.constant 0 : index
    %83 = vector.load %arg8[%c16_95, %c0_96] : memref<256x128xf32, #tpu.memory_space<vmem>>, vector<1x128xf32>
    tpu.vector_store %arg8[%c16_95, %c0_96], %81 {strides = array<i32>} : memref<256x128xf32, #tpu.memory_space<vmem>>, vector<1x128xf32>,
    %c29_97 = arith.constant 29 : index
    %c0_98 = arith.constant 0 : index
    %84 = vector.load %arg8[%c29_97, %c0_98] : memref<256x128xf32, #tpu.memory_space<vmem>>, vector<2x128xf32>
    tpu.vector_store %arg8[%c29_97, %c0_98], %82 {strides = array<i32>} : memref<256x128xf32, #tpu.memory_space<vmem>>, vector<2x128xf32>,
    %c43 = arith.constant 43 : index
    %c0_99 = arith.constant 0 : index
    %85 = vector.load %arg8[%c43, %c0_99] : memref<256x128xf32, #tpu.memory_space<vmem>>, vector<2x128xf32>
    tpu.vector_store %arg8[%c43, %c0_99], %82 {strides = array<i32>} : memref<256x128xf32, #tpu.memory_space<vmem>>, vector<2x128xf32>,
    %c57 = arith.constant 57 : index
    %c0_100 = arith.constant 0 : index
    %86 = vector.load %arg8[%c57, %c0_100] : memref<256x128xf32, #tpu.memory_space<vmem>>, vector<2x128xf32>
    tpu.vector_store %arg8[%c57, %c0_100], %82 {strides = array<i32>} : memref<256x128xf32, #tpu.memory_space<vmem>>, vector<2x128xf32>,
    %c71 = arith.constant 71 : index
    %c0_101 = arith.constant 0 : index
    %87 = vector.load %arg8[%c71, %c0_101] : memref<256x128xf32, #tpu.memory_space<vmem>>, vector<2x128xf32>
    tpu.vector_store %arg8[%c71, %c0_101], %82 {strides = array<i32>} : memref<256x128xf32, #tpu.memory_space<vmem>>, vector<2x128xf32>,
    %c85 = arith.constant 85 : index
    %c0_102 = arith.constant 0 : index
    %88 = vector.load %arg8[%c85, %c0_102] : memref<256x128xf32, #tpu.memory_space<vmem>>, vector<2x128xf32>
    tpu.vector_store %arg8[%c85, %c0_102], %82 {strides = array<i32>} : memref<256x128xf32, #tpu.memory_space<vmem>>, vector<2x128xf32>,
    %c99 = arith.constant 99 : index
    %c0_103 = arith.constant 0 : index
    %89 = vector.load %arg8[%c99, %c0_103] : memref<256x128xf32, #tpu.memory_space<vmem>>, vector<2x128xf32>
    tpu.vector_store %arg8[%c99, %c0_103], %82 {strides = array<i32>} : memref<256x128xf32, #tpu.memory_space<vmem>>, vector<2x128xf32>,
    %c113 = arith.constant 113 : index
    %c0_104 = arith.constant 0 : index
    %90 = vector.load %arg8[%c113, %c0_104] : memref<256x128xf32, #tpu.memory_space<vmem>>, vector<2x128xf32>
    tpu.vector_store %arg8[%c113, %c0_104], %82 {strides = array<i32>} : memref<256x128xf32, #tpu.memory_space<vmem>>, vector<2x128xf32>,
    %c127 = arith.constant 127 : index
    %c0_105 = arith.constant 0 : index
    %91 = vector.load %arg8[%c127, %c0_105] : memref<256x128xf32, #tpu.memory_space<vmem>>, vector<2x128xf32>
    tpu.vector_store %arg8[%c127, %c0_105], %82 {strides = array<i32>} : memref<256x128xf32, #tpu.memory_space<vmem>>, vector<2x128xf32>,
    %c141 = arith.constant 141 : index
    %c0_106 = arith.constant 0 : index
    %92 = vector.load %arg8[%c141, %c0_106] : memref<256x128xf32, #tpu.memory_space<vmem>>, vector<2x128xf32>
    tpu.vector_store %arg8[%c141, %c0_106], %82 {strides = array<i32>} : memref<256x128xf32, #tpu.memory_space<vmem>>, vector<2x128xf32>,
    %c155 = arith.constant 155 : index
    %c0_107 = arith.constant 0 : index
    %93 = vector.load %arg8[%c155, %c0_107] : memref<256x128xf32, #tpu.memory_space<vmem>>, vector<2x128xf32>
    tpu.vector_store %arg8[%c155, %c0_107], %82 {strides = array<i32>} : memref<256x128xf32, #tpu.memory_space<vmem>>, vector<2x128xf32>,
    %c169 = arith.constant 169 : index
    %c0_108 = arith.constant 0 : index
    %94 = vector.load %arg8[%c169, %c0_108] : memref<256x128xf32, #tpu.memory_space<vmem>>, vector<2x128xf32>
    tpu.vector_store %arg8[%c169, %c0_108], %82 {strides = array<i32>} : memref<256x128xf32, #tpu.memory_space<vmem>>, vector<2x128xf32>,
    %c183 = arith.constant 183 : index
    %c0_109 = arith.constant 0 : index
    %95 = vector.load %arg8[%c183, %c0_109] : memref<256x128xf32, #tpu.memory_space<vmem>>, vector<2x128xf32>
    tpu.vector_store %arg8[%c183, %c0_109], %82 {strides = array<i32>} : memref<256x128xf32, #tpu.memory_space<vmem>>, vector<2x128xf32>,
    %c197 = arith.constant 197 : index
    %c0_110 = arith.constant 0 : index
    %96 = vector.load %arg8[%c197, %c0_110] : memref<256x128xf32, #tpu.memory_space<vmem>>, vector<2x128xf32>
    tpu.vector_store %arg8[%c197, %c0_110], %82 {strides = array<i32>} : memref<256x128xf32, #tpu.memory_space<vmem>>, vector<2x128xf32>,
    %c211 = arith.constant 211 : index
    %c0_111 = arith.constant 0 : index
    %97 = vector.load %arg8[%c211, %c0_111] : memref<256x128xf32, #tpu.memory_space<vmem>>, vector<2x128xf32>
    tpu.vector_store %arg8[%c211, %c0_111], %82 {strides = array<i32>} : memref<256x128xf32, #tpu.memory_space<vmem>>, vector<2x128xf32>,
    %c225 = arith.constant 225 : index
    %c0_112 = arith.constant 0 : index
    %98 = vector.load %arg8[%c225, %c0_112] : memref<256x128xf32, #tpu.memory_space<vmem>>, vector<2x128xf32>
    tpu.vector_store %arg8[%c225, %c0_112], %82 {strides = array<i32>} : memref<256x128xf32, #tpu.memory_space<vmem>>, vector<2x128xf32>,
    %c239 = arith.constant 239 : index
    %c0_113 = arith.constant 0 : index
    %99 = vector.load %arg8[%c239, %c0_113] : memref<256x128xf32, #tpu.memory_space<vmem>>, vector<1x128xf32>
    tpu.vector_store %arg8[%c239, %c0_113], %81 {strides = array<i32>} : memref<256x128xf32, #tpu.memory_space<vmem>>, vector<1x128xf32>,
    %c1_114 = arith.constant 1 : index
    %c0_115 = arith.constant 0 : index
    %100 = vector.load %arg8[%c1_114, %c0_115] : memref<256x128xf32, #tpu.memory_space<vmem>>, vector<224x128xf32>
    %c0_116 = arith.constant 0 : index
    %c0_117 = arith.constant 0 : index
    %c0_118 = arith.constant 0 : index
    %101 = vector.load %arg4[%c0_116, %c0_117, %c0_118] : memref<9x128x128xf32, #tpu.memory_space<vmem>>, vector<1x128x128xf32>
    %102 = vector.shape_cast %101 : vector<1x128x128xf32> to vector<128x128xf32>
    %cst_119 = arith.constant dense<0.000000e+00> : vector<224x128xf32>
    %103 = tpu.matmul %100, %102, %cst_119 {dimension_numbers = #tpu.dot_dimension_numbers<[1], [0], [0], [1], [0, 0, 1, 1], [], []>} : vector<224x128xf32>, vector<128x128xf32>, vector<224x128xf32> -> vector<224x128xf32>
    %c0_120 = arith.constant 0 : index
    %c0_121 = arith.constant 0 : index
    %104 = vector.load %arg9[%c0_120, %c0_121] : memref<224x128xf32, #tpu.memory_space<vmem>>, vector<224x128xf32>
    tpu.vector_store %arg9[%c0_120, %c0_121], %103 {strides = array<i32>} : memref<224x128xf32, #tpu.memory_space<vmem>>, vector<224x128xf32>,
    %c0_122 = arith.constant 0 : index
    %c0_123 = arith.constant 0 : index
    %105 = vector.load %arg9[%c0_122, %c0_123] : memref<224x128xf32, #tpu.memory_space<vmem>>, vector<224x128xf32>
    %c2_124 = arith.constant 2 : index
    %c0_125 = arith.constant 0 : index
    %106 = vector.load %arg8[%c2_124, %c0_125] : memref<256x128xf32, #tpu.memory_space<vmem>>, vector<224x128xf32>
    %c1_126 = arith.constant 1 : index
    %c0_127 = arith.constant 0 : index
    %c0_128 = arith.constant 0 : index
    %107 = vector.load %arg4[%c1_126, %c0_127, %c0_128] : memref<9x128x128xf32, #tpu.memory_space<vmem>>, vector<1x128x128xf32>
    %108 = vector.shape_cast %107 : vector<1x128x128xf32> to vector<128x128xf32>
    %cst_129 = arith.constant dense<0.000000e+00> : vector<224x128xf32>
    %109 = tpu.matmul %106, %108, %cst_129 {dimension_numbers = #tpu.dot_dimension_numbers<[1], [0], [0], [1], [0, 0, 1, 1], [], []>} : vector<224x128xf32>, vector<128x128xf32>, vector<224x128xf32> -> vector<224x128xf32>
    %110 = arith.addf %105, %109 : vector<224x128xf32>
    %c0_130 = arith.constant 0 : index
    %c0_131 = arith.constant 0 : index
    %111 = vector.load %arg9[%c0_130, %c0_131] : memref<224x128xf32, #tpu.memory_space<vmem>>, vector<224x128xf32>
    tpu.vector_store %arg9[%c0_130, %c0_131], %110 {strides = array<i32>} : memref<224x128xf32, #tpu.memory_space<vmem>>, vector<224x128xf32>,
    %c0_132 = arith.constant 0 : index
    %c0_133 = arith.constant 0 : index
    %112 = vector.load %arg9[%c0_132, %c0_133] : memref<224x128xf32, #tpu.memory_space<vmem>>, vector<224x128xf32>
    %c3_134 = arith.constant 3 : index
    %c0_135 = arith.constant 0 : index
    %113 = vector.load %arg8[%c3_134, %c0_135] : memref<256x128xf32, #tpu.memory_space<vmem>>, vector<224x128xf32>
    %c2_136 = arith.constant 2 : index
    %c0_137 = arith.constant 0 : index
    %c0_138 = arith.constant 0 : index
    %114 = vector.load %arg4[%c2_136, %c0_137, %c0_138] : memref<9x128x128xf32, #tpu.memory_space<vmem>>, vector<1x128x128xf32>
    %115 = vector.shape_cast %114 : vector<1x128x128xf32> to vector<128x128xf32>
    %cst_139 = arith.constant dense<0.000000e+00> : vector<224x128xf32>
    %116 = tpu.matmul %113, %115, %cst_139 {dimension_numbers = #tpu.dot_dimension_numbers<[1], [0], [0], [1], [0, 0, 1, 1], [], []>} : vector<224x128xf32>, vector<128x128xf32>, vector<224x128xf32> -> vector<224x128xf32>
    %117 = arith.addf %112, %116 : vector<224x128xf32>
    %c0_140 = arith.constant 0 : index
    %c0_141 = arith.constant 0 : index
    %118 = vector.load %arg9[%c0_140, %c0_141] : memref<224x128xf32, #tpu.memory_space<vmem>>, vector<224x128xf32>
    tpu.vector_store %arg9[%c0_140, %c0_141], %117 {strides = array<i32>} : memref<224x128xf32, #tpu.memory_space<vmem>>, vector<224x128xf32>,
    %c0_142 = arith.constant 0 : index
    %c0_143 = arith.constant 0 : index
    %119 = vector.load %arg9[%c0_142, %c0_143] : memref<224x128xf32, #tpu.memory_space<vmem>>, vector<224x128xf32>
    %c15_144 = arith.constant 15 : index
    %c0_145 = arith.constant 0 : index
    %120 = vector.load %arg8[%c15_144, %c0_145] : memref<256x128xf32, #tpu.memory_space<vmem>>, vector<224x128xf32>
    %c3_146 = arith.constant 3 : index
    %c0_147 = arith.constant 0 : index
    %c0_148 = arith.constant 0 : index
    %121 = vector.load %arg4[%c3_146, %c0_147, %c0_148] : memref<9x128x128xf32, #tpu.memory_space<vmem>>, vector<1x128x128xf32>
    %122 = vector.shape_cast %121 : vector<1x128x128xf32> to vector<128x128xf32>
    %cst_149 = arith.constant dense<0.000000e+00> : vector<224x128xf32>
    %123 = tpu.matmul %120, %122, %cst_149 {dimension_numbers = #tpu.dot_dimension_numbers<[1], [0], [0], [1], [0, 0, 1, 1], [], []>} : vector<224x128xf32>, vector<128x128xf32>, vector<224x128xf32> -> vector<224x128xf32>
    %124 = arith.addf %119, %123 : vector<224x128xf32>
    %c0_150 = arith.constant 0 : index
    %c0_151 = arith.constant 0 : index
    %125 = vector.load %arg9[%c0_150, %c0_151] : memref<224x128xf32, #tpu.memory_space<vmem>>, vector<224x128xf32>
    tpu.vector_store %arg9[%c0_150, %c0_151], %124 {strides = array<i32>} : memref<224x128xf32, #tpu.memory_space<vmem>>, vector<224x128xf32>,
    %c0_152 = arith.constant 0 : index
    %c0_153 = arith.constant 0 : index
    %126 = vector.load %arg9[%c0_152, %c0_153] : memref<224x128xf32, #tpu.memory_space<vmem>>, vector<224x128xf32>
    %c16_154 = arith.constant 16 : index
    %c0_155 = arith.constant 0 : index
    %127 = vector.load %arg8[%c16_154, %c0_155] : memref<256x128xf32, #tpu.memory_space<vmem>>, vector<224x128xf32>
    %c4_156 = arith.constant 4 : index
    %c0_157 = arith.constant 0 : index
    %c0_158 = arith.constant 0 : index
    %128 = vector.load %arg4[%c4_156, %c0_157, %c0_158] : memref<9x128x128xf32, #tpu.memory_space<vmem>>, vector<1x128x128xf32>
    %129 = vector.shape_cast %128 : vector<1x128x128xf32> to vector<128x128xf32>
    %cst_159 = arith.constant dense<0.000000e+00> : vector<224x128xf32>
    %130 = tpu.matmul %127, %129, %cst_159 {dimension_numbers = #tpu.dot_dimension_numbers<[1], [0], [0], [1], [0, 0, 1, 1], [], []>} : vector<224x128xf32>, vector<128x128xf32>, vector<224x128xf32> -> vector<224x128xf32>
    %131 = arith.addf %126, %130 : vector<224x128xf32>
    %c0_160 = arith.constant 0 : index
    %c0_161 = arith.constant 0 : index
    %132 = vector.load %arg9[%c0_160, %c0_161] : memref<224x128xf32, #tpu.memory_space<vmem>>, vector<224x128xf32>
    tpu.vector_store %arg9[%c0_160, %c0_161], %131 {strides = array<i32>} : memref<224x128xf32, #tpu.memory_space<vmem>>, vector<224x128xf32>,
    %c0_162 = arith.constant 0 : index
    %c0_163 = arith.constant 0 : index
    %133 = vector.load %arg9[%c0_162, %c0_163] : memref<224x128xf32, #tpu.memory_space<vmem>>, vector<224x128xf32>
    %c17_164 = arith.constant 17 : index
    %c0_165 = arith.constant 0 : index
    %134 = vector.load %arg8[%c17_164, %c0_165] : memref<256x128xf32, #tpu.memory_space<vmem>>, vector<224x128xf32>
    %c5_166 = arith.constant 5 : index
    %c0_167 = arith.constant 0 : index
    %c0_168 = arith.constant 0 : index
    %135 = vector.load %arg4[%c5_166, %c0_167, %c0_168] : memref<9x128x128xf32, #tpu.memory_space<vmem>>, vector<1x128x128xf32>
    %136 = vector.shape_cast %135 : vector<1x128x128xf32> to vector<128x128xf32>
    %cst_169 = arith.constant dense<0.000000e+00> : vector<224x128xf32>
    %137 = tpu.matmul %134, %136, %cst_169 {dimension_numbers = #tpu.dot_dimension_numbers<[1], [0], [0], [1], [0, 0, 1, 1], [], []>} : vector<224x128xf32>, vector<128x128xf32>, vector<224x128xf32> -> vector<224x128xf32>
    %138 = arith.addf %133, %137 : vector<224x128xf32>
    %c0_170 = arith.constant 0 : index
    %c0_171 = arith.constant 0 : index
    %139 = vector.load %arg9[%c0_170, %c0_171] : memref<224x128xf32, #tpu.memory_space<vmem>>, vector<224x128xf32>
    tpu.vector_store %arg9[%c0_170, %c0_171], %138 {strides = array<i32>} : memref<224x128xf32, #tpu.memory_space<vmem>>, vector<224x128xf32>,
    %c0_172 = arith.constant 0 : index
    %c0_173 = arith.constant 0 : index
    %140 = vector.load %arg9[%c0_172, %c0_173] : memref<224x128xf32, #tpu.memory_space<vmem>>, vector<224x128xf32>
    %c29_174 = arith.constant 29 : index
    %c0_175 = arith.constant 0 : index
    %141 = vector.load %arg8[%c29_174, %c0_175] : memref<256x128xf32, #tpu.memory_space<vmem>>, vector<224x128xf32>
    %c6_176 = arith.constant 6 : index
    %c0_177 = arith.constant 0 : index
    %c0_178 = arith.constant 0 : index
    %142 = vector.load %arg4[%c6_176, %c0_177, %c0_178] : memref<9x128x128xf32, #tpu.memory_space<vmem>>, vector<1x128x128xf32>
    %143 = vector.shape_cast %142 : vector<1x128x128xf32> to vector<128x128xf32>
    %cst_179 = arith.constant dense<0.000000e+00> : vector<224x128xf32>
    %144 = tpu.matmul %141, %143, %cst_179 {dimension_numbers = #tpu.dot_dimension_numbers<[1], [0], [0], [1], [0, 0, 1, 1], [], []>} : vector<224x128xf32>, vector<128x128xf32>, vector<224x128xf32> -> vector<224x128xf32>
    %145 = arith.addf %140, %144 : vector<224x128xf32>
    %c0_180 = arith.constant 0 : index
    %c0_181 = arith.constant 0 : index
    %146 = vector.load %arg9[%c0_180, %c0_181] : memref<224x128xf32, #tpu.memory_space<vmem>>, vector<224x128xf32>
    tpu.vector_store %arg9[%c0_180, %c0_181], %145 {strides = array<i32>} : memref<224x128xf32, #tpu.memory_space<vmem>>, vector<224x128xf32>,
    %c0_182 = arith.constant 0 : index
    %c0_183 = arith.constant 0 : index
    %147 = vector.load %arg9[%c0_182, %c0_183] : memref<224x128xf32, #tpu.memory_space<vmem>>, vector<224x128xf32>
    %c30_184 = arith.constant 30 : index
    %c0_185 = arith.constant 0 : index
    %148 = vector.load %arg8[%c30_184, %c0_185] : memref<256x128xf32, #tpu.memory_space<vmem>>, vector<224x128xf32>
    %c7_186 = arith.constant 7 : index
    %c0_187 = arith.constant 0 : index
    %c0_188 = arith.constant 0 : index
    %149 = vector.load %arg4[%c7_186, %c0_187, %c0_188] : memref<9x128x128xf32, #tpu.memory_space<vmem>>, vector<1x128x128xf32>
    %150 = vector.shape_cast %149 : vector<1x128x128xf32> to vector<128x128xf32>
    %cst_189 = arith.constant dense<0.000000e+00> : vector<224x128xf32>
    %151 = tpu.matmul %148, %150, %cst_189 {dimension_numbers = #tpu.dot_dimension_numbers<[1], [0], [0], [1], [0, 0, 1, 1], [], []>} : vector<224x128xf32>, vector<128x128xf32>, vector<224x128xf32> -> vector<224x128xf32>
    %152 = arith.addf %147, %151 : vector<224x128xf32>
    %c0_190 = arith.constant 0 : index
    %c0_191 = arith.constant 0 : index
    %153 = vector.load %arg9[%c0_190, %c0_191] : memref<224x128xf32, #tpu.memory_space<vmem>>, vector<224x128xf32>
    tpu.vector_store %arg9[%c0_190, %c0_191], %152 {strides = array<i32>} : memref<224x128xf32, #tpu.memory_space<vmem>>, vector<224x128xf32>,
    %c0_192 = arith.constant 0 : index
    %c0_193 = arith.constant 0 : index
    %154 = vector.load %arg9[%c0_192, %c0_193] : memref<224x128xf32, #tpu.memory_space<vmem>>, vector<224x128xf32>
    %c31_194 = arith.constant 31 : index
    %c0_195 = arith.constant 0 : index
    %155 = vector.load %arg8[%c31_194, %c0_195] : memref<256x128xf32, #tpu.memory_space<vmem>>, vector<224x128xf32>
    %c8_196 = arith.constant 8 : index
    %c0_197 = arith.constant 0 : index
    %c0_198 = arith.constant 0 : index
    %156 = vector.load %arg4[%c8_196, %c0_197, %c0_198] : memref<9x128x128xf32, #tpu.memory_space<vmem>>, vector<1x128x128xf32>
    %157 = vector.shape_cast %156 : vector<1x128x128xf32> to vector<128x128xf32>
    %cst_199 = arith.constant dense<0.000000e+00> : vector<224x128xf32>
    %158 = tpu.matmul %155, %157, %cst_199 {dimension_numbers = #tpu.dot_dimension_numbers<[1], [0], [0], [1], [0, 0, 1, 1], [], []>} : vector<224x128xf32>, vector<128x128xf32>, vector<224x128xf32> -> vector<224x128xf32>
    %159 = arith.addf %154, %158 : vector<224x128xf32>
    %c0_200 = arith.constant 0 : index
    %c0_201 = arith.constant 0 : index
    %160 = vector.load %arg9[%c0_200, %c0_201] : memref<224x128xf32, #tpu.memory_space<vmem>>, vector<224x128xf32>
    tpu.vector_store %arg9[%c0_200, %c0_201], %159 {strides = array<i32>} : memref<224x128xf32, #tpu.memory_space<vmem>>, vector<224x128xf32>,
    %c0_202 = arith.constant 0 : index
    %c0_203 = arith.constant 0 : index
    %161 = vector.load %arg9[%c0_202, %c0_203] : memref<224x128xf32, #tpu.memory_space<vmem>>, vector<224x128xf32>
    %c0_204 = arith.constant 0 : index
    %c0_205 = arith.constant 0 : index
    %162 = vector.load %arg5[%c0_204, %c0_205] : memref<1x128xf32, #tpu.memory_space<vmem>>, vector<1x128xf32>
    %163 = vector.broadcast %162 : vector<1x128xf32> to vector<224x128xf32>
    %164 = arith.mulf %161, %163 : vector<224x128xf32>
    %c0_206 = arith.constant 0 : index
    %c0_207 = arith.constant 0 : index
    %165 = vector.load %arg6[%c0_206, %c0_207] : memref<1x128xf32, #tpu.memory_space<vmem>>, vector<1x128xf32>
    %166 = vector.broadcast %165 : vector<1x128xf32> to vector<224x128xf32>
    %167 = arith.addf %164, %166 : vector<224x128xf32>
    %cst_208 = arith.constant 0.000000e+00 : f32
    %168 = vector.broadcast %cst_208 : f32 to vector<224x128xf32>
    %169 = arith.maximumf %167, %168 : vector<224x128xf32>
    %c0_209 = arith.constant 0 : index
    %c0_210 = arith.constant 0 : index
    %170 = vector.load %arg9[%c0_209, %c0_210] : memref<224x128xf32, #tpu.memory_space<vmem>>, vector<224x128xf32>
    tpu.vector_store %arg9[%c0_209, %c0_210], %169 {strides = array<i32>} : memref<224x128xf32, #tpu.memory_space<vmem>>, vector<224x128xf32>,
    %c1_211 = arith.constant 1 : index
    %c0_212 = arith.constant 0 : index
    %171 = tpu.strided_load %arg9[%c1_211, %c0_212] {strides = array<i32: 2, 1>} : memref<224x128xf32, #tpu.memory_space<vmem>>, vector<6x128xf32>
    %c2_213 = arith.constant 2 : index
    %c0_214 = arith.constant 0 : index
    %172 = tpu.strided_load %arg9[%c2_213, %c0_214] {strides = array<i32: 2, 1>} : memref<224x128xf32, #tpu.memory_space<vmem>>, vector<6x128xf32>
    %c15_215 = arith.constant 15 : index
    %c0_216 = arith.constant 0 : index
    %173 = tpu.strided_load %arg9[%c15_215, %c0_216] {strides = array<i32: 2, 1>} : memref<224x128xf32, #tpu.memory_space<vmem>>, vector<6x128xf32>
    %c16_217 = arith.constant 16 : index
    %c0_218 = arith.constant 0 : index
    %174 = tpu.strided_load %arg9[%c16_217, %c0_218] {strides = array<i32: 2, 1>} : memref<224x128xf32, #tpu.memory_space<vmem>>, vector<6x128xf32>
    %175 = arith.maximumf %171, %172 : vector<6x128xf32>
    %176 = arith.maximumf %173, %174 : vector<6x128xf32>
    %177 = arith.maximumf %175, %176 : vector<6x128xf32>
    %c0_219 = arith.constant 0 : index
    %c0_220 = arith.constant 0 : index
    %c0_221 = arith.constant 0 : index
    %178 = vector.load %arg7[%c0_219, %c0_220, %c0_221] : memref<1x48x128xf32, #tpu.memory_space<vmem>>, vector<1x6x128xf32>
    %179 = vector.shape_cast %178 : vector<1x6x128xf32> to vector<6x128xf32>
    %180 = vector.shape_cast %177 : vector<6x128xf32> to vector<1x6x128xf32>
    tpu.vector_store %arg7[%c0_219, %c0_220, %c0_221], %180 {strides = array<i32>} : memref<1x48x128xf32, #tpu.memory_space<vmem>>, vector<1x6x128xf32>,
    %c29_222 = arith.constant 29 : index
    %c0_223 = arith.constant 0 : index
    %181 = tpu.strided_load %arg9[%c29_222, %c0_223] {strides = array<i32: 2, 1>} : memref<224x128xf32, #tpu.memory_space<vmem>>, vector<6x128xf32>
    %c30_224 = arith.constant 30 : index
    %c0_225 = arith.constant 0 : index
    %182 = tpu.strided_load %arg9[%c30_224, %c0_225] {strides = array<i32: 2, 1>} : memref<224x128xf32, #tpu.memory_space<vmem>>, vector<6x128xf32>
    %c43_226 = arith.constant 43 : index
    %c0_227 = arith.constant 0 : index
    %183 = tpu.strided_load %arg9[%c43_226, %c0_227] {strides = array<i32: 2, 1>} : memref<224x128xf32, #tpu.memory_space<vmem>>, vector<6x128xf32>
    %c44 = arith.constant 44 : index
    %c0_228 = arith.constant 0 : index
    %184 = tpu.strided_load %arg9[%c44, %c0_228] {strides = array<i32: 2, 1>} : memref<224x128xf32, #tpu.memory_space<vmem>>, vector<6x128xf32>
    %185 = arith.maximumf %181, %182 : vector<6x128xf32>
    %186 = arith.maximumf %183, %184 : vector<6x128xf32>
    %187 = arith.maximumf %185, %186 : vector<6x128xf32>
    %c0_229 = arith.constant 0 : index
    %c6_230 = arith.constant 6 : index
    %c0_231 = arith.constant 0 : index
    %188 = vector.load %arg7[%c0_229, %c6_230, %c0_231] : memref<1x48x128xf32, #tpu.memory_space<vmem>>, vector<1x6x128xf32>
    %189 = vector.shape_cast %188 : vector<1x6x128xf32> to vector<6x128xf32>
    %190 = vector.shape_cast %187 : vector<6x128xf32> to vector<1x6x128xf32>
    tpu.vector_store %arg7[%c0_229, %c6_230, %c0_231], %190 {strides = array<i32>} : memref<1x48x128xf32, #tpu.memory_space<vmem>>, vector<1x6x128xf32>,
    %c57_232 = arith.constant 57 : index
    %c0_233 = arith.constant 0 : index
    %191 = tpu.strided_load %arg9[%c57_232, %c0_233] {strides = array<i32: 2, 1>} : memref<224x128xf32, #tpu.memory_space<vmem>>, vector<6x128xf32>
    %c58 = arith.constant 58 : index
    %c0_234 = arith.constant 0 : index
    %192 = tpu.strided_load %arg9[%c58, %c0_234] {strides = array<i32: 2, 1>} : memref<224x128xf32, #tpu.memory_space<vmem>>, vector<6x128xf32>
    %c71_235 = arith.constant 71 : index
    %c0_236 = arith.constant 0 : index
    %193 = tpu.strided_load %arg9[%c71_235, %c0_236] {strides = array<i32: 2, 1>} : memref<224x128xf32, #tpu.memory_space<vmem>>, vector<6x128xf32>
    %c72 = arith.constant 72 : index
    %c0_237 = arith.constant 0 : index
    %194 = tpu.strided_load %arg9[%c72, %c0_237] {strides = array<i32: 2, 1>} : memref<224x128xf32, #tpu.memory_space<vmem>>, vector<6x128xf32>
    %195 = arith.maximumf %191, %192 : vector<6x128xf32>
    %196 = arith.maximumf %193, %194 : vector<6x128xf32>
    %197 = arith.maximumf %195, %196 : vector<6x128xf32>
    %c0_238 = arith.constant 0 : index
    %c12 = arith.constant 12 : index
    %c0_239 = arith.constant 0 : index
    %198 = vector.load %arg7[%c0_238, %c12, %c0_239] : memref<1x48x128xf32, #tpu.memory_space<vmem>>, vector<1x6x128xf32>
    %199 = vector.shape_cast %198 : vector<1x6x128xf32> to vector<6x128xf32>
    %200 = vector.shape_cast %197 : vector<6x128xf32> to vector<1x6x128xf32>
    tpu.vector_store %arg7[%c0_238, %c12, %c0_239], %200 {strides = array<i32>} : memref<1x48x128xf32, #tpu.memory_space<vmem>>, vector<1x6x128xf32>,
    %c85_240 = arith.constant 85 : index
    %c0_241 = arith.constant 0 : index
    %201 = tpu.strided_load %arg9[%c85_240, %c0_241] {strides = array<i32: 2, 1>} : memref<224x128xf32, #tpu.memory_space<vmem>>, vector<6x128xf32>
    %c86 = arith.constant 86 : index
    %c0_242 = arith.constant 0 : index
    %202 = tpu.strided_load %arg9[%c86, %c0_242] {strides = array<i32: 2, 1>} : memref<224x128xf32, #tpu.memory_space<vmem>>, vector<6x128xf32>
    %c99_243 = arith.constant 99 : index
    %c0_244 = arith.constant 0 : index
    %203 = tpu.strided_load %arg9[%c99_243, %c0_244] {strides = array<i32: 2, 1>} : memref<224x128xf32, #tpu.memory_space<vmem>>, vector<6x128xf32>
    %c100 = arith.constant 100 : index
    %c0_245 = arith.constant 0 : index
    %204 = tpu.strided_load %arg9[%c100, %c0_245] {strides = array<i32: 2, 1>} : memref<224x128xf32, #tpu.memory_space<vmem>>, vector<6x128xf32>
    %205 = arith.maximumf %201, %202 : vector<6x128xf32>
    %206 = arith.maximumf %203, %204 : vector<6x128xf32>
    %207 = arith.maximumf %205, %206 : vector<6x128xf32>
    %c0_246 = arith.constant 0 : index
    %c18 = arith.constant 18 : index
    %c0_247 = arith.constant 0 : index
    %208 = vector.load %arg7[%c0_246, %c18, %c0_247] : memref<1x48x128xf32, #tpu.memory_space<vmem>>, vector<1x6x128xf32>
    %209 = vector.shape_cast %208 : vector<1x6x128xf32> to vector<6x128xf32>
    %210 = vector.shape_cast %207 : vector<6x128xf32> to vector<1x6x128xf32>
    tpu.vector_store %arg7[%c0_246, %c18, %c0_247], %210 {strides = array<i32>} : memref<1x48x128xf32, #tpu.memory_space<vmem>>, vector<1x6x128xf32>,
    %c113_248 = arith.constant 113 : index
    %c0_249 = arith.constant 0 : index
    %211 = tpu.strided_load %arg9[%c113_248, %c0_249] {strides = array<i32: 2, 1>} : memref<224x128xf32, #tpu.memory_space<vmem>>, vector<6x128xf32>
    %c114 = arith.constant 114 : index
    %c0_250 = arith.constant 0 : index
    %212 = tpu.strided_load %arg9[%c114, %c0_250] {strides = array<i32: 2, 1>} : memref<224x128xf32, #tpu.memory_space<vmem>>, vector<6x128xf32>
    %c127_251 = arith.constant 127 : index
    %c0_252 = arith.constant 0 : index
    %213 = tpu.strided_load %arg9[%c127_251, %c0_252] {strides = array<i32: 2, 1>} : memref<224x128xf32, #tpu.memory_space<vmem>>, vector<6x128xf32>
    %c128 = arith.constant 128 : index
    %c0_253 = arith.constant 0 : index
    %214 = tpu.strided_load %arg9[%c128, %c0_253] {strides = array<i32: 2, 1>} : memref<224x128xf32, #tpu.memory_space<vmem>>, vector<6x128xf32>
    %215 = arith.maximumf %211, %212 : vector<6x128xf32>
    %216 = arith.maximumf %213, %214 : vector<6x128xf32>
    %217 = arith.maximumf %215, %216 : vector<6x128xf32>
    %c0_254 = arith.constant 0 : index
    %c24 = arith.constant 24 : index
    %c0_255 = arith.constant 0 : index
    %218 = vector.load %arg7[%c0_254, %c24, %c0_255] : memref<1x48x128xf32, #tpu.memory_space<vmem>>, vector<1x6x128xf32>
    %219 = vector.shape_cast %218 : vector<1x6x128xf32> to vector<6x128xf32>
    %220 = vector.shape_cast %217 : vector<6x128xf32> to vector<1x6x128xf32>
    tpu.vector_store %arg7[%c0_254, %c24, %c0_255], %220 {strides = array<i32>} : memref<1x48x128xf32, #tpu.memory_space<vmem>>, vector<1x6x128xf32>,
    %c141_256 = arith.constant 141 : index
    %c0_257 = arith.constant 0 : index
    %221 = tpu.strided_load %arg9[%c141_256, %c0_257] {strides = array<i32: 2, 1>} : memref<224x128xf32, #tpu.memory_space<vmem>>, vector<6x128xf32>
    %c142 = arith.constant 142 : index
    %c0_258 = arith.constant 0 : index
    %222 = tpu.strided_load %arg9[%c142, %c0_258] {strides = array<i32: 2, 1>} : memref<224x128xf32, #tpu.memory_space<vmem>>, vector<6x128xf32>
    %c155_259 = arith.constant 155 : index
    %c0_260 = arith.constant 0 : index
    %223 = tpu.strided_load %arg9[%c155_259, %c0_260] {strides = array<i32: 2, 1>} : memref<224x128xf32, #tpu.memory_space<vmem>>, vector<6x128xf32>
    %c156 = arith.constant 156 : index
    %c0_261 = arith.constant 0 : index
    %224 = tpu.strided_load %arg9[%c156, %c0_261] {strides = array<i32: 2, 1>} : memref<224x128xf32, #tpu.memory_space<vmem>>, vector<6x128xf32>
    %225 = arith.maximumf %221, %222 : vector<6x128xf32>
    %226 = arith.maximumf %223, %224 : vector<6x128xf32>
    %227 = arith.maximumf %225, %226 : vector<6x128xf32>
    %c0_262 = arith.constant 0 : index
    %c30_263 = arith.constant 30 : index
    %c0_264 = arith.constant 0 : index
    %228 = vector.load %arg7[%c0_262, %c30_263, %c0_264] : memref<1x48x128xf32, #tpu.memory_space<vmem>>, vector<1x6x128xf32>
    %229 = vector.shape_cast %228 : vector<1x6x128xf32> to vector<6x128xf32>
    %230 = vector.shape_cast %227 : vector<6x128xf32> to vector<1x6x128xf32>
    tpu.vector_store %arg7[%c0_262, %c30_263, %c0_264], %230 {strides = array<i32>} : memref<1x48x128xf32, #tpu.memory_space<vmem>>, vector<1x6x128xf32>,
    %c169_265 = arith.constant 169 : index
    %c0_266 = arith.constant 0 : index
    %231 = tpu.strided_load %arg9[%c169_265, %c0_266] {strides = array<i32: 2, 1>} : memref<224x128xf32, #tpu.memory_space<vmem>>, vector<6x128xf32>
    %c170 = arith.constant 170 : index
    %c0_267 = arith.constant 0 : index
    %232 = tpu.strided_load %arg9[%c170, %c0_267] {strides = array<i32: 2, 1>} : memref<224x128xf32, #tpu.memory_space<vmem>>, vector<6x128xf32>
    %c183_268 = arith.constant 183 : index
    %c0_269 = arith.constant 0 : index
    %233 = tpu.strided_load %arg9[%c183_268, %c0_269] {strides = array<i32: 2, 1>} : memref<224x128xf32, #tpu.memory_space<vmem>>, vector<6x128xf32>
    %c184 = arith.constant 184 : index
    %c0_270 = arith.constant 0 : index
    %234 = tpu.strided_load %arg9[%c184, %c0_270] {strides = array<i32: 2, 1>} : memref<224x128xf32, #tpu.memory_space<vmem>>, vector<6x128xf32>
    %235 = arith.maximumf %231, %232 : vector<6x128xf32>
    %236 = arith.maximumf %233, %234 : vector<6x128xf32>
    %237 = arith.maximumf %235, %236 : vector<6x128xf32>
    %c0_271 = arith.constant 0 : index
    %c36 = arith.constant 36 : index
    %c0_272 = arith.constant 0 : index
    %238 = vector.load %arg7[%c0_271, %c36, %c0_272] : memref<1x48x128xf32, #tpu.memory_space<vmem>>, vector<1x6x128xf32>
    %239 = vector.shape_cast %238 : vector<1x6x128xf32> to vector<6x128xf32>
    %240 = vector.shape_cast %237 : vector<6x128xf32> to vector<1x6x128xf32>
    tpu.vector_store %arg7[%c0_271, %c36, %c0_272], %240 {strides = array<i32>} : memref<1x48x128xf32, #tpu.memory_space<vmem>>, vector<1x6x128xf32>,
    %c197_273 = arith.constant 197 : index
    %c0_274 = arith.constant 0 : index
    %241 = tpu.strided_load %arg9[%c197_273, %c0_274] {strides = array<i32: 2, 1>} : memref<224x128xf32, #tpu.memory_space<vmem>>, vector<6x128xf32>
    %c198 = arith.constant 198 : index
    %c0_275 = arith.constant 0 : index
    %242 = tpu.strided_load %arg9[%c198, %c0_275] {strides = array<i32: 2, 1>} : memref<224x128xf32, #tpu.memory_space<vmem>>, vector<6x128xf32>
    %c211_276 = arith.constant 211 : index
    %c0_277 = arith.constant 0 : index
    %243 = tpu.strided_load %arg9[%c211_276, %c0_277] {strides = array<i32: 2, 1>} : memref<224x128xf32, #tpu.memory_space<vmem>>, vector<6x128xf32>
    %c212 = arith.constant 212 : index
    %c0_278 = arith.constant 0 : index
    %244 = tpu.strided_load %arg9[%c212, %c0_278] {strides = array<i32: 2, 1>} : memref<224x128xf32, #tpu.memory_space<vmem>>, vector<6x128xf32>
    %245 = arith.maximumf %241, %242 : vector<6x128xf32>
    %246 = arith.maximumf %243, %244 : vector<6x128xf32>
    %247 = arith.maximumf %245, %246 : vector<6x128xf32>
    %c0_279 = arith.constant 0 : index
    %c42 = arith.constant 42 : index
    %c0_280 = arith.constant 0 : index
    %248 = vector.load %arg7[%c0_279, %c42, %c0_280] : memref<1x48x128xf32, #tpu.memory_space<vmem>>, vector<1x6x128xf32>
    %249 = vector.shape_cast %248 : vector<1x6x128xf32> to vector<6x128xf32>
    %250 = vector.shape_cast %247 : vector<6x128xf32> to vector<1x6x128xf32>
    tpu.vector_store %arg7[%c0_279, %c42, %c0_280], %250 {strides = array<i32>} : memref<1x48x128xf32, #tpu.memory_space<vmem>>, vector<1x6x128xf32>,
    return
  }
  func.func @transform_0(%arg0: i32) -> (i32, i32, i32) {
    %c0_i32 = arith.constant 0 : i32
    %c0_i32_0 = arith.constant 0 : i32
    %c0_i32_1 = arith.constant 0 : i32
    return %arg0, %c0_i32, %c0_i32_0 : i32, i32, i32
  }
  func.func @transform_1(%arg0: i32) -> (i32, i32, i32) {
    %c0_i32 = arith.constant 0 : i32
    %c0_i32_0 = arith.constant 0 : i32
    %c0_i32_1 = arith.constant 0 : i32
    %c0_i32_2 = arith.constant 0 : i32
    return %c0_i32, %c0_i32_0, %c0_i32_1 : i32, i32, i32
  }
  func.func @transform_2(%arg0: i32) -> (i32, i32) {
    %c0_i32 = arith.constant 0 : i32
    %c0_i32_0 = arith.constant 0 : i32
    %c0_i32_1 = arith.constant 0 : i32
    return %c0_i32, %c0_i32_0 : i32, i32
  }
  func.func @transform_3(%arg0: i32) -> (i32, i32, i32) {
    %c0_i32 = arith.constant 0 : i32
    %c0_i32_0 = arith.constant 0 : i32
    %c0_i32_1 = arith.constant 0 : i32
    %c0_i32_2 = arith.constant 0 : i32
    return %c0_i32, %c0_i32_0, %c0_i32_1 : i32, i32, i32
  }
  func.func @transform_4(%arg0: i32) -> (i32, i32) {
    %c0_i32 = arith.constant 0 : i32
    %c0_i32_0 = arith.constant 0 : i32
    %c0_i32_1 = arith.constant 0 : i32
    return %c0_i32, %c0_i32_0 : i32, i32
  }
  func.func @transform_5(%arg0: i32) -> (i32, i32) {
    %c0_i32 = arith.constant 0 : i32
    %c0_i32_0 = arith.constant 0 : i32
    %c0_i32_1 = arith.constant 0 : i32
    return %c0_i32, %c0_i32_0 : i32, i32
  }
  func.func @transform_6(%arg0: i32) -> (i32, i32, i32) {
    %c0_i32 = arith.constant 0 : i32
    %c0_i32_0 = arith.constant 0 : i32
    %c0_i32_1 = arith.constant 0 : i32
    return %arg0, %c0_i32, %c0_i32_0 : i32, i32, i32
  }
}

module attributes {stable_mosaic.version = 11 : i64} {
  func.func @_classifier_kernel(%arg0: i32, %arg1: memref<2x2304xf32, #tpu.memory_space<vmem>>, %arg2: memref<2304x384xf32, #tpu.memory_space<vmem>>, %arg3: memref<1x384xf32, #tpu.memory_space<vmem>>, %arg4: memref<384x128xf32, #tpu.memory_space<vmem>>, %arg5: memref<1x128xf32, #tpu.memory_space<vmem>>, %arg6: memref<2x128xf32, #tpu.memory_space<vmem>>) attributes {dimension_semantics = [#tpu.dimension_semantics<arbitrary>], iteration_bounds = array<i64: 1>, scalar_prefetch = 0 : i64, scratch_operands = 0 : i64, tpu.core_type = #tpu.core_type<tc>, window_params = [{pipeline_mode = #tpu.pipeline_mode<synchronous>, transform_indices = @transform_0, window_bounds = array<i64: 2, 2304>}, {pipeline_mode = #tpu.pipeline_mode<synchronous>, transform_indices = @transform_1, window_bounds = array<i64: 2304, 384>}, {pipeline_mode = #tpu.pipeline_mode<synchronous>, transform_indices = @transform_2, window_bounds = array<i64: 1, 384>}, {pipeline_mode = #tpu.pipeline_mode<synchronous>, transform_indices = @transform_3, window_bounds = array<i64: 384, 128>}, {pipeline_mode = #tpu.pipeline_mode<synchronous>, transform_indices = @transform_4, window_bounds = array<i64: 1, 128>}, {pipeline_mode = #tpu.pipeline_mode<synchronous>, transform_indices = @transform_5, window_bounds = array<i64: 2, 128>}]} {
    %c0 = arith.constant 0 : index
    %c0_0 = arith.constant 0 : index
    %0 = vector.load %arg1[%c0, %c0_0] : memref<2x2304xf32, #tpu.memory_space<vmem>>, vector<2x2304xf32>
    %c0_1 = arith.constant 0 : index
    %c0_2 = arith.constant 0 : index
    %1 = vector.load %arg2[%c0_1, %c0_2] : memref<2304x384xf32, #tpu.memory_space<vmem>>, vector<2304x384xf32>
    %cst = arith.constant dense<0.000000e+00> : vector<2x384xf32>
    %2 = tpu.matmul %0, %1, %cst {dimension_numbers = #tpu.dot_dimension_numbers<[1], [0], [0], [1], [0, 0, 1, 1], [], []>} : vector<2x2304xf32>, vector<2304x384xf32>, vector<2x384xf32> -> vector<2x384xf32>
    %c0_3 = arith.constant 0 : index
    %c0_4 = arith.constant 0 : index
    %3 = vector.load %arg3[%c0_3, %c0_4] : memref<1x384xf32, #tpu.memory_space<vmem>>, vector<1x384xf32>
    %4 = vector.broadcast %3 : vector<1x384xf32> to vector<2x384xf32>
    %5 = arith.addf %2, %4 : vector<2x384xf32>
    %cst_5 = arith.constant 0.000000e+00 : f32
    %6 = vector.broadcast %cst_5 : f32 to vector<2x384xf32>
    %7 = arith.maximumf %5, %6 : vector<2x384xf32>
    %c0_6 = arith.constant 0 : index
    %c0_7 = arith.constant 0 : index
    %8 = vector.load %arg4[%c0_6, %c0_7] : memref<384x128xf32, #tpu.memory_space<vmem>>, vector<384x128xf32>
    %cst_8 = arith.constant dense<0.000000e+00> : vector<2x128xf32>
    %9 = tpu.matmul %7, %8, %cst_8 {dimension_numbers = #tpu.dot_dimension_numbers<[1], [0], [0], [1], [0, 0, 1, 1], [], []>} : vector<2x384xf32>, vector<384x128xf32>, vector<2x128xf32> -> vector<2x128xf32>
    %c0_9 = arith.constant 0 : index
    %c0_10 = arith.constant 0 : index
    %10 = vector.load %arg5[%c0_9, %c0_10] : memref<1x128xf32, #tpu.memory_space<vmem>>, vector<1x128xf32>
    %11 = vector.broadcast %10 : vector<1x128xf32> to vector<2x128xf32>
    %12 = arith.addf %9, %11 : vector<2x128xf32>
    %cst_11 = arith.constant dense<0xFF800000> : vector<2xf32>
    %13 = vector.multi_reduction <maximumf>, %12, %cst_11 [1] : vector<2x128xf32> to vector<2xf32>
    %14 = vector.shape_cast %13 : vector<2xf32> to vector<2x1xf32>
    %15 = vector.broadcast %14 : vector<2x1xf32> to vector<2x128xf32>
    %16 = arith.subf %12, %15 : vector<2x128xf32>
    %17 = math.exp %16 : vector<2x128xf32>
    %cst_12 = arith.constant dense<0.000000e+00> : vector<2xf32>
    %18 = vector.multi_reduction <add>, %17, %cst_12 [1] : vector<2x128xf32> to vector<2xf32>
    %19 = vector.shape_cast %18 : vector<2xf32> to vector<2x1xf32>
    %20 = math.log %19 : vector<2x1xf32>
    %21 = vector.broadcast %20 : vector<2x1xf32> to vector<2x128xf32>
    %22 = arith.subf %16, %21 : vector<2x128xf32>
    %c0_13 = arith.constant 0 : index
    %c0_14 = arith.constant 0 : index
    %23 = vector.load %arg6[%c0_13, %c0_14] : memref<2x128xf32, #tpu.memory_space<vmem>>, vector<2x128xf32>
    tpu.vector_store %arg6[%c0_13, %c0_14], %22 {strides = array<i32>} : memref<2x128xf32, #tpu.memory_space<vmem>>, vector<2x128xf32>,
    return
  }
  func.func @transform_0(%arg0: i32) -> (i32, i32) {
    %c0_i32 = arith.constant 0 : i32
    %c0_i32_0 = arith.constant 0 : i32
    %c0_i32_1 = arith.constant 0 : i32
    return %c0_i32, %c0_i32_0 : i32, i32
  }
  func.func @transform_1(%arg0: i32) -> (i32, i32) {
    %c0_i32 = arith.constant 0 : i32
    %c0_i32_0 = arith.constant 0 : i32
    %c0_i32_1 = arith.constant 0 : i32
    return %c0_i32, %c0_i32_0 : i32, i32
  }
  func.func @transform_2(%arg0: i32) -> (i32, i32) {
    %c0_i32 = arith.constant 0 : i32
    %c0_i32_0 = arith.constant 0 : i32
    %c0_i32_1 = arith.constant 0 : i32
    return %c0_i32, %c0_i32_0 : i32, i32
  }
  func.func @transform_3(%arg0: i32) -> (i32, i32) {
    %c0_i32 = arith.constant 0 : i32
    %c0_i32_0 = arith.constant 0 : i32
    %c0_i32_1 = arith.constant 0 : i32
    return %c0_i32, %c0_i32_0 : i32, i32
  }
  func.func @transform_4(%arg0: i32) -> (i32, i32) {
    %c0_i32 = arith.constant 0 : i32
    %c0_i32_0 = arith.constant 0 : i32
    %c0_i32_1 = arith.constant 0 : i32
    return %c0_i32, %c0_i32_0 : i32, i32
  }
  func.func @transform_5(%arg0: i32) -> (i32, i32) {
    %c0_i32 = arith.constant 0 : i32
    %c0_i32_0 = arith.constant 0 : i32
    %c0_i32_1 = arith.constant 0 : i32
    return %c0_i32, %c0_i32_0 : i32, i32
  }
}

</mosaic_0001>

<bundles_post_ra>
// kernel: digital_vgg8_forward.3
= control target key start
LH: loop header
LB: loop body
LE: loop exit
PB: predicated region body
PF: predicated region fallthrough
CT: control target
= control target key end

     0   :  { %10 = vsyncpa [#allocation3], 0  ;;  %s4311_s0 = inlined_call_operand.vmem [shape: f32[2,2304], index: 0, kind: input, shape index: {}]   ;;  %s4312_s1 = inlined_call_operand.hbm [shape: f32[2304,384], index: 1, kind: input, shape index: {}]   ;;  %s4313_s2 = inlined_call_operand.hbm [shape: f32[1,384], index: 2, kind: input, shape index: {}]   ;;  %s4314_s3 = inlined_call_operand.hbm [shape: f32[384,128], index: 3, kind: input, shape index: {}]   ;;  %s4315_s4 = inlined_call_operand.hbm [shape: f32[1,128], index: 4, kind: input, shape index: {}]   ;;  %s4316_s5 = inlined_call_operand.hbm [shape: f32[2,128], index: 5, kind: output, shape index: {}]  }
   0x1   :  { %11 = vsyncpa [#allocation6], 0 }
   0x2   :  { %12 = vsyncpa [#allocation9], 0 }
   0x3   :  { %13 = vsyncpa [#allocation4], 0  ;;  %s4036_s18 = smov [#allocation5]   ;;  %s4037_s20 = smov [#allocation2]  }
   0x4   :  { %s34_s19 = sshll.u32 %s4036_s18, 4  ;;  %s21_s21 = sshll.u32 %s4037_s20, 4  ;;  %s35_s19 = int_to_ptr.vmem [resolvable:$true] %s34_s19  ;;  %s4079_s21 = int_to_ptr.vmem [resolvable:$true] %s21_s21 }
   0x5   :  { %s3918_s24 = scalar_lea.hbm %s4313_s2, 48 }
   0x6   :  { %p3919_p0 = scmp.ne.s32.totalorder %s4313_s2, %s3918_s24  ;;  %p3922_p1 = scmp.lt.u32.totalorder %s3918_s24, %s4313_s2 }
   0x8   :  { %p3924_p2 = pnand %p3922_p1, %p3919_p0 }
   0xa   :  { %3927 = shalt.err (!%p3924_p2)
}
   0xb   :  { %s3928_s29 = scalar_lea.vmem %s35_s19, 48  ;;  %s3932_s30 = scalar_lea.vmem %s35_s19, 64 }
   0xc   :  { %p3929_p3 = scmp.ne.s32.totalorder %s35_s19, %s3928_s29  ;;  %p3933_p4 = scmp.lt.s32.totalorder %s35_s19, %s35_s19 }
   0xd   :  { %p3934_p5 = scmp.lt.s32.totalorder %s3932_s30, %s3928_s29 }
   0xf   :  { %p3935_p6 = por %p3934_p5, %p3933_p4 }
  0x11   :  { %p3936_p7 = pnand %p3935_p6, %p3929_p3 }
  0x13   :  { %3939 = shalt.err (!%p3936_p7)
}
  0x14   :  { %37 = dma.hbm_to_vmem [thread:$0]  %s4313_s2, 48, %s35_s19, [#allocation6]  }
  0x15   :  { %s3940_s10 = scalar_lea.hbm %s4312_s1, 110592 }
  0x16   :  { %p3941_p8 = scmp.ne.s32.totalorder %s4312_s1, %s3940_s10  ;;  %p3944_p9 = scmp.lt.u32.totalorder %s3940_s10, %s4312_s1 }
  0x18   :  { %p3946_p10 = pnand %p3944_p9, %p3941_p8 }
  0x1a   :  { %3949 = shalt.err (!%p3946_p10)
}
  0x1b   :  { %s3950_s15 = scalar_lea.vmem %s4079_s21, 110592  ;;  %p3955_p12 = scmp.lt.s32.totalorder %s4079_s21, %s4079_s21 }
  0x1c   :  { %p3951_p11 = scmp.ne.s32.totalorder %s4079_s21, %s3950_s15  ;;  %p3956_p13 = scmp.lt.s32.totalorder %s3950_s15, %s3950_s15 }
  0x1e   :  { %p3957_p0 = por %p3956_p13, %p3955_p12 }
  0x20   :  { %p3958_p1 = pnand %p3957_p0, %p3951_p11 }
  0x22   :  { %3961 = shalt.err (!%p3958_p1)
}
  0x23   :  { %s4038_s2 = smov 384   ;;  %s4039_s16 = smov 24  }
  0x24   :  { %27 = dma.hbm_to_vmem [thread:$0]  %s4312_s1, 110592, %s4079_s21, [#allocation3], %s4038_s2, %s4038_s2, %s4039_s16  }
  0x25   :  { %s4040_s19 = smov [#allocation7]   ;;  %s3962_s24 = scalar_lea.hbm %s4314_s3, 6144 }
  0x26   :  { %s43_s20 = sshll.u32 %s4040_s19, 4  ;;  %p3963_p2 = scmp.ne.s32.totalorder %s4314_s3, %s3962_s24  ;;  %s44_s20 = int_to_ptr.vmem [resolvable:$true] %s43_s20 }
  0x27   :  { %p3966_p3 = scmp.lt.u32.totalorder %s3962_s24, %s4314_s3 }
  0x29   :  { %p3968_p4 = pnand %p3966_p3, %p3963_p2 }
  0x2b   :  { %3971 = shalt.err (!%p3968_p4)
}
  0x2c   :  { %s3972_s29 = scalar_lea.vmem %s44_s20, 6144  ;;  %p3977_p6 = scmp.lt.s32.totalorder %s44_s20, %s44_s20 }
  0x2d   :  { %p3973_p5 = scmp.ne.s32.totalorder %s44_s20, %s3972_s29  ;;  %p3978_p7 = scmp.lt.s32.totalorder %s3972_s29, %s3972_s29 }
  0x2f   :  { %p3979_p8 = por %p3978_p7, %p3977_p6 }
  0x31   :  { %p3980_p9 = pnand %p3979_p8, %p3973_p5 }
  0x33   :  { %3983 = shalt.err (!%p3980_p9)
}
  0x34   :  { %s4041_s1 = smov 128   ;;  %s4042_s21 = smov 8  }
  0x35   :  { %49 = dma.hbm_to_vmem [thread:$0]  %s4314_s3, 6144, %s44_s20, [#allocation6], %s4041_s1, %s4041_s1, %s4042_s21  }
  0x36   :  { %s4043_s7 = smov [#allocation8]   ;;  %s3984_s11 = scalar_lea.hbm %s4315_s4, 16 }
  0x37   :  { %s56_s8 = sshll.u32 %s4043_s7, 4  ;;  %p3985_p10 = scmp.ne.s32.totalorder %s4315_s4, %s3984_s11  ;;  %s57_s8 = int_to_ptr.vmem [resolvable:$true] %s56_s8 }
  0x38   :  { %p3988_p11 = scmp.lt.u32.totalorder %s3984_s11, %s4315_s4 }
  0x3a   :  { %p3990_p12 = pnand %p3988_p11, %p3985_p10 }
  0x3c   :  { %3993 = shalt.err (!%p3990_p12)
}
  0x3d   :  { %s3994_s2 = scalar_lea.vmem %s57_s8, 16  ;;  %s3998_s3 = scalar_lea.vmem %s57_s8, 32 }
  0x3e   :  { %p3995_p13 = scmp.ne.s32.totalorder %s57_s8, %s3994_s2  ;;  %p3999_p0 = scmp.lt.s32.totalorder %s57_s8, %s57_s8 }
  0x3f   :  { %p4000_p1 = scmp.lt.s32.totalorder %s3998_s3, %s3994_s2 }
  0x41   :  { %p4001_p2 = por %p4000_p1, %p3999_p0 }
  0x43   :  { %p4002_p3 = pnand %p4001_p2, %p3995_p13 }
  0x45   :  { %4005 = shalt.err (!%p4002_p3)
}
  0x46   :  { %59 = dma.hbm_to_vmem [thread:$0]  %s4315_s4, 16, %s57_s8, [#allocation9]  }
  0x47   :  { %4028 = dma.done.wait [#allocation3], 110592  }
  0x48   :  { %4029 = vsyncadd [#allocation3], 4294856704 }
  0x49   :  { %4030 = dma.done.wait [#allocation6], 6192  }
  0x4a   :  { %4031 = vsyncadd [#allocation6], 4294961104 }
  0x4b   :  { %4032 = dma.done.wait [#allocation9], 16  }
  0x4c   :  { %4033 = vsyncadd [#allocation9], 4294967280  ;;  %v78_v0 = vld [vmem:[#allocation2 + $0x8] sm:$0xff]  ;;  %v81_v1 = vld [vmem:[#allocation2 + $0x20] sm:$0xff]  ;;  %vm4046_vm0 = vmmov 0   ;;  %vm2524_vm1 = vcmask 1041408  }
  0x4d   :  { %v270_v2 = vld [vmem:[#allocation2 + $0x608] sm:$0xff]  ;;  %v2959_v3 = vpack.c.bf16 %v81_v1, %v78_v0  ;;  %v273_v4 = vld [vmem:[#allocation2 + $0x620] sm:$0xff]  ;;  %v80_v6 = vld [vmem:[#allocation2 + $0x18] sm:$0xff] }
  0x4e   :  { %v77_v5 = vld [vmem:[#allocation2] sm:$0xff]  ;;  %v3087_v7 = vpack.c.bf16 %v273_v4, %v270_v2  ;;  %v272_v10 = vld [vmem:[#allocation2 + $0x618] sm:$0xff]  ;;  %v87_v13 = vld [vmem:[#allocation2 + $0x50] sm:$0xff] }
  0x4f   :  { %v2961_v8 = vpack.c.bf16 %v80_v6, %v77_v5  ;;  %v269_v9 = vld [vmem:[#allocation2 + $0x600] sm:$0xff]  ;;  %v84_v11 = vld [vmem:[#allocation2 + $0x38] sm:$0xff]  ;;  %2960 = vmatprep.subr.bf16.mxu1 %v2959_v3  ;;  %v279_v15 = vld [vmem:[#allocation2 + $0x650] sm:$0xff] }
  0x50   :  { %v3089_v12 = vpack.c.bf16 %v272_v10, %v269_v9  ;;  %v276_v14 = vld [vmem:[#allocation2 + $0x638] sm:$0xff]  ;;  %3088 = vmatprep.subr.bf16.mxu0 %v3087_v7  ;;  %v2963_v16 = vpack.c.bf16 %v87_v13, %v84_v11  ;;  %v83_v18 = vld [vmem:[#allocation2 + $0x30] sm:$0xff]  ;;  %v86_v19 = vld [vmem:[#allocation2 + $0x48] sm:$0xff] }
  0x51   :  { %2962 = vmatpush1.bf16.msra.mxu1 %v2961_v8  ;;  %v3091_v17 = vpack.c.bf16 %v279_v15, %v276_v14  ;;  %v275_v20 = vld [vmem:[#allocation2 + $0x630] sm:$0xff]  ;;  %v2965_v21 = vpack.c.bf16 %v86_v19, %v83_v18  ;;  %v278_v22 = vld [vmem:[#allocation2 + $0x648] sm:$0xff]  ;;  %v93_v24 = vld [vmem:[#allocation2 + $0x80] sm:$0xff] }
  0x52   :  { %3090 = vmatpush1.bf16.msra.mxu0 %v3089_v12  ;;  %v90_v23 = vld [vmem:[#allocation2 + $0x68] sm:$0xff]  ;;  %2964 = vmatprep.subr.bf16.mxu1 %v2963_v16  ;;  %v3093_v25 = vpack.c.bf16 %v278_v22, %v275_v20  ;;  %v285_v28 = vld [vmem:[#allocation2 + $0x680] sm:$0xff]  ;;  %v92_v31 = vld [vmem:[#allocation2 + $0x78] sm:$0xff] }
  0x53   :  { %3092 = vmatprep.subr.bf16.mxu0 %v3091_v17  ;;  %v2967_v26 = vpack.c.bf16 %v93_v24, %v90_v23  ;;  %v282_v27 = vld [vmem:[#allocation2 + $0x668] sm:$0xff]  ;;  %v89_v29 = vld [vmem:[#allocation2 + $0x60] sm:$0xff]  ;;  %v284_v33 = vld [vmem:[#allocation2 + $0x678] sm:$0xff] }
  0x54   :  { %v3095_v30 = vpack.c.bf16 %v285_v28, %v282_v27  ;;  %v281_v32 = vld [vmem:[#allocation2 + $0x660] sm:$0xff]  ;;  %v2969_v34 = vpack.c.bf16 %v92_v31, %v89_v29  ;;  %v96_v35 = vld [vmem:[#allocation2 + $0x98] sm:$0xff]  ;;  %v99_v36 = vld [vmem:[#allocation2 + $0xb0] sm:$0xff] }
  0x55   :  { %2966 = vmatpush1.bf16.msra.mxu1 %v2965_v21  ;;  %v288_v37 = vld [vmem:[#allocation2 + $0x698] sm:$0xff]  ;;  %v3097_v38 = vpack.c.bf16 %v284_v33, %v281_v32  ;;  %v2971_v39 = vpack.c.bf16 %v99_v36, %v96_v35  ;;  %v291_v40 = vld [vmem:[#allocation2 + $0x6b0] sm:$0xff]  ;;  %v98_v42 = vld [vmem:[#allocation2 + $0xa8] sm:$0xff] }
  0x56   :  { %3094 = vmatpush1.bf16.msra.mxu0 %v3093_v25  ;;  %2968 = vmatprep.subr.bf16.mxu1 %v2967_v26  ;;  %v95_v41 = vld [vmem:[#allocation2 + $0x90] sm:$0xff]  ;;  %v3099_v43 = vpack.c.bf16 %v291_v40, %v288_v37  ;;  %v290_v45 = vld [vmem:[#allocation2 + $0x6a8] sm:$0xff]  ;;  %v105_v47 = vld [vmem:[#allocation2 + $0xe0] sm:$0xff] }
  0x57   :  { %3096 = vmatprep.subr.bf16.mxu0 %v3095_v30  ;;  %v287_v44 = vld [vmem:[#allocation2 + $0x690] sm:$0xff]  ;;  %v102_v46 = vld [vmem:[#allocation2 + $0xc8] sm:$0xff]  ;;  %v297_v49 = vld [vmem:[#allocation2 + $0x6e0] sm:$0xff]  ;;  %v2973_v50 = vpack.c.bf16 %v98_v42, %v95_v41 }
  0x58   :  { %v294_v48 = vld [vmem:[#allocation2 + $0x6c8] sm:$0xff]  ;;  %v3101_v51 = vpack.c.bf16 %v290_v45, %v287_v44  ;;  %v2975_v52 = vpack.c.bf16 %v105_v47, %v102_v46  ;;  %v101_v53 = vld [vmem:[#allocation2 + $0xc0] sm:$0xff]  ;;  %v104_v54 = vld [vmem:[#allocation2 + $0xd8] sm:$0xff]  ;;  %v943_v46 = vlaneseq  ;;  %v4044_v47 = vmov 1983009808  }
  0x59   :  { %2970 = vmatpush1.bf16.msra.mxu1 %v2969_v34  ;;  %v293_v55 = vld [vmem:[#allocation2 + $0x6c0] sm:$0xff]  ;;  %v3103_v56 = vpack.c.bf16 %v297_v49, %v294_v48  ;;  %v296_v57 = vld [vmem:[#allocation2 + $0x6d8] sm:$0xff]  ;;  %v111_v59 = vld [vmem:[#allocation2 + $0x110] sm:$0xff]  ;;  %v2977_v62 = vpack.c.bf16 %v104_v54, %v101_v53  ;;  %v965_v48 = vunpack.c.l.s4 %v4044_v47 }
  0x5a   :  { %3098 = vmatpush1.bf16.msra.mxu0 %v3097_v38  ;;  %2972 = vmatprep.subr.bf16.mxu1 %v2971_v39  ;;  %v108_v58 = vld [vmem:[#allocation2 + $0xf8] sm:$0xff]  ;;  %v303_v61 = vld [vmem:[#allocation2 + $0x710] sm:$0xff]  ;;  %v3105_v63 = vpack.c.bf16 %v296_v57, %v293_v55  ;;  %v110_v2 = vld [vmem:[#allocation2 + $0x108] sm:$0xff] }
  0x5b   :  { %3100 = vmatprep.subr.bf16.mxu0 %v3099_v43  ;;  %v300_v60 = vld [vmem:[#allocation2 + $0x6f8] sm:$0xff]  ;;  %v2979_v0 = vpack.c.bf16 %v111_v59, %v108_v58  ;;  %v107_v1 = vld [vmem:[#allocation2 + $0xf0] sm:$0xff]  ;;  %v302_v5 = vld [vmem:[#allocation2 + $0x708] sm:$0xff] }
  0x5c   :  { %v299_v3 = vld [vmem:[#allocation2 + $0x6f0] sm:$0xff]  ;;  %v3107_v4 = vpack.c.bf16 %v303_v61, %v300_v60  ;;  %v114_v6 = vld [vmem:[#allocation2 + $0x128] sm:$0xff]  ;;  %v117_v7 = vld [vmem:[#allocation2 + $0x140] sm:$0xff]  ;;  %v2981_v10 = vpack.c.bf16 %v110_v2, %v107_v1  ;;  %v4134_v61 = vshrl.u32 %v943_v46, 7 }
  0x5d   :  { %2974 = vmatpush1.bf16.msra.mxu1 %v2973_v50  ;;  %v306_v8 = vld [vmem:[#allocation2 + $0x728] sm:$0xff]  ;;  %v309_v9 = vld [vmem:[#allocation2 + $0x740] sm:$0xff]  ;;  %v3109_v11 = vpack.c.bf16 %v302_v5, %v299_v3  ;;  %v2983_v12 = vpack.c.bf16 %v117_v7, %v114_v6  ;;  %v116_v14 = vld [vmem:[#allocation2 + $0x138] sm:$0xff] }
  0x5e   :  { %3102 = vmatpush1.bf16.msra.mxu0 %v3101_v51  ;;  %2976 = vmatprep.subr.bf16.mxu1 %v2975_v52  ;;  %v113_v13 = vld [vmem:[#allocation2 + $0x120] sm:$0xff]  ;;  %v3111_v16 = vpack.c.bf16 %v309_v9, %v306_v8  ;;  %v308_v17 = vld [vmem:[#allocation2 + $0x738] sm:$0xff]  ;;  %v123_v19 = vld [vmem:[#allocation2 + $0x170] sm:$0xff] }
  0x5f   :  { %3104 = vmatprep.subr.bf16.mxu0 %v3103_v56  ;;  %v305_v15 = vld [vmem:[#allocation2 + $0x720] sm:$0xff]  ;;  %v120_v18 = vld [vmem:[#allocation2 + $0x158] sm:$0xff]  ;;  %v315_v21 = vld [vmem:[#allocation2 + $0x770] sm:$0xff]  ;;  %v2985_v22 = vpack.c.bf16 %v116_v14, %v113_v13 }
  0x60   :  { %v312_v20 = vld [vmem:[#allocation2 + $0x758] sm:$0xff]  ;;  %v3113_v23 = vpack.c.bf16 %v308_v17, %v305_v15  ;;  %v2987_v24 = vpack.c.bf16 %v123_v19, %v120_v18  ;;  %v119_v25 = vld [vmem:[#allocation2 + $0x150] sm:$0xff]  ;;  %v122_v26 = vld [vmem:[#allocation2 + $0x168] sm:$0xff] }
  0x61   :  { %2978 = vmatpush1.bf16.msra.mxu1 %v2977_v62  ;;  %v311_v27 = vld [vmem:[#allocation2 + $0x750] sm:$0xff]  ;;  %v3115_v28 = vpack.c.bf16 %v315_v21, %v312_v20  ;;  %v314_v29 = vld [vmem:[#allocation2 + $0x768] sm:$0xff]  ;;  %v129_v31 = vld [vmem:[#allocation2 + $0x1a0] sm:$0xff]  ;;  %v2989_v34 = vpack.c.bf16 %v122_v26, %v119_v25  ;;  %v966_v62 = vunpack.c.0.s8 %v965_v48 }
  0x62   :  { %3106 = vmatpush1.bf16.msra.mxu0 %v3105_v63  ;;  %2980 = vmatprep.subr.bf16.mxu1 %v2979_v0  ;;  %v126_v30 = vld [vmem:[#allocation2 + $0x188] sm:$0xff]  ;;  %v321_v33 = vld [vmem:[#allocation2 + $0x7a0] sm:$0xff]  ;;  %v3117_v35 = vpack.c.bf16 %v314_v29, %v311_v27  ;;  %v128_v38 = vld [vmem:[#allocation2 + $0x198] sm:$0xff] }
  0x63   :  { %3108 = vmatprep.subr.bf16.mxu0 %v3107_v4  ;;  %v318_v32 = vld [vmem:[#allocation2 + $0x788] sm:$0xff]  ;;  %v2991_v36 = vpack.c.bf16 %v129_v31, %v126_v30  ;;  %v125_v37 = vld [vmem:[#allocation2 + $0x180] sm:$0xff]  ;;  %v320_v41 = vld [vmem:[#allocation2 + $0x798] sm:$0xff] }
  0x64   :  { %v317_v39 = vld [vmem:[#allocation2 + $0x780] sm:$0xff]  ;;  %v3119_v40 = vpack.c.bf16 %v321_v33, %v318_v32  ;;  %v132_v42 = vld [vmem:[#allocation2 + $0x1b8] sm:$0xff]  ;;  %v135_v43 = vld [vmem:[#allocation2 + $0x1d0] sm:$0xff]  ;;  %v2993_v49 = vpack.c.bf16 %v128_v38, %v125_v37 }
  0x65   :  { %2982 = vmatpush1.bf16.msra.mxu1 %v2981_v10  ;;  %v324_v44 = vld [vmem:[#allocation2 + $0x7b8] sm:$0xff]  ;;  %v327_v45 = vld [vmem:[#allocation2 + $0x7d0] sm:$0xff]  ;;  %v3121_v50 = vpack.c.bf16 %v320_v41, %v317_v39  ;;  %v2995_v51 = vpack.c.bf16 %v135_v43, %v132_v42  ;;  %v134_v53 = vld [vmem:[#allocation2 + $0x1c8] sm:$0xff] }
  0x66   :  { %3110 = vmatpush1.bf16.msra.mxu0 %v3109_v11  ;;  %2984 = vmatprep.subr.bf16.mxu1 %v2983_v12  ;;  %v131_v52 = vld [vmem:[#allocation2 + $0x1b0] sm:$0xff]  ;;  %v3123_v55 = vpack.c.bf16 %v327_v45, %v324_v44  ;;  %v326_v56 = vld [vmem:[#allocation2 + $0x7c8] sm:$0xff]  ;;  %v141_v58 = vld [vmem:[#allocation2 + $0x200] sm:$0xff]  ;;  %v4137_v11 = vsub.s32 %v966_v62, %v4134_v61 }
  0x67   :  { %3112 = vmatprep.subr.bf16.mxu0 %v3111_v16  ;;  %v323_v54 = vld [vmem:[#allocation2 + $0x7b0] sm:$0xff]  ;;  %v138_v57 = vld [vmem:[#allocation2 + $0x1e8] sm:$0xff]  ;;  %v333_v60 = vld [vmem:[#allocation2 + $0x800] sm:$0xff]  ;;  %v2997_v63 = vpack.c.bf16 %v134_v53, %v131_v52 }
  0x68   :  { %v330_v59 = vld [vmem:[#allocation2 + $0x7e8] sm:$0xff]  ;;  %v3125_v0 = vpack.c.bf16 %v326_v56, %v323_v54  ;;  %v2999_v1 = vpack.c.bf16 %v141_v58, %v138_v57  ;;  %v137_v2 = vld [vmem:[#allocation2 + $0x1e0] sm:$0xff]  ;;  %v140_v3 = vld [vmem:[#allocation2 + $0x1f8] sm:$0xff] }
  0x69   :  { %2986 = vmatpush1.bf16.msra.mxu1 %v2985_v22  ;;  %v329_v4 = vld [vmem:[#allocation2 + $0x7e0] sm:$0xff]  ;;  %v3127_v5 = vpack.c.bf16 %v333_v60, %v330_v59  ;;  %v332_v6 = vld [vmem:[#allocation2 + $0x7f8] sm:$0xff]  ;;  %v147_v8 = vld [vmem:[#allocation2 + $0x230] sm:$0xff]  ;;  %v3001_v12 = vpack.c.bf16 %v140_v3, %v137_v2 }
  0x6a   :  { %3114 = vmatpush1.bf16.msra.mxu0 %v3113_v23  ;;  %2988 = vmatprep.subr.bf16.mxu1 %v2987_v24  ;;  %v144_v7 = vld [vmem:[#allocation2 + $0x218] sm:$0xff]  ;;  %v339_v10 = vld [vmem:[#allocation2 + $0x830] sm:$0xff]  ;;  %v3129_v14 = vpack.c.bf16 %v332_v6, %v329_v4  ;;  %v146_v16 = vld [vmem:[#allocation2 + $0x228] sm:$0xff] }
  0x6b   :  { %3116 = vmatprep.subr.bf16.mxu0 %v3115_v28  ;;  %v336_v9 = vld [vmem:[#allocation2 + $0x818] sm:$0xff]  ;;  %v143_v13 = vld [vmem:[#allocation2 + $0x210] sm:$0xff]  ;;  %v3003_v15 = vpack.c.bf16 %v147_v8, %v144_v7  ;;  %v338_v18 = vld [vmem:[#allocation2 + $0x828] sm:$0xff] }
  0x6c   :  { %v335_v17 = vld [vmem:[#allocation2 + $0x810] sm:$0xff]  ;;  %v3131_v19 = vpack.c.bf16 %v339_v10, %v336_v9  ;;  %v150_v20 = vld [vmem:[#allocation2 + $0x248] sm:$0xff]  ;;  %v153_v21 = vld [vmem:[#allocation2 + $0x260] sm:$0xff]  ;;  %v3005_v27 = vpack.c.bf16 %v146_v16, %v143_v13 }
  0x6d   :  { %2990 = vmatpush1.bf16.msra.mxu1 %v2989_v34  ;;  %v4142_v22 = vld [vmem:[%s4311_s0] sm:$0xff]  ;;  %v342_v23 = vld [vmem:[#allocation2 + $0x848] sm:$0xff]  ;;  %v3133_v29 = vpack.c.bf16 %v338_v18, %v335_v17  ;;  %v3007_v30 = vpack.c.bf16 %v153_v21, %v150_v20  ;;  %v152_v32 = vld [vmem:[#allocation2 + $0x258] sm:$0xff] }
  0x6e   :  { %3118 = vmatpush1.bf16.msra.mxu0 %v3117_v35  ;;  %2992 = vmatprep.subr.bf16.mxu1 %v2991_v36  ;;  %v345_v24 = vld [vmem:[#allocation2 + $0x860] sm:$0xff]  ;;  %v4146_v25 = vrot.slane %v4142_v22, %v4137_v11  ;;  %v4151_v26 = vld [vmem:[%s4311_s0 + $0x8] sm:$0xff]  ;;  %v344_v36 = vld [vmem:[#allocation2 + $0x858] sm:$0xff] }
  0x6f   :  { %3120 = vmatprep.subr.bf16.mxu0 %v3119_v40  ;;  %v4155_v28 = vrot.slane %v4151_v26, %v4137_v11  ;;  %v149_v31 = vld [vmem:[#allocation2 + $0x240] sm:$0xff]  ;;  %v3135_v35 = vpack.c.bf16 %v345_v24, %v342_v23  ;;  %v156_v37 = vld [vmem:[#allocation2 + $0x278] sm:$0xff]  ;;  %v159_v38 = vld [vmem:[#allocation2 + $0x290] sm:$0xff] }
  0x70   :  { %v341_v33 = vld [vmem:[#allocation2 + $0x840] sm:$0xff]  ;;  %v4159_v34 = vcombine.high %v4146_v25, %v4146_v25  ;;  %v348_v40 = vld [vmem:[#allocation2 + $0x878] sm:$0xff]  ;;  %v351_v41 = vld [vmem:[#allocation2 + $0x890] sm:$0xff]  ;;  %v3009_v42 = vpack.c.bf16 %v152_v32, %v149_v31  ;;  %v3011_v44 = vpack.c.bf16 %v159_v38, %v156_v37 }
  0x71   :  { %2994 = vmatpush1.bf16.msra.mxu1 %v2993_v49  ;;  %v4163_v39 = vcombine.high %v4155_v28, %v4155_v28  ;;  %v3137_v43 = vpack.c.bf16 %v344_v36, %v341_v33  ;;  %v155_v45 = vld [vmem:[#allocation2 + $0x270] sm:$0xff]  ;;  %v158_v46 = vld [vmem:[#allocation2 + $0x288] sm:$0xff]  ;;  %v3139_v48 = vpack.c.bf16 %v351_v41, %v348_v40  ;;  %v357_v53 = vld [vmem:[#allocation2 + $0x8c0] sm:$0xff] }
  0x72   :  { %3122 = vmatpush1.bf16.msra.mxu0 %v3121_v50  ;;  %2996 = vmatprep.subr.bf16.mxu1 %v2995_v51  ;;  %v347_v47 = vld [vmem:[#allocation2 + $0x870] sm:$0xff]  ;;  %v350_v49 = vld [vmem:[#allocation2 + $0x888] sm:$0xff]  ;;  %v165_v51 = vld [vmem:[#allocation2 + $0x2c0] sm:$0xff]  ;;  %v3013_v54 = vpack.c.bf16 %v158_v46, %v155_v45 }
  0x73   :  { %3124 = vmatprep.subr.bf16.mxu0 %v3123_v55  ;;  %1121 = vmatprep.mubr.f32.mxu1 %v4159_v34  ;;  %v162_v50 = vld [vmem:[#allocation2 + $0x2a8] sm:$0xff]  ;;  %v3141_v55 = vpack.c.bf16 %v350_v49, %v347_v47  ;;  %v161_v57 = vld [vmem:[#allocation2 + $0x2a0] sm:$0xff]  ;;  %v164_v58 = vld [vmem:[#allocation2 + $0x2b8] sm:$0xff] }
  0x74   :  { %1263 = vmatprep.mubr.f32.mxu0 %v4163_v39  ;;  %v354_v52 = vld [vmem:[#allocation2 + $0x8a8] sm:$0xff]  ;;  %v3015_v56 = vpack.c.bf16 %v165_v51, %v162_v50  ;;  %v353_v59 = vld [vmem:[#allocation2 + $0x8a0] sm:$0xff]  ;;  %v356_v62 = vld [vmem:[#allocation2 + $0x8b8] sm:$0xff]  ;;  %v3017_v3 = vpack.c.bf16 %v164_v58, %v161_v57 }
  0x75   :  { %2998 = vmatpush1.bf16.msra.mxu1 %v2997_v63  ;;  %v3143_v60 = vpack.c.bf16 %v357_v53, %v354_v52  ;;  %v168_v63 = vld [vmem:[#allocation2 + $0x2d8] sm:$0xff]  ;;  %v363_v2 = vld [vmem:[#allocation2 + $0x8f0] sm:$0xff]  ;;  %v3145_v4 = vpack.c.bf16 %v356_v62, %v353_v59  ;;  %v170_v7 = vld [vmem:[#allocation2 + $0x2e8] sm:$0xff] }
  0x76   :  { %3126 = vmatpush1.bf16.msra.mxu0 %v3125_v0  ;;  %3000 = vmatprep.subr.bf16.mxu1 %v2999_v1  ;;  %v171_v0 = vld [vmem:[#allocation2 + $0x2f0] sm:$0xff]  ;;  %v360_v1 = vld [vmem:[#allocation2 + $0x8d8] sm:$0xff]  ;;  %v362_v10 = vld [vmem:[#allocation2 + $0x8e8] sm:$0xff] }
  0x77   :  { %3128 = vmatprep.subr.bf16.mxu0 %v3127_v5  ;;  %v3019_v5 = vpack.c.bf16 %v171_v0, %v168_v63  ;;  %v167_v6 = vld [vmem:[#allocation2 + $0x2d0] sm:$0xff]  ;;  %v3147_v9 = vpack.c.bf16 %v363_v2, %v360_v1  ;;  %v174_v13 = vld [vmem:[#allocation2 + $0x308] sm:$0xff]  ;;  %v369_v17 = vld [vmem:[#allocation2 + $0x920] sm:$0xff] }
  0x78   :  { %v359_v8 = vld [vmem:[#allocation2 + $0x8d0] sm:$0xff]  ;;  %v366_v16 = vld [vmem:[#allocation2 + $0x908] sm:$0xff]  ;;  %v3021_v18 = vpack.c.bf16 %v170_v7, %v167_v6  ;;  %v173_v21 = vld [vmem:[#allocation2 + $0x300] sm:$0xff] }
  0x79   :  { %3002 = vmatpush1.bf16.msra.mxu1 %v3001_v12  ;;  %v963_v12 = vcombine.high %v4142_v22, %v4142_v22  ;;  %v176_v23 = vld [vmem:[#allocation2 + $0x318] sm:$0xff]  ;;  %v365_v24 = vld [vmem:[#allocation2 + $0x900] sm:$0xff]  ;;  %v375_v32 = vld [vmem:[#allocation2 + $0x950] sm:$0xff] }
  0x7a   :  { %3130 = vmatpush1.bf16.msra.mxu0 %v3129_v14  ;;  %3004 = vmatprep.subr.bf16.mxu1 %v3003_v15  ;;  %v177_v14 = vld [vmem:[#allocation2 + $0x320] sm:$0xff]  ;;  %v980_v15 = vcombine.high %v4151_v26, %v4151_v26  ;;  %v180_v22 = vld [vmem:[#allocation2 + $0x338] sm:$0xff]  ;;  %v179_v38 = vld [vmem:[#allocation2 + $0x330] sm:$0xff] }
  0x7b   :  { %3132 = vmatprep.subr.bf16.mxu0 %v3131_v19  ;;  %v3149_v19 = vpack.c.bf16 %v362_v10, %v359_v8  ;;  %v3023_v20 = vpack.c.bf16 %v177_v14, %v174_v13  ;;  %v4172_v31 = vrot.slane %v963_v12, %v4137_v11  ;;  %v372_v26 = vld [vmem:[#allocation2 + $0x938] sm:$0xff]  ;;  %v182_v40 = vld [vmem:[#allocation2 + $0x348] sm:$0xff]  ;;  %v371_v41 = vld [vmem:[#allocation2 + $0x930] sm:$0xff] }
  0x7c   :  { %v4175_v33 = vrot.slane %v980_v15, %v4137_v11  ;;  %v189_v45 = vld [vmem:[#allocation2 + $0x380] sm:$0xff]  ;;  %v378_v47 = vld [vmem:[#allocation2 + $0x968] sm:$0xff]  ;;  %v3029_v50 = vpack.c.bf16 %v182_v40, %v179_v38  ;;  %v380_v57 = vld [vmem:[#allocation2 + $0x978] sm:$0xff] }
  0x7d   :  { %3006 = vmatpush1.bf16.msra.mxu1 %v3005_v27  ;;  %v3151_v27 = vpack.c.bf16 %v369_v17, %v366_v16  ;;  %v4179_v46 = vcombine.high %v4172_v31, %v4172_v31  ;;  %v185_v53 = vld [vmem:[#allocation2 + $0x360] sm:$0xff]  ;;  %v192_v58 = vld [vmem:[#allocation2 + $0x398] sm:$0xff]  ;;  %v195_v59 = vld [vmem:[#allocation2 + $0x3b0] sm:$0xff] }
  0x7e   :  { %3134 = vmatpush1.bf16.msra.mxu0 %v3133_v29  ;;  %3008 = vmatprep.subr.bf16.mxu1 %v3007_v30  ;;  %v368_v29 = vld [vmem:[#allocation2 + $0x918] sm:$0xff]  ;;  %v183_v30 = vld [vmem:[#allocation2 + $0x350] sm:$0xff]  ;;  %v4184_v49 = vcombine.high %v4175_v33, %v4175_v33  ;;  %v3035_v1 = vpack.c.bf16 %v195_v59, %v192_v58  ;;  %v386_v6 = vld [vmem:[#allocation2 + $0x9a8] sm:$0xff] }
  0x7f   :  { %3136 = vmatprep.subr.bf16.mxu0 %v3135_v35  ;;  %v3025_v35 = vpack.c.bf16 %v176_v23, %v173_v21  ;;  %v3153_v36 = vpack.c.bf16 %v368_v29, %v365_v24  ;;  %v3027_v37 = vpack.c.bf16 %v183_v30, %v180_v22  ;;  %v387_v62 = vld [vmem:[#allocation2 + $0x9b0] sm:$0xff]  ;;  %v198_v7 = vld [vmem:[#allocation2 + $0x3c8] sm:$0xff]  ;;  %v201_v8 = vld [vmem:[#allocation2 + $0x3e0] sm:$0xff] }
  0x80   :  { %v191_v2 = vld [vmem:[#allocation2 + $0x390] sm:$0xff]  ;;  %v393_v10 = vld [vmem:[#allocation2 + $0x9e0] sm:$0xff]  ;;  %v3039_v14 = vpack.c.bf16 %v201_v8, %v198_v7  ;;  %v200_v16 = vld [vmem:[#allocation2 + $0x3d8] sm:$0xff] }
  0x81   :  { %3010 = vmatpush1.bf16.msra.mxu1 %v3009_v42  ;;  %v3155_v42 = vpack.c.bf16 %v375_v32, %v372_v26  ;;  %v197_v15 = vld [vmem:[#allocation2 + $0x3c0] sm:$0xff]  ;;  %v207_v21 = vld [vmem:[#allocation2 + $0x410] sm:$0xff]  ;;  %v396_v23 = vld [vmem:[#allocation2 + $0x9f8] sm:$0xff] }
  0x82   :  { %3138 = vmatpush1.bf16.msra.mxu0 %v3137_v43  ;;  %3012 = vmatprep.subr.bf16.mxu1 %v3011_v44  ;;  %v374_v43 = vld [vmem:[#allocation2 + $0x948] sm:$0xff]  ;;  %v389_v17 = vld [vmem:[#allocation2 + $0x9c0] sm:$0xff]  ;;  %v399_v24 = vld [vmem:[#allocation2 + $0xa10] sm:$0xff] }
  0x83   :  { %3140 = vmatprep.subr.bf16.mxu0 %v3139_v48  ;;  %v186_v44 = vld [vmem:[#allocation2 + $0x368] sm:$0xff]  ;;  %v381_v48 = vld [vmem:[#allocation2 + $0x980] sm:$0xff]  ;;  %v3157_v51 = vpack.c.bf16 %v374_v43, %v371_v41  ;;  %v203_v30 = vld [vmem:[#allocation2 + $0x3f0] sm:$0xff] }
  0x84   :  { %v3031_v52 = vpack.c.bf16 %v189_v45, %v186_v44  ;;  %v206_v26 = vld [vmem:[#allocation2 + $0x408] sm:$0xff]  ;;  %v395_v32 = vld [vmem:[#allocation2 + $0x9f0] sm:$0xff]  ;;  %v213_v38 = vld [vmem:[#allocation2 + $0x440] sm:$0xff] }
  0x85   :  { %3014 = vmatpush1.bf16.msra.mxu1 %v3013_v54  ;;  %v188_v54 = vld [vmem:[#allocation2 + $0x378] sm:$0xff]  ;;  %v402_v40 = vld [vmem:[#allocation2 + $0xa28] sm:$0xff]  ;;  %v405_v41 = vld [vmem:[#allocation2 + $0xa40] sm:$0xff] }
  0x86   :  { %3142 = vmatpush1.bf16.msra.mxu0 %v3141_v55  ;;  %3016 = vmatprep.subr.bf16.mxu1 %v3015_v56  ;;  %v377_v55 = vld [vmem:[#allocation2 + $0x960] sm:$0xff]  ;;  %v3159_v56 = vpack.c.bf16 %v381_v48, %v378_v47  ;;  %v3033_v63 = vpack.c.bf16 %v188_v54, %v185_v53  ;;  %v212_v47 = vld [vmem:[#allocation2 + $0x438] sm:$0xff]  ;;  %v219_v53 = vld [vmem:[#allocation2 + $0x470] sm:$0xff] }
  0x87   :  { %3144 = vmatprep.subr.bf16.mxu0 %v3143_v60  ;;  %v384_v60 = vld [vmem:[#allocation2 + $0x998] sm:$0xff]  ;;  %v3161_v0 = vpack.c.bf16 %v380_v57, %v377_v55  ;;  %v209_v45 = vld [vmem:[#allocation2 + $0x420] sm:$0xff]  ;;  %v411_v55 = vld [vmem:[#allocation2 + $0xa70] sm:$0xff] }
  0x88   :  { %v401_v48 = vld [vmem:[#allocation2 + $0xa20] sm:$0xff]  ;;  %v408_v54 = vld [vmem:[#allocation2 + $0xa58] sm:$0xff]  ;;  %v215_v59 = vld [vmem:[#allocation2 + $0x450] sm:$0xff] }
  0x89   :  { %3018 = vmatpush1.bf16.msra.mxu1 %v3017_v3  ;;  %v194_v3 = vld [vmem:[#allocation2 + $0x3a8] sm:$0xff]  ;;  %v221_v8 = vld [vmem:[#allocation2 + $0x480] sm:$0xff] }
  0x8a   :  { %3146 = vmatpush1.bf16.msra.mxu0 %v3145_v4  ;;  %3020 = vmatprep.subr.bf16.mxu1 %v3019_v5  ;;  %v383_v4 = vld [vmem:[#allocation2 + $0x990] sm:$0xff]  ;;  %v3163_v5 = vpack.c.bf16 %v387_v62, %v384_v60  ;;  %v3037_v12 = vpack.c.bf16 %v194_v3, %v191_v2  ;;  %v218_v60 = vld [vmem:[#allocation2 + $0x468] sm:$0xff]  ;;  %v225_v2 = vld [vmem:[#allocation2 + $0x4a0] sm:$0xff] }
  0x8b   :  { %3148 = vmatprep.subr.bf16.mxu0 %v3147_v9  ;;  %v390_v9 = vld [vmem:[#allocation2 + $0x9c8] sm:$0xff]  ;;  %v3165_v13 = vpack.c.bf16 %v386_v6, %v383_v4  ;;  %v407_v62 = vld [vmem:[#allocation2 + $0xa50] sm:$0xff]  ;;  %v417_v4 = vld [vmem:[#allocation2 + $0xaa0] sm:$0xff] }
  0x8c   :  { %v414_v3 = vld [vmem:[#allocation2 + $0xa88] sm:$0xff] }
  0x8d   :  { %3022 = vmatpush1.bf16.msra.mxu1 %v3021_v18  ;;  %v3167_v18 = vpack.c.bf16 %v393_v10, %v390_v9  ;;  %v224_v9 = vld [vmem:[#allocation2 + $0x498] sm:$0xff]  ;;  %v413_v10 = vld [vmem:[#allocation2 + $0xa80] sm:$0xff] }
  0x8e   :  { %3150 = vmatpush1.bf16.msra.mxu0 %v3149_v19  ;;  %3024 = vmatprep.subr.bf16.mxu1 %v3023_v20  ;;  %v392_v19 = vld [vmem:[#allocation2 + $0x9d8] sm:$0xff] }
  0x8f   :  { %3152 = vmatprep.subr.bf16.mxu0 %v3151_v27  ;;  %v204_v20 = vld [vmem:[#allocation2 + $0x3f8] sm:$0xff]  ;;  %v3041_v27 = vpack.c.bf16 %v200_v16, %v197_v15  ;;  %v3169_v29 = vpack.c.bf16 %v392_v19, %v389_v17  ;;  %v231_v15 = vld [vmem:[#allocation2 + $0x4d0] sm:$0xff] }
  0x90   :  { %1122 = vmatmul.mubr.f32.vlgmr.msra.gmra.mrb[0].mxu1 %v4146_v25  ;;  %v3043_v22 = vpack.c.bf16 %v207_v21, %v204_v20  ;;  %v420_v16 = vld [vmem:[#allocation2 + $0xab8] sm:$0xff]  ;;  %v423_v17 = vld [vmem:[#allocation2 + $0xad0] sm:$0xff] }
  0x91   :  { %3026 = vmatpush1.bf16.msra.mxu1 %v3025_v35  ;;  %1264 = vmatmul.mubr.f32.vlgmr.msra.gmra.mrb[0].mxu0 %v4155_v28  ;;  %v3171_v35 = vpack.c.bf16 %v399_v24, %v396_v23  ;;  %v227_v21 = vld [vmem:[#allocation2 + $0x4b0] sm:$0xff]  ;;  %v230_v23 = vld [vmem:[#allocation2 + $0x4c8] sm:$0xff] }
  0x92   :  { %3154 = vmatpush1.bf16.msra.mxu0 %v3153_v36  ;;  %3028 = vmatprep.subr.bf16.mxu1 %v3027_v37  ;;  %v398_v36 = vld [vmem:[#allocation2 + $0xa08] sm:$0xff]  ;;  %v419_v24 = vld [vmem:[#allocation2 + $0xab0] sm:$0xff] }
  0x93   :  { %3156 = vmatprep.subr.bf16.mxu0 %v3155_v42  ;;  %1192 = vmatprep.mubr.f32.mxu1 %v4179_v46  ;;  %v210_v37 = vld [vmem:[#allocation2 + $0x428] sm:$0xff]  ;;  %v3045_v42 = vpack.c.bf16 %v206_v26, %v203_v30  ;;  %v3173_v43 = vpack.c.bf16 %v398_v36, %v395_v32  ;;  %v237_v30 = vld [vmem:[#allocation2 + $0x500] sm:$0xff] }
  0x94   :  { %1334 = vmatprep.mubr.f32.mxu0 %v4184_v49  ;;  %v3047_v44 = vpack.c.bf16 %v213_v38, %v210_v37  ;;  %v426_v26 = vld [vmem:[#allocation2 + $0xae8] sm:$0xff]  ;;  %v429_v32 = vld [vmem:[#allocation2 + $0xb00] sm:$0xff] }
  0x95   :  { %3030 = vmatpush1.bf16.msra.mxu1 %v3029_v50  ;;  %v3175_v50 = vpack.c.bf16 %v405_v41, %v402_v40  ;;  %v233_v38 = vld [vmem:[#allocation2 + $0x4e0] sm:$0xff]  ;;  %v236_v40 = vld [vmem:[#allocation2 + $0x4f8] sm:$0xff] }
  0x96   :  { %3158 = vmatpush1.bf16.msra.mxu0 %v3157_v51  ;;  %3032 = vmatprep.subr.bf16.mxu1 %v3031_v52  ;;  %v404_v51 = vld [vmem:[#allocation2 + $0xa38] sm:$0xff]  ;;  %v425_v41 = vld [vmem:[#allocation2 + $0xae0] sm:$0xff] }
  0x97   :  { %3160 = vmatprep.subr.bf16.mxu0 %v3159_v56  ;;  %v216_v52 = vld [vmem:[#allocation2 + $0x458] sm:$0xff]  ;;  %v3049_v56 = vpack.c.bf16 %v212_v47, %v209_v45  ;;  %v3177_v57 = vpack.c.bf16 %v404_v51, %v401_v48  ;;  %v243_v45 = vld [vmem:[#allocation2 + $0x530] sm:$0xff] }
  0x98   :  { %v3051_v58 = vpack.c.bf16 %v219_v53, %v216_v52  ;;  %v432_v47 = vld [vmem:[#allocation2 + $0xb18] sm:$0xff]  ;;  %v435_v48 = vld [vmem:[#allocation2 + $0xb30] sm:$0xff] }
  0x99   :  { %3034 = vmatpush1.bf16.msra.mxu1 %v3033_v63  ;;  %v3179_v63 = vpack.c.bf16 %v411_v55, %v408_v54  ;;  %v239_v53 = vld [vmem:[#allocation2 + $0x510] sm:$0xff]  ;;  %v242_v54 = vld [vmem:[#allocation2 + $0x528] sm:$0xff] }
  0x9a   :  { %3162 = vmatpush1.bf16.msra.mxu0 %v3161_v0  ;;  %3036 = vmatprep.subr.bf16.mxu1 %v3035_v1  ;;  %v410_v0 = vld [vmem:[#allocation2 + $0xa68] sm:$0xff]  ;;  %v431_v55 = vld [vmem:[#allocation2 + $0xb10] sm:$0xff] }
  0x9b   :  { %3164 = vmatprep.subr.bf16.mxu0 %v3163_v5  ;;  %v222_v1 = vld [vmem:[#allocation2 + $0x488] sm:$0xff]  ;;  %v3053_v5 = vpack.c.bf16 %v218_v60, %v215_v59  ;;  %v3181_v6 = vpack.c.bf16 %v410_v0, %v407_v62  ;;  %v249_v59 = vld [vmem:[#allocation2 + $0x560] sm:$0xff] }
  0x9c   :  { %v3055_v7 = vpack.c.bf16 %v225_v2, %v222_v1  ;;  %v438_v60 = vld [vmem:[#allocation2 + $0xb48] sm:$0xff]  ;;  %v441_v62 = vld [vmem:[#allocation2 + $0xb60] sm:$0xff] }
  0x9d   :  { %3038 = vmatpush1.bf16.msra.mxu1 %v3037_v12  ;;  %v3183_v12 = vpack.c.bf16 %v417_v4, %v414_v3  ;;  %v245_v2 = vld [vmem:[#allocation2 + $0x540] sm:$0xff]  ;;  %v248_v3 = vld [vmem:[#allocation2 + $0x558] sm:$0xff] }
  0x9e   :  { %3166 = vmatpush1.bf16.msra.mxu0 %v3165_v13  ;;  %3040 = vmatprep.subr.bf16.mxu1 %v3039_v14  ;;  %v416_v13 = vld [vmem:[#allocation2 + $0xa98] sm:$0xff]  ;;  %v437_v4 = vld [vmem:[#allocation2 + $0xb40] sm:$0xff] }
  0x9f   :  { %3168 = vmatprep.subr.bf16.mxu0 %v3167_v18  ;;  %v228_v14 = vld [vmem:[#allocation2 + $0x4b8] sm:$0xff]  ;;  %v3057_v18 = vpack.c.bf16 %v224_v9, %v221_v8  ;;  %v3185_v19 = vpack.c.bf16 %v416_v13, %v413_v10  ;;  %v255_v8 = vld [vmem:[#allocation2 + $0x590] sm:$0xff] }
  0xa0   :  { %v3059_v20 = vpack.c.bf16 %v231_v15, %v228_v14  ;;  %v444_v9 = vld [vmem:[#allocation2 + $0xb78] sm:$0xff]  ;;  %v447_v10 = vld [vmem:[#allocation2 + $0xb90] sm:$0xff] }
  0xa1   :  { %3042 = vmatpush1.bf16.msra.mxu1 %v3041_v27  ;;  %v3187_v27 = vpack.c.bf16 %v423_v17, %v420_v16  ;;  %v251_v15 = vld [vmem:[#allocation2 + $0x570] sm:$0xff]  ;;  %v254_v16 = vld [vmem:[#allocation2 + $0x588] sm:$0xff] }
  0xa2   :  { %3170 = vmatpush1.bf16.msra.mxu0 %v3169_v29  ;;  %3044 = vmatprep.subr.bf16.mxu1 %v3043_v22  ;;  %v422_v29 = vld [vmem:[#allocation2 + $0xac8] sm:$0xff]  ;;  %v443_v17 = vld [vmem:[#allocation2 + $0xb70] sm:$0xff] }
  0xa3   :  { %3172 = vmatprep.subr.bf16.mxu0 %v3171_v35  ;;  %v234_v22 = vld [vmem:[#allocation2 + $0x4e8] sm:$0xff]  ;;  %v3061_v35 = vpack.c.bf16 %v230_v23, %v227_v21  ;;  %v3189_v36 = vpack.c.bf16 %v422_v29, %v419_v24  ;;  %v261_v21 = vld [vmem:[#allocation2 + $0x5c0] sm:$0xff] }
  0xa4   :  { %v3063_v37 = vpack.c.bf16 %v237_v30, %v234_v22  ;;  %v450_v23 = vld [vmem:[#allocation2 + $0xba8] sm:$0xff]  ;;  %v453_v24 = vld [vmem:[#allocation2 + $0xbc0] sm:$0xff] }
  0xa5   :  { %3046 = vmatpush1.bf16.msra.mxu1 %v3045_v42  ;;  %v3191_v42 = vpack.c.bf16 %v429_v32, %v426_v26  ;;  %v257_v30 = vld [vmem:[#allocation2 + $0x5a0] sm:$0xff]  ;;  %v260_v26 = vld [vmem:[#allocation2 + $0x5b8] sm:$0xff] }
  0xa6   :  { %3174 = vmatpush1.bf16.msra.mxu0 %v3173_v43  ;;  %3048 = vmatprep.subr.bf16.mxu1 %v3047_v44  ;;  %v428_v43 = vld [vmem:[#allocation2 + $0xaf8] sm:$0xff]  ;;  %v449_v32 = vld [vmem:[#allocation2 + $0xba0] sm:$0xff] }
  0xa7   :  { %3176 = vmatprep.subr.bf16.mxu0 %v3175_v50  ;;  %v240_v44 = vld [vmem:[#allocation2 + $0x518] sm:$0xff]  ;;  %v3065_v50 = vpack.c.bf16 %v236_v40, %v233_v38  ;;  %v3193_v51 = vpack.c.bf16 %v428_v43, %v425_v41  ;;  %v267_v38 = vld [vmem:[#allocation2 + $0x5f0] sm:$0xff] }
  0xa8   :  { %v3067_v52 = vpack.c.bf16 %v243_v45, %v240_v44  ;;  %v456_v40 = vld [vmem:[#allocation2 + $0xbd8] sm:$0xff]  ;;  %v459_v41 = vld [vmem:[#allocation2 + $0xbf0] sm:$0xff] }
  0xa9   :  { %3050 = vmatpush1.bf16.msra.mxu1 %v3049_v56  ;;  %v3195_v56 = vpack.c.bf16 %v435_v48, %v432_v47  ;;  %v263_v45 = vld [vmem:[#allocation2 + $0x5d0] sm:$0xff]  ;;  %v266_v47 = vld [vmem:[#allocation2 + $0x5e8] sm:$0xff] }
  0xaa   :  { %3178 = vmatpush1.bf16.msra.mxu0 %v3177_v57  ;;  %3052 = vmatprep.subr.bf16.mxu1 %v3051_v58  ;;  %v434_v57 = vld [vmem:[#allocation2 + $0xb28] sm:$0xff]  ;;  %v455_v48 = vld [vmem:[#allocation2 + $0xbd0] sm:$0xff] }
  0xab   :  { %3180 = vmatprep.subr.bf16.mxu0 %v3179_v63  ;;  %v246_v58 = vld [vmem:[#allocation2 + $0x548] sm:$0xff]  ;;  %v3069_v63 = vpack.c.bf16 %v242_v54, %v239_v53  ;;  %v3197_v0 = vpack.c.bf16 %v434_v57, %v431_v55  ;;  %v465_v55 = vld [vmem:[#allocation2 + $0xc20] sm:$0xff] }
  0xac   :  { %v3071_v1 = vpack.c.bf16 %v249_v59, %v246_v58  ;;  %v130_v53 = vld [vmem:[#allocation2 + $0x1a8] sm:$0xff]  ;;  %v461_v59 = vld [vmem:[#allocation2 + $0xc00] sm:$0xff] }
  0xad   :  { %3054 = vmatpush1.bf16.msra.mxu1 %v3053_v5  ;;  %v3199_v5 = vpack.c.bf16 %v441_v62, %v438_v60  ;;  %v462_v54 = vld [vmem:[#allocation2 + $0xc08] sm:$0xff]  ;;  %v79_v60 = vld [vmem:[#allocation2 + $0x10] sm:$0xff] }
  0xae   :  { %3182 = vmatpush1.bf16.msra.mxu0 %v3181_v6  ;;  %3056 = vmatprep.subr.bf16.mxu1 %v3055_v7  ;;  %v440_v6 = vld [vmem:[#allocation2 + $0xb58] sm:$0xff]  ;;  %v82_v62 = vld [vmem:[#allocation2 + $0x28] sm:$0xff] }
  0xaf   :  { %3184 = vmatprep.subr.bf16.mxu0 %v3183_v12  ;;  %v252_v7 = vld [vmem:[#allocation2 + $0x578] sm:$0xff]  ;;  %v3073_v12 = vpack.c.bf16 %v248_v3, %v245_v2  ;;  %v3201_v13 = vpack.c.bf16 %v440_v6, %v437_v4  ;;  %v471_v4 = vld [vmem:[#allocation2 + $0xc50] sm:$0xff] }
  0xb0   :  { %v3075_v14 = vpack.c.bf16 %v255_v8, %v252_v7  ;;  %v136_v2 = vld [vmem:[#allocation2 + $0x1d8] sm:$0xff]  ;;  %v4192_v6 = vld [vmem:[%s4311_s0 + $0x10] sm:$0xff] }
  0xb1   :  { %3058 = vmatpush1.bf16.msra.mxu1 %v3057_v18  ;;  %v3203_v18 = vpack.c.bf16 %v447_v10, %v444_v9  ;;  %v468_v3 = vld [vmem:[#allocation2 + $0xc38] sm:$0xff]  ;;  %v467_v9 = vld [vmem:[#allocation2 + $0xc30] sm:$0xff]  ;;  %v85_v10 = vld [vmem:[#allocation2 + $0x40] sm:$0xff] }
  0xb2   :  { %3186 = vmatpush1.bf16.msra.mxu0 %v3185_v19  ;;  %3060 = vmatprep.subr.bf16.mxu1 %v3059_v20  ;;  %v446_v19 = vld [vmem:[#allocation2 + $0xb88] sm:$0xff] }
  0xb3   :  { %3188 = vmatprep.subr.bf16.mxu0 %v3187_v27  ;;  %v258_v20 = vld [vmem:[#allocation2 + $0x5a8] sm:$0xff]  ;;  %v3077_v27 = vpack.c.bf16 %v254_v16, %v251_v15  ;;  %v3205_v29 = vpack.c.bf16 %v446_v19, %v443_v17  ;;  %v139_v16 = vld [vmem:[#allocation2 + $0x1f0] sm:$0xff]  ;;  %v477_v19 = vld [vmem:[#allocation2 + $0xc80] sm:$0xff] }
  0xb4   :  { %v3079_v22 = vpack.c.bf16 %v261_v21, %v258_v20  ;;  %v470_v15 = vld [vmem:[#allocation2 + $0xc48] sm:$0xff] }
  0xb5   :  { %3062 = vmatpush1.bf16.msra.mxu1 %v3061_v35  ;;  %v3207_v35 = vpack.c.bf16 %v453_v24, %v450_v23  ;;  %v142_v17 = vld [vmem:[#allocation2 + $0x208] sm:$0xff]  ;;  %v3221_v23 = vpack.c.bf16 %v470_v15, %v467_v9  ;;  %v501_v15 = vld [vmem:[#allocation2 + $0xd40] sm:$0xff] }
  0xb6   :  { %3190 = vmatpush1.bf16.msra.mxu0 %v3189_v36  ;;  %3064 = vmatprep.subr.bf16.mxu1 %v3063_v37  ;;  %v452_v36 = vld [vmem:[#allocation2 + $0xbb8] sm:$0xff]  ;;  %v3543_v24 = vpack.c.bf16 %v142_v17, %v139_v16  ;;  %v494_v9 = vld [vmem:[#allocation2 + $0xd08] sm:$0xff] }
  0xb7   :  { %3192 = vmatprep.subr.bf16.mxu0 %v3191_v42  ;;  %v264_v37 = vld [vmem:[#allocation2 + $0x5d8] sm:$0xff]  ;;  %v3081_v42 = vpack.c.bf16 %v260_v26, %v257_v30  ;;  %v3209_v43 = vpack.c.bf16 %v452_v36, %v449_v32  ;;  %v145_v32 = vld [vmem:[#allocation2 + $0x220] sm:$0xff] }
  0xb8   :  { %v3083_v44 = vpack.c.bf16 %v267_v38, %v264_v37  ;;  %v476_v26 = vld [vmem:[#allocation2 + $0xc78] sm:$0xff]  ;;  %v483_v37 = vld [vmem:[#allocation2 + $0xcb0] sm:$0xff] }
  0xb9   :  { %3066 = vmatpush1.bf16.msra.mxu1 %v3065_v50  ;;  %v3211_v50 = vpack.c.bf16 %v459_v41, %v456_v40  ;;  %v480_v36 = vld [vmem:[#allocation2 + $0xc98] sm:$0xff] }
  0xba   :  { %3194 = vmatpush1.bf16.msra.mxu0 %v3193_v51  ;;  %3068 = vmatprep.subr.bf16.mxu1 %v3067_v52  ;;  %v458_v51 = vld [vmem:[#allocation2 + $0xbe8] sm:$0xff]  ;;  %v127_v52 = vld [vmem:[#allocation2 + $0x190] sm:$0xff] }
  0xbb   :  { %3196 = vmatprep.subr.bf16.mxu0 %v3195_v56  ;;  %v3085_v56 = vpack.c.bf16 %v266_v47, %v263_v45  ;;  %v3213_v57 = vpack.c.bf16 %v458_v51, %v455_v48  ;;  %v3535_v58 = vpack.c.bf16 %v130_v53, %v127_v52  ;;  %v3227_v45 = vpack.c.bf16 %v483_v37, %v480_v36  ;;  %v482_v47 = vld [vmem:[#allocation2 + $0xca8] sm:$0xff]  ;;  %v151_v48 = vld [vmem:[#allocation2 + $0x250] sm:$0xff] }
  0xbc   :  { %v486_v51 = vld [vmem:[#allocation2 + $0xcc8] sm:$0xff]  ;;  %v503_v37 = vld [vmem:[#allocation2 + $0xd50] sm:$0xff] }
  0xbd   :  { %3070 = vmatpush1.bf16.msra.mxu1 %v3069_v63  ;;  %v3215_v63 = vpack.c.bf16 %v465_v55, %v462_v54  ;;  %v485_v55 = vld [vmem:[#allocation2 + $0xcc0] sm:$0xff] }
  0xbe   :  { %3198 = vmatpush1.bf16.msra.mxu0 %v3197_v0  ;;  %3072 = vmatprep.subr.bf16.mxu1 %v3071_v1  ;;  %v464_v0 = vld [vmem:[#allocation2 + $0xc18] sm:$0xff]  ;;  %v133_v1 = vld [vmem:[#allocation2 + $0x1c0] sm:$0xff] }
  0xbf   :  { %3200 = vmatprep.subr.bf16.mxu0 %v3199_v5  ;;  %v3537_v5 = vpack.c.bf16 %v82_v62, %v79_v60  ;;  %v3217_v7 = vpack.c.bf16 %v464_v0, %v461_v59  ;;  %v3539_v8 = vpack.c.bf16 %v136_v2, %v133_v1  ;;  %v488_v59 = vld [vmem:[#allocation2 + $0xcd8] sm:$0xff]  ;;  %v157_v60 = vld [vmem:[#allocation2 + $0x280] sm:$0xff]  ;;  %v495_v0 = vld [vmem:[#allocation2 + $0xd10] sm:$0xff] }
  0xc0   :  { %v160_v62 = vld [vmem:[#allocation2 + $0x298] sm:$0xff]  ;;  %v3233_v2 = vpack.c.bf16 %v488_v59, %v485_v55  ;;  %v519_v59 = vld [vmem:[#allocation2 + $0xdd0] sm:$0xff] }
  0xc1   :  { %3074 = vmatpush1.bf16.msra.mxu1 %v3073_v12  ;;  %v88_v12 = vld [vmem:[#allocation2 + $0x58] sm:$0xff] }
  0xc2   :  { %3202 = vmatpush1.bf16.msra.mxu0 %v3201_v13  ;;  %3076 = vmatprep.subr.bf16.mxu1 %v3075_v14  ;;  %v4196_v13 = vrot.slane %v4192_v6, %v4137_v11  ;;  %v3219_v14 = vpack.c.bf16 %v471_v4, %v468_v3  ;;  %v3541_v21 = vpack.c.bf16 %v88_v12, %v85_v10  ;;  %v491_v4 = vld [vmem:[#allocation2 + $0xcf0] sm:$0xff]  ;;  %v166_v12 = vld [vmem:[#allocation2 + $0x2c8] sm:$0xff]  ;;  %v512_v55 = vld [vmem:[#allocation2 + $0xd98] sm:$0xff] }
  0xc3   :  { %3204 = vmatprep.subr.bf16.mxu0 %v3203_v18  ;;  %v474_v18 = vld [vmem:[#allocation2 + $0xc68] sm:$0xff]  ;;  %v3555_v3 = vpack.c.bf16 %v160_v62, %v157_v60  ;;  %v163_v10 = vld [vmem:[#allocation2 + $0x2b0] sm:$0xff]  ;;  %v3237_v17 = vpack.c.bf16 %v494_v9, %v491_v4  ;;  %v525_v9 = vld [vmem:[#allocation2 + $0xe00] sm:$0xff] }
  0xc4   :  { %v4201_v20 = vcombine.high %v4196_v13, %v4196_v13  ;;  %v3223_v30 = vpack.c.bf16 %v477_v19, %v474_v18  ;;  %v3559_v18 = vpack.c.bf16 %v166_v12, %v163_v10  ;;  %v497_v19 = vld [vmem:[#allocation2 + $0xd20] sm:$0xff]  ;;  %v518_v4 = vld [vmem:[#allocation2 + $0xdc8] sm:$0xff] }
  0xc5   :  { %3078 = vmatpush1.bf16.msra.mxu1 %v3077_v27  ;;  %v473_v27 = vld [vmem:[#allocation2 + $0xc60] sm:$0xff] }
  0xc6   :  { %3206 = vmatpush1.bf16.msra.mxu0 %v3205_v29  ;;  %3080 = vmatprep.subr.bf16.mxu1 %v3079_v22  ;;  %v91_v29 = vld [vmem:[#allocation2 + $0x70] sm:$0xff]  ;;  %v94_v22 = vld [vmem:[#allocation2 + $0x88] sm:$0xff]  ;;  %v3225_v40 = vpack.c.bf16 %v476_v26, %v473_v27  ;;  %v500_v27 = vld [vmem:[#allocation2 + $0xd38] sm:$0xff] }
  0xc7   :  { %3208 = vmatprep.subr.bf16.mxu0 %v3207_v35  ;;  %v148_v35 = vld [vmem:[#allocation2 + $0x238] sm:$0xff]  ;;  %v3545_v38 = vpack.c.bf16 %v94_v22, %v91_v29  ;;  %v169_v29 = vld [vmem:[#allocation2 + $0x2e0] sm:$0xff]  ;;  %v507_v26 = vld [vmem:[#allocation2 + $0xd70] sm:$0xff] }
  0xc8   :  { %v3547_v41 = vpack.c.bf16 %v148_v35, %v145_v32  ;;  %v172_v22 = vld [vmem:[#allocation2 + $0x2f8] sm:$0xff]  ;;  %v3241_v35 = vpack.c.bf16 %v500_v27, %v497_v19 }
  0xc9   :  { %3082 = vmatpush1.bf16.msra.mxu1 %v3081_v42  ;;  %v479_v42 = vld [vmem:[#allocation2 + $0xc90] sm:$0xff]  ;;  %v3563_v36 = vpack.c.bf16 %v172_v22, %v169_v29  ;;  %v524_v19 = vld [vmem:[#allocation2 + $0xdf8] sm:$0xff] }
  0xca   :  { %3210 = vmatpush1.bf16.msra.mxu0 %v3209_v43  ;;  %3084 = vmatprep.subr.bf16.mxu1 %v3083_v44  ;;  %v97_v43 = vld [vmem:[#allocation2 + $0xa0] sm:$0xff]  ;;  %v100_v44 = vld [vmem:[#allocation2 + $0xb8] sm:$0xff]  ;;  %v3229_v53 = vpack.c.bf16 %v482_v47, %v479_v42  ;;  %v506_v42 = vld [vmem:[#allocation2 + $0xd68] sm:$0xff] }
  0xcb   :  { %3212 = vmatprep.subr.bf16.mxu0 %v3211_v50  ;;  %v154_v50 = vld [vmem:[#allocation2 + $0x268] sm:$0xff]  ;;  %v3549_v52 = vpack.c.bf16 %v100_v44, %v97_v43  ;;  %v223_v43 = vld [vmem:[#allocation2 + $0x490] sm:$0xff]  ;;  %v513_v47 = vld [vmem:[#allocation2 + $0xda0] sm:$0xff] }
  0xcc   :  { %v3551_v54 = vpack.c.bf16 %v154_v50, %v151_v48  ;;  %v226_v44 = vld [vmem:[#allocation2 + $0x4a8] sm:$0xff]  ;;  %v3245_v50 = vpack.c.bf16 %v506_v42, %v503_v37  ;;  %v527_v22 = vld [vmem:[#allocation2 + $0xe10] sm:$0xff] }
  0xcd   :  { %3086 = vmatpush1.bf16.msra.mxu1 %v3085_v56  ;;  %v103_v56 = vld [vmem:[#allocation2 + $0xd0] sm:$0xff]  ;;  %v250_v37 = vld [vmem:[#allocation2 + $0x568] sm:$0xff] }
  0xce   :  { %3214 = vmatpush1.bf16.msra.mxu0 %v3213_v57  ;;  %3536 = vmatprep.subr.bf16.mxu1 %v3535_v58  ;;  %v106_v57 = vld [vmem:[#allocation2 + $0xe8] sm:$0xff] }
  0xcf   :  { %3216 = vmatprep.subr.bf16.mxu0 %v3215_v63  ;;  %v492_v63 = vld [vmem:[#allocation2 + $0xcf8] sm:$0xff]  ;;  %v3553_v1 = vpack.c.bf16 %v106_v57, %v103_v56  ;;  %v229_v56 = vld [vmem:[#allocation2 + $0x4c0] sm:$0xff] }
  0xd0   :  { %1193 = vmatmul.mubr.f32.vlgmr.msra.gmra.mrb[0].mxu1 %v4172_v31  ;;  %v232_v57 = vld [vmem:[#allocation2 + $0x4d8] sm:$0xff] }
  0xd1   :  { %1335 = vmatmul.mubr.f32.vlgmr.msra.gmra.mrb[0].mxu0 %v4175_v33  ;;  %3538 = vmatpush3.bf16.msra.mxu1 %v3537_v5  ;;  %v109_v5 = vld [vmem:[#allocation2 + $0x100] sm:$0xff] }
  0xd2   :  { %3218 = vmatpush1.bf16.msra.mxu0 %v3217_v7  ;;  %3540 = vmatprep.subr.bf16.mxu1 %v3539_v8  ;;  %v112_v7 = vld [vmem:[#allocation2 + $0x118] sm:$0xff]  ;;  %v3235_v8 = vpack.c.bf16 %v495_v0, %v492_v63  ;;  %v3571_v63 = vpack.c.bf16 %v232_v57, %v229_v56  ;;  %v515_v0 = vld [vmem:[#allocation2 + $0xdb0] sm:$0xff] }
  0xd3   :  { %3220 = vmatprep.subr.bf16.mxu0 %v3219_v14  ;;  %1760 = vmatprep.mubr.f32.mxu1 %v4159_v34  ;;  %v489_v34 = vld [vmem:[#allocation2 + $0xce0] sm:$0xff]  ;;  %v498_v14 = vld [vmem:[#allocation2 + $0xd28] sm:$0xff]  ;;  %v3557_v16 = vpack.c.bf16 %v112_v7, %v109_v5  ;;  %v235_v5 = vld [vmem:[#allocation2 + $0x4f0] sm:$0xff]  ;;  %v3253_v12 = vpack.c.bf16 %v518_v4, %v515_v0 }
  0xd4   :  { %1405 = vmatprep.mubr.f32.mxu0 %v4201_v20  ;;  %v3231_v58 = vpack.c.bf16 %v489_v34, %v486_v51  ;;  %v3567_v51 = vpack.c.bf16 %v226_v44, %v223_v43  ;;  %v509_v34 = vld [vmem:[#allocation2 + $0xd80] sm:$0xff]  ;;  %v238_v7 = vld [vmem:[#allocation2 + $0x508] sm:$0xff]  ;;  %v539_v57 = vld [vmem:[#allocation2 + $0xe70] sm:$0xff] }
  0xd5   :  { %3542 = vmatpush3.bf16.msra.mxu1 %v3541_v21  ;;  %v115_v21 = vld [vmem:[#allocation2 + $0x130] sm:$0xff]  ;;  %v3249_v62 = vpack.c.bf16 %v512_v55, %v509_v34  ;;  %v533_v44 = vld [vmem:[#allocation2 + $0xe40] sm:$0xff]  ;;  %v256_v34 = vld [vmem:[#allocation2 + $0x598] sm:$0xff] }
  0xd6   :  { %3222 = vmatpush1.bf16.msra.mxu0 %v3221_v23  ;;  %3544 = vmatprep.subr.bf16.mxu1 %v3543_v24  ;;  %v118_v23 = vld [vmem:[#allocation2 + $0x148] sm:$0xff]  ;;  %v3239_v24 = vpack.c.bf16 %v501_v15, %v498_v14  ;;  %v3575_v14 = vpack.c.bf16 %v238_v7, %v235_v5  ;;  %v521_v15 = vld [vmem:[#allocation2 + $0xde0] sm:$0xff] }
  0xd7   :  { %3224 = vmatprep.subr.bf16.mxu0 %v3223_v30  ;;  %v504_v30 = vld [vmem:[#allocation2 + $0xd58] sm:$0xff]  ;;  %v3561_v32 = vpack.c.bf16 %v118_v23, %v115_v21  ;;  %v241_v21 = vld [vmem:[#allocation2 + $0x520] sm:$0xff]  ;;  %v3257_v29 = vpack.c.bf16 %v524_v19, %v521_v15  ;;  %v262_v0 = vld [vmem:[#allocation2 + $0x5c8] sm:$0xff] }
  0xd8   :  { %v244_v23 = vld [vmem:[#allocation2 + $0x538] sm:$0xff]  ;;  %v545_v7 = vld [vmem:[#allocation2 + $0xea0] sm:$0xff] }
  0xd9   :  { %3546 = vmatpush3.bf16.msra.mxu1 %v3545_v38  ;;  %v121_v38 = vld [vmem:[#allocation2 + $0x160] sm:$0xff]  ;;  %v268_v15 = vld [vmem:[#allocation2 + $0x5f8] sm:$0xff] }
  0xda   :  { %3226 = vmatpush1.bf16.msra.mxu0 %v3225_v40  ;;  %3548 = vmatprep.subr.bf16.mxu1 %v3547_v41  ;;  %v124_v40 = vld [vmem:[#allocation2 + $0x178] sm:$0xff]  ;;  %v3243_v41 = vpack.c.bf16 %v507_v26, %v504_v30  ;;  %v193_v30 = vld [vmem:[#allocation2 + $0x3a0] sm:$0xff] }
  0xdb   :  { %3228 = vmatprep.subr.bf16.mxu0 %v3227_v45  ;;  %v510_v45 = vld [vmem:[#allocation2 + $0xd88] sm:$0xff]  ;;  %v3565_v48 = vpack.c.bf16 %v124_v40, %v121_v38  ;;  %v196_v26 = vld [vmem:[#allocation2 + $0x3b8] sm:$0xff]  ;;  %v537_v40 = vld [vmem:[#allocation2 + $0xe60] sm:$0xff] }
  0xdc   :  { %v534_v38 = vld [vmem:[#allocation2 + $0xe48] sm:$0xff] }
  0xdd   :  { %3550 = vmatpush3.bf16.msra.mxu1 %v3549_v52  ;;  %v175_v52 = vld [vmem:[#allocation2 + $0x310] sm:$0xff] }
  0xde   :  { %3230 = vmatpush1.bf16.msra.mxu0 %v3229_v53  ;;  %3552 = vmatprep.subr.bf16.mxu1 %v3551_v54  ;;  %v178_v53 = vld [vmem:[#allocation2 + $0x328] sm:$0xff]  ;;  %v3247_v54 = vpack.c.bf16 %v513_v47, %v510_v45  ;;  %v199_v45 = vld [vmem:[#allocation2 + $0x3d0] sm:$0xff] }
  0xdf   :  { %3232 = vmatprep.subr.bf16.mxu0 %v3231_v58  ;;  %v516_v58 = vld [vmem:[#allocation2 + $0xdb8] sm:$0xff]  ;;  %v3569_v60 = vpack.c.bf16 %v178_v53, %v175_v52  ;;  %v202_v47 = vld [vmem:[#allocation2 + $0x3e8] sm:$0xff]  ;;  %v543_v53 = vld [vmem:[#allocation2 + $0xe90] sm:$0xff] }
  0xe0   :  { %v540_v52 = vld [vmem:[#allocation2 + $0xe78] sm:$0xff] }
  0xe1   :  { %3554 = vmatpush3.bf16.msra.mxu1 %v3553_v1  ;;  %v181_v1 = vld [vmem:[#allocation2 + $0x340] sm:$0xff] }
  0xe2   :  { %3234 = vmatpush1.bf16.msra.mxu0 %v3233_v2  ;;  %3556 = vmatprep.subr.bf16.mxu1 %v3555_v3  ;;  %v184_v2 = vld [vmem:[#allocation2 + $0x358] sm:$0xff]  ;;  %v3251_v3 = vpack.c.bf16 %v519_v59, %v516_v58  ;;  %v205_v58 = vld [vmem:[#allocation2 + $0x400] sm:$0xff] }
  0xe3   :  { %3236 = vmatprep.subr.bf16.mxu0 %v3235_v8  ;;  %v522_v8 = vld [vmem:[#allocation2 + $0xde8] sm:$0xff]  ;;  %v3573_v10 = vpack.c.bf16 %v184_v2, %v181_v1  ;;  %v208_v59 = vld [vmem:[#allocation2 + $0x418] sm:$0xff]  ;;  %v549_v2 = vld [vmem:[#allocation2 + $0xec0] sm:$0xff] }
  0xe4   :  { %v546_v1 = vld [vmem:[#allocation2 + $0xea8] sm:$0xff] }
  0xe5   :  { %3558 = vmatpush3.bf16.msra.mxu1 %v3557_v16  ;;  %v187_v16 = vld [vmem:[#allocation2 + $0x370] sm:$0xff] }
  0xe6   :  { %3238 = vmatpush1.bf16.msra.mxu0 %v3237_v17  ;;  %3560 = vmatprep.subr.bf16.mxu1 %v3559_v18  ;;  %v190_v17 = vld [vmem:[#allocation2 + $0x388] sm:$0xff]  ;;  %v3255_v18 = vpack.c.bf16 %v525_v9, %v522_v8  ;;  %v211_v8 = vld [vmem:[#allocation2 + $0x430] sm:$0xff] }
  0xe7   :  { %3240 = vmatprep.subr.bf16.mxu0 %v3239_v24  ;;  %v528_v24 = vld [vmem:[#allocation2 + $0xe18] sm:$0xff]  ;;  %v3577_v27 = vpack.c.bf16 %v190_v17, %v187_v16  ;;  %v214_v9 = vld [vmem:[#allocation2 + $0x448] sm:$0xff]  ;;  %v555_v17 = vld [vmem:[#allocation2 + $0xef0] sm:$0xff] }
  0xe8   :  { %v552_v16 = vld [vmem:[#allocation2 + $0xed8] sm:$0xff] }
  0xe9   :  { %3562 = vmatpush3.bf16.msra.mxu1 %v3561_v32 }
  0xea   :  { %3242 = vmatpush1.bf16.msra.mxu0 %v3241_v35  ;;  %3564 = vmatprep.subr.bf16.mxu1 %v3563_v36  ;;  %v530_v35 = vld [vmem:[#allocation2 + $0xe28] sm:$0xff]  ;;  %v247_v36 = vld [vmem:[#allocation2 + $0x550] sm:$0xff] }
  0xeb   :  { %3244 = vmatprep.subr.bf16.mxu0 %v3243_v41  ;;  %v3581_v41 = vpack.c.bf16 %v196_v26, %v193_v30  ;;  %v3261_v42 = vpack.c.bf16 %v530_v35, %v527_v22  ;;  %v3583_v43 = vpack.c.bf16 %v250_v37, %v247_v36  ;;  %v322_v22 = vld [vmem:[#allocation2 + $0x7a8] sm:$0xff]  ;;  %v561_v26 = vld [vmem:[#allocation2 + $0xf20] sm:$0xff] }
  0xec   :  { %v558_v30 = vld [vmem:[#allocation2 + $0xf08] sm:$0xff] }
  0xed   :  { %3566 = vmatpush3.bf16.msra.mxu1 %v3565_v48  ;;  %v3263_v48 = vpack.c.bf16 %v537_v40, %v534_v38  ;;  %v557_v38 = vld [vmem:[#allocation2 + $0xf00] sm:$0xff]  ;;  %v271_v40 = vld [vmem:[#allocation2 + $0x610] sm:$0xff] }
  0xee   :  { %3246 = vmatpush1.bf16.msra.mxu0 %v3245_v50  ;;  %3568 = vmatprep.subr.bf16.mxu1 %v3567_v51  ;;  %v536_v50 = vld [vmem:[#allocation2 + $0xe58] sm:$0xff]  ;;  %v253_v51 = vld [vmem:[#allocation2 + $0x580] sm:$0xff] }
  0xef   :  { %3248 = vmatprep.subr.bf16.mxu0 %v3247_v54  ;;  %v3585_v54 = vpack.c.bf16 %v202_v47, %v199_v45  ;;  %v3265_v55 = vpack.c.bf16 %v536_v50, %v533_v44  ;;  %v3587_v56 = vpack.c.bf16 %v256_v34, %v253_v51  ;;  %v325_v44 = vld [vmem:[#allocation2 + $0x7c0] sm:$0xff]  ;;  %v328_v45 = vld [vmem:[#allocation2 + $0x7d8] sm:$0xff] }
  0xf0   :  { %1761 = vmatmul.mubr.f32.vlgmr.msra.gmra.mrb[2].mxu1 %v4146_v25  ;;  %v531_v25 = vld [vmem:[#allocation2 + $0xe30] sm:$0xff]  ;;  %v564_v47 = vld [vmem:[#allocation2 + $0xf38] sm:$0xff]  ;;  %v3603_v34 = vpack.c.bf16 %v328_v45, %v325_v44  ;;  %v301_v45 = vld [vmem:[#allocation2 + $0x700] sm:$0xff] }
  0xf1   :  { %3570 = vmatpush3.bf16.msra.mxu1 %v3569_v60  ;;  %1830 = vmatprep.mubr.f32.mxu1 %v4179_v46  ;;  %v3579_v46 = vpack.c.bf16 %v244_v23, %v241_v21  ;;  %v3259_v32 = vpack.c.bf16 %v531_v25, %v528_v24  ;;  %v3267_v60 = vpack.c.bf16 %v543_v53, %v540_v52  ;;  %v551_v23 = vld [vmem:[#allocation2 + $0xed0] sm:$0xff]  ;;  %v217_v24 = vld [vmem:[#allocation2 + $0x460] sm:$0xff]  ;;  %v220_v25 = vld [vmem:[#allocation2 + $0x478] sm:$0xff] }
  0xf2   :  { %3250 = vmatpush1.bf16.msra.mxu0 %v3249_v62  ;;  %3572 = vmatprep.subr.bf16.mxu1 %v3571_v63  ;;  %v542_v62 = vld [vmem:[#allocation2 + $0xe88] sm:$0xff]  ;;  %v259_v63 = vld [vmem:[#allocation2 + $0x5b0] sm:$0xff]  ;;  %v3597_v35 = vpack.c.bf16 %v220_v25, %v217_v24  ;;  %v277_v53 = vld [vmem:[#allocation2 + $0x640] sm:$0xff] }
  0xf3   :  { %3252 = vmatprep.subr.bf16.mxu0 %v3251_v3  ;;  %v3589_v3 = vpack.c.bf16 %v208_v59, %v205_v58  ;;  %v3269_v4 = vpack.c.bf16 %v542_v62, %v539_v57  ;;  %v3591_v5 = vpack.c.bf16 %v262_v0, %v259_v63  ;;  %v563_v52 = vld [vmem:[#allocation2 + $0xf30] sm:$0xff]  ;;  %v334_v58 = vld [vmem:[#allocation2 + $0x808] sm:$0xff] }
  0xf4   :  { %v331_v57 = vld [vmem:[#allocation2 + $0x7f0] sm:$0xff]  ;;  %v570_v59 = vld [vmem:[#allocation2 + $0xf68] sm:$0xff] }
  0xf5   :  { %3574 = vmatpush3.bf16.msra.mxu1 %v3573_v10  ;;  %v3271_v10 = vpack.c.bf16 %v549_v2, %v546_v1  ;;  %v3607_v1 = vpack.c.bf16 %v334_v58, %v331_v57  ;;  %v569_v2 = vld [vmem:[#allocation2 + $0xf60] sm:$0xff]  ;;  %v346_v24 = vld [vmem:[#allocation2 + $0x868] sm:$0xff]  ;;  %v587_v44 = vld [vmem:[#allocation2 + $0xff0] sm:$0xff] }
  0xf6   :  { %3254 = vmatpush1.bf16.msra.mxu0 %v3253_v12  ;;  %3576 = vmatprep.subr.bf16.mxu1 %v3575_v14  ;;  %v548_v12 = vld [vmem:[#allocation2 + $0xeb8] sm:$0xff]  ;;  %v265_v14 = vld [vmem:[#allocation2 + $0x5e0] sm:$0xff]  ;;  %v582_v25 = vld [vmem:[#allocation2 + $0xfc8] sm:$0xff] }
  0xf7   :  { %3256 = vmatprep.subr.bf16.mxu0 %v3255_v18  ;;  %v3593_v18 = vpack.c.bf16 %v214_v9, %v211_v8  ;;  %v3273_v19 = vpack.c.bf16 %v548_v12, %v545_v7  ;;  %v3595_v21 = vpack.c.bf16 %v268_v15, %v265_v14  ;;  %v337_v7 = vld [vmem:[#allocation2 + $0x820] sm:$0xff]  ;;  %v340_v8 = vld [vmem:[#allocation2 + $0x838] sm:$0xff]  ;;  %v307_v58 = vld [vmem:[#allocation2 + $0x730] sm:$0xff] }
  0xf8   :  { %v576_v9 = vld [vmem:[#allocation2 + $0xf98] sm:$0xff]  ;;  %v3611_v15 = vpack.c.bf16 %v340_v8, %v337_v7  ;;  %v593_v57 = vld [vmem:[#allocation2 + $0x1020] sm:$0xff]  ;;  %v599_v7 = vld [vmem:[#allocation2 + $0x1050] sm:$0xff] }
  0xf9   :  { %3578 = vmatpush3.bf16.msra.mxu1 %v3577_v27  ;;  %v3275_v27 = vpack.c.bf16 %v555_v17, %v552_v16  ;;  %v575_v16 = vld [vmem:[#allocation2 + $0xf90] sm:$0xff]  ;;  %v289_v17 = vld [vmem:[#allocation2 + $0x6a0] sm:$0xff] }
  0xfa   :  { %3258 = vmatpush1.bf16.msra.mxu0 %v3257_v29  ;;  %3580 = vmatprep.subr.bf16.mxu1 %v3579_v46  ;;  %v554_v29 = vld [vmem:[#allocation2 + $0xee8] sm:$0xff]  ;;  %v319_v46 = vld [vmem:[#allocation2 + $0x790] sm:$0xff]  ;;  %v313_v8 = vld [vmem:[#allocation2 + $0x760] sm:$0xff] }
  0xfb   :  { %3260 = vmatprep.subr.bf16.mxu0 %v3259_v32  ;;  %v997_v32 = vcombine.high %v4192_v6, %v4192_v6  ;;  %v3277_v36 = vpack.c.bf16 %v554_v29, %v551_v23  ;;  %v3599_v37 = vpack.c.bf16 %v322_v22, %v319_v46  ;;  %v343_v23 = vld [vmem:[#allocation2 + $0x850] sm:$0xff]  ;;  %v581_v22 = vld [vmem:[#allocation2 + $0xfc0] sm:$0xff] }
  0xfc   :  { %v3615_v46 = vpack.c.bf16 %v346_v24, %v343_v23  ;;  %v605_v23 = vld [vmem:[#allocation2 + $0x1080] sm:$0xff]  ;;  %v367_v24 = vld [vmem:[#allocation2 + $0x910] sm:$0xff] }
  0xfd   :  { %3582 = vmatpush3.bf16.msra.mxu1 %v3581_v41  ;;  %v274_v41 = vld [vmem:[#allocation2 + $0x628] sm:$0xff]  ;;  %v4211_v50 = vrot.slane %v997_v32, %v4137_v11 }
  0xfe   :  { %3262 = vmatpush1.bf16.msra.mxu0 %v3261_v42  ;;  %3584 = vmatprep.subr.bf16.mxu1 %v3583_v43  ;;  %v3279_v42 = vpack.c.bf16 %v561_v26, %v558_v30  ;;  %v560_v43 = vld [vmem:[#allocation2 + $0xf18] sm:$0xff]  ;;  %v3601_v6 = vpack.c.bf16 %v274_v41, %v271_v40  ;;  %v295_v30 = vld [vmem:[#allocation2 + $0x6d0] sm:$0xff]  ;;  %v298_v26 = vld [vmem:[#allocation2 + $0x6e8] sm:$0xff] }
  0xff   :  { %3264 = vmatprep.subr.bf16.mxu0 %v3263_v48  ;;  %v567_v48 = vld [vmem:[#allocation2 + $0xf50] sm:$0xff]  ;;  %v3281_v51 = vpack.c.bf16 %v560_v43, %v557_v38  ;;  %v4216_v62 = vcombine.high %v4211_v50, %v4211_v50  ;;  %v588_v38 = vld [vmem:[#allocation2 + $0xff8] sm:$0xff]  ;;  %v3617_v41 = vpack.c.bf16 %v298_v26, %v295_v30 }
 0x100   :  { %v591_v40 = vld [vmem:[#allocation2 + $0x1010] sm:$0xff] }
 0x101   :  { %3586 = vmatpush3.bf16.msra.mxu1 %v3585_v54  ;;  %v280_v54 = vld [vmem:[#allocation2 + $0x658] sm:$0xff]  ;;  %v615_v30 = vld [vmem:[#allocation2 + $0x10d0] sm:$0xff] }
 0x102   :  { %3266 = vmatpush1.bf16.msra.mxu0 %v3265_v55  ;;  %3588 = vmatprep.subr.bf16.mxu1 %v3587_v56  ;;  %v3283_v55 = vpack.c.bf16 %v567_v48, %v564_v47  ;;  %v566_v56 = vld [vmem:[#allocation2 + $0xf48] sm:$0xff]  ;;  %v3605_v63 = vpack.c.bf16 %v280_v54, %v277_v53  ;;  %v304_v47 = vld [vmem:[#allocation2 + $0x718] sm:$0xff]  ;;  %v3299_v48 = vpack.c.bf16 %v591_v40, %v588_v38  ;;  %v597_v53 = vld [vmem:[#allocation2 + $0x1040] sm:$0xff] }
 0x103   :  { %3268 = vmatprep.subr.bf16.mxu0 %v3267_v60  ;;  %v573_v60 = vld [vmem:[#allocation2 + $0xf80] sm:$0xff]  ;;  %v3285_v0 = vpack.c.bf16 %v566_v56, %v563_v52  ;;  %v594_v52 = vld [vmem:[#allocation2 + $0x1028] sm:$0xff]  ;;  %v3621_v54 = vpack.c.bf16 %v304_v47, %v301_v45  ;;  %v376_v38 = vld [vmem:[#allocation2 + $0x958] sm:$0xff] }
 0x104   :  { %v621_v45 = vld [vmem:[#allocation2 + $0x1100] sm:$0xff] }
 0x105   :  { %3590 = vmatpush3.bf16.msra.mxu1 %v3589_v3  ;;  %v283_v3 = vld [vmem:[#allocation2 + $0x670] sm:$0xff] }
 0x106   :  { %3270 = vmatpush1.bf16.msra.mxu0 %v3269_v4  ;;  %3592 = vmatprep.subr.bf16.mxu1 %v3591_v5  ;;  %v286_v4 = vld [vmem:[#allocation2 + $0x688] sm:$0xff]  ;;  %v3287_v5 = vpack.c.bf16 %v573_v60, %v570_v59  ;;  %v3303_v60 = vpack.c.bf16 %v597_v53, %v594_v52 }
 0x107   :  { %3272 = vmatprep.subr.bf16.mxu0 %v3271_v10  ;;  %v579_v10 = vld [vmem:[#allocation2 + $0xfb0] sm:$0xff]  ;;  %v3609_v12 = vpack.c.bf16 %v286_v4, %v283_v3  ;;  %v310_v59 = vld [vmem:[#allocation2 + $0x748] sm:$0xff] }
 0x108   :  { %v603_v3 = vld [vmem:[#allocation2 + $0x1070] sm:$0xff]  ;;  %v3625_v4 = vpack.c.bf16 %v310_v59, %v307_v58  ;;  %v382_v52 = vld [vmem:[#allocation2 + $0x988] sm:$0xff] }
 0x109   :  { %3594 = vmatpush3.bf16.msra.mxu1 %v3593_v18  ;;  %v292_v18 = vld [vmem:[#allocation2 + $0x6b8] sm:$0xff] }
 0x10a   :  { %3274 = vmatpush1.bf16.msra.mxu0 %v3273_v19  ;;  %3596 = vmatprep.subr.bf16.mxu1 %v3595_v21  ;;  %v3291_v19 = vpack.c.bf16 %v579_v10, %v576_v9  ;;  %v578_v21 = vld [vmem:[#allocation2 + $0xfa8] sm:$0xff]  ;;  %v316_v9 = vld [vmem:[#allocation2 + $0x778] sm:$0xff] }
 0x10b   :  { %3276 = vmatprep.subr.bf16.mxu0 %v3275_v27  ;;  %v3613_v27 = vpack.c.bf16 %v292_v18, %v289_v17  ;;  %v3293_v29 = vpack.c.bf16 %v578_v21, %v575_v16  ;;  %v606_v16 = vld [vmem:[#allocation2 + $0x1088] sm:$0xff]  ;;  %v609_v17 = vld [vmem:[#allocation2 + $0x10a0] sm:$0xff]  ;;  %v3629_v18 = vpack.c.bf16 %v316_v9, %v313_v8 }
 0x10d   :  { %3598 = vmatpush3.bf16.msra.mxu1 %v3597_v35  ;;  %v584_v35 = vld [vmem:[#allocation2 + $0xfd8] sm:$0xff] }
 0x10e   :  { %3278 = vmatpush1.bf16.msra.mxu0 %v3277_v36  ;;  %3600 = vmatprep.subr.bf16.mxu1 %v3599_v37  ;;  %v349_v36 = vld [vmem:[#allocation2 + $0x880] sm:$0xff]  ;;  %v352_v37 = vld [vmem:[#allocation2 + $0x898] sm:$0xff] }
 0x10f   :  { %3280 = vmatprep.subr.bf16.mxu0 %v3279_v42  ;;  %v3297_v42 = vpack.c.bf16 %v584_v35, %v581_v22  ;;  %v3619_v43 = vpack.c.bf16 %v352_v37, %v349_v36  ;;  %v612_v22 = vld [vmem:[#allocation2 + $0x10b8] sm:$0xff]  ;;  %v611_v36 = vld [vmem:[#allocation2 + $0x10b0] sm:$0xff]  ;;  %v373_v37 = vld [vmem:[#allocation2 + $0x940] sm:$0xff] }
 0x110   :  { %1831 = vmatmul.mubr.f32.vlgmr.msra.gmra.mrb[4].mxu1 %v4172_v31  ;;  %v572_v31 = vld [vmem:[#allocation2 + $0xf78] sm:$0xff]  ;;  %v3315_v40 = vpack.c.bf16 %v615_v30, %v612_v22  ;;  %v3637_v47 = vpack.c.bf16 %v376_v38, %v373_v37  ;;  %v638_v22 = vld [vmem:[#allocation2 + $0x1188] sm:$0xff]  ;;  %v451_v30 = vld [vmem:[#allocation2 + $0xbb0] sm:$0xff] }
 0x111   :  { %1406 = vmatmul.mubr.f32.vlgmr.msra.gmra.mrb[0].mxu0 %v4196_v13  ;;  %3602 = vmatpush3.bf16.msra.mxu1 %v3601_v6  ;;  %v3289_v14 = vpack.c.bf16 %v572_v31, %v569_v2  ;;  %v590_v6 = vld [vmem:[#allocation2 + $0x1008] sm:$0xff]  ;;  %v600_v2 = vld [vmem:[#allocation2 + $0x1058] sm:$0xff] }
 0x112   :  { %3282 = vmatpush1.bf16.msra.mxu0 %v3281_v51  ;;  %3604 = vmatprep.subr.bf16.mxu1 %v3603_v34  ;;  %v355_v51 = vld [vmem:[#allocation2 + $0x8b0] sm:$0xff]  ;;  %v358_v34 = vld [vmem:[#allocation2 + $0x8c8] sm:$0xff]  ;;  %v3307_v10 = vpack.c.bf16 %v603_v3, %v600_v2 }
 0x113   :  { %3284 = vmatprep.subr.bf16.mxu0 %v3283_v55  ;;  %1900 = vmatprep.mubr.f32.mxu1 %v4163_v39  ;;  %v585_v39 = vld [vmem:[#allocation2 + $0xfe0] sm:$0xff]  ;;  %v3301_v55 = vpack.c.bf16 %v590_v6, %v587_v44  ;;  %v3623_v56 = vpack.c.bf16 %v358_v34, %v355_v51  ;;  %v618_v44 = vld [vmem:[#allocation2 + $0x10e8] sm:$0xff]  ;;  %v379_v34 = vld [vmem:[#allocation2 + $0x970] sm:$0xff] }
 0x114   :  { %1476 = vmatprep.mubr.f32.mxu0 %v4216_v62  ;;  %v3295_v32 = vpack.c.bf16 %v585_v39, %v582_v25  ;;  %v370_v25 = vld [vmem:[#allocation2 + $0x928] sm:$0xff]  ;;  %v3311_v39 = vpack.c.bf16 %v609_v17, %v606_v16  ;;  %v617_v51 = vld [vmem:[#allocation2 + $0x10e0] sm:$0xff]  ;;  %v3319_v53 = vpack.c.bf16 %v621_v45, %v618_v44  ;;  %v3641_v58 = vpack.c.bf16 %v382_v52, %v379_v34  ;;  %v439_v3 = vld [vmem:[#allocation2 + $0xb50] sm:$0xff] }
 0x115   :  { %3606 = vmatpush3.bf16.msra.mxu1 %v3605_v63  ;;  %v596_v63 = vld [vmem:[#allocation2 + $0x1038] sm:$0xff]  ;;  %v3633_v26 = vpack.c.bf16 %v370_v25, %v367_v24  ;;  %v626_v2 = vld [vmem:[#allocation2 + $0x1128] sm:$0xff]  ;;  %v445_v17 = vld [vmem:[#allocation2 + $0xb80] sm:$0xff] }
 0x116   :  { %3286 = vmatpush1.bf16.msra.mxu0 %v3285_v0  ;;  %3608 = vmatprep.subr.bf16.mxu1 %v3607_v1  ;;  %v361_v0 = vld [vmem:[#allocation2 + $0x8e0] sm:$0xff]  ;;  %v364_v1 = vld [vmem:[#allocation2 + $0x8f8] sm:$0xff] }
 0x117   :  { %3288 = vmatprep.subr.bf16.mxu0 %v3287_v5  ;;  %v3305_v5 = vpack.c.bf16 %v596_v63, %v593_v57  ;;  %v3627_v31 = vpack.c.bf16 %v364_v1, %v361_v0  ;;  %v624_v57 = vld [vmem:[#allocation2 + $0x1118] sm:$0xff]  ;;  %v385_v63 = vld [vmem:[#allocation2 + $0x9a0] sm:$0xff] }
 0x118   :  { %v388_v0 = vld [vmem:[#allocation2 + $0x9b8] sm:$0xff]  ;;  %v457_v45 = vld [vmem:[#allocation2 + $0xbe0] sm:$0xff] }
 0x119   :  { %3610 = vmatpush3.bf16.msra.mxu1 %v3609_v12  ;;  %v602_v12 = vld [vmem:[#allocation2 + $0x1068] sm:$0xff]  ;;  %v632_v16 = vld [vmem:[#allocation2 + $0x1158] sm:$0xff] }
 0x11a   :  { %3290 = vmatpush1.bf16.msra.mxu0 %v3289_v14  ;;  %3612 = vmatprep.subr.bf16.mxu1 %v3611_v15  ;;  %v415_v14 = vld [vmem:[#allocation2 + $0xa90] sm:$0xff]  ;;  %v418_v15 = vld [vmem:[#allocation2 + $0xaa8] sm:$0xff]  ;;  %v644_v44 = vld [vmem:[#allocation2 + $0x11b8] sm:$0xff] }
 0x11b   :  { %3292 = vmatprep.subr.bf16.mxu0 %v3291_v19  ;;  %v3309_v19 = vpack.c.bf16 %v602_v12, %v599_v7  ;;  %v3631_v21 = vpack.c.bf16 %v418_v15, %v415_v14  ;;  %v3645_v7 = vpack.c.bf16 %v388_v0, %v385_v63  ;;  %v391_v12 = vld [vmem:[#allocation2 + $0x9d0] sm:$0xff]  ;;  %v394_v14 = vld [vmem:[#allocation2 + $0x9e8] sm:$0xff]  ;;  %v4226_v63 = vld [vmem:[%s4311_s0 + $0x18] sm:$0xff] }
 0x11d   :  { %3614 = vmatpush3.bf16.msra.mxu1 %v3613_v27  ;;  %v608_v27 = vld [vmem:[#allocation2 + $0x1098] sm:$0xff] }
 0x11e   :  { %3294 = vmatpush1.bf16.msra.mxu0 %v3293_v29  ;;  %3616 = vmatprep.subr.bf16.mxu1 %v3615_v46  ;;  %v421_v29 = vld [vmem:[#allocation2 + $0xac0] sm:$0xff]  ;;  %v424_v46 = vld [vmem:[#allocation2 + $0xad8] sm:$0xff] }
 0x11f   :  { %3296 = vmatprep.subr.bf16.mxu0 %v3295_v32  ;;  %v3313_v32 = vpack.c.bf16 %v608_v27, %v605_v23  ;;  %v3635_v35 = vpack.c.bf16 %v424_v46, %v421_v29  ;;  %v3649_v23 = vpack.c.bf16 %v394_v14, %v391_v12  ;;  %v397_v27 = vld [vmem:[#allocation2 + $0xa00] sm:$0xff]  ;;  %v400_v29 = vld [vmem:[#allocation2 + $0xa18] sm:$0xff]  ;;  %v4230_v12 = vrot.slane %v4226_v63, %v4137_v11 }
 0x121   :  { %3618 = vmatpush3.bf16.msra.mxu1 %v3617_v41  ;;  %v614_v41 = vld [vmem:[#allocation2 + $0x10c8] sm:$0xff] }
 0x122   :  { %3298 = vmatpush1.bf16.msra.mxu0 %v3297_v42  ;;  %3620 = vmatprep.subr.bf16.mxu1 %v3619_v43  ;;  %v427_v42 = vld [vmem:[#allocation2 + $0xaf0] sm:$0xff]  ;;  %v430_v43 = vld [vmem:[#allocation2 + $0xb08] sm:$0xff] }
 0x123   :  { %3300 = vmatprep.subr.bf16.mxu0 %v3299_v48  ;;  %v3317_v48 = vpack.c.bf16 %v614_v41, %v611_v36  ;;  %v3639_v6 = vpack.c.bf16 %v430_v43, %v427_v42  ;;  %v3653_v36 = vpack.c.bf16 %v400_v29, %v397_v27  ;;  %v403_v41 = vld [vmem:[#allocation2 + $0xa30] sm:$0xff]  ;;  %v406_v42 = vld [vmem:[#allocation2 + $0xa48] sm:$0xff]  ;;  %v669_v27 = vld [vmem:[#allocation2 + $0x1280] sm:$0xff]  ;;  %v4235_v29 = vcombine.high %v4230_v12, %v4230_v12 }
 0x125   :  { %3622 = vmatpush3.bf16.msra.mxu1 %v3621_v54  ;;  %v620_v54 = vld [vmem:[#allocation2 + $0x10f8] sm:$0xff] }
 0x126   :  { %3302 = vmatpush1.bf16.msra.mxu0 %v3301_v55  ;;  %3624 = vmatprep.subr.bf16.mxu1 %v3623_v56  ;;  %v433_v55 = vld [vmem:[#allocation2 + $0xb20] sm:$0xff]  ;;  %v436_v56 = vld [vmem:[#allocation2 + $0xb38] sm:$0xff]  ;;  %v3321_v59 = vpack.c.bf16 %v620_v54, %v617_v51  ;;  %v3657_v51 = vpack.c.bf16 %v406_v42, %v403_v41  ;;  %v675_v41 = vld [vmem:[#allocation2 + $0x12b0] sm:$0xff] }
 0x127   :  { %3304 = vmatprep.subr.bf16.mxu0 %v3303_v60  ;;  %v623_v60 = vld [vmem:[#allocation2 + $0x1110] sm:$0xff]  ;;  %v409_v54 = vld [vmem:[#allocation2 + $0xa60] sm:$0xff] }
 0x128   :  { %v3325_v8 = vpack.c.bf16 %v626_v2, %v623_v60  ;;  %v653_v2 = vld [vmem:[#allocation2 + $0x1200] sm:$0xff] }
 0x129   :  { %3626 = vmatpush3.bf16.msra.mxu1 %v3625_v4  ;;  %v442_v4 = vld [vmem:[#allocation2 + $0xb68] sm:$0xff] }
 0x12a   :  { %3306 = vmatpush1.bf16.msra.mxu0 %v3305_v5  ;;  %3628 = vmatprep.subr.bf16.mxu1 %v3627_v31  ;;  %v630_v5 = vld [vmem:[#allocation2 + $0x1148] sm:$0xff]  ;;  %v633_v31 = vld [vmem:[#allocation2 + $0x1160] sm:$0xff]  ;;  %v3647_v9 = vpack.c.bf16 %v442_v4, %v439_v3  ;;  %v463_v3 = vld [vmem:[#allocation2 + $0xc10] sm:$0xff] }
 0x12b   :  { %3308 = vmatprep.subr.bf16.mxu0 %v3307_v10  ;;  %v629_v10 = vld [vmem:[#allocation2 + $0x1140] sm:$0xff]  ;;  %v3327_v15 = vpack.c.bf16 %v633_v31, %v630_v5  ;;  %v466_v4 = vld [vmem:[#allocation2 + $0xc28] sm:$0xff]  ;;  %v656_v31 = vld [vmem:[#allocation2 + $0x1218] sm:$0xff] }
 0x12c   :  { %v3329_v24 = vpack.c.bf16 %v632_v16, %v629_v10  ;;  %v663_v10 = vld [vmem:[#allocation2 + $0x1250] sm:$0xff]  ;;  %v3665_v14 = vpack.c.bf16 %v466_v4, %v463_v3 }
 0x12d   :  { %3630 = vmatpush3.bf16.msra.mxu1 %v3629_v18  ;;  %v448_v18 = vld [vmem:[#allocation2 + $0xb98] sm:$0xff] }
 0x12e   :  { %3310 = vmatpush1.bf16.msra.mxu0 %v3309_v19  ;;  %3632 = vmatprep.subr.bf16.mxu1 %v3631_v21  ;;  %v636_v19 = vld [vmem:[#allocation2 + $0x1178] sm:$0xff]  ;;  %v639_v21 = vld [vmem:[#allocation2 + $0x1190] sm:$0xff]  ;;  %v3651_v25 = vpack.c.bf16 %v448_v18, %v445_v17  ;;  %v469_v18 = vld [vmem:[#allocation2 + $0xc40] sm:$0xff] }
 0x12f   :  { %3312 = vmatprep.subr.bf16.mxu0 %v3311_v39  ;;  %v635_v39 = vld [vmem:[#allocation2 + $0x1170] sm:$0xff]  ;;  %v3331_v46 = vpack.c.bf16 %v639_v21, %v636_v19  ;;  %v472_v19 = vld [vmem:[#allocation2 + $0xc58] sm:$0xff] }
 0x130   :  { %1901 = vmatmul.mubr.f32.vlgmr.msra.gmra.mrb[6].mxu1 %v4155_v28  ;;  %v627_v28 = vld [vmem:[#allocation2 + $0x1130] sm:$0xff]  ;;  %v3333_v37 = vpack.c.bf16 %v638_v22, %v635_v39  ;;  %v666_v39 = vld [vmem:[#allocation2 + $0x1268] sm:$0xff] }
 0x131   :  { %3634 = vmatpush3.bf16.msra.mxu1 %v3633_v26  ;;  %1970 = vmatprep.mubr.f32.mxu1 %v4184_v49  ;;  %v3643_v49 = vpack.c.bf16 %v436_v56, %v433_v55  ;;  %v3323_v1 = vpack.c.bf16 %v627_v28, %v624_v57  ;;  %v454_v26 = vld [vmem:[#allocation2 + $0xbc8] sm:$0xff]  ;;  %v412_v55 = vld [vmem:[#allocation2 + $0xa78] sm:$0xff]  ;;  %v511_v28 = vld [vmem:[#allocation2 + $0xd90] sm:$0xff] }
 0x132   :  { %3314 = vmatpush1.bf16.msra.mxu0 %v3313_v32  ;;  %3636 = vmatprep.subr.bf16.mxu1 %v3635_v35  ;;  %v642_v32 = vld [vmem:[#allocation2 + $0x11a8] sm:$0xff]  ;;  %v645_v35 = vld [vmem:[#allocation2 + $0x11c0] sm:$0xff]  ;;  %v3655_v38 = vpack.c.bf16 %v454_v26, %v451_v30  ;;  %v3661_v60 = vpack.c.bf16 %v412_v55, %v409_v54  ;;  %v659_v17 = vld [vmem:[#allocation2 + $0x1230] sm:$0xff] }
 0x133   :  { %3316 = vmatprep.subr.bf16.mxu0 %v3315_v40  ;;  %v641_v40 = vld [vmem:[#allocation2 + $0x11a0] sm:$0xff]  ;;  %v3335_v43 = vpack.c.bf16 %v645_v35, %v642_v32  ;;  %v650_v57 = vld [vmem:[#allocation2 + $0x11e8] sm:$0xff]  ;;  %v475_v32 = vld [vmem:[#allocation2 + $0xc70] sm:$0xff] }
 0x134   :  { %v3337_v34 = vpack.c.bf16 %v644_v44, %v641_v40  ;;  %v665_v26 = vld [vmem:[#allocation2 + $0x1260] sm:$0xff]  ;;  %v478_v35 = vld [vmem:[#allocation2 + $0xc88] sm:$0xff]  ;;  %v672_v40 = vld [vmem:[#allocation2 + $0x1298] sm:$0xff] }
 0x135   :  { %3638 = vmatpush3.bf16.msra.mxu1 %v3637_v47  ;;  %v460_v47 = vld [vmem:[#allocation2 + $0xbf8] sm:$0xff]  ;;  %v3673_v42 = vpack.c.bf16 %v478_v35, %v475_v32 }
 0x136   :  { %3318 = vmatpush1.bf16.msra.mxu0 %v3317_v48  ;;  %3640 = vmatprep.subr.bf16.mxu1 %v3639_v6  ;;  %v648_v48 = vld [vmem:[#allocation2 + $0x11d8] sm:$0xff]  ;;  %v651_v6 = vld [vmem:[#allocation2 + $0x11f0] sm:$0xff]  ;;  %v3659_v52 = vpack.c.bf16 %v460_v47, %v457_v45  ;;  %v481_v47 = vld [vmem:[#allocation2 + $0xca0] sm:$0xff] }
 0x137   :  { %3320 = vmatprep.subr.bf16.mxu0 %v3319_v53  ;;  %v647_v53 = vld [vmem:[#allocation2 + $0x11d0] sm:$0xff]  ;;  %v3339_v56 = vpack.c.bf16 %v651_v6, %v648_v48  ;;  %v484_v48 = vld [vmem:[#allocation2 + $0xcb8] sm:$0xff]  ;;  %v3355_v6 = vpack.c.bf16 %v675_v41, %v672_v40  ;;  %v698_v41 = vld [vmem:[#allocation2 + $0x1368] sm:$0xff] }
 0x138   :  { %v3341_v0 = vpack.c.bf16 %v650_v57, %v647_v53  ;;  %v671_v45 = vld [vmem:[#allocation2 + $0x1290] sm:$0xff]  ;;  %v678_v53 = vld [vmem:[#allocation2 + $0x12c8] sm:$0xff]  ;;  %v3677_v54 = vpack.c.bf16 %v484_v48, %v481_v47  ;;  %v677_v57 = vld [vmem:[#allocation2 + $0x12c0] sm:$0xff] }
 0x139   :  { %3642 = vmatpush3.bf16.msra.mxu1 %v3641_v58  ;;  %v514_v58 = vld [vmem:[#allocation2 + $0xda8] sm:$0xff] }
 0x13a   :  { %3322 = vmatpush1.bf16.msra.mxu0 %v3321_v59  ;;  %3644 = vmatprep.subr.bf16.mxu1 %v3643_v49  ;;  %v654_v59 = vld [vmem:[#allocation2 + $0x1208] sm:$0xff]  ;;  %v657_v49 = vld [vmem:[#allocation2 + $0x1220] sm:$0xff] }
 0x13b   :  { %3324 = vmatprep.subr.bf16.mxu0 %v3323_v1  ;;  %v3663_v1 = vpack.c.bf16 %v514_v58, %v511_v28  ;;  %v3343_v5 = vpack.c.bf16 %v657_v49, %v654_v59  ;;  %v487_v28 = vld [vmem:[#allocation2 + $0xcd0] sm:$0xff]  ;;  %v490_v58 = vld [vmem:[#allocation2 + $0xce8] sm:$0xff]  ;;  %v680_v49 = vld [vmem:[#allocation2 + $0x12d8] sm:$0xff] }
 0x13c   :  { %v3681_v3 = vpack.c.bf16 %v490_v58, %v487_v28  ;;  %v3361_v4 = vpack.c.bf16 %v680_v49, %v677_v57  ;;  %v711_v57 = vld [vmem:[#allocation2 + $0x13d0] sm:$0xff] }
 0x13d   :  { %3646 = vmatpush3.bf16.msra.mxu1 %v3645_v7  ;;  %v517_v7 = vld [vmem:[#allocation2 + $0xdc0] sm:$0xff]  ;;  %v707_v49 = vld [vmem:[#allocation2 + $0x13b0] sm:$0xff] }
 0x13e   :  { %3326 = vmatpush1.bf16.msra.mxu0 %v3325_v8  ;;  %3648 = vmatprep.subr.bf16.mxu1 %v3647_v9  ;;  %v520_v8 = vld [vmem:[#allocation2 + $0xdd8] sm:$0xff] }
 0x13f   :  { %3328 = vmatprep.subr.bf16.mxu0 %v3327_v15  ;;  %v660_v9 = vld [vmem:[#allocation2 + $0x1238] sm:$0xff]  ;;  %v3345_v15 = vpack.c.bf16 %v656_v31, %v653_v2  ;;  %v3667_v16 = vpack.c.bf16 %v520_v8, %v517_v7  ;;  %v687_v2 = vld [vmem:[#allocation2 + $0x1310] sm:$0xff]  ;;  %v493_v7 = vld [vmem:[#allocation2 + $0xd00] sm:$0xff] }
 0x140   :  { %v3347_v21 = vpack.c.bf16 %v663_v10, %v660_v9  ;;  %v683_v31 = vld [vmem:[#allocation2 + $0x12f0] sm:$0xff]  ;;  %v496_v8 = vld [vmem:[#allocation2 + $0xd18] sm:$0xff]  ;;  %v686_v10 = vld [vmem:[#allocation2 + $0x1308] sm:$0xff] }
 0x141   :  { %3650 = vmatpush3.bf16.msra.mxu1 %v3649_v23  ;;  %v662_v23 = vld [vmem:[#allocation2 + $0x1248] sm:$0xff] }
 0x142   :  { %3330 = vmatpush1.bf16.msra.mxu0 %v3329_v24  ;;  %3652 = vmatprep.subr.bf16.mxu1 %v3651_v25  ;;  %v523_v24 = vld [vmem:[#allocation2 + $0xdf0] sm:$0xff]  ;;  %v526_v25 = vld [vmem:[#allocation2 + $0xe08] sm:$0xff]  ;;  %v3349_v22 = vpack.c.bf16 %v662_v23, %v659_v17  ;;  %v693_v17 = vld [vmem:[#allocation2 + $0x1340] sm:$0xff] }
 0x143   :  { %3332 = vmatprep.subr.bf16.mxu0 %v3331_v46  ;;  %v3669_v46 = vpack.c.bf16 %v472_v19, %v469_v18  ;;  %v3671_v30 = vpack.c.bf16 %v526_v25, %v523_v24  ;;  %v3685_v18 = vpack.c.bf16 %v496_v8, %v493_v7  ;;  %v3365_v19 = vpack.c.bf16 %v686_v10, %v683_v31  ;;  %v689_v23 = vld [vmem:[#allocation2 + $0x1320] sm:$0xff]  ;;  %v499_v24 = vld [vmem:[#allocation2 + $0xd30] sm:$0xff]  ;;  %v502_v25 = vld [vmem:[#allocation2 + $0xd48] sm:$0xff] }
 0x144   :  { %v3689_v32 = vpack.c.bf16 %v502_v25, %v499_v24  ;;  %v717_v31 = vld [vmem:[#allocation2 + $0x1400] sm:$0xff]  ;;  %v719_v25 = vld [vmem:[#allocation2 + $0x1410] sm:$0xff] }
 0x145   :  { %3654 = vmatpush3.bf16.msra.mxu1 %v3653_v36  ;;  %v3351_v36 = vpack.c.bf16 %v669_v27, %v666_v39  ;;  %v692_v27 = vld [vmem:[#allocation2 + $0x1338] sm:$0xff]  ;;  %v713_v10 = vld [vmem:[#allocation2 + $0x13e0] sm:$0xff] }
 0x146   :  { %3334 = vmatpush1.bf16.msra.mxu0 %v3333_v37  ;;  %3656 = vmatprep.subr.bf16.mxu1 %v3655_v38  ;;  %v529_v37 = vld [vmem:[#allocation2 + $0xe20] sm:$0xff]  ;;  %v532_v38 = vld [vmem:[#allocation2 + $0xe38] sm:$0xff]  ;;  %v3369_v35 = vpack.c.bf16 %v692_v27, %v689_v23 }
 0x147   :  { %3336 = vmatprep.subr.bf16.mxu0 %v3335_v43  ;;  %v3675_v44 = vpack.c.bf16 %v532_v38, %v529_v37  ;;  %v505_v37 = vld [vmem:[#allocation2 + $0xd60] sm:$0xff]  ;;  %v508_v38 = vld [vmem:[#allocation2 + $0xd78] sm:$0xff] }
 0x148   :  { %v3693_v47 = vpack.c.bf16 %v508_v38, %v505_v37  ;;  %v580_v27 = vld [vmem:[#allocation2 + $0xfb8] sm:$0xff]  ;;  %v725_v38 = vld [vmem:[#allocation2 + $0x1440] sm:$0xff] }
 0x149   :  { %3658 = vmatpush3.bf16.msra.mxu1 %v3657_v51  ;;  %v674_v51 = vld [vmem:[#allocation2 + $0x12a8] sm:$0xff] }
 0x14a   :  { %3338 = vmatpush1.bf16.msra.mxu0 %v3337_v34  ;;  %3660 = vmatprep.subr.bf16.mxu1 %v3659_v52  ;;  %v535_v34 = vld [vmem:[#allocation2 + $0xe50] sm:$0xff]  ;;  %v538_v52 = vld [vmem:[#allocation2 + $0xe68] sm:$0xff]  ;;  %v3357_v55 = vpack.c.bf16 %v674_v51, %v671_v45  ;;  %v705_v45 = vld [vmem:[#allocation2 + $0x13a0] sm:$0xff] }
 0x14b   :  { %3340 = vmatprep.subr.bf16.mxu0 %v3339_v56  ;;  %v3679_v56 = vpack.c.bf16 %v538_v52, %v535_v34  ;;  %v701_v51 = vld [vmem:[#allocation2 + $0x1380] sm:$0xff]  ;;  %v559_v34 = vld [vmem:[#allocation2 + $0xf10] sm:$0xff]  ;;  %v562_v52 = vld [vmem:[#allocation2 + $0xf28] sm:$0xff] }
 0x14c   :  { %v3697_v28 = vpack.c.bf16 %v562_v52, %v559_v34  ;;  %v731_v52 = vld [vmem:[#allocation2 + $0x1470] sm:$0xff] }
 0x14d   :  { %3662 = vmatpush3.bf16.msra.mxu1 %v3661_v60  ;;  %v541_v60 = vld [vmem:[#allocation2 + $0xe80] sm:$0xff] }
 0x14e   :  { %3342 = vmatpush1.bf16.msra.mxu0 %v3341_v0  ;;  %3664 = vmatprep.subr.bf16.mxu1 %v3663_v1  ;;  %v544_v0 = vld [vmem:[#allocation2 + $0xe98] sm:$0xff] }
 0x14f   :  { %3344 = vmatprep.subr.bf16.mxu0 %v3343_v5  ;;  %v684_v1 = vld [vmem:[#allocation2 + $0x12f8] sm:$0xff]  ;;  %v3683_v5 = vpack.c.bf16 %v544_v0, %v541_v60  ;;  %v565_v60 = vld [vmem:[#allocation2 + $0xf40] sm:$0xff] }
 0x150   :  { %1971 = vmatmul.mubr.f32.vlgmr.msra.gmra.mrb[8].mxu1 %v4175_v33  ;;  %v668_v33 = vld [vmem:[#allocation2 + $0x1278] sm:$0xff]  ;;  %v3363_v9 = vpack.c.bf16 %v687_v2, %v684_v1  ;;  %v710_v2 = vld [vmem:[#allocation2 + $0x13c8] sm:$0xff] }
 0x151   :  { %1477 = vmatmul.mubr.f32.vlgmr.msra.gmra.mrb[0].mxu0 %v4211_v50  ;;  %3666 = vmatpush3.bf16.msra.mxu1 %v3665_v14  ;;  %v3353_v43 = vpack.c.bf16 %v668_v33, %v665_v26  ;;  %v547_v14 = vld [vmem:[#allocation2 + $0xeb0] sm:$0xff]  ;;  %v568_v0 = vld [vmem:[#allocation2 + $0xf58] sm:$0xff]  ;;  %v3381_v8 = vpack.c.bf16 %v710_v2, %v707_v49  ;;  %v598_v2 = vld [vmem:[#allocation2 + $0x1048] sm:$0xff] }
 0x152   :  { %3346 = vmatpush1.bf16.msra.mxu0 %v3345_v15  ;;  %3668 = vmatprep.subr.bf16.mxu1 %v3667_v16  ;;  %v550_v15 = vld [vmem:[#allocation2 + $0xec8] sm:$0xff]  ;;  %v699_v26 = vld [vmem:[#allocation2 + $0x1370] sm:$0xff]  ;;  %v3701_v7 = vpack.c.bf16 %v568_v0, %v565_v60  ;;  %v737_v0 = vld [vmem:[#allocation2 + $0x14a0] sm:$0xff] }
 0x153   :  { %3348 = vmatprep.subr.bf16.mxu0 %v3347_v21  ;;  %2040 = vmatprep.mubr.f32.mxu1 %v4201_v20  ;;  %v681_v20 = vld [vmem:[#allocation2 + $0x12e0] sm:$0xff]  ;;  %v690_v16 = vld [vmem:[#allocation2 + $0x1328] sm:$0xff]  ;;  %v3687_v21 = vpack.c.bf16 %v550_v15, %v547_v14  ;;  %v695_v33 = vld [vmem:[#allocation2 + $0x1350] sm:$0xff] }
 0x154   :  { %1547 = vmatprep.mubr.f32.mxu0 %v4235_v29  ;;  %v3359_v59 = vpack.c.bf16 %v681_v20, %v678_v53  ;;  %v3367_v39 = vpack.c.bf16 %v693_v17, %v690_v16  ;;  %v3373_v48 = vpack.c.bf16 %v698_v41, %v695_v33  ;;  %v704_v20 = vld [vmem:[#allocation2 + $0x1398] sm:$0xff]  ;;  %v571_v14 = vld [vmem:[#allocation2 + $0xf70] sm:$0xff]  ;;  %v574_v15 = vld [vmem:[#allocation2 + $0xf88] sm:$0xff] }
 0x155   :  { %3670 = vmatpush3.bf16.msra.mxu1 %v3669_v46  ;;  %v553_v46 = vld [vmem:[#allocation2 + $0xee0] sm:$0xff]  ;;  %v3377_v58 = vpack.c.bf16 %v704_v20, %v701_v51  ;;  %v716_v17 = vld [vmem:[#allocation2 + $0x13f8] sm:$0xff]  ;;  %v3705_v23 = vpack.c.bf16 %v574_v15, %v571_v14  ;;  %v586_v41 = vld [vmem:[#allocation2 + $0xfe8] sm:$0xff] }
 0x156   :  { %3350 = vmatpush1.bf16.msra.mxu0 %v3349_v22  ;;  %3672 = vmatprep.subr.bf16.mxu1 %v3671_v30  ;;  %v556_v22 = vld [vmem:[#allocation2 + $0xef8] sm:$0xff]  ;;  %v3385_v24 = vpack.c.bf16 %v716_v17, %v713_v10  ;;  %v743_v15 = vld [vmem:[#allocation2 + $0x14d0] sm:$0xff] }
 0x157   :  { %3352 = vmatprep.subr.bf16.mxu0 %v3351_v36  ;;  %v696_v30 = vld [vmem:[#allocation2 + $0x1358] sm:$0xff]  ;;  %v3691_v36 = vpack.c.bf16 %v556_v22, %v553_v46  ;;  %v722_v22 = vld [vmem:[#allocation2 + $0x1428] sm:$0xff] }
 0x158   :  { %v3371_v40 = vpack.c.bf16 %v699_v26, %v696_v30  ;;  %v631_v30 = vld [vmem:[#allocation2 + $0x1150] sm:$0xff]  ;;  %v634_v26 = vld [vmem:[#allocation2 + $0x1168] sm:$0xff]  ;;  %v3389_v33 = vpack.c.bf16 %v722_v22, %v719_v25  ;;  %v592_v20 = vld [vmem:[#allocation2 + $0x1018] sm:$0xff] }
 0x159   :  { %3674 = vmatpush3.bf16.msra.mxu1 %v3673_v42  ;;  %v607_v42 = vld [vmem:[#allocation2 + $0x1090] sm:$0xff]  ;;  %v3711_v37 = vpack.c.bf16 %v634_v26, %v631_v30  ;;  %v604_v17 = vld [vmem:[#allocation2 + $0x1078] sm:$0xff]  ;;  %v658_v30 = vld [vmem:[#allocation2 + $0x1228] sm:$0xff] }
 0x15a   :  { %3354 = vmatpush1.bf16.msra.mxu0 %v3353_v43  ;;  %3676 = vmatprep.subr.bf16.mxu1 %v3675_v44  ;;  %v610_v43 = vld [vmem:[#allocation2 + $0x10a8] sm:$0xff]  ;;  %v655_v22 = vld [vmem:[#allocation2 + $0x1210] sm:$0xff] }
 0x15b   :  { %3356 = vmatprep.subr.bf16.mxu0 %v3355_v6  ;;  %v702_v44 = vld [vmem:[#allocation2 + $0x1388] sm:$0xff]  ;;  %v3695_v6 = vpack.c.bf16 %v610_v43, %v607_v42  ;;  %v728_v43 = vld [vmem:[#allocation2 + $0x1458] sm:$0xff] }
 0x15c   :  { %v3375_v53 = vpack.c.bf16 %v705_v45, %v702_v44  ;;  %v637_v44 = vld [vmem:[#allocation2 + $0x1180] sm:$0xff]  ;;  %v640_v45 = vld [vmem:[#allocation2 + $0x1198] sm:$0xff]  ;;  %v3393_v51 = vpack.c.bf16 %v728_v43, %v725_v38 }
 0x15d   :  { %3678 = vmatpush3.bf16.msra.mxu1 %v3677_v54  ;;  %v613_v54 = vld [vmem:[#allocation2 + $0x10c0] sm:$0xff]  ;;  %v3715_v34 = vpack.c.bf16 %v640_v45, %v637_v44  ;;  %v664_v44 = vld [vmem:[#allocation2 + $0x1258] sm:$0xff] }
 0x15e   :  { %3358 = vmatpush1.bf16.msra.mxu0 %v3357_v55  ;;  %3680 = vmatprep.subr.bf16.mxu1 %v3679_v56  ;;  %v616_v55 = vld [vmem:[#allocation2 + $0x10d8] sm:$0xff]  ;;  %v661_v43 = vld [vmem:[#allocation2 + $0x1240] sm:$0xff] }
 0x15f   :  { %3360 = vmatprep.subr.bf16.mxu0 %v3359_v59  ;;  %v708_v56 = vld [vmem:[#allocation2 + $0x13b8] sm:$0xff]  ;;  %v3699_v59 = vpack.c.bf16 %v616_v55, %v613_v54  ;;  %v734_v55 = vld [vmem:[#allocation2 + $0x1488] sm:$0xff] }
 0x160   :  { %v3379_v1 = vpack.c.bf16 %v711_v57, %v708_v56  ;;  %v643_v56 = vld [vmem:[#allocation2 + $0x11b0] sm:$0xff]  ;;  %v646_v57 = vld [vmem:[#allocation2 + $0x11c8] sm:$0xff]  ;;  %v3397_v49 = vpack.c.bf16 %v734_v55, %v731_v52  ;;  %v3733_v52 = vpack.c.bf16 %v664_v44, %v661_v43 }
 0x161   :  { %3682 = vmatpush3.bf16.msra.mxu1 %v3681_v3  ;;  %v619_v3 = vld [vmem:[#allocation2 + $0x10f0] sm:$0xff]  ;;  %v3719_v60 = vpack.c.bf16 %v646_v57, %v643_v56  ;;  %v670_v56 = vld [vmem:[#allocation2 + $0x1288] sm:$0xff] }
 0x162   :  { %3362 = vmatpush1.bf16.msra.mxu0 %v3361_v4  ;;  %3684 = vmatprep.subr.bf16.mxu1 %v3683_v5  ;;  %v622_v4 = vld [vmem:[#allocation2 + $0x1108] sm:$0xff]  ;;  %v667_v55 = vld [vmem:[#allocation2 + $0x1270] sm:$0xff] }
 0x163   :  { %3364 = vmatprep.subr.bf16.mxu0 %v3363_v9  ;;  %v714_v5 = vld [vmem:[#allocation2 + $0x13e8] sm:$0xff]  ;;  %v3703_v9 = vpack.c.bf16 %v622_v4, %v619_v3  ;;  %v740_v4 = vld [vmem:[#allocation2 + $0x14b8] sm:$0xff]  ;;  %v691_v43 = vld [vmem:[#allocation2 + $0x1330] sm:$0xff] }
 0x164   :  { %v3383_v16 = vpack.c.bf16 %v717_v31, %v714_v5  ;;  %v649_v5 = vld [vmem:[#allocation2 + $0x11e0] sm:$0xff]  ;;  %v652_v31 = vld [vmem:[#allocation2 + $0x11f8] sm:$0xff]  ;;  %v3401_v10 = vpack.c.bf16 %v740_v4, %v737_v0  ;;  %v694_v44 = vld [vmem:[#allocation2 + $0x1348] sm:$0xff] }
 0x165   :  { %3686 = vmatpush3.bf16.msra.mxu1 %v3685_v18  ;;  %v625_v18 = vld [vmem:[#allocation2 + $0x1120] sm:$0xff]  ;;  %v3723_v14 = vpack.c.bf16 %v652_v31, %v649_v5  ;;  %v676_v4 = vld [vmem:[#allocation2 + $0x12b8] sm:$0xff]  ;;  %v770_v31 = vld [vmem:[#allocation2 + $0x15a8] sm:$0xff] }
 0x166   :  { %3366 = vmatpush1.bf16.msra.mxu0 %v3365_v19  ;;  %3688 = vmatprep.subr.bf16.mxu1 %v3687_v21  ;;  %v628_v19 = vld [vmem:[#allocation2 + $0x1138] sm:$0xff] }
 0x167   :  { %3368 = vmatprep.subr.bf16.mxu0 %v3367_v39  ;;  %v720_v21 = vld [vmem:[#allocation2 + $0x1418] sm:$0xff]  ;;  %v577_v39 = vld [vmem:[#allocation2 + $0xfa0] sm:$0xff] }
 0x169   :  { %3690 = vmatpush3.bf16.msra.mxu1 %v3689_v32  ;;  %v726_v32 = vld [vmem:[#allocation2 + $0x1448] sm:$0xff] }
 0x16a   :  { %3370 = vmatpush1.bf16.msra.mxu0 %v3369_v35  ;;  %3692 = vmatprep.subr.bf16.mxu1 %v3691_v36  ;;  %v729_v35 = vld [vmem:[#allocation2 + $0x1460] sm:$0xff]  ;;  %v3709_v36 = vpack.c.bf16 %v580_v27, %v577_v39 }
 0x16b   :  { %3372 = vmatprep.subr.bf16.mxu0 %v3371_v40  ;;  %v583_v40 = vld [vmem:[#allocation2 + $0xfd0] sm:$0xff]  ;;  %v3391_v42 = vpack.c.bf16 %v729_v35, %v726_v32  ;;  %v752_v32 = vld [vmem:[#allocation2 + $0x1518] sm:$0xff]  ;;  %v709_v35 = vld [vmem:[#allocation2 + $0x13c0] sm:$0xff] }
 0x16d   :  { %3694 = vmatpush3.bf16.msra.mxu1 %v3693_v47  ;;  %v732_v47 = vld [vmem:[#allocation2 + $0x1478] sm:$0xff] }
 0x16e   :  { %3374 = vmatpush1.bf16.msra.mxu0 %v3373_v48  ;;  %3696 = vmatprep.subr.bf16.mxu1 %v3695_v6  ;;  %v735_v48 = vld [vmem:[#allocation2 + $0x1490] sm:$0xff]  ;;  %v3713_v6 = vpack.c.bf16 %v586_v41, %v583_v40 }
 0x16f   :  { %3376 = vmatprep.subr.bf16.mxu0 %v3375_v53  ;;  %v589_v53 = vld [vmem:[#allocation2 + $0x1000] sm:$0xff]  ;;  %v3395_v54 = vpack.c.bf16 %v735_v48, %v732_v47  ;;  %v758_v47 = vld [vmem:[#allocation2 + $0x1548] sm:$0xff]  ;;  %v715_v48 = vld [vmem:[#allocation2 + $0x13f0] sm:$0xff] }
 0x170   :  { %2041 = vmatmul.mubr.f32.vlgmr.msra.gmra.mrb[10].mxu1 %v4196_v13  ;;  %v723_v13 = vld [vmem:[#allocation2 + $0x1430] sm:$0xff] }
 0x171   :  { %3698 = vmatpush3.bf16.msra.mxu1 %v3697_v28  ;;  %2110 = vmatprep.mubr.f32.mxu1 %v4216_v62  ;;  %v3707_v62 = vpack.c.bf16 %v628_v19, %v625_v18  ;;  %v3387_v46 = vpack.c.bf16 %v723_v13, %v720_v21  ;;  %v738_v28 = vld [vmem:[#allocation2 + $0x14a8] sm:$0xff]  ;;  %v703_v21 = vld [vmem:[#allocation2 + $0x1390] sm:$0xff] }
 0x172   :  { %3378 = vmatpush1.bf16.msra.mxu0 %v3377_v58  ;;  %3700 = vmatprep.subr.bf16.mxu1 %v3699_v59  ;;  %v741_v58 = vld [vmem:[#allocation2 + $0x14c0] sm:$0xff]  ;;  %v3717_v59 = vpack.c.bf16 %v592_v20, %v589_v53  ;;  %v746_v19 = vld [vmem:[#allocation2 + $0x14e8] sm:$0xff] }
 0x173   :  { %3380 = vmatprep.subr.bf16.mxu0 %v3379_v1  ;;  %v595_v1 = vld [vmem:[#allocation2 + $0x1030] sm:$0xff]  ;;  %v3399_v3 = vpack.c.bf16 %v741_v58, %v738_v28  ;;  %v706_v13 = vld [vmem:[#allocation2 + $0x13a8] sm:$0xff]  ;;  %v3405_v39 = vpack.c.bf16 %v746_v19, %v743_v15  ;;  %v721_v28 = vld [vmem:[#allocation2 + $0x1420] sm:$0xff] }
 0x174   :  { %v3727_v27 = vpack.c.bf16 %v706_v13, %v703_v21  ;;  %v724_v58 = vld [vmem:[#allocation2 + $0x1438] sm:$0xff]  ;;  %v733_v13 = vld [vmem:[#allocation2 + $0x1480] sm:$0xff] }
 0x175   :  { %3702 = vmatpush3.bf16.msra.mxu1 %v3701_v7  ;;  %v744_v7 = vld [vmem:[#allocation2 + $0x14d8] sm:$0xff] }
 0x176   :  { %3382 = vmatpush1.bf16.msra.mxu0 %v3381_v8  ;;  %3704 = vmatprep.subr.bf16.mxu1 %v3703_v9  ;;  %v747_v8 = vld [vmem:[#allocation2 + $0x14f0] sm:$0xff]  ;;  %v3721_v9 = vpack.c.bf16 %v598_v2, %v595_v1  ;;  %v3739_v1 = vpack.c.bf16 %v724_v58, %v721_v28  ;;  %v776_v21 = vld [vmem:[#allocation2 + $0x15d8] sm:$0xff]  ;;  %v794_v58 = vld [vmem:[#allocation2 + $0x1668] sm:$0xff] }
 0x177   :  { %3384 = vmatprep.subr.bf16.mxu0 %v3383_v16  ;;  %v601_v16 = vld [vmem:[#allocation2 + $0x1060] sm:$0xff]  ;;  %v3403_v18 = vpack.c.bf16 %v747_v8, %v744_v7  ;;  %v767_v2 = vld [vmem:[#allocation2 + $0x1590] sm:$0xff]  ;;  %v730_v8 = vld [vmem:[#allocation2 + $0x1468] sm:$0xff] }
 0x178   :  { %v3725_v25 = vpack.c.bf16 %v604_v17, %v601_v16  ;;  %v727_v7 = vld [vmem:[#allocation2 + $0x1450] sm:$0xff]  ;;  %v773_v16 = vld [vmem:[#allocation2 + $0x15c0] sm:$0xff] }
 0x179   :  { %3706 = vmatpush3.bf16.msra.mxu1 %v3705_v23  ;;  %v750_v23 = vld [vmem:[#allocation2 + $0x1508] sm:$0xff]  ;;  %v3743_v15 = vpack.c.bf16 %v730_v8, %v727_v7  ;;  %v679_v17 = vld [vmem:[#allocation2 + $0x12d0] sm:$0xff]  ;;  %v800_v8 = vld [vmem:[#allocation2 + $0x1698] sm:$0xff] }
 0x17a   :  { %3386 = vmatpush1.bf16.msra.mxu0 %v3385_v24  ;;  %3708 = vmatprep.subr.bf16.mxu1 %v3707_v62  ;;  %v753_v24 = vld [vmem:[#allocation2 + $0x1520] sm:$0xff]  ;;  %v1014_v62 = vcombine.high %v4226_v63, %v4226_v63  ;;  %v3729_v63 = vpack.c.bf16 %v658_v30, %v655_v22  ;;  %v688_v30 = vld [vmem:[#allocation2 + $0x1318] sm:$0xff] }
 0x17b   :  { %3388 = vmatprep.subr.bf16.mxu0 %v3387_v46  ;;  %v749_v46 = vld [vmem:[#allocation2 + $0x1500] sm:$0xff]  ;;  %v3407_v26 = vpack.c.bf16 %v753_v24, %v750_v23  ;;  %v736_v23 = vld [vmem:[#allocation2 + $0x1498] sm:$0xff] }
 0x17c   :  { %v4245_v38 = vrot.slane %v1014_v62, %v4137_v11  ;;  %v3409_v40 = vpack.c.bf16 %v752_v32, %v749_v46  ;;  %v780_v24 = vld [vmem:[#allocation2 + $0x15f8] sm:$0xff]  ;;  %v783_v62 = vld [vmem:[#allocation2 + $0x1610] sm:$0xff]  ;;  %v685_v22 = vld [vmem:[#allocation2 + $0x1300] sm:$0xff] }
 0x17d   :  { %3710 = vmatpush3.bf16.msra.mxu1 %v3709_v36  ;;  %v712_v36 = vld [vmem:[#allocation2 + $0x13d8] sm:$0xff]  ;;  %v779_v46 = vld [vmem:[#allocation2 + $0x15f0] sm:$0xff]  ;;  %v782_v32 = vld [vmem:[#allocation2 + $0x1608] sm:$0xff] }
 0x17e   :  { %3390 = vmatpush1.bf16.msra.mxu0 %v3389_v33  ;;  %3712 = vmatprep.subr.bf16.mxu1 %v3711_v37  ;;  %v756_v33 = vld [vmem:[#allocation2 + $0x1538] sm:$0xff]  ;;  %v759_v37 = vld [vmem:[#allocation2 + $0x1550] sm:$0xff]  ;;  %v3731_v41 = vpack.c.bf16 %v712_v36, %v709_v35  ;;  %v4250_v11 = vcombine.high %v4245_v38, %v4245_v38  ;;  %v742_v36 = vld [vmem:[#allocation2 + $0x14c8] sm:$0xff] }
 0x17f   :  { %3392 = vmatprep.subr.bf16.mxu0 %v3391_v42  ;;  %v755_v42 = vld [vmem:[#allocation2 + $0x1530] sm:$0xff]  ;;  %v3411_v45 = vpack.c.bf16 %v759_v37, %v756_v33  ;;  %v786_v33 = vld [vmem:[#allocation2 + $0x1628] sm:$0xff]  ;;  %v789_v37 = vld [vmem:[#allocation2 + $0x1640] sm:$0xff] }
 0x180   :  { %v3413_v53 = vpack.c.bf16 %v758_v47, %v755_v42  ;;  %v739_v35 = vld [vmem:[#allocation2 + $0x14b0] sm:$0xff]  ;;  %v785_v42 = vld [vmem:[#allocation2 + $0x1620] sm:$0xff]  ;;  %v3431_v47 = vpack.c.bf16 %v789_v37, %v786_v33  ;;  %v820_v37 = vld [vmem:[#allocation2 + $0x1738] sm:$0xff] }
 0x181   :  { %3714 = vmatpush3.bf16.msra.mxu1 %v3713_v6  ;;  %v718_v6 = vld [vmem:[#allocation2 + $0x1408] sm:$0xff]  ;;  %v817_v33 = vld [vmem:[#allocation2 + $0x1720] sm:$0xff] }
 0x182   :  { %3394 = vmatpush1.bf16.msra.mxu0 %v3393_v51  ;;  %3716 = vmatprep.subr.bf16.mxu1 %v3715_v34  ;;  %v762_v51 = vld [vmem:[#allocation2 + $0x1568] sm:$0xff]  ;;  %v765_v34 = vld [vmem:[#allocation2 + $0x1580] sm:$0xff]  ;;  %v3735_v20 = vpack.c.bf16 %v718_v6, %v715_v48  ;;  %v788_v48 = vld [vmem:[#allocation2 + $0x1638] sm:$0xff] }
 0x183   :  { %3396 = vmatprep.subr.bf16.mxu0 %v3395_v54  ;;  %v761_v54 = vld [vmem:[#allocation2 + $0x1560] sm:$0xff]  ;;  %v3415_v57 = vpack.c.bf16 %v765_v34, %v762_v51  ;;  %v748_v51 = vld [vmem:[#allocation2 + $0x14f8] sm:$0xff] }
 0x184   :  { %v745_v6 = vld [vmem:[#allocation2 + $0x14e0] sm:$0xff] }
 0x185   :  { %3718 = vmatpush3.bf16.msra.mxu1 %v3717_v59  ;;  %v768_v59 = vld [vmem:[#allocation2 + $0x1598] sm:$0xff] }
 0x186   :  { %3398 = vmatpush1.bf16.msra.mxu0 %v3397_v49  ;;  %3720 = vmatprep.subr.bf16.mxu1 %v3719_v60  ;;  %v771_v49 = vld [vmem:[#allocation2 + $0x15b0] sm:$0xff]  ;;  %v3737_v60 = vpack.c.bf16 %v670_v56, %v667_v55  ;;  %v3755_v55 = vpack.c.bf16 %v748_v51, %v745_v6  ;;  %v826_v51 = vld [vmem:[#allocation2 + $0x1768] sm:$0xff] }
 0x187   :  { %3400 = vmatprep.subr.bf16.mxu0 %v3399_v3  ;;  %v673_v3 = vld [vmem:[#allocation2 + $0x12a0] sm:$0xff]  ;;  %v3419_v5 = vpack.c.bf16 %v771_v49, %v768_v59  ;;  %v791_v56 = vld [vmem:[#allocation2 + $0x1650] sm:$0xff]  ;;  %v802_v49 = vld [vmem:[#allocation2 + $0x16a8] sm:$0xff] }
 0x188   :  { %v799_v59 = vld [vmem:[#allocation2 + $0x1690] sm:$0xff] }
 0x189   :  { %3722 = vmatpush3.bf16.msra.mxu1 %v3721_v9  ;;  %v774_v9 = vld [vmem:[#allocation2 + $0x15c8] sm:$0xff]  ;;  %v823_v6 = vld [vmem:[#allocation2 + $0x1750] sm:$0xff] }
 0x18a   :  { %3402 = vmatpush1.bf16.msra.mxu0 %v3401_v10  ;;  %3724 = vmatprep.subr.bf16.mxu1 %v3723_v14  ;;  %v3741_v10 = vpack.c.bf16 %v676_v4, %v673_v3  ;;  %v3421_v14 = vpack.c.bf16 %v770_v31, %v767_v2  ;;  %v3437_v2 = vpack.c.bf16 %v794_v58, %v791_v56  ;;  %v797_v4 = vld [vmem:[#allocation2 + $0x1680] sm:$0xff]  ;;  %v754_v31 = vld [vmem:[#allocation2 + $0x1528] sm:$0xff]  ;;  %v824_v58 = vld [vmem:[#allocation2 + $0x1758] sm:$0xff] }
 0x18b   :  { %3404 = vmatprep.subr.bf16.mxu0 %v3403_v18  ;;  %v682_v18 = vld [vmem:[#allocation2 + $0x12e8] sm:$0xff]  ;;  %v3759_v3 = vpack.c.bf16 %v802_v49, %v799_v59  ;;  %v821_v56 = vld [vmem:[#allocation2 + $0x1740] sm:$0xff]  ;;  %v832_v49 = vld [vmem:[#allocation2 + $0x1798] sm:$0xff] }
 0x18c   :  { %v829_v59 = vld [vmem:[#allocation2 + $0x1780] sm:$0xff] }
 0x18d   :  { %3726 = vmatpush3.bf16.msra.mxu1 %v3725_v25  ;;  %v3745_v25 = vpack.c.bf16 %v682_v18, %v679_v17  ;;  %v803_v18 = vld [vmem:[#allocation2 + $0x16b0] sm:$0xff] }
 0x18e   :  { %3406 = vmatpush1.bf16.msra.mxu0 %v3405_v39  ;;  %3728 = vmatprep.subr.bf16.mxu1 %v3727_v27  ;;  %v3425_v39 = vpack.c.bf16 %v776_v21, %v773_v16  ;;  %v3747_v27 = vpack.c.bf16 %v736_v23, %v733_v13  ;;  %v3441_v16 = vpack.c.bf16 %v800_v8, %v797_v4  ;;  %v760_v21 = vld [vmem:[#allocation2 + $0x1558] sm:$0xff]  ;;  %v806_v23 = vld [vmem:[#allocation2 + $0x16c8] sm:$0xff]  ;;  %v827_v4 = vld [vmem:[#allocation2 + $0x1770] sm:$0xff] }
 0x18f   :  { %3408 = vmatprep.subr.bf16.mxu0 %v3407_v26  ;;  %v3427_v26 = vpack.c.bf16 %v783_v62, %v780_v24  ;;  %v811_v24 = vld [vmem:[#allocation2 + $0x16f0] sm:$0xff]  ;;  %v814_v62 = vld [vmem:[#allocation2 + $0x1708] sm:$0xff] }
 0x190   :  { %2111 = vmatmul.mubr.f32.vlgmr.msra.gmra.mrb[12].mxu1 %v4211_v50  ;;  %v764_v50 = vld [vmem:[#allocation2 + $0x1578] sm:$0xff]  ;;  %v830_v8 = vld [vmem:[#allocation2 + $0x1788] sm:$0xff] }
 0x191   :  { %1548 = vmatmul.mubr.f32.vlgmr.msra.gmra.mrb[0].mxu0 %v4230_v12  ;;  %3730 = vmatpush3.bf16.msra.mxu1 %v3729_v63  ;;  %v3417_v0 = vpack.c.bf16 %v764_v50, %v761_v54  ;;  %v3749_v63 = vpack.c.bf16 %v688_v30, %v685_v22  ;;  %v3433_v54 = vpack.c.bf16 %v788_v48, %v785_v42  ;;  %v700_v50 = vld [vmem:[#allocation2 + $0x1378] sm:$0xff]  ;;  %v809_v30 = vld [vmem:[#allocation2 + $0x16e0] sm:$0xff]  ;;  %v815_v42 = vld [vmem:[#allocation2 + $0x1710] sm:$0xff] }
 0x192   :  { %3410 = vmatpush1.bf16.msra.mxu0 %v3409_v40  ;;  %3732 = vmatprep.subr.bf16.mxu1 %v3731_v41  ;;  %v3429_v40 = vpack.c.bf16 %v782_v32, %v779_v46  ;;  %v3751_v41 = vpack.c.bf16 %v742_v36, %v739_v35  ;;  %v3445_v46 = vpack.c.bf16 %v806_v23, %v803_v18  ;;  %v766_v32 = vld [vmem:[#allocation2 + $0x1588] sm:$0xff]  ;;  %v812_v36 = vld [vmem:[#allocation2 + $0x16f8] sm:$0xff]  ;;  %v833_v18 = vld [vmem:[#allocation2 + $0x17a0] sm:$0xff] }
 0x193   :  { %3412 = vmatprep.subr.bf16.mxu0 %v3411_v45  ;;  %2180 = vmatprep.mubr.f32.mxu1 %v4235_v29  ;;  %v777_v29 = vld [vmem:[#allocation2 + $0x15e0] sm:$0xff]  ;;  %v3767_v22 = vpack.c.bf16 %v814_v62, %v811_v24  ;;  %v818_v48 = vld [vmem:[#allocation2 + $0x1728] sm:$0xff]  ;;  %v836_v23 = vld [vmem:[#allocation2 + $0x17b8] sm:$0xff] }
 0x194   :  { %1618 = vmatprep.mubr.f32.mxu0 %v4250_v11  ;;  %v3423_v19 = vpack.c.bf16 %v777_v29, %v774_v9  ;;  %v805_v9 = vld [vmem:[#allocation2 + $0x16c0] sm:$0xff]  ;;  %v808_v29 = vld [vmem:[#allocation2 + $0x16d8] sm:$0xff] }
 0x195   :  { %3734 = vmatpush3.bf16.msra.mxu1 %v3733_v52  ;;  %v792_v52 = vld [vmem:[#allocation2 + $0x1658] sm:$0xff]  ;;  %v3763_v17 = vpack.c.bf16 %v808_v29, %v805_v9  ;;  %v835_v9 = vld [vmem:[#allocation2 + $0x17b0] sm:$0xff]  ;;  %v838_v29 = vld [vmem:[#allocation2 + $0x17c8] sm:$0xff] }
 0x196   :  { %3414 = vmatpush1.bf16.msra.mxu0 %v3413_v53  ;;  %3736 = vmatprep.subr.bf16.mxu1 %v3735_v20  ;;  %v795_v53 = vld [vmem:[#allocation2 + $0x1670] sm:$0xff]  ;;  %v3753_v20 = vpack.c.bf16 %v694_v44, %v691_v43  ;;  %v769_v43 = vld [vmem:[#allocation2 + $0x15a0] sm:$0xff]  ;;  %v772_v44 = vld [vmem:[#allocation2 + $0x15b8] sm:$0xff] }
 0x197   :  { %3416 = vmatprep.subr.bf16.mxu0 %v3415_v57  ;;  %v697_v57 = vld [vmem:[#allocation2 + $0x1360] sm:$0xff]  ;;  %v3435_v28 = vpack.c.bf16 %v795_v53, %v792_v52  ;;  %v822_v52 = vld [vmem:[#allocation2 + $0x1748] sm:$0xff]  ;;  %v844_v62 = vld [vmem:[#allocation2 + $0x17f8] sm:$0xff] }
 0x198   :  { %v825_v53 = vld [vmem:[#allocation2 + $0x1760] sm:$0xff] }
 0x199   :  { %3738 = vmatpush3.bf16.msra.mxu1 %v3737_v60  ;;  %v798_v60 = vld [vmem:[#allocation2 + $0x1688] sm:$0xff]  ;;  %v841_v24 = vld [vmem:[#allocation2 + $0x17e0] sm:$0xff] }
 0x19a   :  { %3418 = vmatpush1.bf16.msra.mxu0 %v3417_v0  ;;  %3740 = vmatprep.subr.bf16.mxu1 %v3739_v1  ;;  %v801_v0 = vld [vmem:[#allocation2 + $0x16a0] sm:$0xff]  ;;  %v3757_v1 = vpack.c.bf16 %v700_v50, %v697_v57  ;;  %v775_v57 = vld [vmem:[#allocation2 + $0x15d0] sm:$0xff]  ;;  %v778_v50 = vld [vmem:[#allocation2 + $0x15e8] sm:$0xff] }
 0x19b   :  { %3420 = vmatprep.subr.bf16.mxu0 %v3419_v5  ;;  %v751_v5 = vld [vmem:[#allocation2 + $0x1510] sm:$0xff]  ;;  %v3439_v7 = vpack.c.bf16 %v801_v0, %v798_v60  ;;  %v828_v60 = vld [vmem:[#allocation2 + $0x1778] sm:$0xff] }
 0x19c   :  { %v831_v0 = vld [vmem:[#allocation2 + $0x1790] sm:$0xff] }
 0x19d   :  { %3742 = vmatpush3.bf16.msra.mxu1 %v3741_v10  ;;  %v804_v10 = vld [vmem:[#allocation2 + $0x16b8] sm:$0xff] }
 0x19e   :  { %3422 = vmatpush1.bf16.msra.mxu0 %v3421_v14  ;;  %3744 = vmatprep.subr.bf16.mxu1 %v3743_v15  ;;  %v807_v14 = vld [vmem:[#allocation2 + $0x16d0] sm:$0xff]  ;;  %v3761_v15 = vpack.c.bf16 %v754_v31, %v751_v5  ;;  %v781_v5 = vld [vmem:[#allocation2 + $0x1600] sm:$0xff]  ;;  %v784_v31 = vld [vmem:[#allocation2 + $0x1618] sm:$0xff] }
 0x19f   :  { %3424 = vmatprep.subr.bf16.mxu0 %v3423_v19  ;;  %v757_v19 = vld [vmem:[#allocation2 + $0x1540] sm:$0xff]  ;;  %v3443_v13 = vpack.c.bf16 %v807_v14, %v804_v10  ;;  %v834_v10 = vld [vmem:[#allocation2 + $0x17a8] sm:$0xff] }
 0x1a0   :  { %v837_v14 = vld [vmem:[#allocation2 + $0x17c0] sm:$0xff] }
 0x1a1   :  { %3746 = vmatpush3.bf16.msra.mxu1 %v3745_v25  ;;  %v810_v25 = vld [vmem:[#allocation2 + $0x16e8] sm:$0xff] }
 0x1a2   :  { %3426 = vmatpush1.bf16.msra.mxu0 %v3425_v39  ;;  %3748 = vmatprep.subr.bf16.mxu1 %v3747_v27  ;;  %v813_v39 = vld [vmem:[#allocation2 + $0x1700] sm:$0xff]  ;;  %v3765_v27 = vpack.c.bf16 %v760_v21, %v757_v19  ;;  %v787_v19 = vld [vmem:[#allocation2 + $0x1630] sm:$0xff]  ;;  %v790_v21 = vld [vmem:[#allocation2 + $0x1648] sm:$0xff] }
 0x1a3   :  { %v4255_v45 = vpop.f32.mrb[0].mxu1  ;;  %3428 = vmatprep.subr.bf16.mxu0 %v3427_v26  ;;  %v763_v26 = vld [vmem:[#allocation2 + $0x1570] sm:$0xff]  ;;  %v3447_v35 = vpack.c.bf16 %v813_v39, %v810_v25  ;;  %v840_v39 = vld [vmem:[#allocation2 + $0x17d8] sm:$0xff] }
 0x1a4   :  { %v4257_v34 = vpop.f32.mrb[1].mxu1 }
 0x1a5   :  { %3750 = vmatpush3.bf16.msra.mxu1 %v3749_v63  ;;  %v816_v63 = vld [vmem:[#allocation2 + $0x1718] sm:$0xff] }
 0x1a6   :  { %3430 = vmatpush1.bf16.msra.mxu0 %v3429_v40  ;;  %3752 = vmatprep.subr.bf16.mxu1 %v3751_v41  ;;  %v3769_v40 = vpack.c.bf16 %v766_v32, %v763_v26  ;;  %v3449_v41 = vpack.c.bf16 %v812_v36, %v809_v30  ;;  %v3465_v26 = vpack.c.bf16 %v836_v23, %v833_v18  ;;  %v793_v36 = vld [vmem:[#allocation2 + $0x1660] sm:$0xff]  ;;  %v864_v18 = vld [vmem:[#allocation2 + $0x1898] sm:$0xff]  ;;  %v863_v23 = vld [vmem:[#allocation2 + $0x1890] sm:$0xff] }
 0x1a7   :  { %3432 = vmatprep.subr.bf16.mxu0 %v3431_v47  ;;  %v3787_v32 = vpack.c.bf16 %v844_v62, %v841_v24  ;;  %v865_v24 = vld [vmem:[#allocation2 + $0x18a0] sm:$0xff]  ;;  %v868_v62 = vld [vmem:[#allocation2 + $0x18b8] sm:$0xff] }
 0x1a9   :  { %3754 = vmatpush3.bf16.msra.mxu1 %v3753_v20  ;;  %v3773_v20 = vpack.c.bf16 %v772_v44, %v769_v43 }
 0x1aa   :  { %3434 = vmatpush1.bf16.msra.mxu0 %v3433_v54  ;;  %3756 = vmatprep.subr.bf16.mxu1 %v3755_v55  ;;  %v3453_v54 = vpack.c.bf16 %v818_v48, %v815_v42  ;;  %v3775_v55 = vpack.c.bf16 %v826_v51, %v823_v6  ;;  %v847_v48 = vld [vmem:[#allocation2 + $0x1810] sm:$0xff]  ;;  %v850_v6 = vld [vmem:[#allocation2 + $0x1828] sm:$0xff] }
 0x1ab   :  { %3436 = vmatprep.subr.bf16.mxu0 %v3435_v28  ;;  %v3455_v28 = vpack.c.bf16 %v825_v53, %v822_v52  ;;  %v848_v52 = vld [vmem:[#allocation2 + $0x1818] sm:$0xff]  ;;  %v901_v53 = vld [vmem:[#allocation2 + $0x19c0] sm:$0xff] }
 0x1ad   :  { %3758 = vmatpush3.bf16.msra.mxu1 %v3757_v1  ;;  %v3777_v1 = vpack.c.bf16 %v778_v50, %v775_v57  ;;  %v3793_v57 = vpack.c.bf16 %v850_v6, %v847_v48 }
 0x1ae   :  { %3438 = vmatpush1.bf16.msra.mxu0 %v3437_v2  ;;  %3760 = vmatprep.subr.bf16.mxu1 %v3759_v3  ;;  %v3457_v2 = vpack.c.bf16 %v824_v58, %v821_v56  ;;  %v3779_v3 = vpack.c.bf16 %v832_v49, %v829_v59  ;;  %v4266_v56 = vld.sshfl [vmem:[%s4311_s0 + $0x20] sm:$0x33 pattern:$0x76325410]  ;;  %v851_v58 = vld [vmem:[#allocation2 + $0x1830] sm:$0xff]  ;;  %v856_v49 = vld [vmem:[#allocation2 + $0x1858] sm:$0xff] }
 0x1af   :  { %3440 = vmatprep.subr.bf16.mxu0 %v3439_v7  ;;  %v3459_v7 = vpack.c.bf16 %v831_v0, %v828_v60  ;;  %v853_v59 = vld [vmem:[#allocation2 + $0x1840] sm:$0xff]  ;;  %v854_v0 = vld [vmem:[#allocation2 + $0x1848] sm:$0xff]  ;;  %s4048_s0 = smov [#allocation10]  }
 0x1b0   :  { %2181 = vmatmul.mubr.f32.vlgmr.msra.gmra.mrb[14].mxu1 %v4230_v12  ;;  %v819_v12 = vld [vmem:[#allocation2 + $0x1730] sm:$0xff]  ;;  %s2544_s28 = sshll.u32 %s4048_s0, 4  ;;  %s2545_s28 = int_to_ptr.vmem [resolvable:$true] %s2544_s28 }
 0x1b1   :  { %3762 = vmatpush3.bf16.msra.mxu1 %v3761_v15  ;;  %2250 = vmatprep.mubr.f32.mxu1 %v4250_v11  ;;  %v3771_v11 = vpack.c.bf16 %v820_v37, %v817_v33  ;;  %v3451_v47 = vpack.c.bf16 %v819_v12, %v816_v63  ;;  %v3781_v15 = vpack.c.bf16 %v784_v31, %v781_v5  ;;  %v796_v33 = vld [vmem:[#allocation2 + $0x1678] sm:$0xff]  ;;  %v842_v63 = vld [vmem:[#allocation2 + $0x17e8] sm:$0xff]  ;;  %v895_v12 = vld [vmem:[#allocation2 + $0x1990] sm:$0xff]  ;;  %s4006_s29 = scalar_lea.vmem %s2545_s28, 32  ;;  %p4011_p5 = scmp.lt.s32.totalorder %s2545_s28, %s2545_s28 }
 0x1b2   :  { %3442 = vmatpush1.bf16.msra.mxu0 %v3441_v16  ;;  %3764 = vmatprep.subr.bf16.mxu1 %v3763_v17  ;;  %v3461_v16 = vpack.c.bf16 %v830_v8, %v827_v4  ;;  %v3783_v17 = vpack.c.bf16 %v838_v29, %v835_v9  ;;  %v3789_v42 = vpack.c.bf16 %v796_v33, %v793_v36  ;;  %v858_v4 = vld [vmem:[#allocation2 + $0x1868] sm:$0xff]  ;;  %v861_v5 = vld [vmem:[#allocation2 + $0x1880] sm:$0xff]  ;;  %v859_v29 = vld [vmem:[#allocation2 + $0x1870] sm:$0xff]  ;;  %p4007_p4 = scmp.ne.s32.totalorder %s2545_s28, %s4006_s29  ;;  %p4012_p6 = scmp.lt.s32.totalorder %s4006_s29, %s4006_s29 }
 0x1b3   :  { %3444 = vmatprep.subr.bf16.mxu0 %v3443_v13  ;;  %v3463_v13 = vpack.c.bf16 %v837_v14, %v834_v10  ;;  %v3797_v31 = vpack.c.bf16 %v856_v49, %v853_v59  ;;  %v857_v9 = vld [vmem:[#allocation2 + $0x1860] sm:$0xff]  ;;  %v862_v10 = vld [vmem:[#allocation2 + $0x1888] sm:$0xff]  ;;  %v3479_v14 = vpack.c.bf16 %v861_v5, %v858_v4  ;;  %v884_v5 = vld [vmem:[#allocation2 + $0x1938] sm:$0xff] }
 0x1b4   :  { %v869_v33 = vld [vmem:[#allocation2 + $0x18c0] sm:$0xff]  ;;  %p4013_p7 = por %p4012_p6, %p4011_p5 }
 0x1b5   :  { %3766 = vmatpush3.bf16.msra.mxu1 %v3765_v27  ;;  %v843_v27 = vld [vmem:[#allocation2 + $0x17f0] sm:$0xff]  ;;  %v885_v59 = vld [vmem:[#allocation2 + $0x1940] sm:$0xff] }
 0x1b6   :  { %3446 = vmatpush1.bf16.msra.mxu0 %v3445_v46  ;;  %3768 = vmatprep.subr.bf16.mxu1 %v3767_v22  ;;  %v3785_v22 = vpack.c.bf16 %v790_v21, %v787_v19  ;;  %v3467_v37 = vpack.c.bf16 %v843_v27, %v840_v39  ;;  %v867_v19 = vld [vmem:[#allocation2 + $0x18b0] sm:$0xff]  ;;  %v866_v39 = vld [vmem:[#allocation2 + $0x18a8] sm:$0xff]  ;;  %p4014_p8 = pnand %p4013_p7, %p4007_p4 }
 0x1b7   :  { %3448 = vmatprep.subr.bf16.mxu0 %v3447_v35  ;;  %v839_v35 = vld [vmem:[#allocation2 + $0x17d0] sm:$0xff] }
 0x1b8   :  { %v3469_v43 = vpack.c.bf16 %v842_v63, %v839_v35  ;;  %v919_v27 = vld [vmem:[#allocation2 + $0x1a50] sm:$0xff]  ;;  %v3485_v35 = vpack.c.bf16 %v866_v39, %v863_v23  ;;  %v874_v63 = vld [vmem:[#allocation2 + $0x18e8] sm:$0xff] }
 0x1b9   :  { %3770 = vmatpush3.bf16.msra.mxu1 %v3769_v40  ;;  %v898_v40 = vld [vmem:[#allocation2 + $0x19a8] sm:$0xff] }
 0x1ba   :  { %3450 = vmatpush1.bf16.msra.mxu0 %v3449_v41  ;;  %3772 = vmatprep.subr.bf16.mxu1 %v3771_v11  ;;  %v846_v41 = vld [vmem:[#allocation2 + $0x1808] sm:$0xff]  ;;  %v849_v11 = vld [vmem:[#allocation2 + $0x1820] sm:$0xff]  ;;  %v3791_v44 = vpack.c.bf16 %v898_v40, %v895_v12  ;;  %v872_v40 = vld [vmem:[#allocation2 + $0x18d8] sm:$0xff] }
 0x1bb   :  { %3452 = vmatprep.subr.bf16.mxu0 %v3451_v47  ;;  %v845_v47 = vld [vmem:[#allocation2 + $0x1800] sm:$0xff]  ;;  %v3471_v51 = vpack.c.bf16 %v849_v11, %v846_v41  ;;  %v928_v11 = vld [vmem:[#allocation2 + $0x1a98] sm:$0xff]  ;;  %v3489_v6 = vpack.c.bf16 %v872_v40, %v869_v33  ;;  %v890_v23 = vld [vmem:[#allocation2 + $0x1968] sm:$0xff] }
 0x1bc   :  { %v3473_v50 = vpack.c.bf16 %v848_v52, %v845_v47  ;;  %v925_v41 = vld [vmem:[#allocation2 + $0x1a80] sm:$0xff]  ;;  %v875_v52 = vld [vmem:[#allocation2 + $0x18f0] sm:$0xff] }
 0x1bd   :  { %3774 = vmatpush3.bf16.msra.mxu1 %v3773_v20  ;;  %v904_v20 = vld [vmem:[#allocation2 + $0x19d8] sm:$0xff]  ;;  %v4273_v47 = vld [vmem:[#allocation5] sm:$0x7]  ;;  %v899_v33 = vld [vmem:[#allocation2 + $0x19b0] sm:$0xff] }
 0x1be   :  { %3454 = vmatpush1.bf16.msra.mxu0 %v3453_v54  ;;  %3776 = vmatprep.subr.bf16.mxu1 %v3775_v55  ;;  %v852_v54 = vld [vmem:[#allocation2 + $0x1838] sm:$0xff]  ;;  %v855_v55 = vld [vmem:[#allocation2 + $0x1850] sm:$0xff] }
 0x1bf   :  { %3456 = vmatprep.subr.bf16.mxu0 %v3455_v28  ;;  %v3795_v28 = vpack.c.bf16 %v904_v20, %v901_v53  ;;  %v3475_v60 = vpack.c.bf16 %v855_v55, %v852_v54  ;;  %v877_v53 = vld [vmem:[#allocation2 + $0x1900] sm:$0xff]  ;;  %v880_v20 = vld [vmem:[#allocation2 + $0x1918] sm:$0xff]  ;;  %v878_v55 = vld [vmem:[#allocation2 + $0x1908] sm:$0xff] }
 0x1c0   :  { %v3813_v49 = vpack.c.bf16 %v880_v20, %v877_v53  ;;  %v918_v53 = vld [vmem:[#allocation2 + $0x1a48] sm:$0xff]  ;;  %v921_v20 = vld [vmem:[#allocation2 + $0x1a60] sm:$0xff] }
 0x1c1   :  { %3778 = vmatpush3.bf16.msra.mxu1 %v3777_v1  ;;  %v907_v1 = vld [vmem:[#allocation2 + $0x19f0] sm:$0xff] }
 0x1c2   :  { %3458 = vmatpush1.bf16.msra.mxu0 %v3457_v2  ;;  %3780 = vmatprep.subr.bf16.mxu1 %v3779_v3  ;;  %v910_v2 = vld [vmem:[#allocation2 + $0x1a08] sm:$0xff]  ;;  %v1038_v3 = vcombine.high %v4266_v56, %v4266_v56 }
 0x1c3   :  { %3460 = vmatprep.subr.bf16.mxu0 %v3459_v7  ;;  %v2589_v25 = vpop.f32.mrb[2].mxu1  ;;  %v3477_v7 = vpack.c.bf16 %v854_v0, %v851_v58  ;;  %v3799_v8 = vpack.c.bf16 %v910_v2, %v907_v1  ;;  %v882_v58 = vld [vmem:[#allocation2 + $0x1928] sm:$0xff]  ;;  %v881_v1 = vld [vmem:[#allocation2 + $0x1920] sm:$0xff]  ;;  %v883_v2 = vld [vmem:[#allocation2 + $0x1930] sm:$0xff] }
 0x1c4   :  { %v2590_v46 = vpop.f32.mrb[3].mxu1  ;;  %v3495_v4 = vpack.c.bf16 %v885_v59, %v882_v58  ;;  %v927_v58 = vld [vmem:[#allocation2 + $0x1a90] sm:$0xff] }
 0x1c5   :  { %3782 = vmatpush3.bf16.msra.mxu1 %v3781_v15  ;;  %v4261_v30 = vadd.f32 %v2590_v46, %v2589_v25  ;;  %v860_v15 = vld [vmem:[#allocation2 + $0x1878] sm:$0xff]  ;;  %v3483_v25 = vpack.c.bf16 %v867_v19, %v864_v18  ;;  %v922_v46 = vld [vmem:[#allocation2 + $0x1a68] sm:$0xff]  ;;  %v889_v19 = vld [vmem:[#allocation2 + $0x1960] sm:$0xff] }
 0x1c6   :  { %3462 = vmatpush1.bf16.msra.mxu0 %v3461_v16  ;;  %3784 = vmatprep.subr.bf16.mxu1 %v3783_v17  ;;  %v913_v16 = vld [vmem:[#allocation2 + $0x1a20] sm:$0xff]  ;;  %v916_v17 = vld [vmem:[#allocation2 + $0x1a38] sm:$0xff]  ;;  %v3481_v21 = vpack.c.bf16 %v860_v15, %v857_v9  ;;  %v3807_v36 = vpack.c.bf16 %v922_v46, %v919_v27 }
 0x1c7   :  { %3464 = vmatprep.subr.bf16.mxu0 %v3463_v13  ;;  %v3803_v13 = vpack.c.bf16 %v916_v17, %v913_v16  ;;  %v3497_v17 = vpack.c.bf16 %v884_v5, %v881_v1  ;;  %v893_v46 = vld [vmem:[#allocation2 + $0x1980] sm:$0xff]  ;;  %v930_v1 = vld [vmem:[#allocation2 + $0x1aa8] sm:$0xff] }
 0x1c9   :  { %3786 = vmatpush3.bf16.msra.mxu1 %v3785_v22  ;;  %v870_v22 = vld [vmem:[#allocation2 + $0x18c8] sm:$0xff] }
 0x1ca   :  { %3466 = vmatpush1.bf16.msra.mxu0 %v3465_v26  ;;  %3788 = vmatprep.subr.bf16.mxu1 %v3787_v32  ;;  %v873_v26 = vld [vmem:[#allocation2 + $0x18e0] sm:$0xff]  ;;  %v3805_v32 = vpack.c.bf16 %v868_v62, %v865_v24 }
 0x1cb   :  { %3468 = vmatprep.subr.bf16.mxu0 %v3467_v37  ;;  %v871_v37 = vld [vmem:[#allocation2 + $0x18d0] sm:$0xff]  ;;  %v3487_v12 = vpack.c.bf16 %v873_v26, %v870_v22  ;;  %v897_v62 = vld [vmem:[#allocation2 + $0x19a0] sm:$0xff]  ;;  %v896_v22 = vld [vmem:[#allocation2 + $0x1998] sm:$0xff] }
 0x1cc   :  { %v3809_v48 = vpack.c.bf16 %v874_v63, %v871_v37  ;;  %v900_v26 = vld [vmem:[#allocation2 + $0x19b8] sm:$0xff]  ;;  %v902_v37 = vld [vmem:[#allocation2 + $0x19c8] sm:$0xff] }
 0x1cd   :  { %3790 = vmatpush3.bf16.msra.mxu1 %v3789_v42  ;;  %v953_v42 = vsub.s32 2, %v4134_v61  ;;  %v906_v63 = vld [vmem:[#allocation2 + $0x19e8] sm:$0xff]  ;;  %v3509_v40 = vpack.c.bf16 %v902_v37, %v899_v33  ;;  %v2331_v33 = vld [vmem:[#allocation7 + $0x10] sm:$0xff]  ;;  %v2332_v37 = vld [vmem:[#allocation7 + $0x18] sm:$0xff] }
 0x1ce   :  { %3470 = vmatpush1.bf16.msra.mxu0 %v3469_v43  ;;  %3792 = vmatprep.subr.bf16.mxu1 %v3791_v44  ;;  %v876_v43 = vld [vmem:[#allocation2 + $0x18f8] sm:$0xff]  ;;  %v879_v44 = vld [vmem:[#allocation2 + $0x1910] sm:$0xff] }
 0x1cf   :  { %3472 = vmatprep.subr.bf16.mxu0 %v3471_v51  ;;  %v3811_v51 = vpack.c.bf16 %v928_v11, %v925_v41  ;;  %v3491_v54 = vpack.c.bf16 %v879_v44, %v876_v43  ;;  %v905_v11 = vld [vmem:[#allocation2 + $0x19e0] sm:$0xff]  ;;  %v912_v43 = vld [vmem:[#allocation2 + $0x1a18] sm:$0xff]  ;;  %v915_v44 = vld [vmem:[#allocation2 + $0x1a30] sm:$0xff] }
 0x1d0   :  { %2251 = vmatmul.mubr.f32.vlgmr.msra.gmra.mrb[16].mxu1 %v4245_v38 }
 0x1d1   :  { %1619 = vmatmul.mubr.f32.vlgmr.msra.gmra.mrb[0].mxu0 %v4245_v38  ;;  %3794 = vmatpush3.bf16.msra.mxu1 %v3793_v57  ;;  %v3801_v38 = vpack.c.bf16 %v862_v10, %v859_v29  ;;  %v931_v57 = vld [vmem:[#allocation2 + $0x1ab0] sm:$0xff]  ;;  %v888_v29 = vld [vmem:[#allocation2 + $0x1958] sm:$0xff] }
 0x1d2   :  { %3474 = vmatpush1.bf16.msra.mxu0 %v3473_v50  ;;  %3796 = vmatprep.subr.bf16.mxu1 %v3795_v28  ;;  %v934_v50 = vld [vmem:[#allocation2 + $0x1ac8] sm:$0xff]  ;;  %v954_v28 = vrot.slane %v4273_v47, %v953_v42  ;;  %v891_v10 = vld [vmem:[#allocation2 + $0x1970] sm:$0xff]  ;;  %v908_v42 = vld [vmem:[#allocation2 + $0x19f8] sm:$0xff] }
 0x1d3   :  { %3476 = vmatprep.subr.bf16.mxu0 %v3475_v60  ;;  %2320 = vmatprep.mubr.f32.mxu1 %v1038_v3  ;;  %v3493_v60 = vpack.c.bf16 %v878_v55, %v875_v52  ;;  %v3815_v0 = vpack.c.bf16 %v934_v50, %v931_v57  ;;  %v914_v52 = vld [vmem:[#allocation2 + $0x1a28] sm:$0xff]  ;;  %v3519_v55 = vpack.c.bf16 %v921_v20, %v918_v53  ;;  %v917_v57 = vld [vmem:[#allocation2 + $0x1a40] sm:$0xff]  ;;  %v920_v50 = vld [vmem:[#allocation2 + $0x1a58] sm:$0xff] }
 0x1d4   :  { %1689 = vmatprep.mubr.f32.mxu0 %v1038_v3  ;;  %v886_v3 = vld [vmem:[#allocation2 + $0x1948] sm:$0xff]  ;;  %v3521_v59 = vpack.c.bf16 %v920_v50, %v917_v57 }
 0x1d5   :  { %3798 = vmatpush3.bf16.msra.mxu1 %v3797_v31  ;;  %v937_v31 = vld [vmem:[#allocation2 + $0x1ae0] sm:$0xff]  ;;  %v3817_v15 = vpack.c.bf16 %v886_v3, %v883_v2  ;;  %v2354_v20 = vld [vmem:[#allocation7 + $0xc8] sm:$0xff] }
 0x1d6   :  { %3478 = vmatpush1.bf16.msra.mxu0 %v3477_v7  ;;  %3800 = vmatprep.subr.bf16.mxu1 %v3799_v8  ;;  %v940_v7 = vld [vmem:[#allocation2 + $0x1af8] sm:$0xff]  ;;  %v1763_v8 = vadd.f32 %v4261_v30, %v954_v28  ;;  %v894_v30 = vld [vmem:[#allocation2 + $0x1988] sm:$0xff]  ;;  %v933_v2 = vld [vmem:[#allocation2 + $0x1ac0] sm:$0xff] }
 0x1d7   :  { %3480 = vmatprep.subr.bf16.mxu0 %v3479_v14  ;;  %v3819_v18 = vpack.c.bf16 %v940_v7, %v937_v31  ;;  %v3503_v27 = vpack.c.bf16 %v897_v62, %v894_v30  ;;  %v924_v28 = vld [vmem:[#allocation2 + $0x1a78] sm:$0xff]  ;;  %v3527_v5 = vpack.c.bf16 %v933_v2, %v930_v1  ;;  %v929_v31 = vld [vmem:[#allocation2 + $0x1aa0] sm:$0xff]  ;;  %v2338_v50 = vld [vmem:[#allocation7 + $0x48] sm:$0xff] }
 0x1d8   :  { %v932_v7 = vld [vmem:[#allocation2 + $0x1ab8] sm:$0xff]  ;;  %v2353_v53 = vld [vmem:[#allocation7 + $0xc0] sm:$0xff]  ;;  %v2358_v2 = vld [vmem:[#allocation7 + $0xe8] sm:$0xff] }
 0x1d9   :  { %3802 = vmatpush3.bf16.msra.mxu1 %v3801_v38  ;;  %v892_v38 = vld [vmem:[#allocation2 + $0x1978] sm:$0xff]  ;;  %v2337_v57 = vld [vmem:[#allocation7 + $0x40] sm:$0xff] }
 0x1da   :  { %3482 = vmatpush1.bf16.msra.mxu0 %v3481_v21  ;;  %3804 = vmatprep.subr.bf16.mxu1 %v3803_v13  ;;  %v3499_v21 = vpack.c.bf16 %v891_v10, %v888_v29  ;;  %v887_v13 = vld [vmem:[#allocation2 + $0x1950] sm:$0xff]  ;;  %v2357_v1 = vld [vmem:[#allocation7 + $0xe0] sm:$0xff] }
 0x1db   :  { %3484 = vmatprep.subr.bf16.mxu0 %v3483_v25  ;;  %v3821_v25 = vpack.c.bf16 %v892_v38, %v889_v19  ;;  %v3501_v39 = vpack.c.bf16 %v890_v23, %v887_v13  ;;  %v939_v29 = vld [vmem:[#allocation2 + $0x1af0] sm:$0xff] }
 0x1dd   :  { %3806 = vmatpush3.bf16.msra.mxu1 %v3805_v32  ;;  %v903_v32 = vld [vmem:[#allocation2 + $0x19d0] sm:$0xff] }
 0x1de   :  { %3486 = vmatpush1.bf16.msra.mxu0 %v3485_v35  ;;  %3808 = vmatprep.subr.bf16.mxu1 %v3807_v36  ;;  %v3505_v35 = vpack.c.bf16 %v896_v22, %v893_v46  ;;  %v3507_v36 = vpack.c.bf16 %v903_v32, %v900_v26  ;;  %v2329_v22 = vld [vmem:[#allocation7] sm:$0xff]  ;;  %v2330_v26 = vld [vmem:[#allocation7 + $0x8] sm:$0xff] }
 0x1df   :  { %3488 = vmatprep.subr.bf16.mxu0 %v3487_v12  ;;  %v909_v12 = vld [vmem:[#allocation2 + $0x1a00] sm:$0xff]  ;;  %v3825_v32 = vpack.c.bf16 %v2330_v26, %v2329_v22 }
 0x1e0   :  { %v3511_v41 = vpack.c.bf16 %v909_v12, %v906_v63  ;;  %v2349_v63 = vld [vmem:[#allocation7 + $0xa0] sm:$0xff]  ;;  %v2350_v12 = vld [vmem:[#allocation7 + $0xa8] sm:$0xff] }
 0x1e1   :  { %3810 = vmatpush3.bf16.msra.mxu1 %v3809_v48  ;;  %v3513_v48 = vpack.c.bf16 %v908_v42, %v905_v11  ;;  %v2333_v11 = vld [vmem:[#allocation7 + $0x20] sm:$0xff]  ;;  %v2334_v42 = vld [vmem:[#allocation7 + $0x28] sm:$0xff] }
 0x1e2   :  { %3490 = vmatpush1.bf16.msra.mxu0 %v3489_v6  ;;  %3812 = vmatprep.subr.bf16.mxu1 %v3811_v51  ;;  %v3515_v6 = vpack.c.bf16 %v915_v44, %v912_v43  ;;  %v911_v51 = vld [vmem:[#allocation2 + $0x1a10] sm:$0xff]  ;;  %v2352_v44 = vld [vmem:[#allocation7 + $0xb8] sm:$0xff] }
 0x1e3   :  { %3492 = vmatprep.subr.bf16.mxu0 %v3491_v54  ;;  %v2624_v9 = vpop.f32.mrb[4].mxu1  ;;  %v3517_v54 = vpack.c.bf16 %v914_v52, %v911_v51  ;;  %v2351_v43 = vld [vmem:[#allocation7 + $0xb0] sm:$0xff]  ;;  %v2336_v52 = vld [vmem:[#allocation7 + $0x38] sm:$0xff] }
 0x1e4   :  { %v2625_v14 = vpop.f32.mrb[5].mxu1  ;;  %v2335_v51 = vld [vmem:[#allocation7 + $0x30] sm:$0xff] }
 0x1e5   :  { %3814 = vmatpush3.bf16.msra.mxu1 %v3813_v49  ;;  %v2626_v16 = vadd.f32 %v2625_v14, %v2624_v9  ;;  %v3523_v49 = vpack.c.bf16 %v927_v58, %v924_v28  ;;  %v936_v9 = vld [vmem:[#allocation2 + $0x1ad8] sm:$0xff]  ;;  %v3529_v14 = vpack.c.bf16 %v932_v7, %v929_v31  ;;  %v2342_v31 = vld [vmem:[#allocation7 + $0x68] sm:$0xff] }
 0x1e6   :  { %3494 = vmatpush1.bf16.msra.mxu0 %v3493_v60  ;;  %3816 = vmatprep.subr.bf16.mxu1 %v3815_v0  ;;  %v923_v60 = vld [vmem:[#allocation2 + $0x1a70] sm:$0xff]  ;;  %v926_v0 = vld [vmem:[#allocation2 + $0x1a88] sm:$0xff]  ;;  %v2356_v58 = vld [vmem:[#allocation7 + $0xd8] sm:$0xff] }
 0x1e7   :  { %3496 = vmatprep.subr.bf16.mxu0 %v3495_v4  ;;  %v4277_v24 = vadd.f32 %v2626_v16, %v1763_v8  ;;  %v3525_v3 = vpack.c.bf16 %v926_v0, %v923_v60  ;;  %v3531_v16 = vpack.c.bf16 %v939_v29, %v936_v9  ;;  %v2355_v28 = vld [vmem:[#allocation7 + $0xd0] sm:$0xff]  ;;  %v2340_v0 = vld [vmem:[#allocation7 + $0x58] sm:$0xff] }
 0x1e8   :  { %v2339_v60 = vld [vmem:[#allocation7 + $0x50] sm:$0xff]  ;;  %v2360_v29 = vld [vmem:[#allocation7 + $0xf8] sm:$0xff] }
 0x1e9   :  { %3818 = vmatpush3.bf16.msra.mxu1 %v3817_v15  ;;  %v2359_v9 = vld [vmem:[#allocation7 + $0xf0] sm:$0xff] }
 0x1ea   :  { %3498 = vmatpush1.bf16.msra.mxu0 %v3497_v17  ;;  %3820 = vmatprep.subr.bf16.mxu1 %v3819_v18  ;;  %v935_v17 = vld [vmem:[#allocation2 + $0x1ad0] sm:$0xff]  ;;  %v938_v18 = vld [vmem:[#allocation2 + $0x1ae8] sm:$0xff] }
 0x1eb   :  { %3500 = vmatprep.subr.bf16.mxu0 %v3499_v21  ;;  %v3533_v19 = vpack.c.bf16 %v938_v18, %v935_v17 }
 0x1ed   :  { %3822 = vmatpush3.bf16.msra.mxu1 %v3821_v25 }
 0x1ee   :  { %3502 = vmatpush1.bf16.msra.mxu0 %v3501_v39 }
 0x1ef   :  { %3504 = vmatprep.subr.bf16.mxu0 %v3503_v27  ;;  %v2346_v27 = vld [vmem:[#allocation7 + $0x88] sm:$0xff] }
 0x1f0   :  { %2321 = vmatmul.mubr.f32.vlgmr.msra.gmra.mrb[18].mxu1 %v4266_v56 }
 0x1f2   :  { %3506 = vmatpush1.bf16.msra.mxu0 %v3505_v35  ;;  %v2347_v35 = vld [vmem:[#allocation7 + $0x90] sm:$0xff] }
 0x1f3   :  { %3508 = vmatprep.subr.bf16.mxu0 %v3507_v36  ;;  %v2348_v36 = vld [vmem:[#allocation7 + $0x98] sm:$0xff] }
 0x1f6   :  { %3510 = vmatpush1.bf16.msra.mxu0 %v3509_v40  ;;  %v3829_v40 = vpack.c.bf16 %v2332_v37, %v2331_v33 }
 0x1f7   :  { %3512 = vmatprep.subr.bf16.mxu0 %v3511_v41  ;;  %v3831_v41 = vpack.c.bf16 %v2350_v12, %v2349_v63 }
 0x1fa   :  { %3514 = vmatpush1.bf16.msra.mxu0 %v3513_v48  ;;  %v3833_v48 = vpack.c.bf16 %v2334_v42, %v2333_v11  ;;  %v2362_v11 = vld [vmem:[#allocation7 + $0x108] sm:$0xff] }
 0x1fb   :  { %3516 = vmatprep.subr.bf16.mxu0 %v3515_v6  ;;  %v3835_v6 = vpack.c.bf16 %v2352_v44, %v2351_v43 }
 0x1fe   :  { %3518 = vmatpush1.bf16.msra.mxu0 %v3517_v54  ;;  %v3837_v54 = vpack.c.bf16 %v2336_v52, %v2335_v51  ;;  %v2364_v51 = vld [vmem:[#allocation7 + $0x118] sm:$0xff] }
 0x1ff   :  { %3520 = vmatprep.subr.bf16.mxu0 %v3519_v55  ;;  %v3839_v55 = vpack.c.bf16 %v2354_v20, %v2353_v53  ;;  %v2367_v53 = vld [vmem:[#allocation7 + $0x130] sm:$0xff]  ;;  %v2368_v20 = vld [vmem:[#allocation7 + $0x138] sm:$0xff] }
 0x202   :  { %3522 = vmatpush1.bf16.msra.mxu0 %v3521_v59  ;;  %v3841_v59 = vpack.c.bf16 %v2338_v50, %v2337_v57  ;;  %v2370_v57 = vld [vmem:[#allocation7 + $0x148] sm:$0xff] }
 0x203   :  { %3524 = vmatprep.subr.bf16.mxu0 %v3523_v49  ;;  %v2659_v4 = vpop.f32.mrb[6].mxu1  ;;  %v3843_v49 = vpack.c.bf16 %v2356_v58, %v2355_v28  ;;  %v2371_v28 = vld [vmem:[#allocation7 + $0x150] sm:$0xff]  ;;  %v2372_v58 = vld [vmem:[#allocation7 + $0x158] sm:$0xff] }
 0x204   :  { %v2660_v8 = vpop.f32.mrb[7].mxu1 }
 0x205   :  { %v2661_v10 = vadd.f32 %v2660_v8, %v2659_v4  ;;  %v3847_v4 = vpack.c.bf16 %v2358_v2, %v2357_v1  ;;  %v2375_v1 = vld [vmem:[#allocation7 + $0x170] sm:$0xff]  ;;  %v2376_v2 = vld [vmem:[#allocation7 + $0x178] sm:$0xff] }
 0x206   :  { %3526 = vmatpush1.bf16.msra.mxu0 %v3525_v3  ;;  %v3845_v3 = vpack.c.bf16 %v2340_v0, %v2339_v60  ;;  %v2374_v60 = vld [vmem:[#allocation7 + $0x168] sm:$0xff] }
 0x207   :  { %v1903_v15 = vadd.f32 %v2661_v10, %v4277_v24  ;;  %3528 = vmatprep.subr.bf16.mxu0 %v3527_v5  ;;  %v2345_v24 = vld [vmem:[#allocation7 + $0x80] sm:$0xff] }
 0x208   :  { %v3823_v46 = vpack.c.bf16 %v2346_v27, %v2345_v24  ;;  %v2341_v5 = vld [vmem:[#allocation7 + $0x60] sm:$0xff] }
 0x209   :  { %v3849_v7 = vpack.c.bf16 %v2342_v31, %v2341_v5 }
 0x20a   :  { %3530 = vmatpush1.bf16.msra.mxu0 %v3529_v14  ;;  %3824 = vmatprep.subr.bf16.mxu1 %v3823_v46  ;;  %v3851_v14 = vpack.c.bf16 %v2360_v29, %v2359_v9 }
 0x20b   :  { %3532 = vmatprep.subr.bf16.mxu0 %v3531_v16  ;;  %3826 = vmatpush3.bf16.msra.mxu1 %v3825_v32  ;;  %v2344_v16 = vld [vmem:[#allocation7 + $0x78] sm:$0xff] }
 0x20e   :  { %3534 = vmatpush1.bf16.msra.mxu0 %v3533_v19 }
 0x211   :  { %1690 = vmatmul.mubr.f32.vlgmr.msra.gmra.mrb[0].mxu0 %v4266_v56  ;;  %v3827_v56 = vpack.c.bf16 %v2348_v36, %v2347_v35  ;;  %v945_v35 = vsub.s32 0, %v4134_v61 }
 0x213   :  { %3828 = vmatprep.subr.bf16.mxu1 %v3827_v56  ;;  %v946_v36 = vrot.slane %v4273_v47, %v945_v35 }
 0x214   :  { %3830 = vmatpush3.bf16.msra.mxu1 %v3829_v40 }
 0x215   :  { %3832 = vmatprep.subr.bf16.mxu1 %v3831_v41  ;;  %v3879_v56 = vadd.f32 %v4255_v45, %v946_v36  ;;  %v2361_v41 = vld [vmem:[#allocation7 + $0x100] sm:$0xff] }
 0x216   :  { %v3856_v44 = vpack.c.bf16 %v2362_v11, %v2361_v41  ;;  %v2365_v45 = vld [vmem:[#allocation7 + $0x120] sm:$0xff] }
 0x218   :  { %3834 = vmatpush3.bf16.msra.mxu1 %v3833_v48 }
 0x219   :  { %3836 = vmatprep.subr.bf16.mxu1 %v3835_v6  ;;  %v2363_v6 = vld [vmem:[#allocation7 + $0x110] sm:$0xff] }
 0x21c   :  { %3838 = vmatpush3.bf16.msra.mxu1 %v3837_v54  ;;  %v3865_v54 = vpack.c.bf16 %v2368_v20, %v2367_v53 }
 0x21d   :  { %3840 = vmatprep.subr.bf16.mxu1 %v3839_v55  ;;  %v2369_v55 = vld [vmem:[#allocation7 + $0x140] sm:$0xff] }
 0x21e   :  { %v3868_v50 = vpack.c.bf16 %v2370_v57, %v2369_v55 }
 0x220   :  { %3842 = vmatpush3.bf16.msra.mxu1 %v3841_v59  ;;  %v3871_v59 = vpack.c.bf16 %v2372_v58, %v2371_v28 }
 0x221   :  { %3844 = vmatprep.subr.bf16.mxu1 %v3843_v49  ;;  %v2373_v49 = vld [vmem:[#allocation7 + $0x160] sm:$0xff] }
 0x222   :  { %v3874_v0 = vpack.c.bf16 %v2374_v60, %v2373_v49 }
 0x223   :  { %v2694_v38 = vpop.f32.mrb[8].mxu1 }
 0x224   :  { %v2695_v21 = vpop.f32.mrb[9].mxu1  ;;  %3846 = vmatpush3.bf16.msra.mxu1 %v3845_v3  ;;  %v3877_v3 = vpack.c.bf16 %v2376_v2, %v2375_v1 }
 0x225   :  { %v2696_v13 = vadd.f32 %v2695_v21, %v2694_v38  ;;  %3848 = vmatprep.subr.bf16.mxu1 %v3847_v4  ;;  %v4045_v38 = vmov 0.0|0.0  }
 0x227   :  { %v1973_v23 = vadd.f32 %v2696_v13, %v1903_v15  ;;  %v2343_v15 = vld [vmem:[#allocation7 + $0x70] sm:$0xff] }
 0x228   :  { %3850 = vmatpush3.bf16.msra.mxu1 %v3849_v7  ;;  %v3853_v18 = vpack.c.bf16 %v2344_v16, %v2343_v15 }
 0x229   :  { %3852 = vmatprep.subr.bf16.mxu1 %v3851_v14 }
 0x22c   :  { %3854 = vmatpush3.bf16.msra.mxu1 %v3853_v18 }
 0x22d   :  { %3855 = vmatprep.subr.bf16.mxu1 %v4045_v38 }
 0x243   :  { %v2729_v30 = vpop.f32.mrb[10].mxu1 }
 0x244   :  { %v2730_v62 = vpop.f32.mrb[11].mxu1 }
 0x245   :  { %v2731_v25 = vadd.f32 %v2730_v62, %v2729_v30 }
 0x247   :  { %v4282_v39 = vadd.f32 %v2731_v25, %v1973_v23 }
 0x263   :  { %v2764_v8 = vpop.f32.mrb[12].mxu1 }
 0x264   :  { %v2765_v10 = vpop.f32.mrb[13].mxu1 }
 0x265   :  { %v2766_v17 = vadd.f32 %v2765_v10, %v2764_v8  ;;  %v2556_v8 = vld [vmem:[#allocation8] ss:$0 sm:$0xff] }
 0x267   :  { %v2113_v19 = vadd.f32 %v2766_v17, %v4282_v39  ;;  %v949_v39 = vsub.s32 1, %v4134_v61  ;;  %v3859_v61 = vpack.c.bf16 %v2364_v51, %v2363_v6 }
 0x269   :  { %v950_v33 = vrot.slane %v4273_v47, %v949_v39  ;;  %v4047_v47 = vmov 0.0  }
 0x26b   :  { %v3881_v37 = vadd.f32 %v4257_v34, %v950_v33  ;;  %v2366_v34 = vld [vmem:[#allocation7 + $0x128] sm:$0xff] }
 0x26c   :  { %v3862_v52 = vpack.c.bf16 %v2366_v34, %v2365_v45 }
 0x283   :  { %v2799_v21 = vpop.f32.mrb[14].mxu1 }
 0x284   :  { %v2800_v13 = vpop.f32.mrb[15].mxu1 }
 0x285   :  { %v2801_v23 = vadd.f32 %v2800_v13, %v2799_v21 }
 0x287   :  { %v2183_v30 = vadd.f32 %v2801_v23, %v2113_v19 }
 0x2a3   :  { %v2834_v62 = vpop.f32.mrb[16].mxu1 }
 0x2a4   :  { %v2835_v25 = vpop.f32.mrb[17].mxu1 }
 0x2a5   :  { %v2836_v24 = vadd.f32 %v2835_v25, %v2834_v62 }
 0x2a7   :  { %v2253_v27 = vadd.f32 %v2836_v24, %v2183_v30 }
 0x2c3   :  { %v2869_v46 = vpop.f32.mrb[18].mxu1 }
 0x2c4   :  { %v2870_v22 = vpop.f32.mrb[19].mxu1 }
 0x2c5   :  { %v2871_v26 = vadd.f32 %v2870_v22, %v2869_v46 }
 0x2c7   :  { %v2323_v32 = vadd.f32 %v2871_v26, %v2253_v27 }
 0x2c9   :  { %v2328_v4 = vmax.f32 %v2323_v32, 0.0 }
 0x2e4   :  { %v1691_v63 = vpop.f32.mrb[0].mxu0 }
 0x2e5   :  { %v3880_v12 = vadd.f32 %v3879_v56, %v1691_v63  ;;  %v1693_v40 = vpop.f32.mrb[1].mxu0 }
 0x2e6   :  { %v3882_v42 = vadd.f32 %v3881_v37, %v1693_v40 }
 0x2e7   :  { %v2326_v48 = vmax.f32 %v3880_v12, 0.0 }
 0x2e8   :  { %v2327_v43 = vmax.f32 %v3882_v42, 0.0 }
 0x2ea   :  { %2448 = vmatprep.mubr.f32.mxu1 %v2327_v43 }
 0x2eb   :  { %2449 = vmatmul.mubr.f32.vlgmr.msra.gmra.mrb[20].mxu1 %v2326_v48 }
 0x2ec   :  { %3857 = vmatpush3.bf16.msra.mxu1 %v3856_v44  ;;  %2956 = vmatprep.mubr.msk.f32.mxu1 %vm4046_vm0, %v4047_v47 }
 0x2ed   :  { %3858 = vmatprep.subr.bf16.mxu1 %v4045_v38 }
 0x2f0   :  { %3860 = vmatpush3.bf16.msra.mxu1 %v3859_v61 }
 0x2f1   :  { %3861 = vmatprep.subr.bf16.mxu1 %v4045_v38 }
 0x2f4   :  { %3863 = vmatpush3.bf16.msra.mxu1 %v3862_v52 }
 0x2f5   :  { %3864 = vmatprep.subr.bf16.mxu1 %v4045_v38 }
 0x2f8   :  { %3866 = vmatpush3.bf16.msra.mxu1 %v3865_v54 }
 0x2f9   :  { %3867 = vmatprep.subr.bf16.mxu1 %v4045_v38 }
 0x2fc   :  { %3869 = vmatpush3.bf16.msra.mxu1 %v3868_v50 }
 0x2fd   :  { %3870 = vmatprep.subr.bf16.mxu1 %v4045_v38 }
 0x300   :  { %3872 = vmatpush3.bf16.msra.mxu1 %v3871_v59 }
 0x301   :  { %3873 = vmatprep.subr.bf16.mxu1 %v4045_v38 }
 0x304   :  { %3875 = vmatpush3.bf16.msra.mxu1 %v3874_v0 }
 0x305   :  { %3876 = vmatprep.subr.bf16.mxu1 %v4045_v38 }
 0x308   :  { %3878 = vmatpush3.bf16.msra.mxu1 %v3877_v3 }
 0x30b   :  { %2957 = vmatmul.mubr.f32.vlgmr.msra.gmra.mrb[22].mxu1 %v2328_v4 }
 0x3be   :  { %v2904_v5 = vpop.f32.mrb[20].mxu1 }
 0x3bf   :  { %v2905_v31 = vpop.f32.mrb[21].mxu1 }
 0x3c0   :  { %v2906_v7 = vadd.f32 %v2905_v31, %v2904_v5 }
 0x3c2   :  { %v2451_v9 = vadd.f32 %v2906_v7, %v2556_v8 }
 0x3de   :  { %v2520_v29 = vpop.f32.mrb[22].mxu1 }
 0x3df   :  { %v2521_v10 = vadd.f32 %v2520_v29, %v2451_v9  ;;  %v2958_v14 = vpop.f32.mrb[23].mxu1 }
 0x3e1   :  { %v2525_v15 = vsel %vm2524_vm1, %v2521_v10, -inf }
 0x3e2   :  { %2526 = vmax.xlane.f32.xlu0 %v2525_v15 }
 0x46f   :  { %v2527_v16 = vpop.xlane.xlu0 %2526 }
 0x470   :  { %v2528_v17 = vsub.f32 %v2521_v10, %v2527_v16 }
 0x472   :  { %v2529_v18 = vmul.f32 1.442695, %v2528_v17 }
 0x474   :  { %3914 = vpow2.f32 %v2529_v18 }
 0x47e   :  { %v3915_v19 = vpop.eup %3914 }
 0x47f   :  { %v2531_v38 = vsel %vm2524_vm1, %v3915_v19, 0.0 }
 0x480   :  { %2532 = vadd.xlane.f32.xlu0 %v2531_v38 }
 0x50d   :  { %v2533_v21 = vpop.xlane.xlu0 %2532 }
 0x50e   :  { %3916 = vlog2.f32 %v2533_v21 }
 0x518   :  { %v3917_v13 = vpop.eup %3916 }
 0x519   :  { %v2535_v23 = vmul.f32 0.6931472, %v3917_v13 }
 0x51b   :  { %v2536_v30 = vsub.f32 %v2528_v17, %v2535_v23 }
 0x51d   :  { %2537 = vst [vmem:[#allocation10] sm:$0x3] %v2536_v30 }
 0x51e   :  { %4017 = shalt.err (!%p4014_p8)
}
 0x51f   :  { %s4018_s30 = scalar_lea.hbm %s4316_s5, 32 }
 0x520   :  { %p4019_p9 = scmp.ne.s32.totalorder %s4316_s5, %s4018_s30  ;;  %p4022_p10 = scmp.lt.u32.totalorder %s4018_s30, %s4316_s5 }
 0x522   :  { %p4024_p11 = pnand %p4022_p10, %p4019_p9 }
 0x524   :  { %4027 = shalt.err (!%p4024_p11)
}
 0x525   :  { %2547 = dma.vmem_to_hbm [thread:$0]  %s2545_s28, 32, %s4316_s5, [#allocation4]  }
 0x526   :  { %4034 = dma.done.wait [#allocation4], 32  }
 0x527   :  { %4035 = vsyncadd [#allocation4], 4294967264 }
 0x528   :  { %2551 = vsyncpa [#allocation3], 1 }
 0x529   :  { %2552 = vsyncpa [#allocation6], 1 }
 0x52a   :  { %2553 = vsyncpa [#allocation9], 1 }
 0x52b   :  { %2554 = vsyncpa [#allocation4], 1 }

// kernel: digital_vgg8_forward.2
= control target key start
LH: loop header
LB: loop body
LE: loop exit
PB: predicated region body
PF: predicated region fallthrough
CT: control target
= control target key end

     0   :  { %11 = vsyncpa [#allocation5], 0  ;;  %s11542_s0 = inlined_call_operand.vmem [shape: f32[2,256,8], index: 0, kind: input, shape index: {}]   ;;  %s11543_s1 = inlined_call_operand.hbm [shape: f32[9,8,128], index: 1, kind: input, shape index: {}]   ;;  %s11544_s2 = inlined_call_operand.hbm [shape: f32[1,128], index: 2, kind: input, shape index: {}]   ;;  %s11545_s3 = inlined_call_operand.hbm [shape: f32[9,128,128], index: 3, kind: input, shape index: {}]   ;;  %s11546_s4 = inlined_call_operand.hbm [shape: f32[1,128], index: 4, kind: input, shape index: {}]   ;;  %s11547_s5 = inlined_call_operand.hbm [shape: f32[1,128], index: 5, kind: input, shape index: {}]   ;;  %s11548_s6 = inlined_call_operand.vmem [shape: f32[2,48,128], index: 6, kind: output, shape index: {}]  }
   0x1   :  { %12 = vsyncpa [#allocation7], 0 }
   0x2   :  { %13 = vsyncpa [#allocation10], 0  ;;  %s10362_s21 = smov 0  }
   0x3 LB: > { %s10319_s22 = smov [#allocation6]   ;;  %s10368_s24 = sadd.s32 4294967295, %s10317_s21   ;;  %s10317_s21 = sphi %s10362_s21, %s19_s21  }
   0x4   : > { %s207_s23 = sshll.u32 %s10319_s22, 4  ;;  %p7336_p0 = scmp.ge.s32.totalorder %s10317_s21, 1  ;;  %s10373_s23 = int_to_ptr.vmem [resolvable:$true] %s207_s23 }
   0x5   : > { %p181_p1 = scmp.lt.s32.totalorder %s10317_s21, 3  ;;  %p11549_p2 = scmp.eq.s32.totalorder %s10368_s24, 0 }
   0x6   : > { %s10320_s26 = smov [#allocation9]   ;;  %s10321_s28 = smov [#allocation4]  }
   0x7   : > { %p10375_p3 = pnand %p7336_p0, %p181_p1  ;;  %s231_s27 = sshll.u32 %s10320_s26, 4  ;;  %s10381_s27 = int_to_ptr.vmem [resolvable:$true] %s231_s27 }
   0x8   : > { %s193_s29 = sshll.u32 %s10321_s28, 4  ;;  %s10322_s7 = smov [#allocation8]   ;;  %s10389_s29 = int_to_ptr.vmem [resolvable:$true] %s193_s29 }
   0x9   : > { %s11553_s25 = scalar_select %p10375_p3, 1, 0 }
   0xa   : > { %p10114_p4 = pneg %p10375_p3  ;;  %s10391_s8 = sshll.u32 %s10322_s7, 4  ;;  %s218_s8 = int_to_ptr.vmem [resolvable:$true] %s10391_s8 }
   0xb   : > { %s10159_s11 = scalar_lea.hbm %s11544_s2, 16 }
   0xc   : > { %p10385_p5 = pnand %p11549_p2, %p10114_p4  ;;  %p10160_p6 = scmp.ne.s32.totalorder %s11544_s2, %s10159_s11 }
   0xd   : > { %p10166_p10 = scmp.lt.u32.totalorder %s10159_s11, %s11544_s2 }
   0xe   : > { %p10401_p7 = pneg %p10385_p5 }
  0x10   : > { %p10162_p8 = pnand %p10401_p7, %p10160_p6 }
  0x12   : > { %p10163_p9 = pneg %p10162_p8 }
  0x14   : > { %p10168_p11 = pnand %p10166_p10, %p10163_p9 }
  0x16   : > { %10171 = shalt.err (!%p10168_p11)
}
  0x17   : > { %s10172_s17 = scalar_lea.vmem %s10373_s23, 16  ;;  %s10179_s18 = scalar_lea.vmem %s10373_s23, 32 }
  0x18   : > { %p10173_p12 = scmp.ne.s32.totalorder %s10373_s23, %s10172_s17  ;;  %p10180_p1 = scmp.lt.s32.totalorder %s10373_s23, %s10373_s23 }
  0x19   : > { %p10181_p4 = scmp.lt.s32.totalorder %s10179_s18, %s10172_s17 }
  0x1a   : > { %p10175_p13 = pnand %p10173_p12, %p10401_p7 }
  0x1b   : > { %p10182_p6 = por %p10181_p4, %p10180_p1 }
  0x1c   : > { %p10176_p0 = pneg %p10175_p13 }
  0x1e   : > { %p10183_p8 = pnand %p10182_p6, %p10176_p0 }
  0x20   : > { %10186 = shalt.err (!%p10183_p8)
}
  0x21   : > { %10120 = dma.hbm_to_vmem [thread:$0]  (!%p10385_p5), %s11544_s2, 16, %s10373_s23, [#allocation7]  }
  0x22   : > { %s10187_s28 = scalar_lea.hbm %s11546_s4, 16 }
  0x23   : > { %p10188_p9 = scmp.ne.s32.totalorder %s11546_s4, %s10187_s28  ;;  %p10194_p12 = scmp.lt.u32.totalorder %s10187_s28, %s11546_s4 }
  0x25   : > { %p10190_p10 = pnand %p10188_p9, %p10401_p7 }
  0x27   : > { %p10191_p11 = pneg %p10190_p10 }
  0x29   : > { %p10196_p13 = pnand %p10194_p12, %p10191_p11 }
  0x2b   : > { %10199 = shalt.err (!%p10196_p13)
}
  0x2c   : > { %s10200_s23 = scalar_lea.vmem %s10381_s27, 16  ;;  %s10207_s12 = scalar_lea.vmem %s10381_s27, 32 }
  0x2d   : > { %p10201_p0 = scmp.ne.s32.totalorder %s10381_s27, %s10200_s23  ;;  %p10208_p6 = scmp.lt.s32.totalorder %s10381_s27, %s10381_s27 }
  0x2e   : > { %p10209_p8 = scmp.lt.s32.totalorder %s10207_s12, %s10200_s23 }
  0x2f   : > { %p10203_p1 = pnand %p10201_p0, %p10401_p7 }
  0x30   : > { %p10210_p9 = por %p10209_p8, %p10208_p6 }
  0x31   : > { %p10204_p4 = pneg %p10203_p1 }
  0x33   : > { %p10211_p10 = pnand %p10210_p9, %p10204_p4 }
  0x35   : > { %10214 = shalt.err (!%p10211_p10)
}
  0x36   : > { %10126 = dma.hbm_to_vmem [thread:$0]  (!%p10385_p5), %s11546_s4, 16, %s10381_s27, [#allocation10]  }
  0x37   : > { %s10215_s18 = scalar_lea.hbm %s11543_s1, 1152 }
  0x38   : > { %p10216_p11 = scmp.ne.s32.totalorder %s11543_s1, %s10215_s18  ;;  %p10222_p0 = scmp.lt.u32.totalorder %s10215_s18, %s11543_s1 }
  0x3a   : > { %p10218_p12 = pnand %p10216_p11, %p10401_p7 }
  0x3c   : > { %p10219_p13 = pneg %p10218_p12 }
  0x3e   : > { %p10224_p1 = pnand %p10222_p0, %p10219_p13 }
  0x40   : > { %10227 = shalt.err (!%p10224_p1)
}
  0x41   : > { %s10228_s27 = scalar_lea.vmem %s10389_s29, 1152  ;;  %p10236_p9 = scmp.lt.s32.totalorder %s10389_s29, %s10389_s29 }
  0x42   : > { %p10229_p4 = scmp.ne.s32.totalorder %s10389_s29, %s10228_s27  ;;  %p10237_p10 = scmp.lt.s32.totalorder %s10228_s27, %s10228_s27 }
  0x44   : > { %p10231_p6 = pnand %p10229_p4, %p10401_p7  ;;  %p10238_p11 = por %p10237_p10, %p10236_p9 }
  0x46   : > { %p10232_p8 = pneg %p10231_p6 }
  0x48   : > { %p10239_p12 = pnand %p10238_p11, %p10232_p8 }
  0x4a   : > { %10242 = shalt.err (!%p10239_p12)
}
  0x4b   : > { %s10323_s28 = smov 128   ;;  %s10324_s7 = smov 8  }
  0x4c   : > { %10117 = dma.hbm_to_vmem [thread:$0]  (!%p10385_p5), %s11543_s1, 1152, %s10389_s29, [#allocation5], %s10323_s28, %s10323_s28, %s10324_s7  }
  0x4d   : > { %s10243_s12 = scalar_lea.hbm %s11545_s3, 18432 }
  0x4e   : > { %p10244_p13 = scmp.ne.s32.totalorder %s11545_s3, %s10243_s12  ;;  %p10250_p4 = scmp.lt.u32.totalorder %s10243_s12, %s11545_s3 }
  0x50   : > { %p10246_p0 = pnand %p10244_p13, %p10401_p7 }
  0x52   : > { %p10247_p1 = pneg %p10246_p0 }
  0x54   : > { %p10252_p6 = pnand %p10250_p4, %p10247_p1 }
  0x56   : > { %10255 = shalt.err (!%p10252_p6)
}
  0x57   : > { %s10256_s18 = scalar_lea.vmem %s218_s8, 18432  ;;  %p10264_p11 = scmp.lt.s32.totalorder %s218_s8, %s218_s8 }
  0x58   : > { %p10257_p8 = scmp.ne.s32.totalorder %s218_s8, %s10256_s18  ;;  %p10265_p12 = scmp.lt.s32.totalorder %s10256_s18, %s10256_s18 }
  0x5a   : > { %p10259_p9 = pnand %p10257_p8, %p10401_p7  ;;  %p10266_p2 = por %p10265_p12, %p10264_p11 }
  0x5c   : > { %p10260_p10 = pneg %p10259_p9 }
  0x5e   : > { %p10267_p3 = pnand %p10266_p2, %p10260_p10 }
  0x60   : > { %10270 = shalt.err (!%p10267_p3)
}
  0x61   : > { %10123 = dma.hbm_to_vmem [thread:$0]  (!%p10385_p5), %s11545_s3, 18432, %s218_s8, [#allocation7], %s10323_s28, %s10323_s28, %s10324_s7  }
  0x62   : > { %s10325_s20 = smov [#allocation11]   ;;  %s10271_s9 = scalar_lea.hbm %s11547_s5, 16 }
  0x63   : > { %s242_s22 = sshll.u32 %s10325_s20, 4  ;;  %p10272_p13 = scmp.ne.s32.totalorder %s11547_s5, %s10271_s9  ;;  %s243_s22 = int_to_ptr.vmem [resolvable:$true] %s242_s22 }
  0x64   : > { %p10278_p0 = scmp.lt.u32.totalorder %s10271_s9, %s11547_s5 }
  0x65   : > { %p10274_p2 = pnand %p10272_p13, %p10401_p7 }
  0x67   : > { %p10275_p3 = pneg %p10274_p2 }
  0x69   : > { %p10280_p1 = pnand %p10278_p0, %p10275_p3 }
  0x6b   : > { %10283 = shalt.err (!%p10280_p1)
}
  0x6c   : > { %s10284_s8 = scalar_lea.vmem %s243_s22, 16  ;;  %s10291_s28 = scalar_lea.vmem %s243_s22, 32 }
  0x6d   : > { %p10285_p4 = scmp.ne.s32.totalorder %s243_s22, %s10284_s8  ;;  %p10292_p9 = scmp.lt.s32.totalorder %s243_s22, %s243_s22 }
  0x6e   : > { %p10293_p10 = scmp.lt.s32.totalorder %s10291_s28, %s10284_s8 }
  0x6f   : > { %p10287_p6 = pnand %p10285_p4, %p10401_p7 }
  0x70   : > { %p10294_p11 = por %p10293_p10, %p10292_p9 }
  0x71   : > { %p10288_p8 = pneg %p10287_p6 }
  0x73   : > { %p10295_p12 = pnand %p10294_p11, %p10288_p8 }
  0x75   : > { %10298 = shalt.err (!%p10295_p12)
}
  0x76   : > { %10129 = dma.hbm_to_vmem [thread:$0]  (!%p10385_p5), %s11547_s5, 16, %s243_s22, [#allocation10]  }
  0x77   : > { %p11556_p13 = scmp.ne.s32.totalorder %s11553_s25, 0 }
  0x78   : > { %p11557_p2 = scmp.eq.s32.totalorder (!%p11556_p13), %s10368_s24, 0 }
  0x79   : > { %263 = sbr.rel (%p11556_p13) target bundleno = 1550 (0x60e), region = 44 }
  0x80   : > { %10304 = dma.done.wait (%p11557_p2), [#allocation5], 1152   ;;  %p11558_p7 = pmov %p11557_p2 }
  0x81   : > { %p11559_p3 = pmov %p11557_p2 }
  0x82   : > { %10306 = vsyncadd (%p11558_p7), [#allocation5], 4294966144 }
  0x83   : > { %10308 = dma.done.wait (%p11559_p3), [#allocation7], 18448   ;;  %p11560_p0 = pmov %p11557_p2 }
  0x85   : > { %10310 = vsyncadd (%p11560_p0), [#allocation7], 4294948848  ;;  %p11561_p1 = pmov %p11560_p0 }
  0x86   : > { %p11562_p5 = pmov %p11560_p0 }
  0x87   : > { %10312 = dma.done.wait (%p11561_p1), [#allocation10], 32  }
  0x88   : > { %10314 = vsyncadd (%p11562_p5), [#allocation10], 4294967264  ;;  %p309_p4 = scmp.lt.s32.totalorder %s10368_s24, 1  ;;  %vm348_vm0 = vcmask 64512   ;;  %v347_v0 = vld [vmem:[#allocation4] sm:$0xff]  ;;  %v723_v3 = vld [vmem:[#allocation4 + $0x8] sm:$0xff] }
  0x89   : > { %8267 = vmatprep.subr.mxu0 %v347_v0  ;;  %v1126_v9 = vld [vmem:[#allocation4 + $0x10] sm:$0xff]  ;;  %v1529_v34 = vld [vmem:[#allocation4 + $0x18] sm:$0xff]  ;;  %v1932_v63 = vld [vmem:[#allocation4 + $0x20] sm:$0xff] }
  0x8a   : > { %s11566_s24 = smov (!%p309_p4, %s10368_s24), 1  ;;  %8268 = vmatpush3.msra.mxu0 %v347_v0 }
  0x8b   : > { %s7609_s25 = sshll.u32 %s11566_s24, 8  ;;  %8311 = vmatprep.subr.mxu0 %v723_v3  ;;  %s10093_s16 = smul.u32 48, %s11566_s24 }
  0x8c   : > { %s10529_s15 = scalar_lea.vmem %s11542_s0, %s7609_s25 }
  0x8d   : > { %v319_v1 = vld [vmem:[%s10529_s15 + $0x1] sm:$0xff]  ;;  %v320_v2 = vld [vmem:[%s10529_s15 + $0x9] sm:$0xff]  ;;  %v10535_v4 = vld [vmem:[%s10529_s15 + $0x11] sm:$0xff]  ;;  %s11494_s18 = scalar_lea.vmem %s11548_s6, %s10093_s16 }
  0x8e   : > { %8269 = vmatprep.mubr.msk.f32.mxu0 %vm348_vm0, %v319_v1  ;;  %v10541_v5 = vld [vmem:[%s10529_s15 + $0x19] sm:$0xff]  ;;  %v10544_v6 = vld [vmem:[%s10529_s15 + $0x21] sm:$0xff]  ;;  %v10551_v7 = vld [vmem:[%s10529_s15 + $0x29] sm:$0xff] }
  0x8f   : > { %8270 = vmatmul.mubr.msk.f32.vlgmr.msra.gmra.mrb[0].mxu0 %vm348_vm0, %v320_v2  ;;  %v10554_v8 = vld [vmem:[%s10529_s15 + $0x31] sm:$0xff]  ;;  %v10561_v10 = vld [vmem:[%s10529_s15 + $0x39] sm:$0xff]  ;;  %v10564_v11 = vld [vmem:[%s10529_s15 + $0x41] sm:$0xff] }
  0x90   : > { %8312 = vmatpush3.msra.mxu0 %v723_v3  ;;  %8272 = vmatprep.mubr.msk.f32.mxu0 %vm348_vm0, %v10535_v4  ;;  %v10571_v12 = vld [vmem:[%s10529_s15 + $0x49] sm:$0xff]  ;;  %v10574_v13 = vld [vmem:[%s10529_s15 + $0x51] sm:$0xff]  ;;  %v10581_v14 = vld [vmem:[%s10529_s15 + $0x59] sm:$0xff] }
  0x91   : > { %8355 = vmatprep.subr.mxu0 %v1126_v9  ;;  %v10584_v15 = vld [vmem:[%s10529_s15 + $0x61] sm:$0xff]  ;;  %v10591_v16 = vld [vmem:[%s10529_s15 + $0x69] sm:$0xff]  ;;  %v10594_v17 = vld [vmem:[%s10529_s15 + $0x71] sm:$0xff] }
  0x92   : > { %v10601_v18 = vld [vmem:[%s10529_s15 + $0x79] sm:$0xff]  ;;  %v10604_v19 = vld [vmem:[%s10529_s15 + $0x81] sm:$0xff]  ;;  %v10611_v20 = vld [vmem:[%s10529_s15 + $0x89] sm:$0xff] }
  0x93   : > { %8273 = vmatmul.mubr.msk.f32.gmra.mrb[2].mxu0 %vm348_vm0, %v10541_v5  ;;  %v10614_v21 = vld [vmem:[%s10529_s15 + $0x91] sm:$0xff]  ;;  %v10621_v22 = vld [vmem:[%s10529_s15 + $0x99] sm:$0xff]  ;;  %v10624_v23 = vld [vmem:[%s10529_s15 + $0xa1] sm:$0xff] }
  0x94   : > { %8275 = vmatprep.mubr.msk.f32.mxu0 %vm348_vm0, %v10544_v6  ;;  %v10631_v24 = vld [vmem:[%s10529_s15 + $0xa9] sm:$0xff]  ;;  %v10634_v25 = vld [vmem:[%s10529_s15 + $0xb1] sm:$0xff]  ;;  %v10641_v26 = vld [vmem:[%s10529_s15 + $0xb9] sm:$0xff] }
  0x95   : > { %v10644_v27 = vld [vmem:[%s10529_s15 + $0xc1] sm:$0xff]  ;;  %v10651_v28 = vld [vmem:[%s10529_s15 + $0xc9] sm:$0xff]  ;;  %v10654_v29 = vld [vmem:[%s10529_s15 + $0xd1] sm:$0xff] }
  0x96   : > { %v10661_v30 = vld [vmem:[%s10529_s15 + $0xd9] sm:$0xff]  ;;  %v694_v31 = vld [vmem:[%s10529_s15 + $0x2] sm:$0xff]  ;;  %v695_v32 = vld [vmem:[%s10529_s15 + $0xa] sm:$0xff] }
  0x97   : > { %8276 = vmatmul.mubr.msk.f32.gmra.mrb[4].mxu0 %vm348_vm0, %v10551_v7  ;;  %v696_v33 = vld [vmem:[%s10529_s15 + $0x12] sm:$0xff]  ;;  %v697_v35 = vld [vmem:[%s10529_s15 + $0x1a] sm:$0xff]  ;;  %v698_v36 = vld [vmem:[%s10529_s15 + $0x22] sm:$0xff] }
  0x98   : > { %8278 = vmatprep.mubr.msk.f32.mxu0 %vm348_vm0, %v10554_v8  ;;  %v699_v37 = vld [vmem:[%s10529_s15 + $0x2a] sm:$0xff]  ;;  %v700_v38 = vld [vmem:[%s10529_s15 + $0x32] sm:$0xff]  ;;  %v701_v39 = vld [vmem:[%s10529_s15 + $0x3a] sm:$0xff] }
  0x99   : > { %v702_v40 = vld [vmem:[%s10529_s15 + $0x42] sm:$0xff]  ;;  %v703_v41 = vld [vmem:[%s10529_s15 + $0x4a] sm:$0xff]  ;;  %v704_v42 = vld [vmem:[%s10529_s15 + $0x52] sm:$0xff] }
  0x9a   : > { %v705_v43 = vld [vmem:[%s10529_s15 + $0x5a] sm:$0xff]  ;;  %v706_v44 = vld [vmem:[%s10529_s15 + $0x62] sm:$0xff]  ;;  %v707_v45 = vld [vmem:[%s10529_s15 + $0x6a] sm:$0xff] }
  0x9b   : > { %8279 = vmatmul.mubr.msk.f32.gmra.mrb[6].mxu0 %vm348_vm0, %v10561_v10  ;;  %v708_v46 = vld [vmem:[%s10529_s15 + $0x72] sm:$0xff]  ;;  %v709_v47 = vld [vmem:[%s10529_s15 + $0x7a] sm:$0xff]  ;;  %v710_v48 = vld [vmem:[%s10529_s15 + $0x82] sm:$0xff] }
  0x9c   : > { %8281 = vmatprep.mubr.msk.f32.mxu0 %vm348_vm0, %v10564_v11  ;;  %v711_v49 = vld [vmem:[%s10529_s15 + $0x8a] sm:$0xff]  ;;  %v712_v50 = vld [vmem:[%s10529_s15 + $0x92] sm:$0xff]  ;;  %v713_v51 = vld [vmem:[%s10529_s15 + $0x9a] sm:$0xff] }
  0x9d   : > { %v714_v52 = vld [vmem:[%s10529_s15 + $0xa2] sm:$0xff]  ;;  %v715_v53 = vld [vmem:[%s10529_s15 + $0xaa] sm:$0xff]  ;;  %v716_v54 = vld [vmem:[%s10529_s15 + $0xb2] sm:$0xff] }
  0x9e   : > { %v717_v55 = vld [vmem:[%s10529_s15 + $0xba] sm:$0xff]  ;;  %v718_v56 = vld [vmem:[%s10529_s15 + $0xc2] sm:$0xff]  ;;  %v719_v57 = vld [vmem:[%s10529_s15 + $0xca] sm:$0xff] }
  0x9f   : > { %8282 = vmatmul.mubr.msk.f32.gmra.mrb[8].mxu0 %vm348_vm0, %v10571_v12  ;;  %v720_v58 = vld [vmem:[%s10529_s15 + $0xd2] sm:$0xff]  ;;  %v721_v59 = vld [vmem:[%s10529_s15 + $0xda] sm:$0xff]  ;;  %v1097_v60 = vld [vmem:[%s10529_s15 + $0x3] sm:$0xff] }
  0xa0   : > { %8284 = vmatprep.mubr.msk.f32.mxu0 %vm348_vm0, %v10574_v13  ;;  %v1098_v61 = vld [vmem:[%s10529_s15 + $0xb] sm:$0xff]  ;;  %v1099_v62 = vld [vmem:[%s10529_s15 + $0x13] sm:$0xff]  ;;  %v1100_v0 = vld [vmem:[%s10529_s15 + $0x1b] sm:$0xff] }
  0xa1   : > { %v1101_v1 = vld [vmem:[%s10529_s15 + $0x23] sm:$0xff]  ;;  %v1102_v2 = vld [vmem:[%s10529_s15 + $0x2b] sm:$0xff]  ;;  %v1103_v3 = vld [vmem:[%s10529_s15 + $0x33] sm:$0xff] }
  0xa3   : > { %8285 = vmatmul.mubr.msk.f32.gmra.mrb[10].mxu0 %vm348_vm0, %v10581_v14 }
  0xa4   : > { %8287 = vmatprep.mubr.msk.f32.mxu0 %vm348_vm0, %v10584_v15 }
  0xa7   : > { %8288 = vmatmul.mubr.msk.f32.gmra.mrb[12].mxu0 %vm348_vm0, %v10591_v16 }
  0xa8   : > { %8290 = vmatprep.mubr.msk.f32.mxu0 %vm348_vm0, %v10594_v17 }
  0xab   : > { %8291 = vmatmul.mubr.msk.f32.gmra.mrb[14].mxu0 %vm348_vm0, %v10601_v18 }
  0xac   : > { %8293 = vmatprep.mubr.msk.f32.mxu0 %vm348_vm0, %v10604_v19 }
  0xaf   : > { %8294 = vmatmul.mubr.msk.f32.gmra.mrb[16].mxu0 %vm348_vm0, %v10611_v20 }
  0xb0   : > { %8296 = vmatprep.mubr.msk.f32.mxu0 %vm348_vm0, %v10614_v21 }
  0xb3   : > { %8297 = vmatmul.mubr.msk.f32.gmra.mrb[18].mxu0 %vm348_vm0, %v10621_v22 }
  0xb4   : > { %8299 = vmatprep.mubr.msk.f32.mxu0 %vm348_vm0, %v10624_v23 }
  0xb7   : > { %8300 = vmatmul.mubr.msk.f32.gmra.mrb[20].mxu0 %vm348_vm0, %v10631_v24 }
  0xb8   : > { %8302 = vmatprep.mubr.msk.f32.mxu0 %vm348_vm0, %v10634_v25 }
  0xbb   : > { %8303 = vmatmul.mubr.msk.f32.gmra.mrb[22].mxu0 %vm348_vm0, %v10641_v26 }
  0xbc   : > { %8305 = vmatprep.mubr.msk.f32.mxu0 %vm348_vm0, %v10644_v27 }
  0xbf   : > { %8306 = vmatmul.mubr.msk.f32.gmra.mrb[24].mxu0 %vm348_vm0, %v10651_v28 }
  0xc0   : > { %8308 = vmatprep.mubr.msk.f32.mxu0 %vm348_vm0, %v10654_v29 }
  0xc3   : > { %8309 = vmatmul.mubr.msk.f32.gmra.mrb[26].mxu0 %vm348_vm0, %v10661_v30 }
  0xc4   : > { %8313 = vmatprep.mubr.msk.f32.mxu0 %vm348_vm0, %v694_v31  ;;  %v1105_v31 = vld [vmem:[%s10529_s15 + $0x43] sm:$0xff] }
  0xc7   : > { %8314 = vmatmul.mubr.msk.f32.vlgmr.msra.gmra.mrb[0].mxu0 %vm348_vm0, %v695_v32  ;;  %v1106_v32 = vld [vmem:[%s10529_s15 + $0x4b] sm:$0xff] }
  0xc8   : > { %8356 = vmatpush3.msra.mxu0 %v1126_v9  ;;  %8316 = vmatprep.mubr.msk.f32.mxu0 %vm348_vm0, %v696_v33  ;;  %v1104_v9 = vld [vmem:[%s10529_s15 + $0x3b] sm:$0xff]  ;;  %v1107_v33 = vld [vmem:[%s10529_s15 + $0x53] sm:$0xff] }
  0xc9   : > { %8399 = vmatprep.subr.mxu0 %v1529_v34 }
  0xcb   : > { %8317 = vmatmul.mubr.msk.f32.gmra.mrb[2].mxu0 %vm348_vm0, %v697_v35  ;;  %v1109_v35 = vld [vmem:[%s10529_s15 + $0x63] sm:$0xff] }
  0xcc   : > { %8319 = vmatprep.mubr.msk.f32.mxu0 %vm348_vm0, %v698_v36  ;;  %v1110_v36 = vld [vmem:[%s10529_s15 + $0x6b] sm:$0xff] }
  0xcf   : > { %8320 = vmatmul.mubr.msk.f32.gmra.mrb[4].mxu0 %vm348_vm0, %v699_v37  ;;  %v1111_v37 = vld [vmem:[%s10529_s15 + $0x73] sm:$0xff] }
  0xd0   : > { %8322 = vmatprep.mubr.msk.f32.mxu0 %vm348_vm0, %v700_v38  ;;  %v1112_v38 = vld [vmem:[%s10529_s15 + $0x7b] sm:$0xff] }
  0xd3   : > { %8323 = vmatmul.mubr.msk.f32.gmra.mrb[6].mxu0 %vm348_vm0, %v701_v39  ;;  %v1113_v39 = vld [vmem:[%s10529_s15 + $0x83] sm:$0xff] }
  0xd4   : > { %8325 = vmatprep.mubr.msk.f32.mxu0 %vm348_vm0, %v702_v40  ;;  %v1114_v40 = vld [vmem:[%s10529_s15 + $0x8b] sm:$0xff] }
  0xd7   : > { %8326 = vmatmul.mubr.msk.f32.gmra.mrb[8].mxu0 %vm348_vm0, %v703_v41  ;;  %v1115_v41 = vld [vmem:[%s10529_s15 + $0x93] sm:$0xff] }
  0xd8   : > { %8328 = vmatprep.mubr.msk.f32.mxu0 %vm348_vm0, %v704_v42  ;;  %v1116_v42 = vld [vmem:[%s10529_s15 + $0x9b] sm:$0xff] }
  0xdb   : > { %8329 = vmatmul.mubr.msk.f32.gmra.mrb[10].mxu0 %vm348_vm0, %v705_v43  ;;  %v1117_v43 = vld [vmem:[%s10529_s15 + $0xa3] sm:$0xff] }
  0xdc   : > { %8331 = vmatprep.mubr.msk.f32.mxu0 %vm348_vm0, %v706_v44  ;;  %v1118_v44 = vld [vmem:[%s10529_s15 + $0xab] sm:$0xff] }
  0xdf   : > { %8332 = vmatmul.mubr.msk.f32.gmra.mrb[12].mxu0 %vm348_vm0, %v707_v45  ;;  %v1119_v45 = vld [vmem:[%s10529_s15 + $0xb3] sm:$0xff] }
  0xe0   : > { %8334 = vmatprep.mubr.msk.f32.mxu0 %vm348_vm0, %v708_v46  ;;  %v1120_v46 = vld [vmem:[%s10529_s15 + $0xbb] sm:$0xff] }
  0xe3   : > { %8335 = vmatmul.mubr.msk.f32.gmra.mrb[14].mxu0 %vm348_vm0, %v709_v47  ;;  %v1121_v47 = vld [vmem:[%s10529_s15 + $0xc3] sm:$0xff] }
  0xe4   : > { %8337 = vmatprep.mubr.msk.f32.mxu0 %vm348_vm0, %v710_v48  ;;  %v1122_v48 = vld [vmem:[%s10529_s15 + $0xcb] sm:$0xff] }
  0xe7   : > { %8338 = vmatmul.mubr.msk.f32.gmra.mrb[16].mxu0 %vm348_vm0, %v711_v49  ;;  %v1123_v49 = vld [vmem:[%s10529_s15 + $0xd3] sm:$0xff] }
  0xe8   : > { %8340 = vmatprep.mubr.msk.f32.mxu0 %vm348_vm0, %v712_v50  ;;  %v1124_v50 = vld [vmem:[%s10529_s15 + $0xdb] sm:$0xff] }
  0xeb   : > { %8341 = vmatmul.mubr.msk.f32.gmra.mrb[18].mxu0 %vm348_vm0, %v713_v51  ;;  %v1500_v51 = vld [vmem:[%s10529_s15 + $0xf] sm:$0xff] }
  0xec   : > { %8343 = vmatprep.mubr.msk.f32.mxu0 %vm348_vm0, %v714_v52  ;;  %v1501_v52 = vld [vmem:[%s10529_s15 + $0x17] sm:$0xff] }
  0xef   : > { %8344 = vmatmul.mubr.msk.f32.gmra.mrb[20].mxu0 %vm348_vm0, %v715_v53  ;;  %v10781_v53 = vld [vmem:[%s10529_s15 + $0x1f] sm:$0xff] }
  0xf0   : > { %8346 = vmatprep.mubr.msk.f32.mxu0 %vm348_vm0, %v716_v54  ;;  %v2335_v54 = vld [vmem:[#allocation4 + $0x28] sm:$0xff] }
  0xf3   : > { %8347 = vmatmul.mubr.msk.f32.gmra.mrb[22].mxu0 %vm348_vm0, %v717_v55  ;;  %v10787_v55 = vld [vmem:[%s10529_s15 + $0x27] sm:$0xff] }
  0xf4   : > { %8349 = vmatprep.mubr.msk.f32.mxu0 %vm348_vm0, %v718_v56  ;;  %v10790_v56 = vld [vmem:[%s10529_s15 + $0x2f] sm:$0xff] }
  0xf7   : > { %8350 = vmatmul.mubr.msk.f32.gmra.mrb[24].mxu0 %vm348_vm0, %v719_v57  ;;  %v10797_v57 = vld [vmem:[%s10529_s15 + $0x37] sm:$0xff] }
  0xf8   : > { %8352 = vmatprep.mubr.msk.f32.mxu0 %vm348_vm0, %v720_v58  ;;  %v10800_v58 = vld [vmem:[%s10529_s15 + $0x3f] sm:$0xff] }
  0xfb   : > { %8353 = vmatmul.mubr.msk.f32.gmra.mrb[26].mxu0 %vm348_vm0, %v721_v59  ;;  %v10807_v59 = vld [vmem:[%s10529_s15 + $0x47] sm:$0xff] }
  0xfc   : > { %8357 = vmatprep.mubr.msk.f32.mxu0 %vm348_vm0, %v1097_v60  ;;  %v10810_v60 = vld [vmem:[%s10529_s15 + $0x4f] sm:$0xff] }
  0xff   : > { %8358 = vmatmul.mubr.msk.f32.vlgmr.msra.gmra.mrb[0].mxu0 %vm348_vm0, %v1098_v61  ;;  %v10817_v61 = vld [vmem:[%s10529_s15 + $0x57] sm:$0xff] }
 0x100   : > { %8400 = vmatpush3.msra.mxu0 %v1529_v34  ;;  %8360 = vmatprep.mubr.msk.f32.mxu0 %vm348_vm0, %v1099_v62  ;;  %v1108_v34 = vld [vmem:[%s10529_s15 + $0x5b] sm:$0xff] }
 0x101   : > { %8443 = vmatprep.subr.mxu0 %v1932_v63  ;;  %v10820_v62 = vld [vmem:[%s10529_s15 + $0x5f] sm:$0xff] }
 0x103   : > { %8361 = vmatmul.mubr.msk.f32.gmra.mrb[2].mxu0 %vm348_vm0, %v1100_v0  ;;  %v10830_v0 = vld [vmem:[%s10529_s15 + $0x6f] sm:$0xff] }
 0x104   : > { %8363 = vmatprep.mubr.msk.f32.mxu0 %vm348_vm0, %v1101_v1  ;;  %v10837_v1 = vld [vmem:[%s10529_s15 + $0x77] sm:$0xff] }
 0x107   : > { %8364 = vmatmul.mubr.msk.f32.gmra.mrb[4].mxu0 %vm348_vm0, %v1102_v2  ;;  %v10840_v2 = vld [vmem:[%s10529_s15 + $0x7f] sm:$0xff] }
 0x108   : > { %8366 = vmatprep.mubr.msk.f32.mxu0 %vm348_vm0, %v1103_v3  ;;  %v10847_v3 = vld [vmem:[%s10529_s15 + $0x87] sm:$0xff] }
 0x10b   : > { %8367 = vmatmul.mubr.msk.f32.gmra.mrb[6].mxu0 %vm348_vm0, %v1104_v9  ;;  %v10850_v9 = vld [vmem:[%s10529_s15 + $0x8f] sm:$0xff] }
 0x10c   : > { %8369 = vmatprep.mubr.msk.f32.mxu0 %vm348_vm0, %v1105_v31  ;;  %v10857_v31 = vld [vmem:[%s10529_s15 + $0x97] sm:$0xff] }
 0x10f   : > { %8370 = vmatmul.mubr.msk.f32.gmra.mrb[8].mxu0 %vm348_vm0, %v1106_v32  ;;  %v10860_v32 = vld [vmem:[%s10529_s15 + $0x9f] sm:$0xff] }
 0x110   : > { %8372 = vmatprep.mubr.msk.f32.mxu0 %vm348_vm0, %v1107_v33  ;;  %v10867_v33 = vld [vmem:[%s10529_s15 + $0xa7] sm:$0xff] }
 0x113   : > { %8373 = vmatmul.mubr.msk.f32.gmra.mrb[10].mxu0 %vm348_vm0, %v1108_v34  ;;  %v10870_v34 = vld [vmem:[%s10529_s15 + $0xaf] sm:$0xff] }
 0x114   : > { %8375 = vmatprep.mubr.msk.f32.mxu0 %vm348_vm0, %v1109_v35  ;;  %v10877_v35 = vld [vmem:[%s10529_s15 + $0xb7] sm:$0xff] }
 0x117   : > { %8376 = vmatmul.mubr.msk.f32.gmra.mrb[12].mxu0 %vm348_vm0, %v1110_v36  ;;  %v10880_v36 = vld [vmem:[%s10529_s15 + $0xbf] sm:$0xff] }
 0x118   : > { %8378 = vmatprep.mubr.msk.f32.mxu0 %vm348_vm0, %v1111_v37  ;;  %v10887_v37 = vld [vmem:[%s10529_s15 + $0xc7] sm:$0xff] }
 0x11b   : > { %8379 = vmatmul.mubr.msk.f32.gmra.mrb[14].mxu0 %vm348_vm0, %v1112_v38  ;;  %v10890_v38 = vld [vmem:[%s10529_s15 + $0xcf] sm:$0xff] }
 0x11c   : > { %8381 = vmatprep.mubr.msk.f32.mxu0 %vm348_vm0, %v1113_v39  ;;  %v10897_v39 = vld [vmem:[%s10529_s15 + $0xd7] sm:$0xff] }
 0x11f   : > { %8382 = vmatmul.mubr.msk.f32.gmra.mrb[16].mxu0 %vm348_vm0, %v1114_v40  ;;  %v10900_v40 = vld [vmem:[%s10529_s15 + $0xdf] sm:$0xff] }
 0x120   : > { %8384 = vmatprep.mubr.msk.f32.mxu0 %vm348_vm0, %v1115_v41  ;;  %v10907_v41 = vld [vmem:[%s10529_s15 + $0xe7] sm:$0xff] }
 0x123   : > { %8385 = vmatmul.mubr.msk.f32.gmra.mrb[18].mxu0 %vm348_vm0, %v1116_v42  ;;  %v1903_v42 = vld [vmem:[%s10529_s15 + $0x10] sm:$0xff] }
 0x124   : > { %8387 = vmatprep.mubr.msk.f32.mxu0 %vm348_vm0, %v1117_v43  ;;  %v1904_v43 = vld [vmem:[%s10529_s15 + $0x18] sm:$0xff] }
 0x127   : > { %8388 = vmatmul.mubr.msk.f32.gmra.mrb[20].mxu0 %vm348_vm0, %v1118_v44  ;;  %v1905_v44 = vld [vmem:[%s10529_s15 + $0x20] sm:$0xff] }
 0x128   : > { %8390 = vmatprep.mubr.msk.f32.mxu0 %vm348_vm0, %v1119_v45  ;;  %v2738_v45 = vld [vmem:[#allocation4 + $0x30] sm:$0xff] }
 0x12b   : > { %8391 = vmatmul.mubr.msk.f32.gmra.mrb[22].mxu0 %vm348_vm0, %v1120_v46  ;;  %v1906_v46 = vld [vmem:[%s10529_s15 + $0x28] sm:$0xff] }
 0x12c   : > { %8393 = vmatprep.mubr.msk.f32.mxu0 %vm348_vm0, %v1121_v47  ;;  %v1907_v47 = vld [vmem:[%s10529_s15 + $0x30] sm:$0xff] }
 0x12f   : > { %8394 = vmatmul.mubr.msk.f32.gmra.mrb[24].mxu0 %vm348_vm0, %v1122_v48  ;;  %v1908_v48 = vld [vmem:[%s10529_s15 + $0x38] sm:$0xff] }
 0x130   : > { %8396 = vmatprep.mubr.msk.f32.mxu0 %vm348_vm0, %v1123_v49  ;;  %v1909_v49 = vld [vmem:[%s10529_s15 + $0x40] sm:$0xff] }
 0x133   : > { %8397 = vmatmul.mubr.msk.f32.gmra.mrb[26].mxu0 %vm348_vm0, %v1124_v50  ;;  %v1910_v50 = vld [vmem:[%s10529_s15 + $0x48] sm:$0xff] }
 0x134   : > { %8401 = vmatprep.mubr.msk.f32.mxu0 %vm348_vm0, %v1500_v51  ;;  %v1911_v51 = vld [vmem:[%s10529_s15 + $0x50] sm:$0xff] }
 0x137   : > { %8402 = vmatmul.mubr.msk.f32.vlgmr.msra.gmra.mrb[0].mxu0 %vm348_vm0, %v1501_v52  ;;  %v1912_v52 = vld [vmem:[%s10529_s15 + $0x58] sm:$0xff] }
 0x138   : > { %8444 = vmatpush3.msra.mxu0 %v1932_v63  ;;  %8404 = vmatprep.mubr.msk.f32.mxu0 %vm348_vm0, %v10781_v53  ;;  %v10827_v63 = vld [vmem:[%s10529_s15 + $0x67] sm:$0xff] }
 0x139   : > { %8487 = vmatprep.subr.mxu0 %v2335_v54 }
 0x13b   : > { %8405 = vmatmul.mubr.msk.f32.gmra.mrb[2].mxu0 %vm348_vm0, %v10787_v55 }
 0x13c   : > { %8407 = vmatprep.mubr.msk.f32.mxu0 %vm348_vm0, %v10790_v56 }
 0x13f   : > { %8408 = vmatmul.mubr.msk.f32.gmra.mrb[4].mxu0 %vm348_vm0, %v10797_v57 }
 0x140   : > { %8410 = vmatprep.mubr.msk.f32.mxu0 %vm348_vm0, %v10800_v58 }
 0x143   : > { %8411 = vmatmul.mubr.msk.f32.gmra.mrb[6].mxu0 %vm348_vm0, %v10807_v59 }
 0x144   : > { %8413 = vmatprep.mubr.msk.f32.mxu0 %vm348_vm0, %v10810_v60 }
 0x147   : > { %8414 = vmatmul.mubr.msk.f32.gmra.mrb[8].mxu0 %vm348_vm0, %v10817_v61 }
 0x148   : > { %8416 = vmatprep.mubr.msk.f32.mxu0 %vm348_vm0, %v10820_v62 }
 0x14b   : > { %8417 = vmatmul.mubr.msk.f32.gmra.mrb[10].mxu0 %vm348_vm0, %v10827_v63 }
 0x14c   : > { %8419 = vmatprep.mubr.msk.f32.mxu0 %vm348_vm0, %v10830_v0 }
 0x14f   : > { %8420 = vmatmul.mubr.msk.f32.gmra.mrb[12].mxu0 %vm348_vm0, %v10837_v1 }
 0x150   : > { %8422 = vmatprep.mubr.msk.f32.mxu0 %vm348_vm0, %v10840_v2 }
 0x153   : > { %8423 = vmatmul.mubr.msk.f32.gmra.mrb[14].mxu0 %vm348_vm0, %v10847_v3 }
 0x154   : > { %8425 = vmatprep.mubr.msk.f32.mxu0 %vm348_vm0, %v10850_v9 }
 0x157   : > { %8426 = vmatmul.mubr.msk.f32.gmra.mrb[16].mxu0 %vm348_vm0, %v10857_v31 }
 0x158   : > { %8428 = vmatprep.mubr.msk.f32.mxu0 %vm348_vm0, %v10860_v32 }
 0x15b   : > { %8429 = vmatmul.mubr.msk.f32.gmra.mrb[18].mxu0 %vm348_vm0, %v10867_v33 }
 0x15c   : > { %8431 = vmatprep.mubr.msk.f32.mxu0 %vm348_vm0, %v10870_v34 }
 0x15f   : > { %8432 = vmatmul.mubr.msk.f32.gmra.mrb[20].mxu0 %vm348_vm0, %v10877_v35 }
 0x160   : > { %8434 = vmatprep.mubr.msk.f32.mxu0 %vm348_vm0, %v10880_v36 }
 0x163   : > { %8435 = vmatmul.mubr.msk.f32.gmra.mrb[22].mxu0 %vm348_vm0, %v10887_v37 }
 0x164   : > { %8437 = vmatprep.mubr.msk.f32.mxu0 %vm348_vm0, %v10890_v38 }
 0x167   : > { %8438 = vmatmul.mubr.msk.f32.gmra.mrb[24].mxu0 %vm348_vm0, %v10897_v39 }
 0x168   : > { %8440 = vmatprep.mubr.msk.f32.mxu0 %vm348_vm0, %v10900_v40 }
 0x16b   : > { %8441 = vmatmul.mubr.msk.f32.gmra.mrb[26].mxu0 %vm348_vm0, %v10907_v41 }
 0x16c   : > { %8445 = vmatprep.mubr.msk.f32.mxu0 %vm348_vm0, %v1903_v42  ;;  %v1914_v42 = vld [vmem:[%s10529_s15 + $0x68] sm:$0xff] }
 0x16f   : > { %8446 = vmatmul.mubr.msk.f32.vlgmr.msra.gmra.mrb[0].mxu0 %vm348_vm0, %v1904_v43  ;;  %v1915_v43 = vld [vmem:[%s10529_s15 + $0x70] sm:$0xff] }
 0x170   : > { %8488 = vmatpush3.msra.mxu0 %v2335_v54  ;;  %8448 = vmatprep.mubr.msk.f32.mxu0 %vm348_vm0, %v1905_v44  ;;  %v1913_v54 = vld [vmem:[%s10529_s15 + $0x60] sm:$0xff]  ;;  %v1916_v44 = vld [vmem:[%s10529_s15 + $0x78] sm:$0xff] }
 0x171   : > { %8531 = vmatprep.subr.mxu0 %v2738_v45 }
 0x173   : > { %8449 = vmatmul.mubr.msk.f32.gmra.mrb[2].mxu0 %vm348_vm0, %v1906_v46  ;;  %v1917_v46 = vld [vmem:[%s10529_s15 + $0x80] sm:$0xff] }
 0x174   : > { %8451 = vmatprep.mubr.msk.f32.mxu0 %vm348_vm0, %v1907_v47  ;;  %v1918_v47 = vld [vmem:[%s10529_s15 + $0x88] sm:$0xff] }
 0x177   : > { %8452 = vmatmul.mubr.msk.f32.gmra.mrb[4].mxu0 %vm348_vm0, %v1908_v48  ;;  %v1919_v48 = vld [vmem:[%s10529_s15 + $0x90] sm:$0xff] }
 0x178   : > { %8454 = vmatprep.mubr.msk.f32.mxu0 %vm348_vm0, %v1909_v49  ;;  %v1920_v49 = vld [vmem:[%s10529_s15 + $0x98] sm:$0xff] }
 0x17b   : > { %8455 = vmatmul.mubr.msk.f32.gmra.mrb[6].mxu0 %vm348_vm0, %v1910_v50  ;;  %v1921_v50 = vld [vmem:[%s10529_s15 + $0xa0] sm:$0xff] }
 0x17c   : > { %8457 = vmatprep.mubr.msk.f32.mxu0 %vm348_vm0, %v1911_v51  ;;  %v1922_v51 = vld [vmem:[%s10529_s15 + $0xa8] sm:$0xff] }
 0x17f   : > { %8458 = vmatmul.mubr.msk.f32.gmra.mrb[8].mxu0 %vm348_vm0, %v1912_v52  ;;  %v1923_v52 = vld [vmem:[%s10529_s15 + $0xb0] sm:$0xff] }
 0x180   : > { %8460 = vmatprep.mubr.msk.f32.mxu0 %vm348_vm0, %v1913_v54  ;;  %v1924_v54 = vld [vmem:[%s10529_s15 + $0xb8] sm:$0xff] }
 0x183   : > { %8461 = vmatmul.mubr.msk.f32.gmra.mrb[10].mxu0 %vm348_vm0, %v1914_v42  ;;  %v1925_v42 = vld [vmem:[%s10529_s15 + $0xc0] sm:$0xff] }
 0x184   : > { %8463 = vmatprep.mubr.msk.f32.mxu0 %vm348_vm0, %v1915_v43  ;;  %v1926_v43 = vld [vmem:[%s10529_s15 + $0xc8] sm:$0xff] }
 0x187   : > { %8464 = vmatmul.mubr.msk.f32.gmra.mrb[12].mxu0 %vm348_vm0, %v1916_v44  ;;  %v1927_v44 = vld [vmem:[%s10529_s15 + $0xd0] sm:$0xff] }
 0x188   : > { %8466 = vmatprep.mubr.msk.f32.mxu0 %vm348_vm0, %v1917_v46  ;;  %v1928_v46 = vld [vmem:[%s10529_s15 + $0xd8] sm:$0xff] }
 0x18b   : > { %8467 = vmatmul.mubr.msk.f32.gmra.mrb[14].mxu0 %vm348_vm0, %v1918_v47  ;;  %v1929_v47 = vld [vmem:[%s10529_s15 + $0xe0] sm:$0xff] }
 0x18c   : > { %8469 = vmatprep.mubr.msk.f32.mxu0 %vm348_vm0, %v1919_v48  ;;  %v1930_v48 = vld [vmem:[%s10529_s15 + $0xe8] sm:$0xff] }
 0x18f   : > { %8470 = vmatmul.mubr.msk.f32.gmra.mrb[16].mxu0 %vm348_vm0, %v1920_v49  ;;  %v3141_v49 = vld [vmem:[#allocation4 + $0x38] sm:$0xff] }
 0x190   : > { %8472 = vmatprep.mubr.msk.f32.mxu0 %vm348_vm0, %v1921_v50  ;;  %v2730_v50 = vld [vmem:[%s10529_s15 + $0xc5] sm:$0xff] }
 0x193   : > { %8473 = vmatmul.mubr.msk.f32.gmra.mrb[18].mxu0 %vm348_vm0, %v1922_v51 }
 0x194   : > { %8475 = vmatprep.mubr.msk.f32.mxu0 %vm348_vm0, %v1923_v52  ;;  %v4061_v52 = vld [vmem:[#allocation8 + $0x18] sm:$0xff] }
 0x197   : > { %8476 = vmatmul.mubr.msk.f32.gmra.mrb[20].mxu0 %vm348_vm0, %v1924_v54  ;;  %v2731_v54 = vld [vmem:[%s10529_s15 + $0xcd] sm:$0xff] }
 0x198   : > { %8478 = vmatprep.mubr.msk.f32.mxu0 %vm348_vm0, %v1925_v42 }
 0x19b   : > { %8479 = vmatmul.mubr.msk.f32.gmra.mrb[22].mxu0 %vm348_vm0, %v1926_v43  ;;  %v4062_v43 = vld [vmem:[#allocation8 + $0x20] sm:$0xff] }
 0x19c   : > { %8481 = vmatprep.mubr.msk.f32.mxu0 %vm348_vm0, %v1927_v44  ;;  %v4063_v44 = vld [vmem:[#allocation8 + $0x28] sm:$0xff] }
 0x19f   : > { %8482 = vmatmul.mubr.msk.f32.gmra.mrb[24].mxu0 %vm348_vm0, %v1928_v46  ;;  %v2732_v46 = vld [vmem:[%s10529_s15 + $0xd5] sm:$0xff] }
 0x1a0   : > { %8484 = vmatprep.mubr.msk.f32.mxu0 %vm348_vm0, %v1929_v47  ;;  %v2733_v47 = vld [vmem:[%s10529_s15 + $0xdd] sm:$0xff] }
 0x1a3   : > { %8485 = vmatmul.mubr.msk.f32.gmra.mrb[26].mxu0 %vm348_vm0, %v1930_v48  ;;  %v11081_v48 = vpack.c.bf16 %v4063_v44, %v4062_v43 }
 0x1a4   : > { %8489 = vmatprep.mubr.msk.f32.mxu0 %vm348_vm0, %v10535_v4  ;;  %v2332_v4 = vld [vmem:[%s10529_s15 + $0xe1] sm:$0xff] }
 0x1a7   : > { %8490 = vmatmul.mubr.msk.f32.vlgmr.msra.gmra.mrb[0].mxu0 %vm348_vm0, %v10541_v5  ;;  %v2333_v5 = vld [vmem:[%s10529_s15 + $0xe9] sm:$0xff] }
 0x1a8   : > { %8532 = vmatpush3.msra.mxu0 %v2738_v45  ;;  %8492 = vmatprep.mubr.msk.f32.mxu0 %vm348_vm0, %v10544_v6  ;;  %v2709_v6 = vld [vmem:[%s10529_s15 + $0x1d] sm:$0xff] }
 0x1a9   : > { %8575 = vmatprep.subr.mxu0 %v3141_v49  ;;  %v4060_v45 = vld [vmem:[#allocation8 + $0x10] sm:$0xff] }
 0x1aa   : > { %v11072_v42 = vpack.c.bf16 %v4061_v52, %v4060_v45  ;;  %v3136_v45 = vld [vmem:[%s10529_s15 + $0xde] sm:$0xff]  ;;  %v3138_v52 = vld [vmem:[%s10529_s15 + $0xee] sm:$0xff] }
 0x1ab   : > { %8493 = vmatmul.mubr.msk.f32.gmra.mrb[2].mxu0 %vm348_vm0, %v10551_v7  ;;  %v2710_v7 = vld [vmem:[%s10529_s15 + $0x25] sm:$0xff] }
 0x1ac   : > { %8495 = vmatprep.mubr.msk.f32.mxu0 %vm348_vm0, %v10554_v8  ;;  %v2711_v8 = vld [vmem:[%s10529_s15 + $0x2d] sm:$0xff] }
 0x1af   : > { %8496 = vmatmul.mubr.msk.f32.gmra.mrb[4].mxu0 %vm348_vm0, %v10561_v10  ;;  %v11027_v10 = vld [vmem:[#allocation4 + $0x40] sm:$0xff] }
 0x1b0   : > { %8498 = vmatprep.mubr.msk.f32.mxu0 %vm348_vm0, %v10564_v11  ;;  %v2712_v11 = vld [vmem:[%s10529_s15 + $0x35] sm:$0xff] }
 0x1b3   : > { %8499 = vmatmul.mubr.msk.f32.gmra.mrb[6].mxu0 %vm348_vm0, %v10571_v12  ;;  %v2713_v12 = vld [vmem:[%s10529_s15 + $0x3d] sm:$0xff] }
 0x1b4   : > { %8501 = vmatprep.mubr.msk.f32.mxu0 %vm348_vm0, %v10574_v13  ;;  %v2714_v13 = vld [vmem:[%s10529_s15 + $0x45] sm:$0xff] }
 0x1b7   : > { %8502 = vmatmul.mubr.msk.f32.gmra.mrb[8].mxu0 %vm348_vm0, %v10581_v14  ;;  %v2715_v14 = vld [vmem:[%s10529_s15 + $0x4d] sm:$0xff] }
 0x1b8   : > { %8504 = vmatprep.mubr.msk.f32.mxu0 %vm348_vm0, %v10584_v15  ;;  %v2716_v15 = vld [vmem:[%s10529_s15 + $0x55] sm:$0xff] }
 0x1bb   : > { %8505 = vmatmul.mubr.msk.f32.gmra.mrb[10].mxu0 %vm348_vm0, %v10591_v16  ;;  %v2717_v16 = vld [vmem:[%s10529_s15 + $0x5d] sm:$0xff] }
 0x1bc   : > { %8507 = vmatprep.mubr.msk.f32.mxu0 %vm348_vm0, %v10594_v17  ;;  %v2718_v17 = vld [vmem:[%s10529_s15 + $0x65] sm:$0xff] }
 0x1bf   : > { %8508 = vmatmul.mubr.msk.f32.gmra.mrb[12].mxu0 %vm348_vm0, %v10601_v18  ;;  %v2719_v18 = vld [vmem:[%s10529_s15 + $0x6d] sm:$0xff] }
 0x1c0   : > { %8510 = vmatprep.mubr.msk.f32.mxu0 %vm348_vm0, %v10604_v19  ;;  %v2720_v19 = vld [vmem:[%s10529_s15 + $0x75] sm:$0xff] }
 0x1c3   : > { %8511 = vmatmul.mubr.msk.f32.gmra.mrb[14].mxu0 %vm348_vm0, %v10611_v20  ;;  %v2721_v20 = vld [vmem:[%s10529_s15 + $0x7d] sm:$0xff] }
 0x1c4   : > { %8513 = vmatprep.mubr.msk.f32.mxu0 %vm348_vm0, %v10614_v21  ;;  %v2722_v21 = vld [vmem:[%s10529_s15 + $0x85] sm:$0xff] }
 0x1c7   : > { %8514 = vmatmul.mubr.msk.f32.gmra.mrb[16].mxu0 %vm348_vm0, %v10621_v22  ;;  %v2723_v22 = vld [vmem:[%s10529_s15 + $0x8d] sm:$0xff] }
 0x1c8   : > { %8516 = vmatprep.mubr.msk.f32.mxu0 %vm348_vm0, %v10624_v23  ;;  %v2724_v23 = vld [vmem:[%s10529_s15 + $0x95] sm:$0xff] }
 0x1cb   : > { %8517 = vmatmul.mubr.msk.f32.gmra.mrb[18].mxu0 %vm348_vm0, %v10631_v24  ;;  %v2725_v24 = vld [vmem:[%s10529_s15 + $0x9d] sm:$0xff] }
 0x1cc   : > { %8519 = vmatprep.mubr.msk.f32.mxu0 %vm348_vm0, %v10634_v25  ;;  %v2726_v25 = vld [vmem:[%s10529_s15 + $0xa5] sm:$0xff] }
 0x1cf   : > { %8520 = vmatmul.mubr.msk.f32.gmra.mrb[20].mxu0 %vm348_vm0, %v10641_v26  ;;  %v2727_v26 = vld [vmem:[%s10529_s15 + $0xad] sm:$0xff] }
 0x1d0   : > { %8522 = vmatprep.mubr.msk.f32.mxu0 %vm348_vm0, %v10644_v27  ;;  %v2728_v27 = vld [vmem:[%s10529_s15 + $0xb5] sm:$0xff] }
 0x1d3   : > { %8523 = vmatmul.mubr.msk.f32.gmra.mrb[22].mxu0 %vm348_vm0, %v10651_v28  ;;  %v2729_v28 = vld [vmem:[%s10529_s15 + $0xbd] sm:$0xff] }
 0x1d4   : > { %8525 = vmatprep.mubr.msk.f32.mxu0 %vm348_vm0, %v10654_v29  ;;  %v4058_v29 = vld [vmem:[#allocation8] sm:$0xff] }
 0x1d7   : > { %8526 = vmatmul.mubr.msk.f32.gmra.mrb[24].mxu0 %vm348_vm0, %v10661_v30  ;;  %v4059_v30 = vld [vmem:[#allocation8 + $0x8] sm:$0xff] }
 0x1d8   : > { %8528 = vmatprep.mubr.msk.f32.mxu0 %vm348_vm0, %v2332_v4  ;;  %v11069_v51 = vpack.c.bf16 %v4059_v30, %v4058_v29  ;;  %v2735_v4 = vld [vmem:[%s10529_s15 + $0xed] sm:$0xff]  ;;  %v3135_v30 = vld [vmem:[%s10529_s15 + $0xd6] sm:$0xff] }
 0x1d9   : > { %v3134_v29 = vld [vmem:[%s10529_s15 + $0xce] sm:$0xff] }
 0x1da   : > { %9617 = vmatprep.subr.bf16.mxu1 %v11069_v51 }
 0x1db   : > { %8529 = vmatmul.mubr.msk.f32.gmra.mrb[26].mxu0 %vm348_vm0, %v2333_v5  ;;  %9625 = vmatpush3.bf16.msra.mxu1 %v11069_v51  ;;  %v2736_v5 = vld [vmem:[%s10529_s15 + $0xf5] sm:$0xff] }
 0x1dc   : > { %8533 = vmatprep.mubr.msk.f32.mxu0 %vm348_vm0, %v2709_v6  ;;  %9618 = vmatprep.subr.bf16.mxu1 %v11072_v42  ;;  %v3112_v6 = vld [vmem:[%s10529_s15 + $0x1e] sm:$0xff] }
 0x1df   : > { %8534 = vmatmul.mubr.msk.f32.vlgmr.msra.gmra.mrb[0].mxu0 %vm348_vm0, %v2710_v7  ;;  %9626 = vmatpush3.bf16.msra.mxu1 %v11072_v42  ;;  %v3113_v7 = vld [vmem:[%s10529_s15 + $0x26] sm:$0xff] }
 0x1e0   : > { %8576 = vmatpush3.msra.mxu0 %v3141_v49  ;;  %8536 = vmatprep.mubr.msk.f32.mxu0 %vm348_vm0, %v2711_v8  ;;  %v2734_v49 = vld [vmem:[%s10529_s15 + $0xe5] sm:$0xff]  ;;  %v3114_v8 = vld [vmem:[%s10529_s15 + $0x2e] sm:$0xff] }
 0x1e1   : > { %8619 = vmatprep.subr.mxu0 %v11027_v10  ;;  %9619 = vmatprep.subr.bf16.mxu1 %v11081_v48 }
 0x1e3   : > { %8537 = vmatmul.mubr.msk.f32.gmra.mrb[2].mxu0 %vm348_vm0, %v2712_v11  ;;  %9627 = vmatpush3.bf16.msra.mxu1 %v11081_v48  ;;  %v3115_v11 = vld [vmem:[%s10529_s15 + $0x36] sm:$0xff] }
 0x1e4   : > { %8539 = vmatprep.mubr.msk.f32.mxu0 %vm348_vm0, %v2713_v12  ;;  %v3116_v12 = vld [vmem:[%s10529_s15 + $0x3e] sm:$0xff] }
 0x1e7   : > { %8540 = vmatmul.mubr.msk.f32.gmra.mrb[4].mxu0 %vm348_vm0, %v2714_v13  ;;  %v3117_v13 = vld [vmem:[%s10529_s15 + $0x46] sm:$0xff] }
 0x1e8   : > { %8542 = vmatprep.mubr.msk.f32.mxu0 %vm348_vm0, %v2715_v14  ;;  %v3118_v14 = vld [vmem:[%s10529_s15 + $0x4e] sm:$0xff] }
 0x1eb   : > { %8543 = vmatmul.mubr.msk.f32.gmra.mrb[6].mxu0 %vm348_vm0, %v2716_v15  ;;  %v3120_v15 = vld [vmem:[%s10529_s15 + $0x5e] sm:$0xff] }
 0x1ec   : > { %8545 = vmatprep.mubr.msk.f32.mxu0 %vm348_vm0, %v2717_v16  ;;  %v3121_v16 = vld [vmem:[%s10529_s15 + $0x66] sm:$0xff] }
 0x1ef   : > { %8546 = vmatmul.mubr.msk.f32.gmra.mrb[8].mxu0 %vm348_vm0, %v2718_v17  ;;  %v3122_v17 = vld [vmem:[%s10529_s15 + $0x6e] sm:$0xff] }
 0x1f0   : > { %8548 = vmatprep.mubr.msk.f32.mxu0 %vm348_vm0, %v2719_v18  ;;  %v3123_v18 = vld [vmem:[%s10529_s15 + $0x76] sm:$0xff] }
 0x1f3   : > { %8549 = vmatmul.mubr.msk.f32.gmra.mrb[10].mxu0 %vm348_vm0, %v2720_v19  ;;  %v3124_v19 = vld [vmem:[%s10529_s15 + $0x7e] sm:$0xff] }
 0x1f4   : > { %8551 = vmatprep.mubr.msk.f32.mxu0 %vm348_vm0, %v2721_v20  ;;  %v3125_v20 = vld [vmem:[%s10529_s15 + $0x86] sm:$0xff] }
 0x1f7   : > { %8552 = vmatmul.mubr.msk.f32.gmra.mrb[12].mxu0 %vm348_vm0, %v2722_v21  ;;  %v3126_v21 = vld [vmem:[%s10529_s15 + $0x8e] sm:$0xff] }
 0x1f8   : > { %8554 = vmatprep.mubr.msk.f32.mxu0 %vm348_vm0, %v2723_v22  ;;  %v3127_v22 = vld [vmem:[%s10529_s15 + $0x96] sm:$0xff] }
 0x1fb   : > { %8555 = vmatmul.mubr.msk.f32.gmra.mrb[14].mxu0 %vm348_vm0, %v2724_v23  ;;  %v3128_v23 = vld [vmem:[%s10529_s15 + $0x9e] sm:$0xff] }
 0x1fc   : > { %8557 = vmatprep.mubr.msk.f32.mxu0 %vm348_vm0, %v2725_v24  ;;  %v3129_v24 = vld [vmem:[%s10529_s15 + $0xa6] sm:$0xff] }
 0x1ff   : > { %8558 = vmatmul.mubr.msk.f32.gmra.mrb[16].mxu0 %vm348_vm0, %v2726_v25  ;;  %v3130_v25 = vld [vmem:[%s10529_s15 + $0xae] sm:$0xff] }
 0x200   : > { %8560 = vmatprep.mubr.msk.f32.mxu0 %vm348_vm0, %v2727_v26  ;;  %v3131_v26 = vld [vmem:[%s10529_s15 + $0xb6] sm:$0xff] }
 0x203   : > { %8561 = vmatmul.mubr.msk.f32.gmra.mrb[18].mxu0 %vm348_vm0, %v2728_v27  ;;  %v3132_v27 = vld [vmem:[%s10529_s15 + $0xbe] sm:$0xff] }
 0x204   : > { %8563 = vmatprep.mubr.msk.f32.mxu0 %vm348_vm0, %v2729_v28  ;;  %v3133_v28 = vld [vmem:[%s10529_s15 + $0xc6] sm:$0xff] }
 0x207   : > { %8564 = vmatmul.mubr.msk.f32.gmra.mrb[20].mxu0 %vm348_vm0, %v2730_v50  ;;  %v3137_v50 = vld [vmem:[%s10529_s15 + $0xe6] sm:$0xff] }
 0x208   : > { %8566 = vmatprep.mubr.msk.f32.mxu0 %vm348_vm0, %v2731_v54  ;;  %v3139_v54 = vld [vmem:[%s10529_s15 + $0xf6] sm:$0xff] }
 0x20b   : > { %8567 = vmatmul.mubr.msk.f32.gmra.mrb[22].mxu0 %vm348_vm0, %v2732_v46 }
 0x20c   : > { %8569 = vmatprep.mubr.msk.f32.mxu0 %vm348_vm0, %v2733_v47 }
 0x20f   : > { %8570 = vmatmul.mubr.msk.f32.gmra.mrb[24].mxu0 %vm348_vm0, %v2734_v49 }
 0x210   : > { %8572 = vmatprep.mubr.msk.f32.mxu0 %vm348_vm0, %v2735_v4 }
 0x213   : > { %8573 = vmatmul.mubr.msk.f32.gmra.mrb[26].mxu0 %vm348_vm0, %v2736_v5 }
 0x214   : > { %8577 = vmatprep.mubr.msk.f32.mxu0 %vm348_vm0, %v3112_v6 }
 0x217   : > { %8578 = vmatmul.mubr.msk.f32.vlgmr.msra.gmra.mrb[0].mxu0 %vm348_vm0, %v3113_v7 }
 0x218   : > { %8620 = vmatpush3.msra.mxu0 %v11027_v10  ;;  %8580 = vmatprep.mubr.msk.f32.mxu0 %vm348_vm0, %v3114_v8  ;;  %v3119_v10 = vld [vmem:[%s10529_s15 + $0x56] sm:$0xff] }
 0x219   : > { %9330 = vmatprep.subr.bf16.mxu0 %v11069_v51 }
 0x21b   : > { %8581 = vmatmul.mubr.msk.f32.gmra.mrb[2].mxu0 %vm348_vm0, %v3115_v11 }
 0x21c   : > { %8583 = vmatprep.mubr.msk.f32.mxu0 %vm348_vm0, %v3116_v12 }
 0x21f   : > { %8584 = vmatmul.mubr.msk.f32.gmra.mrb[4].mxu0 %vm348_vm0, %v3117_v13 }
 0x220   : > { %8586 = vmatprep.mubr.msk.f32.mxu0 %vm348_vm0, %v3118_v14 }
 0x223   : > { %8587 = vmatmul.mubr.msk.f32.gmra.mrb[6].mxu0 %vm348_vm0, %v3119_v10 }
 0x224   : > { %8589 = vmatprep.mubr.msk.f32.mxu0 %vm348_vm0, %v3120_v15 }
 0x227   : > { %8590 = vmatmul.mubr.msk.f32.gmra.mrb[8].mxu0 %vm348_vm0, %v3121_v16 }
 0x228   : > { %8592 = vmatprep.mubr.msk.f32.mxu0 %vm348_vm0, %v3122_v17 }
 0x22b   : > { %8593 = vmatmul.mubr.msk.f32.gmra.mrb[10].mxu0 %vm348_vm0, %v3123_v18 }
 0x22c   : > { %8595 = vmatprep.mubr.msk.f32.mxu0 %vm348_vm0, %v3124_v19 }
 0x22f   : > { %8596 = vmatmul.mubr.msk.f32.gmra.mrb[12].mxu0 %vm348_vm0, %v3125_v20 }
 0x230   : > { %8598 = vmatprep.mubr.msk.f32.mxu0 %vm348_vm0, %v3126_v21 }
 0x233   : > { %8599 = vmatmul.mubr.msk.f32.gmra.mrb[14].mxu0 %vm348_vm0, %v3127_v22 }
 0x234   : > { %8601 = vmatprep.mubr.msk.f32.mxu0 %vm348_vm0, %v3128_v23 }
 0x237   : > { %8602 = vmatmul.mubr.msk.f32.gmra.mrb[16].mxu0 %vm348_vm0, %v3129_v24 }
 0x238   : > { %8604 = vmatprep.mubr.msk.f32.mxu0 %vm348_vm0, %v3130_v25 }
 0x23b   : > { %8605 = vmatmul.mubr.msk.f32.gmra.mrb[18].mxu0 %vm348_vm0, %v3131_v26 }
 0x23c   : > { %8607 = vmatprep.mubr.msk.f32.mxu0 %vm348_vm0, %v3132_v27 }
 0x23f   : > { %8608 = vmatmul.mubr.msk.f32.gmra.mrb[20].mxu0 %vm348_vm0, %v3133_v28 }
 0x240   : > { %8610 = vmatprep.mubr.msk.f32.mxu0 %vm348_vm0, %v3134_v29  ;;  %v4366_v29 = vld [vmem:[#allocation8 + $0x90] sm:$0xff] }
 0x243   : > { %8611 = vmatmul.mubr.msk.f32.gmra.mrb[22].mxu0 %vm348_vm0, %v3135_v30 }
 0x244   : > { %8613 = vmatprep.mubr.msk.f32.mxu0 %vm348_vm0, %v3136_v45 }
 0x247   : > { %8614 = vmatmul.mubr.msk.f32.gmra.mrb[24].mxu0 %vm348_vm0, %v3137_v50 }
 0x248   : > { %8616 = vmatprep.mubr.msk.f32.mxu0 %vm348_vm0, %v3138_v52 }
 0x24b   : > { %8617 = vmatmul.mubr.msk.f32.gmra.mrb[26].mxu0 %vm348_vm0, %v3139_v54  ;;  %v4367_v54 = vld [vmem:[#allocation8 + $0x98] sm:$0xff] }
 0x24c   : > { %8621 = vmatprep.mubr.msk.f32.mxu0 %vm348_vm0, %v10781_v53  ;;  %v3541_v53 = vld [vmem:[%s10529_s15 + $0xef] sm:$0xff] }
 0x24f   : > { %8622 = vmatmul.mubr.msk.f32.vlgmr.msra.gmra.mrb[0].mxu0 %vm348_vm0, %v10787_v55  ;;  %v3542_v55 = vld [vmem:[%s10529_s15 + $0xf7] sm:$0xff] }
 0x250   : > { %8624 = vmatprep.mubr.msk.f32.mxu0 %vm348_vm0, %v10790_v56  ;;  %9332 = vmatpush3.bf16.msra.mxu0 %v11069_v51  ;;  %v4064_v56 = vld [vmem:[#allocation8 + $0x30] sm:$0xff] }
 0x251   : > { %9334 = vmatprep.subr.bf16.mxu0 %v11072_v42 }
 0x253   : > { %8625 = vmatmul.mubr.msk.f32.gmra.mrb[2].mxu0 %vm348_vm0, %v10797_v57  ;;  %v4065_v57 = vld [vmem:[#allocation8 + $0x38] sm:$0xff] }
 0x254   : > { %8627 = vmatprep.mubr.msk.f32.mxu0 %vm348_vm0, %v10800_v58  ;;  %9336 = vmatpush3.bf16.msra.mxu0 %v11072_v42  ;;  %v9341_v58 = vpack.c.bf16 %v4065_v57, %v4064_v56 }
 0x255   : > { %9338 = vmatprep.subr.bf16.mxu0 %v11081_v48 }
 0x256   : > { %9620 = vmatprep.subr.bf16.mxu1 %v9341_v58 }
 0x257   : > { %8628 = vmatmul.mubr.msk.f32.gmra.mrb[4].mxu0 %vm348_vm0, %v10807_v59  ;;  %v4066_v59 = vld [vmem:[#allocation8 + $0x40] sm:$0xff]  ;;  %9628 = vmatpush3.bf16.msra.mxu1 %v9341_v58 }
 0x258   : > { %8630 = vmatprep.mubr.msk.f32.mxu0 %vm348_vm0, %v10810_v60  ;;  %9340 = vmatpush3.bf16.msra.mxu0 %v11081_v48  ;;  %v4067_v60 = vld [vmem:[#allocation8 + $0x48] sm:$0xff] }
 0x259   : > { %9342 = vmatprep.subr.bf16.mxu0 %v9341_v58 }
 0x25b   : > { %8631 = vmatmul.mubr.msk.f32.gmra.mrb[6].mxu0 %vm348_vm0, %v10817_v61  ;;  %v9345_v61 = vpack.c.bf16 %v4067_v60, %v4066_v59 }
 0x25c   : > { %8633 = vmatprep.mubr.msk.f32.mxu0 %vm348_vm0, %v10820_v62  ;;  %9344 = vmatpush3.bf16.msra.mxu0 %v9341_v58  ;;  %v4068_v62 = vld [vmem:[#allocation8 + $0x50] sm:$0xff]  ;;  %v9365_v58 = vpack.c.bf16 %v4367_v54, %v4366_v29  ;;  %v4377_v29 = vld [vmem:[#allocation8 + $0xe8] sm:$0xff] }
 0x25d   : > { %9346 = vmatprep.subr.bf16.mxu0 %v9345_v61  ;;  %9621 = vmatprep.subr.bf16.mxu1 %v9345_v61 }
 0x25e   : > { %9629 = vmatpush3.bf16.msra.mxu1 %v9345_v61 }
 0x25f   : > { %8634 = vmatmul.mubr.msk.f32.gmra.mrb[8].mxu0 %vm348_vm0, %v10827_v63  ;;  %v4069_v63 = vld [vmem:[#allocation8 + $0x58] sm:$0xff] }
 0x260   : > { %8636 = vmatprep.mubr.msk.f32.mxu0 %vm348_vm0, %v10830_v0  ;;  %9348 = vmatpush3.bf16.msra.mxu0 %v9345_v61  ;;  %v9349_v0 = vpack.c.bf16 %v4069_v63, %v4068_v62  ;;  %v4368_v62 = vld [vmem:[#allocation8 + $0xa0] sm:$0xff]  ;;  %v4369_v63 = vld [vmem:[#allocation8 + $0xa8] sm:$0xff] }
 0x262   : > { %9350 = vmatprep.subr.bf16.mxu0 %v9349_v0  ;;  %9622 = vmatprep.subr.bf16.mxu1 %v9349_v0 }
 0x263   : > { %8637 = vmatmul.mubr.msk.f32.gmra.mrb[10].mxu0 %vm348_vm0, %v10837_v1  ;;  %v4070_v1 = vld [vmem:[#allocation8 + $0x60] sm:$0xff]  ;;  %9630 = vmatpush3.bf16.msra.mxu1 %v9349_v0 }
 0x264   : > { %8639 = vmatprep.mubr.msk.f32.mxu0 %vm348_vm0, %v10840_v2  ;;  %9352 = vmatpush3.bf16.msra.mxu0 %v9349_v0  ;;  %v4071_v2 = vld [vmem:[#allocation8 + $0x68] sm:$0xff] }
 0x267   : > { %8640 = vmatmul.mubr.msk.f32.gmra.mrb[12].mxu0 %vm348_vm0, %v10847_v3  ;;  %v9353_v3 = vpack.c.bf16 %v4071_v2, %v4070_v1 }
 0x268   : > { %8642 = vmatprep.mubr.msk.f32.mxu0 %vm348_vm0, %v10850_v9  ;;  %v10326_v9 = vmov 0.0  }
 0x269   : > { %3981 = vst [vmem:[#allocation2] sm:$0xff] %v10326_v9  ;;  %3982 = vst [vmem:[#allocation2 + $0x8] sm:$0xff] %v10326_v9  ;;  %9354 = vmatprep.subr.bf16.mxu0 %v9353_v3  ;;  %9623 = vmatprep.subr.bf16.mxu1 %v9353_v3 }
 0x26a   : > { %3983 = vst [vmem:[#allocation2 + $0xf0] sm:$0xff] %v10326_v9  ;;  %3984 = vst [vmem:[#allocation2 + $0xf8] sm:$0xff] %v10326_v9  ;;  %9356 = vmatpush3.bf16.msra.mxu0 %v9353_v3  ;;  %9631 = vmatpush3.bf16.msra.mxu1 %v9353_v3 }
 0x26b   : > { %8643 = vmatmul.mubr.msk.f32.gmra.mrb[14].mxu0 %vm348_vm0, %v10857_v31  ;;  %v4072_v31 = vld [vmem:[#allocation8 + $0x70] sm:$0xff] }
 0x26c   : > { %8645 = vmatprep.mubr.msk.f32.mxu0 %vm348_vm0, %v10860_v32  ;;  %v4073_v32 = vld [vmem:[#allocation8 + $0x78] sm:$0xff] }
 0x26f   : > { %8646 = vmatmul.mubr.msk.f32.gmra.mrb[16].mxu0 %vm348_vm0, %v10867_v33  ;;  %v9357_v33 = vpack.c.bf16 %v4073_v32, %v4072_v31  ;;  %v9369_v32 = vpack.c.bf16 %v4369_v63, %v4368_v62 }
 0x270   : > { %8648 = vmatprep.mubr.msk.f32.mxu0 %vm348_vm0, %v10870_v34  ;;  %v4030_v34 = vld [vmem:[#allocation2 + $0x1] sm:$0xff] }
 0x271   : > { %9358 = vmatprep.subr.bf16.mxu0 %v9357_v33  ;;  %9624 = vmatprep.subr.bf16.mxu1 %v9357_v33 }
 0x272   : > { %9360 = vmatpush3.bf16.msra.mxu0 %v9357_v33  ;;  %9632 = vmatpush3.bf16.msra.mxu1 %v9357_v33 }
 0x273   : > { %8649 = vmatmul.mubr.msk.f32.gmra.mrb[18].mxu0 %vm348_vm0, %v10877_v35  ;;  %v4364_v35 = vld [vmem:[#allocation8 + $0x80] sm:$0xff] }
 0x274   : > { %8651 = vmatprep.mubr.msk.f32.mxu0 %vm348_vm0, %v10880_v36  ;;  %v4365_v36 = vld [vmem:[#allocation8 + $0x88] sm:$0xff] }
 0x277   : > { %8652 = vmatmul.mubr.msk.f32.gmra.mrb[20].mxu0 %vm348_vm0, %v10887_v37  ;;  %v11217_v37 = vpack.c.bf16 %v4365_v36, %v4364_v35  ;;  %v4370_v36 = vld [vmem:[#allocation8 + $0xb0] sm:$0xff] }
 0x278   : > { %8654 = vmatprep.mubr.msk.f32.mxu0 %vm348_vm0, %v10890_v38  ;;  %v11220_v38 = vld [vmem:[#allocation6] ss:$0 sm:$0xff] }
 0x279   : > { %9362 = vmatprep.subr.bf16.mxu1 %v11217_v37 }
 0x27b   : > { %8655 = vmatmul.mubr.msk.f32.gmra.mrb[22].mxu0 %vm348_vm0, %v10897_v39 }
 0x27c   : > { %8657 = vmatprep.mubr.msk.f32.mxu0 %vm348_vm0, %v10900_v40 }
 0x27f   : > { %8658 = vmatmul.mubr.msk.f32.gmra.mrb[24].mxu0 %vm348_vm0, %v10907_v41 }
 0x280   : > { %8660 = vmatprep.mubr.msk.f32.mxu0 %vm348_vm0, %v3541_v53 }
 0x283   : > { %8661 = vmatmul.mubr.msk.f32.gmra.mrb[26].mxu0 %vm348_vm0, %v3542_v55 }
 0x284   : > { %8695 = vmatprep.mubr.f32.mxu0 %v4030_v34 }
 0x322   : > { %v8623_v39 = vpop.f32.mrb[0].mxu0 }
 0x323   : > { %v3926_v40 = vadd.f32 %v8623_v39, %v11220_v38  ;;  %v3695_v41 = vpop.f32.mrb[1].mxu0  ;;  %v4371_v39 = vld [vmem:[#allocation8 + $0xb8] sm:$0xff] }
 0x324   : > { %v3925_v51 = vadd.f32 %v11220_v38, %v3695_v41 }
 0x325   : > { %v3954_v42 = vmax.f32 %v3926_v40, 0.0 }
 0x326   : > { %v3953_v43 = vmax.f32 %v3925_v51, 0.0  ;;  %v8626_v44 = vpop.f32.mrb[2].mxu0 }
 0x327   : > { %3986 = vst [vmem:[#allocation2 + $0x18] sm:$0xff] %v3954_v42  ;;  %v3928_v46 = vadd.f32 %v8626_v44, %v11220_v38  ;;  %v3705_v47 = vpop.f32.mrb[3].mxu0 }
 0x328   : > { %3985 = vst [vmem:[#allocation2 + $0x10] sm:$0xff] %v3953_v43  ;;  %v3927_v48 = vadd.f32 %v11220_v38, %v3705_v47  ;;  %4014 = vst [vmem:[#allocation2 + $0x1d] sm:$0x3] %v10326_v9  ;;  %v9373_v43 = vpack.c.bf16 %v4371_v39, %v4370_v36 }
 0x329   : > { %v3956_v49 = vmax.f32 %v3928_v46, 0.0  ;;  %4013 = vst [vmem:[#allocation2 + $0x10] sm:$0x1] %v10326_v9 }
 0x32a   : > { %v3955_v4 = vmax.f32 %v3927_v48, 0.0  ;;  %v8629_v5 = vpop.f32.mrb[4].mxu0  ;;  %v4372_v48 = vld [vmem:[#allocation8 + $0xc0] sm:$0xff] }
 0x32b   : > { %3988 = vst [vmem:[#allocation2 + $0x28] sm:$0xff] %v3956_v49  ;;  %v3930_v6 = vadd.f32 %v8629_v5, %v11220_v38  ;;  %v3715_v7 = vpop.f32.mrb[5].mxu0  ;;  %v4373_v49 = vld [vmem:[#allocation8 + $0xc8] sm:$0xff] }
 0x32c   : > { %3987 = vst [vmem:[#allocation2 + $0x20] sm:$0xff] %v3955_v4  ;;  %v11230_v8 = vadd.f32 %v11220_v38, %v3715_v7  ;;  %4015 = vst [vmem:[#allocation2 + $0x2b] sm:$0x3] %v10326_v9 }
 0x32d   : > { %v3958_v11 = vmax.f32 %v3930_v6, 0.0 }
 0x32e   : > { %v8632_v12 = vpop.f32.mrb[6].mxu0  ;;  %v3957_v13 = vmax.f32 %v11230_v8, 0.0 }
 0x32f   : > { %v3932_v14 = vadd.f32 %v8632_v12, %v11220_v38  ;;  %v3725_v10 = vpop.f32.mrb[7].mxu0  ;;  %3990 = vst [vmem:[#allocation2 + $0x38] sm:$0xff] %v3958_v11  ;;  %v4032_v18 = vld [vmem:[#allocation2 + $0x11] sm:$0xff]  ;;  %v9377_v12 = vpack.c.bf16 %v4373_v49, %v4372_v48 }
 0x330   : > { %v3931_v15 = vadd.f32 %v11220_v38, %v3725_v10  ;;  %v4031_v16 = vld [vmem:[#allocation2 + $0x9] sm:$0xff]  ;;  %3989 = vst [vmem:[#allocation2 + $0x30] sm:$0xff] %v3957_v13  ;;  %4016 = vst [vmem:[#allocation2 + $0x39] sm:$0x3] %v10326_v9 }
 0x331   : > { %v3960_v17 = vmax.f32 %v3932_v14, 0.0  ;;  %8696 = vmatmul.mubr.f32.vlgmr.msra.gmra.mrb[28].mxu0 %v4031_v16 }
 0x332   : > { %v3959_v19 = vmax.f32 %v3931_v15, 0.0  ;;  %v8635_v20 = vpop.f32.mrb[8].mxu0  ;;  %8698 = vmatprep.mubr.f32.mxu0 %v4032_v18  ;;  %v4374_v18 = vld [vmem:[#allocation8 + $0xd0] sm:$0xff] }
 0x333   : > { %3992 = vst [vmem:[#allocation2 + $0x48] sm:$0xff] %v3960_v17  ;;  %v3934_v21 = vadd.f32 %v8635_v20, %v11220_v38  ;;  %v3735_v22 = vpop.f32.mrb[9].mxu0  ;;  %v4033_v23 = vld [vmem:[#allocation2 + $0x19] sm:$0xff]  ;;  %v4034_v26 = vld [vmem:[#allocation2 + $0x21] sm:$0xff] }
 0x334   : > { %3991 = vst [vmem:[#allocation2 + $0x40] sm:$0xff] %v3959_v19  ;;  %v3933_v24 = vadd.f32 %v11220_v38, %v3735_v22  ;;  %v4375_v19 = vld [vmem:[#allocation8 + $0xd8] sm:$0xff] }
 0x335   : > { %v3962_v25 = vmax.f32 %v3934_v21, 0.0  ;;  %4017 = vst [vmem:[#allocation2 + $0x47] sm:$0x3] %v10326_v9  ;;  %8699 = vmatmul.mubr.f32.gmra.mrb[30].mxu0 %v4033_v23 }
 0x336   : > { %v3961_v27 = vmax.f32 %v3933_v24, 0.0  ;;  %v8638_v28 = vpop.f32.mrb[10].mxu0  ;;  %8701 = vmatprep.mubr.f32.mxu0 %v4034_v26 }
 0x337   : > { %3994 = vst [vmem:[#allocation2 + $0x58] sm:$0xff] %v3962_v25  ;;  %v3936_v30 = vadd.f32 %v8638_v28, %v11220_v38  ;;  %v3745_v45 = vpop.f32.mrb[11].mxu0  ;;  %v4036_v50 = vld [vmem:[#allocation2 + $0x31] sm:$0xff]  ;;  %v4035_v52 = vld [vmem:[#allocation2 + $0x29] sm:$0xff]  ;;  %v9381_v25 = vpack.c.bf16 %v4375_v19, %v4374_v18  ;;  %v4338_v19 = vld [vmem:[#allocation2 + $0x1a] sm:$0xff] }
 0x338   : > { %3993 = vst [vmem:[#allocation2 + $0x50] sm:$0xff] %v3961_v27  ;;  %v3935_v53 = vadd.f32 %v11220_v38, %v3745_v45  ;;  %8704 = vmatprep.mubr.f32.mxu1 %v4036_v50  ;;  %v4376_v28 = vld [vmem:[#allocation8 + $0xe0] sm:$0xff] }
 0x339   : > { %v3964_v55 = vmax.f32 %v3936_v30, 0.0  ;;  %4018 = vst [vmem:[#allocation2 + $0x55] sm:$0x3] %v10326_v9  ;;  %8702 = vmatmul.mubr.f32.gmra.mrb[32].mxu0 %v4035_v52 }
 0x33a   : > { %v3963_v56 = vmax.f32 %v3935_v53, 0.0  ;;  %v8641_v57 = vpop.f32.mrb[12].mxu0 }
 0x33b   : > { %3996 = vst [vmem:[#allocation2 + $0x68] sm:$0xff] %v3964_v55  ;;  %v3938_v59 = vadd.f32 %v8641_v57, %v11220_v38  ;;  %v3755_v60 = vpop.f32.mrb[13].mxu0  ;;  %v4037_v61 = vld [vmem:[#allocation2 + $0x39] sm:$0xff] }
 0x33c   : > { %3995 = vst [vmem:[#allocation2 + $0x60] sm:$0xff] %v3963_v56  ;;  %v3937_v0 = vadd.f32 %v11220_v38, %v3755_v60  ;;  %8705 = vmatmul.mubr.f32.vlgmr.msra.gmra.mrb[0].mxu1 %v4037_v61  ;;  %v4038_v1 = vld [vmem:[#allocation2 + $0x41] sm:$0xff]  ;;  %v9385_v56 = vpack.c.bf16 %v4377_v29, %v4376_v28  ;;  %v4341_v28 = vld [vmem:[#allocation2 + $0x32] sm:$0xff] }
 0x33d   : > { %4019 = vst [vmem:[#allocation2 + $0x63] sm:$0x3] %v10326_v9  ;;  %v3966_v2 = vmax.f32 %v3938_v59, 0.0  ;;  %8707 = vmatprep.mubr.f32.mxu1 %v4038_v1  ;;  %9364 = vmatpush3.bf16.msra.mxu1 %v11217_v37  ;;  %v4379_v59 = vld [vmem:[#allocation8 + $0xf8] sm:$0xff] }
 0x33e   : > { %v3965_v3 = vmax.f32 %v3937_v0, 0.0  ;;  %v8644_v31 = vpop.f32.mrb[14].mxu0  ;;  %9366 = vmatprep.subr.bf16.mxu1 %v9365_v58 }
 0x33f   : > { %3998 = vst [vmem:[#allocation2 + $0x78] sm:$0xff] %v3966_v2  ;;  %v3940_v33 = vadd.f32 %v8644_v31, %v11220_v38  ;;  %v3765_v34 = vpop.f32.mrb[15].mxu0  ;;  %v4039_v35 = vld [vmem:[#allocation2 + $0x49] sm:$0xff] }
 0x340   : > { %3997 = vst [vmem:[#allocation2 + $0x70] sm:$0xff] %v3965_v3  ;;  %v3939_v40 = vadd.f32 %v11220_v38, %v3765_v34  ;;  %8708 = vmatmul.mubr.f32.gmra.mrb[2].mxu1 %v4039_v35  ;;  %v4040_v41 = vld [vmem:[#allocation2 + $0x51] sm:$0xff] }
 0x341   : > { %4020 = vst [vmem:[#allocation2 + $0x71] sm:$0x3] %v10326_v9  ;;  %v3968_v51 = vmax.f32 %v3940_v33, 0.0  ;;  %8710 = vmatprep.mubr.f32.mxu1 %v4040_v41  ;;  %9368 = vmatpush3.bf16.msra.mxu1 %v9365_v58  ;;  %v4378_v58 = vld [vmem:[#allocation8 + $0xf0] sm:$0xff]  ;;  %v4699_v33 = vld [vmem:[#allocation8 + $0x108] sm:$0xff] }
 0x342   : > { %v3967_v37 = vmax.f32 %v3939_v40, 0.0  ;;  %v8647_v42 = vpop.f32.mrb[16].mxu0  ;;  %9370 = vmatprep.subr.bf16.mxu1 %v9369_v32  ;;  %v9389_v3 = vpack.c.bf16 %v4379_v59, %v4378_v58  ;;  %v4345_v58 = vld [vmem:[#allocation2 + $0x52] sm:$0xff] }
 0x343   : > { %4000 = vst [vmem:[#allocation2 + $0x88] sm:$0xff] %v3968_v51  ;;  %v3942_v44 = vadd.f32 %v8647_v42, %v11220_v38  ;;  %v3775_v46 = vpop.f32.mrb[17].mxu0  ;;  %v4041_v47 = vld [vmem:[#allocation2 + $0x59] sm:$0xff] }
 0x344   : > { %4022 = vst [vmem:[#allocation2 + $0x8d] sm:$0x3] %v10326_v9  ;;  %3999 = vst [vmem:[#allocation2 + $0x80] sm:$0xff] %v3967_v37  ;;  %v11255_v4 = vadd.f32 %v11220_v38, %v3775_v46  ;;  %8711 = vmatmul.mubr.f32.gmra.mrb[4].mxu1 %v4041_v47  ;;  %v4042_v5 = vld [vmem:[#allocation2 + $0x61] sm:$0xff] }
 0x345   : > { %4021 = vst [vmem:[#allocation2 + $0x7f] sm:$0x3] %v10326_v9  ;;  %v3970_v6 = vmax.f32 %v3942_v44, 0.0  ;;  %8713 = vmatprep.mubr.f32.mxu1 %v4042_v5  ;;  %9372 = vmatpush3.bf16.msra.mxu1 %v9369_v32  ;;  %v4698_v32 = vld [vmem:[#allocation8 + $0x100] sm:$0xff] }
 0x346   : > { %v3969_v7 = vmax.f32 %v11255_v4, 0.0  ;;  %v8650_v11 = vpop.f32.mrb[18].mxu0  ;;  %9374 = vmatprep.subr.bf16.mxu1 %v9373_v43  ;;  %v9393_v37 = vpack.c.bf16 %v4699_v33, %v4698_v32  ;;  %v5032_v33 = vld [vmem:[#allocation8 + $0x180] sm:$0xff] }
 0x347   : > { %4002 = vst [vmem:[#allocation2 + $0x98] sm:$0xff] %v3970_v6  ;;  %v3944_v14 = vadd.f32 %v8650_v11, %v11220_v38  ;;  %v3785_v10 = vpop.f32.mrb[19].mxu0  ;;  %v4043_v15 = vld [vmem:[#allocation2 + $0x69] sm:$0xff]  ;;  %v4700_v11 = vld [vmem:[#allocation8 + $0x110] sm:$0xff] }
 0x348   : > { %4001 = vst [vmem:[#allocation2 + $0x90] sm:$0xff] %v3969_v7  ;;  %4023 = vst [vmem:[#allocation2 + $0x9b] sm:$0x3] %v10326_v9  ;;  %v11264_v16 = vadd.f32 %v11220_v38, %v3785_v10  ;;  %8714 = vmatmul.mubr.f32.gmra.mrb[6].mxu1 %v4043_v15  ;;  %v4044_v17 = vld [vmem:[#allocation2 + $0x71] sm:$0xff]  ;;  %v4335_v6 = vld [vmem:[#allocation2 + $0x2] sm:$0xff] }
 0x349   : > { %v3972_v20 = vmax.f32 %v3944_v14, 0.0  ;;  %8716 = vmatprep.mubr.f32.mxu1 %v4044_v17  ;;  %9376 = vmatpush3.bf16.msra.mxu1 %v9373_v43  ;;  %v4336_v14 = vld [vmem:[#allocation2 + $0xa] sm:$0xff]  ;;  %v4703_v15 = vld [vmem:[#allocation8 + $0x128] sm:$0xff] }
 0x34a   : > { %v3971_v21 = vmax.f32 %v11264_v16, 0.0  ;;  %v8653_v22 = vpop.f32.mrb[20].mxu0  ;;  %9378 = vmatprep.subr.bf16.mxu1 %v9377_v12  ;;  %v4702_v10 = vld [vmem:[#allocation8 + $0x120] sm:$0xff]  ;;  %v4337_v17 = vld [vmem:[#allocation2 + $0x12] sm:$0xff] }
 0x34b   : > { %4004 = vst [vmem:[#allocation2 + $0xa8] sm:$0xff] %v3972_v20  ;;  %v3946_v23 = vadd.f32 %v8653_v22, %v11220_v38  ;;  %v3795_v24 = vpop.f32.mrb[21].mxu0  ;;  %v4046_v45 = vld [vmem:[#allocation2 + $0x81] sm:$0xff]  ;;  %v9401_v18 = vpack.c.bf16 %v4703_v15, %v4702_v10  ;;  %v4348_v32 = vld [vmem:[#allocation2 + $0x6a] sm:$0xff] }
 0x34c   : > { %4024 = vst [vmem:[#allocation2 + $0xa9] sm:$0x3] %v10326_v9  ;;  %4003 = vst [vmem:[#allocation2 + $0xa0] sm:$0xff] %v3971_v21  ;;  %v3945_v26 = vadd.f32 %v11220_v38, %v3795_v24  ;;  %v4045_v27 = vld [vmem:[#allocation2 + $0x79] sm:$0xff]  ;;  %v4705_v22 = vld [vmem:[#allocation8 + $0x138] sm:$0xff] }
 0x34d   : > { %v3974_v30 = vmax.f32 %v3946_v23, 0.0  ;;  %8717 = vmatmul.mubr.f32.gmra.mrb[8].mxu1 %v4045_v27  ;;  %v4704_v20 = vld [vmem:[#allocation8 + $0x130] sm:$0xff]  ;;  %v4339_v23 = vld [vmem:[#allocation2 + $0x22] sm:$0xff]  ;;  %v4707_v27 = vld [vmem:[#allocation8 + $0x148] sm:$0xff] }
 0x34e   : > { %v3973_v50 = vmax.f32 %v3945_v26, 0.0  ;;  %v8656_v52 = vpop.f32.mrb[22].mxu0  ;;  %8719 = vmatprep.mubr.f32.mxu1 %v4046_v45  ;;  %9380 = vmatpush3.bf16.msra.mxu1 %v9377_v12  ;;  %v4701_v12 = vld [vmem:[#allocation8 + $0x118] sm:$0xff]  ;;  %v9405_v24 = vpack.c.bf16 %v4705_v22, %v4704_v20  ;;  %v4706_v26 = vld [vmem:[#allocation8 + $0x140] sm:$0xff]  ;;  %v4708_v45 = vld [vmem:[#allocation8 + $0x150] sm:$0xff] }
 0x34f   : > { %4006 = vst [vmem:[#allocation2 + $0xb8] sm:$0xff] %v3974_v30  ;;  %v11273_v54 = vadd.f32 %v8656_v52, %v11220_v38  ;;  %v3805_v53 = vpop.f32.mrb[23].mxu0  ;;  %v4047_v55 = vld [vmem:[#allocation2 + $0x89] sm:$0xff]  ;;  %9382 = vmatprep.subr.bf16.mxu1 %v9381_v25  ;;  %v11278_v61 = vld [vmem:[#allocation2 + $0x91] sm:$0xff]  ;;  %v9409_v29 = vpack.c.bf16 %v4707_v27, %v4706_v26  ;;  %v4342_v30 = vld [vmem:[#allocation2 + $0x3a] sm:$0xff] }
 0x350   : > { %4005 = vst [vmem:[#allocation2 + $0xb0] sm:$0xff] %v3973_v50  ;;  %v3947_v57 = vadd.f32 %v11220_v38, %v3805_v53  ;;  %v4709_v50 = vld [vmem:[#allocation8 + $0x158] sm:$0xff]  ;;  %v4671_v26 = vld [vmem:[#allocation2 + $0x13] sm:$0xff] }
 0x351   : > { %4025 = vst [vmem:[#allocation2 + $0xb7] sm:$0x3] %v10326_v9  ;;  %v11552_v60 = vmax.f32 %v11273_v54, 0.0  ;;  %8720 = vmatmul.mubr.f32.gmra.mrb[10].mxu1 %v4047_v55  ;;  %v4343_v52 = vld [vmem:[#allocation2 + $0x42] sm:$0xff]  ;;  %v9413_v53 = vpack.c.bf16 %v4709_v50, %v4708_v45  ;;  %v4344_v55 = vld [vmem:[#allocation2 + $0x4a] sm:$0xff] }
 0x352   : > { %v3975_v62 = vmax.f32 %v3947_v57, 0.0  ;;  %v8659_v63 = vpop.f32.mrb[24].mxu0  ;;  %8722 = vmatprep.mubr.f32.mxu1 %v11278_v61  ;;  %9384 = vmatpush3.bf16.msra.mxu1 %v9381_v25  ;;  %v4340_v25 = vld [vmem:[#allocation2 + $0x2a] sm:$0xff]  ;;  %v4711_v57 = vld [vmem:[#allocation8 + $0x168] sm:$0xff]  ;;  %v5035_v20 = vld [vmem:[#allocation8 + $0x198] sm:$0xff] }
 0x353   : > { %4008 = vst [vmem:[#allocation2 + $0xc8] sm:$0xff] %v11552_v60  ;;  %v11284_v0 = vadd.f32 %v8659_v63, %v11220_v38  ;;  %v3815_v1 = vpop.f32.mrb[25].mxu0  ;;  %v11286_v2 = vld [vmem:[#allocation2 + $0x99] sm:$0xff]  ;;  %9386 = vmatprep.subr.bf16.mxu1 %v9385_v56  ;;  %v11292_v35 = vld [vmem:[#allocation2 + $0xa1] sm:$0xff] }
 0x354   : > { %4007 = vst [vmem:[#allocation2 + $0xc0] sm:$0xff] %v3975_v62  ;;  %v3949_v31 = vadd.f32 %v11220_v38, %v3815_v1  ;;  %v4346_v62 = vld [vmem:[#allocation2 + $0x5a] sm:$0xff]  ;;  %v4713_v1 = vld [vmem:[#allocation8 + $0x178] sm:$0xff]  ;;  %v5709_v60 = vld [vmem:[#allocation8 + $0x2c8] sm:$0xff] }
 0x355   : > { %4026 = vst [vmem:[#allocation2 + $0xc5] sm:$0x3] %v10326_v9  ;;  %v11551_v34 = vmax.f32 %v11284_v0, 0.0  ;;  %8723 = vmatmul.mubr.f32.gmra.mrb[12].mxu1 %v11286_v2  ;;  %v4712_v63 = vld [vmem:[#allocation8 + $0x170] sm:$0xff]  ;;  %v4673_v45 = vld [vmem:[#allocation2 + $0x23] sm:$0xff] }
 0x356   : > { %v3977_v36 = vmax.f32 %v3949_v31, 0.0  ;;  %v8662_v39 = vpop.f32.mrb[26].mxu0  ;;  %8725 = vmatprep.mubr.f32.mxu1 %v11292_v35  ;;  %9388 = vmatpush3.bf16.msra.mxu1 %v9385_v56  ;;  %v4710_v56 = vld [vmem:[#allocation8 + $0x160] sm:$0xff]  ;;  %v9421_v31 = vpack.c.bf16 %v4713_v1, %v4712_v63 }
 0x357   : > { %4010 = vst [vmem:[#allocation2 + $0xd8] sm:$0xff] %v11551_v34  ;;  %v3952_v40 = vadd.f32 %v8662_v39, %v11220_v38  ;;  %v3825_v41 = vpop.f32.mrb[27].mxu0  ;;  %v11298_v51 = vld [vmem:[#allocation2 + $0xa9] sm:$0xff]  ;;  %9390 = vmatprep.subr.bf16.mxu1 %v9389_v3  ;;  %v9417_v59 = vpack.c.bf16 %v4711_v57, %v4710_v56  ;;  %v4349_v39 = vld [vmem:[#allocation2 + $0x72] sm:$0xff] }
 0x358   : > { %4009 = vst [vmem:[#allocation2 + $0xd0] sm:$0xff] %v3977_v36  ;;  %v3951_v42 = vadd.f32 %v11220_v38, %v3825_v41  ;;  %v11301_v43 = vld [vmem:[#allocation2 + $0xb1] sm:$0xff]  ;;  %v4350_v41 = vld [vmem:[#allocation2 + $0x7a] sm:$0xff]  ;;  %v4677_v63 = vld [vmem:[#allocation2 + $0x43] sm:$0xff] }
 0x359   : > { %4027 = vst [vmem:[#allocation2 + $0xd3] sm:$0x3] %v10326_v9  ;;  %v3980_v44 = vmax.f32 %v3952_v40, 0.0  ;;  %8726 = vmatmul.mubr.f32.gmra.mrb[14].mxu1 %v11298_v51  ;;  %v5033_v36 = vld [vmem:[#allocation8 + $0x188] sm:$0xff]  ;;  %v5707_v34 = vld [vmem:[#allocation8 + $0x2b8] sm:$0xff] }
 0x35a   : > { %v3979_v46 = vmax.f32 %v3951_v42, 0.0  ;;  %8728 = vmatprep.mubr.f32.mxu1 %v11301_v43  ;;  %9392 = vmatpush3.bf16.msra.mxu1 %v9389_v3  ;;  %v4347_v3 = vld [vmem:[#allocation2 + $0x62] sm:$0xff]  ;;  %v9425_v40 = vpack.c.bf16 %v5033_v36, %v5032_v33  ;;  %v4352_v42 = vld [vmem:[#allocation2 + $0x8a] sm:$0xff]  ;;  %v4675_v56 = vld [vmem:[#allocation2 + $0x33] sm:$0xff] }
 0x35b   : > { %4012 = vst [vmem:[#allocation2 + $0xe8] sm:$0xff] %v3980_v44  ;;  %v11306_v47 = vld [vmem:[#allocation2 + $0xb9] sm:$0xff]  ;;  %9394 = vmatprep.subr.bf16.mxu1 %v9393_v37 }
 0x35c   : > { %4029 = vst [vmem:[#allocation2 + $0xef] sm:$0x1] %v10326_v9  ;;  %4011 = vst [vmem:[#allocation2 + $0xe0] sm:$0xff] %v3979_v46  ;;  %v11309_v48 = vld [vmem:[#allocation2 + $0xc1] sm:$0xff]  ;;  %v4353_v44 = vld [vmem:[#allocation2 + $0x92] sm:$0xff] }
 0x35d   : > { %4028 = vst [vmem:[#allocation2 + $0xe1] sm:$0x3] %v10326_v9  ;;  %8729 = vmatmul.mubr.f32.gmra.mrb[16].mxu1 %v11306_v47  ;;  %v9397_v9 = vpack.c.bf16 %v4701_v12, %v4700_v11  ;;  %v4354_v46 = vld [vmem:[#allocation2 + $0x9a] sm:$0xff]  ;;  %v4356_v11 = vld [vmem:[#allocation2 + $0xaa] sm:$0xff]  ;;  %v4357_v12 = vld [vmem:[#allocation2 + $0xb2] sm:$0xff] }
 0x35e   : > { %8731 = vmatprep.mubr.f32.mxu1 %v11309_v48  ;;  %v4679_v33 = vld [vmem:[#allocation2 + $0x53] sm:$0xff] }
 0x35f   : > { %v11314_v38 = vld [vmem:[#allocation2 + $0xc9] sm:$0xff] }
 0x360   : > { %v11316_v49 = vld [vmem:[#allocation2 + $0xd1] sm:$0xff] }
 0x361   : > { %8732 = vmatmul.mubr.f32.gmra.mrb[18].mxu1 %v11314_v38  ;;  %v4360_v10 = vld [vmem:[#allocation2 + $0xca] sm:$0xff]  ;;  %v4361_v15 = vld [vmem:[#allocation2 + $0xd2] sm:$0xff] }
 0x362   : > { %8734 = vmatprep.mubr.f32.mxu1 %v11316_v49  ;;  %v5361_v4 = vld [vmem:[#allocation2 + $0xd0] sm:$0xff] }
 0x363   : > { %v11320_v5 = vld [vmem:[#allocation2 + $0xd9] sm:$0xff]  ;;  %v5364_v16 = vld [vmem:[#allocation2 + $0xe8] sm:$0xff] }
 0x365   : > { %8735 = vmatmul.mubr.f32.gmra.mrb[20].mxu1 %v11320_v5 }
 0x366   : > { %8769 = vmatprep.mubr.f32.mxu1 %v4335_v6  ;;  %v4355_v6 = vld [vmem:[#allocation2 + $0xa2] sm:$0xff] }
 0x369   : > { %8770 = vmatmul.mubr.f32.vlgmr.msra.gmra.mrb[22].mxu1 %v4336_v14  ;;  %v4359_v14 = vld [vmem:[#allocation2 + $0xc2] sm:$0xff] }
 0x36a   : > { %8772 = vmatprep.mubr.f32.mxu1 %v4337_v17  ;;  %9396 = vmatpush3.bf16.msra.mxu1 %v9393_v37  ;;  %v4351_v37 = vld [vmem:[#allocation2 + $0x82] sm:$0xff] }
 0x36b   : > { %9398 = vmatprep.subr.bf16.mxu1 %v9397_v9  ;;  %v4669_v17 = vld [vmem:[#allocation2 + $0x3] sm:$0xff] }
 0x36d   : > { %8773 = vmatmul.mubr.f32.gmra.mrb[24].mxu1 %v4338_v19  ;;  %v5034_v19 = vld [vmem:[#allocation8 + $0x190] sm:$0xff] }
 0x36e   : > { %8775 = vmatprep.mubr.f32.mxu1 %v4339_v23  ;;  %9400 = vmatpush3.bf16.msra.mxu1 %v9397_v9  ;;  %v4358_v9 = vld [vmem:[#allocation2 + $0xba] sm:$0xff]  ;;  %v9429_v22 = vpack.c.bf16 %v5035_v20, %v5034_v19  ;;  %v4670_v23 = vld [vmem:[#allocation2 + $0xb] sm:$0xff] }
 0x36f   : > { %9402 = vmatprep.subr.bf16.mxu1 %v9401_v18  ;;  %v4690_v19 = vld [vmem:[#allocation2 + $0xab] sm:$0xff]  ;;  %v4691_v20 = vld [vmem:[#allocation2 + $0xb3] sm:$0xff] }
 0x371   : > { %8776 = vmatmul.mubr.f32.gmra.mrb[26].mxu1 %v4340_v25  ;;  %v5037_v25 = vld [vmem:[#allocation8 + $0x1a8] sm:$0xff] }
 0x372   : > { %8778 = vmatprep.mubr.f32.mxu1 %v4341_v28  ;;  %9404 = vmatpush3.bf16.msra.mxu1 %v9401_v18  ;;  %v4362_v18 = vld [vmem:[#allocation2 + $0xda] sm:$0xff] }
 0x373   : > { %9406 = vmatprep.subr.bf16.mxu1 %v9405_v24  ;;  %v4672_v28 = vld [vmem:[#allocation2 + $0x1b] sm:$0xff] }
 0x375   : > { %8779 = vmatmul.mubr.f32.gmra.mrb[0].mxu1 %v4342_v30  ;;  %v5039_v30 = vld [vmem:[#allocation8 + $0x1b8] sm:$0xff] }
 0x376   : > { %8781 = vmatprep.mubr.f32.mxu1 %v4343_v52  ;;  %9408 = vmatpush3.bf16.msra.mxu1 %v9405_v24  ;;  %v5036_v24 = vld [vmem:[#allocation8 + $0x1a0] sm:$0xff] }
 0x377   : > { %9410 = vmatprep.subr.bf16.mxu1 %v9409_v29  ;;  %v9433_v27 = vpack.c.bf16 %v5037_v25, %v5036_v24  ;;  %v4674_v52 = vld [vmem:[#allocation2 + $0x2b] sm:$0xff]  ;;  %v4695_v25 = vld [vmem:[#allocation2 + $0xd3] sm:$0xff] }
 0x378   : > { %v4694_v24 = vld [vmem:[#allocation2 + $0xcb] sm:$0xff] }
 0x379   : > { %8782 = vmatmul.mubr.f32.gmra.mrb[2].mxu1 %v4344_v55  ;;  %v5041_v55 = vld [vmem:[#allocation8 + $0x1c8] sm:$0xff] }
 0x37a   : > { %8784 = vmatprep.mubr.f32.mxu1 %v4345_v58  ;;  %9412 = vmatpush3.bf16.msra.mxu1 %v9409_v29  ;;  %v5038_v29 = vld [vmem:[#allocation8 + $0x1b0] sm:$0xff] }
 0x37b   : > { %9414 = vmatprep.subr.bf16.mxu1 %v9413_v53  ;;  %v9437_v50 = vpack.c.bf16 %v5039_v30, %v5038_v29  ;;  %v4676_v58 = vld [vmem:[#allocation2 + $0x3b] sm:$0xff]  ;;  %v5003_v29 = vld [vmem:[#allocation2 + $0xf] sm:$0xff] }
 0x37d   : > { %8785 = vmatmul.mubr.f32.gmra.mrb[4].mxu1 %v4346_v62  ;;  %v5043_v62 = vld [vmem:[#allocation8 + $0x1d8] sm:$0xff] }
 0x37e   : > { %8787 = vmatprep.mubr.f32.mxu1 %v4347_v3  ;;  %9416 = vmatpush3.bf16.msra.mxu1 %v9413_v53  ;;  %v5040_v53 = vld [vmem:[#allocation8 + $0x1c0] sm:$0xff] }
 0x37f   : > { %9418 = vmatprep.subr.bf16.mxu1 %v9417_v59  ;;  %v9441_v57 = vpack.c.bf16 %v5041_v55, %v5040_v53  ;;  %v4678_v3 = vld [vmem:[#allocation2 + $0x4b] sm:$0xff]  ;;  %v11323_v53 = vld [vmem:[#allocation2 + $0x1f] sm:$0xff] }
 0x381   : > { %8788 = vmatmul.mubr.f32.gmra.mrb[6].mxu1 %v4348_v32  ;;  %v5045_v32 = vld [vmem:[#allocation8 + $0x1e8] sm:$0xff] }
 0x382   : > { %8790 = vmatprep.mubr.f32.mxu1 %v4349_v39  ;;  %9420 = vmatpush3.bf16.msra.mxu1 %v9417_v59  ;;  %v5042_v59 = vld [vmem:[#allocation8 + $0x1d0] sm:$0xff] }
 0x383   : > { %9422 = vmatprep.subr.bf16.mxu1 %v9421_v31  ;;  %v9445_v1 = vpack.c.bf16 %v5043_v62, %v5042_v59  ;;  %v4680_v39 = vld [vmem:[#allocation2 + $0x5b] sm:$0xff]  ;;  %v11329_v59 = vld [vmem:[#allocation2 + $0x2f] sm:$0xff] }
 0x385   : > { %8791 = vmatmul.mubr.f32.gmra.mrb[8].mxu1 %v4350_v41  ;;  %v5047_v41 = vld [vmem:[#allocation8 + $0x1f8] sm:$0xff] }
 0x386   : > { %8793 = vmatprep.mubr.f32.mxu1 %v4351_v37  ;;  %9424 = vmatpush3.bf16.msra.mxu1 %v9421_v31  ;;  %v5044_v31 = vld [vmem:[#allocation8 + $0x1e0] sm:$0xff] }
 0x387   : > { %9426 = vmatprep.subr.bf16.mxu1 %v9425_v40  ;;  %v9449_v36 = vpack.c.bf16 %v5045_v32, %v5044_v31  ;;  %v4681_v37 = vld [vmem:[#allocation2 + $0x63] sm:$0xff] }
 0x388   : > { %v11335_v31 = vld [vmem:[#allocation2 + $0x3f] sm:$0xff] }
 0x389   : > { %8794 = vmatmul.mubr.f32.gmra.mrb[10].mxu1 %v4352_v42 }
 0x38a   : > { %8796 = vmatprep.mubr.f32.mxu1 %v4353_v44  ;;  %v4682_v44 = vld [vmem:[#allocation2 + $0x6b] sm:$0xff] }
 0x38d   : > { %8797 = vmatmul.mubr.f32.gmra.mrb[12].mxu1 %v4354_v46  ;;  %v5366_v46 = vld [vmem:[#allocation8 + $0x200] sm:$0xff] }
 0x38e   : > { %8799 = vmatprep.mubr.f32.mxu1 %v4355_v6  ;;  %v5367_v6 = vld [vmem:[#allocation8 + $0x208] sm:$0xff] }
 0x391   : > { %8800 = vmatmul.mubr.f32.gmra.mrb[14].mxu1 %v4356_v11  ;;  %v4683_v11 = vld [vmem:[#allocation2 + $0x73] sm:$0xff] }
 0x392   : > { %8802 = vmatprep.mubr.f32.mxu1 %v4357_v12  ;;  %v9457_v12 = vpack.c.bf16 %v5367_v6, %v5366_v46  ;;  %v11347_v46 = vld [vmem:[#allocation2 + $0x5f] sm:$0xff] }
 0x395   : > { %8803 = vmatmul.mubr.f32.gmra.mrb[16].mxu1 %v4358_v9  ;;  %v4684_v9 = vld [vmem:[#allocation2 + $0x7b] sm:$0xff] }
 0x396   : > { %8805 = vmatprep.mubr.f32.mxu1 %v4359_v14  ;;  %v4685_v14 = vld [vmem:[#allocation2 + $0x83] sm:$0xff] }
 0x399   : > { %8806 = vmatmul.mubr.f32.gmra.mrb[18].mxu1 %v4360_v10  ;;  %v4686_v10 = vld [vmem:[#allocation2 + $0x8b] sm:$0xff] }
 0x39a   : > { %8808 = vmatprep.mubr.f32.mxu1 %v4361_v15  ;;  %v4687_v15 = vld [vmem:[#allocation2 + $0x93] sm:$0xff] }
 0x39d   : > { %8809 = vmatmul.mubr.f32.gmra.mrb[20].mxu1 %v4362_v18  ;;  %v4689_v18 = vld [vmem:[#allocation2 + $0xa3] sm:$0xff] }
 0x39e   : > { %8843 = vmatprep.mubr.f32.mxu1 %v4669_v17  ;;  %v4688_v17 = vld [vmem:[#allocation2 + $0x9b] sm:$0xff] }
 0x3a1   : > { %8844 = vmatmul.mubr.f32.vlgmr.msra.gmra.mrb[22].mxu1 %v4670_v23  ;;  %v4693_v23 = vld [vmem:[#allocation2 + $0xc3] sm:$0xff] }
 0x3a2   : > { %8846 = vmatprep.mubr.f32.mxu1 %v4671_v26  ;;  %9428 = vmatpush3.bf16.msra.mxu1 %v9425_v40  ;;  %v5046_v40 = vld [vmem:[#allocation8 + $0x1f0] sm:$0xff] }
 0x3a3   : > { %9430 = vmatprep.subr.bf16.mxu1 %v9429_v22  ;;  %v9453_v42 = vpack.c.bf16 %v5047_v41, %v5046_v40  ;;  %v4696_v26 = vld [vmem:[#allocation2 + $0xdb] sm:$0xff]  ;;  %v11341_v40 = vld [vmem:[#allocation2 + $0x4f] sm:$0xff] }
 0x3a5   : > { %8847 = vmatmul.mubr.f32.gmra.mrb[24].mxu1 %v4672_v28  ;;  %v5369_v28 = vld [vmem:[#allocation8 + $0x218] sm:$0xff] }
 0x3a6   : > { %8849 = vmatprep.mubr.f32.mxu1 %v4673_v45  ;;  %9432 = vmatpush3.bf16.msra.mxu1 %v9429_v22  ;;  %v4692_v22 = vld [vmem:[#allocation2 + $0xbb] sm:$0xff] }
 0x3a7   : > { %9434 = vmatprep.subr.bf16.mxu1 %v9433_v27  ;;  %v5004_v45 = vld [vmem:[#allocation2 + $0x17] sm:$0xff] }
 0x3a9   : > { %8850 = vmatmul.mubr.f32.gmra.mrb[26].mxu1 %v4674_v52  ;;  %v5371_v52 = vld [vmem:[#allocation8 + $0x228] sm:$0xff] }
 0x3aa   : > { %8852 = vmatprep.mubr.f32.mxu1 %v4675_v56  ;;  %9436 = vmatpush3.bf16.msra.mxu1 %v9433_v27  ;;  %v5368_v27 = vld [vmem:[#allocation8 + $0x210] sm:$0xff]  ;;  %v11326_v56 = vld [vmem:[#allocation2 + $0x27] sm:$0xff] }
 0x3ab   : > { %9438 = vmatprep.subr.bf16.mxu1 %v9437_v50  ;;  %v9461_v30 = vpack.c.bf16 %v5369_v28, %v5368_v27  ;;  %v11377_v27 = vld [vmem:[#allocation2 + $0xaf] sm:$0xff]  ;;  %v11380_v28 = vld [vmem:[#allocation2 + $0xb7] sm:$0xff] }
 0x3ad   : > { %8853 = vmatmul.mubr.f32.gmra.mrb[0].mxu1 %v4676_v58  ;;  %v5373_v58 = vld [vmem:[#allocation8 + $0x238] sm:$0xff] }
 0x3ae   : > { %8855 = vmatprep.mubr.f32.mxu1 %v4677_v63  ;;  %9440 = vmatpush3.bf16.msra.mxu1 %v9437_v50  ;;  %v5370_v50 = vld [vmem:[#allocation8 + $0x220] sm:$0xff]  ;;  %v11332_v63 = vld [vmem:[#allocation2 + $0x37] sm:$0xff] }
 0x3af   : > { %9442 = vmatprep.subr.bf16.mxu1 %v9441_v57  ;;  %v9465_v55 = vpack.c.bf16 %v5371_v52, %v5370_v50  ;;  %v11391_v50 = vld [vmem:[#allocation2 + $0xcf] sm:$0xff] }
 0x3b1   : > { %8856 = vmatmul.mubr.f32.gmra.mrb[2].mxu1 %v4678_v3  ;;  %v5375_v3 = vld [vmem:[#allocation8 + $0x248] sm:$0xff] }
 0x3b2   : > { %8858 = vmatprep.mubr.f32.mxu1 %v4679_v33  ;;  %9444 = vmatpush3.bf16.msra.mxu1 %v9441_v57  ;;  %v5372_v57 = vld [vmem:[#allocation8 + $0x230] sm:$0xff]  ;;  %v11338_v33 = vld [vmem:[#allocation2 + $0x47] sm:$0xff] }
 0x3b3   : > { %9446 = vmatprep.subr.bf16.mxu1 %v9445_v1  ;;  %v9469_v62 = vpack.c.bf16 %v5373_v58, %v5372_v57  ;;  %v11398_v57 = vld [vmem:[#allocation2 + $0xd7] sm:$0xff] }
 0x3b5   : > { %8859 = vmatmul.mubr.f32.gmra.mrb[4].mxu1 %v4680_v39  ;;  %v5377_v39 = vld [vmem:[#allocation8 + $0x258] sm:$0xff] }
 0x3b6   : > { %8861 = vmatprep.mubr.f32.mxu1 %v4681_v37  ;;  %9448 = vmatpush3.bf16.msra.mxu1 %v9445_v1  ;;  %v5374_v1 = vld [vmem:[#allocation8 + $0x240] sm:$0xff]  ;;  %v11344_v37 = vld [vmem:[#allocation2 + $0x57] sm:$0xff] }
 0x3b7   : > { %9450 = vmatprep.subr.bf16.mxu1 %v9449_v36  ;;  %v9473_v32 = vpack.c.bf16 %v5375_v3, %v5374_v1  ;;  %v11408_v3 = vld [vmem:[#allocation2 + $0xe7] sm:$0xff] }
 0x3b9   : > { %8862 = vmatmul.mubr.f32.gmra.mrb[6].mxu1 %v4682_v44  ;;  %v5379_v44 = vld [vmem:[#allocation8 + $0x268] sm:$0xff] }
 0x3ba   : > { %8864 = vmatprep.mubr.f32.mxu1 %v4683_v11  ;;  %9452 = vmatpush3.bf16.msra.mxu1 %v9449_v36  ;;  %v5376_v36 = vld [vmem:[#allocation8 + $0x250] sm:$0xff]  ;;  %v11350_v11 = vld [vmem:[#allocation2 + $0x67] sm:$0xff] }
 0x3bb   : > { %9454 = vmatprep.subr.bf16.mxu1 %v9453_v42  ;;  %v9477_v41 = vpack.c.bf16 %v5377_v39, %v5376_v36  ;;  %v5703_v36 = vld [vmem:[#allocation8 + $0x298] sm:$0xff] }
 0x3bd   : > { %8865 = vmatmul.mubr.f32.gmra.mrb[8].mxu1 %v4684_v9  ;;  %v5381_v9 = vld [vmem:[#allocation8 + $0x278] sm:$0xff] }
 0x3be   : > { %8867 = vmatprep.mubr.f32.mxu1 %v4685_v14  ;;  %9456 = vmatpush3.bf16.msra.mxu1 %v9453_v42  ;;  %v5378_v42 = vld [vmem:[#allocation8 + $0x260] sm:$0xff] }
 0x3bf   : > { %9458 = vmatprep.subr.bf16.mxu1 %v9457_v12  ;;  %v9481_v6 = vpack.c.bf16 %v5379_v44, %v5378_v42  ;;  %v11353_v14 = vld [vmem:[#allocation2 + $0x6f] sm:$0xff]  ;;  %v5338_v44 = vld [vmem:[#allocation2 + $0x18] sm:$0xff] }
 0x3c1   : > { %8868 = vmatmul.mubr.f32.gmra.mrb[10].mxu1 %v4686_v10 }
 0x3c2   : > { %8870 = vmatprep.mubr.f32.mxu1 %v4687_v15  ;;  %v11356_v15 = vld [vmem:[#allocation2 + $0x77] sm:$0xff] }
 0x3c5   : > { %8871 = vmatmul.mubr.f32.gmra.mrb[12].mxu1 %v4688_v17  ;;  %v5700_v17 = vld [vmem:[#allocation8 + $0x280] sm:$0xff] }
 0x3c6   : > { %8873 = vmatprep.mubr.f32.mxu1 %v4689_v18  ;;  %v5701_v18 = vld [vmem:[#allocation8 + $0x288] sm:$0xff] }
 0x3c9   : > { %8874 = vmatmul.mubr.f32.gmra.mrb[14].mxu1 %v4690_v19  ;;  %v11359_v19 = vld [vmem:[#allocation2 + $0x7f] sm:$0xff] }
 0x3ca   : > { %8876 = vmatprep.mubr.f32.mxu1 %v4691_v20  ;;  %v9489_v20 = vpack.c.bf16 %v5701_v18, %v5700_v17  ;;  %v5340_v17 = vld [vmem:[#allocation2 + $0x28] sm:$0xff]  ;;  %v5706_v18 = vld [vmem:[#allocation8 + $0x2b0] sm:$0xff] }
 0x3cd   : > { %8877 = vmatmul.mubr.f32.gmra.mrb[16].mxu1 %v4692_v22  ;;  %v11362_v22 = vld [vmem:[#allocation2 + $0x87] sm:$0xff] }
 0x3ce   : > { %8879 = vmatprep.mubr.f32.mxu1 %v4693_v23  ;;  %v11365_v23 = vld [vmem:[#allocation2 + $0x8f] sm:$0xff] }
 0x3d1   : > { %8880 = vmatmul.mubr.f32.gmra.mrb[18].mxu1 %v4694_v24  ;;  %v11368_v24 = vld [vmem:[#allocation2 + $0x97] sm:$0xff] }
 0x3d2   : > { %8882 = vmatprep.mubr.f32.mxu1 %v4695_v25  ;;  %v11371_v25 = vld [vmem:[#allocation2 + $0x9f] sm:$0xff] }
 0x3d5   : > { %8883 = vmatmul.mubr.f32.gmra.mrb[20].mxu1 %v4696_v26  ;;  %v11374_v26 = vld [vmem:[#allocation2 + $0xa7] sm:$0xff] }
 0x3d6   : > { %8917 = vmatprep.mubr.f32.mxu1 %v5003_v29  ;;  %v11383_v29 = vld [vmem:[#allocation2 + $0xbf] sm:$0xff] }
 0x3d9   : > { %8918 = vmatmul.mubr.f32.vlgmr.msra.gmra.mrb[22].mxu1 %v5004_v45 }
 0x3da   : > { %8920 = vmatprep.mubr.f32.mxu1 %v11323_v53  ;;  %9460 = vmatpush3.bf16.msra.mxu1 %v9457_v12  ;;  %v5380_v12 = vld [vmem:[#allocation8 + $0x270] sm:$0xff] }
 0x3db   : > { %9462 = vmatprep.subr.bf16.mxu1 %v9461_v30  ;;  %v9485_v10 = vpack.c.bf16 %v5381_v9, %v5380_v12  ;;  %v5705_v12 = vld [vmem:[#allocation8 + $0x2a8] sm:$0xff]  ;;  %v5339_v9 = vld [vmem:[#allocation2 + $0x20] sm:$0xff] }
 0x3dd   : > { %8921 = vmatmul.mubr.f32.gmra.mrb[24].mxu1 %v11326_v56 }
 0x3de   : > { %8923 = vmatprep.mubr.f32.mxu1 %v11329_v59  ;;  %9464 = vmatpush3.bf16.msra.mxu1 %v9461_v30  ;;  %v11386_v30 = vld [vmem:[#allocation2 + $0xc7] sm:$0xff] }
 0x3df   : > { %9466 = vmatprep.subr.bf16.mxu1 %v9465_v55 }
 0x3e1   : > { %8924 = vmatmul.mubr.f32.gmra.mrb[26].mxu1 %v11332_v63 }
 0x3e2   : > { %8926 = vmatprep.mubr.f32.mxu1 %v11335_v31  ;;  %9468 = vmatpush3.bf16.msra.mxu1 %v9465_v55 }
 0x3e3   : > { %9470 = vmatprep.subr.bf16.mxu1 %v9469_v62 }
 0x3e5   : > { %8927 = vmatmul.mubr.f32.gmra.mrb[0].mxu1 %v11338_v33 }
 0x3e6   : > { %8929 = vmatprep.mubr.f32.mxu1 %v11341_v40  ;;  %9472 = vmatpush3.bf16.msra.mxu1 %v9469_v62  ;;  %v11403_v62 = vld [vmem:[#allocation2 + $0xdf] sm:$0xff] }
 0x3e7   : > { %9474 = vmatprep.subr.bf16.mxu1 %v9473_v32 }
 0x3e9   : > { %8930 = vmatmul.mubr.f32.gmra.mrb[2].mxu1 %v11344_v37 }
 0x3ea   : > { %8932 = vmatprep.mubr.f32.mxu1 %v11347_v46  ;;  %9476 = vmatpush3.bf16.msra.mxu1 %v9473_v32  ;;  %v5702_v32 = vld [vmem:[#allocation8 + $0x290] sm:$0xff] }
 0x3eb   : > { %9478 = vmatprep.subr.bf16.mxu1 %v9477_v41  ;;  %v9493_v42 = vpack.c.bf16 %v5703_v36, %v5702_v32  ;;  %v5342_v32 = vld [vmem:[#allocation2 + $0x38] sm:$0xff]  ;;  %v5708_v36 = vld [vmem:[#allocation8 + $0x2c0] sm:$0xff] }
 0x3ed   : > { %8933 = vmatmul.mubr.f32.gmra.mrb[4].mxu1 %v11350_v11 }
 0x3ee   : > { %8935 = vmatprep.mubr.f32.mxu1 %v11353_v14  ;;  %9480 = vmatpush3.bf16.msra.mxu1 %v9477_v41  ;;  %v5337_v41 = vld [vmem:[#allocation2 + $0x10] sm:$0xff] }
 0x3ef   : > { %9482 = vmatprep.subr.bf16.mxu1 %v9481_v6 }
 0x3f1   : > { %8936 = vmatmul.mubr.f32.gmra.mrb[6].mxu1 %v11356_v15 }
 0x3f2   : > { %8938 = vmatprep.mubr.f32.mxu1 %v11359_v19  ;;  %9484 = vmatpush3.bf16.msra.mxu1 %v9481_v6  ;;  %v5704_v6 = vld [vmem:[#allocation8 + $0x2a0] sm:$0xff] }
 0x3f3   : > { %9486 = vmatprep.subr.bf16.mxu1 %v9485_v10 }
 0x3f5   : > { %8939 = vmatmul.mubr.f32.gmra.mrb[8].mxu1 %v11362_v22 }
 0x3f6   : > { %8941 = vmatprep.mubr.f32.mxu1 %v11365_v23  ;;  %9488 = vmatpush3.bf16.msra.mxu1 %v9485_v10  ;;  %v9497_v10 = vpack.c.bf16 %v5705_v12, %v5704_v6  ;;  %v5344_v6 = vld [vmem:[#allocation2 + $0x48] sm:$0xff]  ;;  %v5710_v12 = vld [vmem:[#allocation8 + $0x2d0] sm:$0xff] }
 0x3f7   : > { %9490 = vmatprep.subr.bf16.mxu1 %v9489_v20 }
 0x3f9   : > { %8942 = vmatmul.mubr.f32.gmra.mrb[10].mxu1 %v11368_v24 }
 0x3fa   : > { %8944 = vmatprep.mubr.f32.mxu1 %v11371_v25 }
 0x3fd   : > { %8945 = vmatmul.mubr.f32.gmra.mrb[12].mxu1 %v11374_v26 }
 0x3fe   : > { %8947 = vmatprep.mubr.f32.mxu1 %v11377_v27 }
 0x401   : > { %8948 = vmatmul.mubr.f32.gmra.mrb[14].mxu1 %v11380_v28 }
 0x402   : > { %8950 = vmatprep.mubr.f32.mxu1 %v11383_v29 }
 0x404   : > { %v11388_v45 = vpop.f32.mrb[28].mxu0 }
 0x405   : > { %8951 = vmatmul.mubr.f32.gmra.mrb[16].mxu1 %v11386_v30  ;;  %v11393_v52 = vpop.f32.mrb[29].mxu0 }
 0x406   : > { %8953 = vmatprep.mubr.f32.mxu1 %v11391_v50 }
 0x408   : > { %v11396_v55 = vpop.f32.mrb[30].mxu0 }
 0x409   : > { %v11400_v58 = vpop.f32.mrb[31].mxu0  ;;  %8954 = vmatmul.mubr.f32.gmra.mrb[18].mxu1 %v11398_v57 }
 0x40a   : > { %8956 = vmatprep.mubr.f32.mxu1 %v11403_v62 }
 0x40c   : > { %v11406_v1 = vpop.f32.mrb[32].mxu0 }
 0x40d   : > { %v11410_v39 = vpop.f32.mrb[33].mxu0  ;;  %8957 = vmatmul.mubr.f32.gmra.mrb[20].mxu1 %v11408_v3 }
 0x40e   : > { %8991 = vmatprep.mubr.f32.mxu1 %v5337_v41  ;;  %v9501_v41 = vpack.c.bf16 %v5707_v34, %v5706_v18  ;;  %v5712_v34 = vld [vmem:[#allocation8 + $0x2e0] sm:$0xff]  ;;  %v5347_v18 = vld [vmem:[#allocation2 + $0x60] sm:$0xff] }
 0x411   : > { %8992 = vmatmul.mubr.f32.vlgmr.msra.gmra.mrb[22].mxu1 %v5338_v44  ;;  %v5343_v44 = vld [vmem:[#allocation2 + $0x40] sm:$0xff] }
 0x412   : > { %8994 = vmatprep.mubr.f32.mxu1 %v5339_v9  ;;  %9492 = vmatpush3.bf16.msra.mxu1 %v9489_v20  ;;  %v9505_v20 = vpack.c.bf16 %v5709_v60, %v5708_v36  ;;  %v5711_v9 = vld [vmem:[#allocation8 + $0x2d8] sm:$0xff]  ;;  %v5714_v60 = vld [vmem:[#allocation8 + $0x2f0] sm:$0xff] }
 0x413   : > { %9494 = vmatprep.subr.bf16.mxu1 %v9493_v42  ;;  %v9509_v8 = vpack.c.bf16 %v5711_v9, %v5710_v12  ;;  %v5715_v36 = vld [vmem:[#allocation8 + $0x2f8] sm:$0xff]  ;;  %v6034_v12 = vld [vmem:[#allocation8 + $0x300] sm:$0xff]  ;;  %v6035_v9 = vld [vmem:[#allocation8 + $0x308] sm:$0xff] }
 0x415   : > { %8995 = vmatmul.mubr.f32.gmra.mrb[24].mxu1 %v5340_v17  ;;  %v5345_v17 = vld [vmem:[#allocation2 + $0x50] sm:$0xff] }
 0x416   : > { %8997 = vmatprep.mubr.f32.mxu1 %v3957_v13  ;;  %9496 = vmatpush3.bf16.msra.mxu1 %v9493_v42  ;;  %v5346_v13 = vld [vmem:[#allocation2 + $0x58] sm:$0xff] }
 0x417   : > { %9498 = vmatprep.subr.bf16.mxu1 %v9497_v10  ;;  %v5713_v42 = vld [vmem:[#allocation8 + $0x2e8] sm:$0xff] }
 0x419   : > { %8998 = vmatmul.mubr.f32.gmra.mrb[26].mxu1 %v5342_v32  ;;  %v5348_v32 = vld [vmem:[#allocation2 + $0x68] sm:$0xff] }
 0x41a   : > { %9000 = vmatprep.mubr.f32.mxu1 %v5343_v44  ;;  %9500 = vmatpush3.bf16.msra.mxu1 %v9497_v10  ;;  %v9513_v10 = vpack.c.bf16 %v5713_v42, %v5712_v34  ;;  %v5349_v44 = vld [vmem:[#allocation2 + $0x70] sm:$0xff]  ;;  %v5354_v34 = vld [vmem:[#allocation2 + $0x98] sm:$0xff] }
 0x41b   : > { %9502 = vmatprep.subr.bf16.mxu1 %v9501_v41  ;;  %v5357_v42 = vld [vmem:[#allocation2 + $0xb0] sm:$0xff] }
 0x41d   : > { %9001 = vmatmul.mubr.f32.gmra.mrb[0].mxu1 %v5344_v6  ;;  %v5350_v6 = vld [vmem:[#allocation2 + $0x78] sm:$0xff] }
 0x41e   : > { %9003 = vmatprep.mubr.f32.mxu1 %v5345_v17  ;;  %9504 = vmatpush3.bf16.msra.mxu1 %v9501_v41  ;;  %v9517_v41 = vpack.c.bf16 %v5715_v36, %v5714_v60  ;;  %v5351_v17 = vld [vmem:[#allocation2 + $0x80] sm:$0xff] }
 0x41f   : > { %9506 = vmatprep.subr.bf16.mxu1 %v9505_v20  ;;  %v5363_v60 = vld [vmem:[#allocation2 + $0xe0] sm:$0xff] }
 0x420   : > { %v6037_v36 = vld [vmem:[#allocation8 + $0x318] sm:$0xff] }
 0x421   : > { %9004 = vmatmul.mubr.f32.gmra.mrb[2].mxu1 %v5346_v13  ;;  %v5352_v13 = vld [vmem:[#allocation2 + $0x88] sm:$0xff] }
 0x422   : > { %9006 = vmatprep.mubr.f32.mxu1 %v5347_v18  ;;  %9508 = vmatpush3.bf16.msra.mxu1 %v9505_v20  ;;  %v9521_v20 = vpack.c.bf16 %v6035_v9, %v6034_v12  ;;  %v5358_v18 = vld [vmem:[#allocation2 + $0xb8] sm:$0xff]  ;;  %v6038_v12 = vld [vmem:[#allocation8 + $0x320] sm:$0xff] }
 0x423   : > { %9510 = vmatprep.subr.bf16.mxu1 %v9509_v8  ;;  %v6039_v9 = vld [vmem:[#allocation8 + $0x328] sm:$0xff] }
 0x425   : > { %9007 = vmatmul.mubr.f32.gmra.mrb[4].mxu1 %v5348_v32  ;;  %v11563_v32 = vmax.f32 %v11273_v54, 0.0  ;;  %v5673_v54 = vld [vmem:[#allocation2 + $0x21] sm:$0xff] }
 0x426   : > { %9009 = vmatprep.mubr.f32.mxu1 %v5349_v44  ;;  %9512 = vmatpush3.bf16.msra.mxu1 %v9509_v8  ;;  %v5356_v8 = vld [vmem:[#allocation2 + $0xa8] sm:$0xff]  ;;  %v5671_v44 = vld [vmem:[#allocation2 + $0x11] sm:$0xff] }
 0x427   : > { %9514 = vmatprep.subr.bf16.mxu1 %v9513_v10 }
 0x429   : > { %9010 = vmatmul.mubr.f32.gmra.mrb[6].mxu1 %v5350_v6  ;;  %v5672_v6 = vld [vmem:[#allocation2 + $0x19] sm:$0xff] }
 0x42a   : > { %9012 = vmatprep.mubr.f32.mxu1 %v5351_v17  ;;  %9516 = vmatpush3.bf16.msra.mxu1 %v9513_v10  ;;  %v5359_v10 = vld [vmem:[#allocation2 + $0xc0] sm:$0xff]  ;;  %v9529_v17 = vpack.c.bf16 %v6039_v9, %v6038_v12 }
 0x42b   : > { %9518 = vmatprep.subr.bf16.mxu1 %v9517_v41  ;;  %v5681_v12 = vld [vmem:[#allocation2 + $0x61] sm:$0xff] }
 0x42d   : > { %9013 = vmatmul.mubr.f32.gmra.mrb[8].mxu1 %v5352_v13  ;;  %v6040_v13 = vld [vmem:[#allocation8 + $0x330] sm:$0xff] }
 0x42e   : > { %9015 = vmatprep.mubr.f32.mxu1 %v3969_v7  ;;  %9520 = vmatpush3.bf16.msra.mxu1 %v9517_v41  ;;  %v11564_v7 = vmax.f32 %v11284_v0, 0.0  ;;  %v5674_v0 = vld [vmem:[#allocation2 + $0x29] sm:$0xff] }
 0x42f   : > { %9522 = vmatprep.subr.bf16.mxu1 %v9521_v20 }
 0x431   : > { %9016 = vmatmul.mubr.f32.gmra.mrb[10].mxu1 %v5354_v34  ;;  %v6041_v34 = vld [vmem:[#allocation8 + $0x338] sm:$0xff] }
 0x432   : > { %9018 = vmatprep.mubr.f32.mxu1 %v3971_v21  ;;  %v6036_v21 = vld [vmem:[#allocation8 + $0x310] sm:$0xff] }
 0x433   : > { %v9525_v41 = vpack.c.bf16 %v6037_v36, %v6036_v21  ;;  %v5679_v21 = vld [vmem:[#allocation2 + $0x51] sm:$0xff] }
 0x435   : > { %9019 = vmatmul.mubr.f32.gmra.mrb[12].mxu1 %v5356_v8  ;;  %v5675_v8 = vld [vmem:[#allocation2 + $0x31] sm:$0xff] }
 0x436   : > { %9021 = vmatprep.mubr.f32.mxu1 %v5357_v42  ;;  %v9533_v42 = vpack.c.bf16 %v6041_v34, %v6040_v13  ;;  %v5683_v13 = vld [vmem:[#allocation2 + $0x71] sm:$0xff] }
 0x439   : > { %9022 = vmatmul.mubr.f32.gmra.mrb[14].mxu1 %v5358_v18  ;;  %v5676_v18 = vld [vmem:[#allocation2 + $0x39] sm:$0xff] }
 0x43a   : > { %9024 = vmatprep.mubr.f32.mxu1 %v5359_v10  ;;  %v6042_v10 = vld [vmem:[#allocation8 + $0x340] sm:$0xff] }
 0x43d   : > { %9025 = vmatmul.mubr.f32.gmra.mrb[16].mxu1 %v11563_v32  ;;  %v6043_v32 = vld [vmem:[#allocation8 + $0x348] sm:$0xff] }
 0x43e   : > { %9027 = vmatprep.mubr.f32.mxu1 %v5361_v4  ;;  %v5677_v4 = vld [vmem:[#allocation2 + $0x41] sm:$0xff] }
 0x441   : > { %9028 = vmatmul.mubr.f32.gmra.mrb[18].mxu1 %v11564_v7  ;;  %v5678_v7 = vld [vmem:[#allocation2 + $0x49] sm:$0xff] }
 0x442   : > { %9030 = vmatprep.mubr.f32.mxu1 %v5363_v60  ;;  %v6044_v60 = vld [vmem:[#allocation8 + $0x350] sm:$0xff] }
 0x445   : > { %9031 = vmatmul.mubr.f32.gmra.mrb[20].mxu1 %v5364_v16  ;;  %v6045_v16 = vld [vmem:[#allocation8 + $0x358] sm:$0xff] }
 0x446   : > { %9065 = vmatprep.mubr.f32.mxu1 %v5671_v44  ;;  %v9541_v36 = vpack.c.bf16 %v6045_v16, %v6044_v60  ;;  %v5680_v44 = vld [vmem:[#allocation2 + $0x59] sm:$0xff]  ;;  %v6372_v60 = vld [vmem:[#allocation8 + $0x3a0] sm:$0xff]  ;;  %v6375_v16 = vld [vmem:[#allocation8 + $0x3b8] sm:$0xff] }
 0x449   : > { %9066 = vmatmul.mubr.f32.vlgmr.msra.gmra.mrb[22].mxu1 %v5672_v6  ;;  %v6047_v6 = vld [vmem:[#allocation8 + $0x368] sm:$0xff] }
 0x44a   : > { %9068 = vmatprep.mubr.f32.mxu1 %v5673_v54  ;;  %9524 = vmatpush3.bf16.msra.mxu1 %v9521_v20  ;;  %v9537_v20 = vpack.c.bf16 %v6043_v32, %v6042_v10  ;;  %v5682_v54 = vld [vmem:[#allocation2 + $0x69] sm:$0xff]  ;;  %v10157_v10 = vld [vmem:[#allocation2 + $0x81] sm:$0xff] }
 0x44b   : > { %9526 = vmatprep.subr.bf16.mxu1 %v9525_v41 }
 0x44d   : > { %9069 = vmatmul.mubr.f32.gmra.mrb[24].mxu1 %v5674_v0  ;;  %v6049_v0 = vld [vmem:[#allocation8 + $0x378] sm:$0xff] }
 0x44e   : > { %9071 = vmatprep.mubr.f32.mxu1 %v5675_v8  ;;  %9528 = vmatpush3.bf16.msra.mxu1 %v9525_v41  ;;  %v6046_v41 = vld [vmem:[#allocation8 + $0x360] sm:$0xff] }
 0x44f   : > { %9530 = vmatprep.subr.bf16.mxu1 %v9529_v17  ;;  %v9545_v9 = vpack.c.bf16 %v6047_v6, %v6046_v41  ;;  %v6368_v8 = vld [vmem:[#allocation8 + $0x380] sm:$0xff]  ;;  %v6377_v6 = vld [vmem:[#allocation8 + $0x3c8] sm:$0xff] }
 0x450   : > { %v6376_v41 = vld [vmem:[#allocation8 + $0x3c0] sm:$0xff] }
 0x451   : > { %9072 = vmatmul.mubr.f32.gmra.mrb[26].mxu1 %v5676_v18  ;;  %v10156_v18 = vld [vmem:[#allocation2 + $0x79] sm:$0xff] }
 0x452   : > { %9074 = vmatprep.mubr.f32.mxu1 %v5677_v4  ;;  %9532 = vmatpush3.bf16.msra.mxu1 %v9529_v17  ;;  %v6048_v17 = vld [vmem:[#allocation8 + $0x370] sm:$0xff]  ;;  %v10158_v4 = vld [vmem:[#allocation2 + $0x89] sm:$0xff] }
 0x453   : > { %9534 = vmatprep.subr.bf16.mxu1 %v9533_v42  ;;  %v9549_v34 = vpack.c.bf16 %v6049_v0, %v6048_v17  ;;  %v6378_v17 = vld [vmem:[#allocation8 + $0x3d0] sm:$0xff]  ;;  %v6379_v0 = vld [vmem:[#allocation8 + $0x3d8] sm:$0xff] }
 0x455   : > { %9075 = vmatmul.mubr.f32.gmra.mrb[0].mxu1 %v5678_v7  ;;  %v6371_v7 = vld [vmem:[#allocation8 + $0x398] sm:$0xff] }
 0x456   : > { %9077 = vmatprep.mubr.f32.mxu1 %v5679_v21  ;;  %9536 = vmatpush3.bf16.msra.mxu1 %v9533_v42  ;;  %v6369_v42 = vld [vmem:[#allocation8 + $0x388] sm:$0xff]  ;;  %v6009_v21 = vld [vmem:[#allocation2 + $0x3d] sm:$0xff] }
 0x457   : > { %9538 = vmatprep.subr.bf16.mxu1 %v9537_v20  ;;  %v9553_v32 = vpack.c.bf16 %v6369_v42, %v6368_v8  ;;  %v6014_v8 = vld [vmem:[#allocation2 + $0x65] sm:$0xff] }
 0x458   : > { %v6380_v42 = vld [vmem:[#allocation8 + $0x3e0] sm:$0xff] }
 0x459   : > { %9078 = vmatmul.mubr.f32.gmra.mrb[2].mxu1 %v5680_v44  ;;  %v6010_v44 = vld [vmem:[#allocation2 + $0x45] sm:$0xff] }
 0x45a   : > { %9080 = vmatprep.mubr.f32.mxu1 %v5681_v12  ;;  %9540 = vmatpush3.bf16.msra.mxu1 %v9537_v20  ;;  %v5698_v20 = vld [vmem:[#allocation2 + $0xe9] sm:$0xff] }
 0x45b   : > { %9542 = vmatprep.subr.bf16.mxu1 %v9541_v36  ;;  %v6011_v12 = vld [vmem:[#allocation2 + $0x4d] sm:$0xff] }
 0x45d   : > { %9081 = vmatmul.mubr.f32.gmra.mrb[4].mxu1 %v5682_v54  ;;  %v6012_v54 = vld [vmem:[#allocation2 + $0x55] sm:$0xff] }
 0x45e   : > { %9083 = vmatprep.mubr.f32.mxu1 %v5683_v13  ;;  %9544 = vmatpush3.bf16.msra.mxu1 %v9541_v36  ;;  %v6013_v13 = vld [vmem:[#allocation2 + $0x5d] sm:$0xff] }
 0x45f   : > { %9546 = vmatprep.subr.bf16.mxu1 %v9545_v9 }
 0x461   : > { %9084 = vmatmul.mubr.f32.gmra.mrb[6].mxu1 %v10156_v18  ;;  %v6381_v18 = vld [vmem:[#allocation8 + $0x3e8] sm:$0xff] }
 0x462   : > { %9086 = vmatprep.mubr.f32.mxu1 %v10157_v10  ;;  %9548 = vmatpush3.bf16.msra.mxu1 %v9545_v9  ;;  %v9569_v9 = vpack.c.bf16 %v6377_v6, %v6376_v41  ;;  %v6015_v10 = vld [vmem:[#allocation2 + $0x6d] sm:$0xff]  ;;  %v6028_v41 = vld [vmem:[#allocation2 + $0xd5] sm:$0xff]  ;;  %v6029_v6 = vld [vmem:[#allocation2 + $0xdd] sm:$0xff] }
 0x463   : > { %9550 = vmatprep.subr.bf16.mxu1 %v9549_v34 }
 0x465   : > { %9087 = vmatmul.mubr.f32.gmra.mrb[8].mxu1 %v10158_v4  ;;  %v6016_v4 = vld [vmem:[#allocation2 + $0x75] sm:$0xff] }
 0x466   : > { %9089 = vmatprep.mubr.f32.mxu1 %v11278_v61  ;;  %9552 = vmatpush3.bf16.msra.mxu1 %v9549_v34  ;;  %v5697_v61 = vld [vmem:[#allocation2 + $0xe1] sm:$0xff]  ;;  %v9573_v34 = vpack.c.bf16 %v6379_v0, %v6378_v17 }
 0x467   : > { %9554 = vmatprep.subr.bf16.mxu1 %v9553_v32  ;;  %v6704_v17 = vld [vmem:[#allocation8 + $0x410] sm:$0xff]  ;;  %v6705_v0 = vld [vmem:[#allocation8 + $0x418] sm:$0xff] }
 0x469   : > { %9090 = vmatmul.mubr.f32.gmra.mrb[10].mxu1 %v11286_v2  ;;  %v6370_v2 = vld [vmem:[#allocation8 + $0x390] sm:$0xff] }
 0x46a   : > { %9092 = vmatprep.mubr.f32.mxu1 %v11292_v35  ;;  %v6005_v35 = vld [vmem:[#allocation2 + $0x1d] sm:$0xff] }
 0x46d   : > { %9093 = vmatmul.mubr.f32.gmra.mrb[12].mxu1 %v11298_v51  ;;  %v9557_v51 = vpack.c.bf16 %v6371_v7, %v6370_v2  ;;  %v6017_v2 = vld [vmem:[#allocation2 + $0x7d] sm:$0xff] }
 0x46e   : > { %9095 = vmatprep.mubr.f32.mxu1 %v11301_v43  ;;  %v6006_v43 = vld [vmem:[#allocation2 + $0x25] sm:$0xff] }
 0x471   : > { %9096 = vmatmul.mubr.f32.gmra.mrb[14].mxu1 %v11306_v47  ;;  %v6373_v47 = vld [vmem:[#allocation8 + $0x3a8] sm:$0xff] }
 0x472   : > { %9098 = vmatprep.mubr.f32.mxu1 %v11309_v48  ;;  %v6007_v48 = vld [vmem:[#allocation2 + $0x2d] sm:$0xff] }
 0x475   : > { %9099 = vmatmul.mubr.f32.gmra.mrb[16].mxu1 %v11314_v38  ;;  %v9561_v38 = vpack.c.bf16 %v6373_v47, %v6372_v60  ;;  %v6019_v60 = vld [vmem:[#allocation2 + $0x8d] sm:$0xff] }
 0x476   : > { %9101 = vmatprep.mubr.f32.mxu1 %v11316_v49  ;;  %v6008_v49 = vld [vmem:[#allocation2 + $0x35] sm:$0xff] }
 0x479   : > { %9102 = vmatmul.mubr.f32.gmra.mrb[18].mxu1 %v11320_v5  ;;  %v6374_v5 = vld [vmem:[#allocation8 + $0x3b0] sm:$0xff] }
 0x47a   : > { %9104 = vmatprep.mubr.f32.mxu1 %v5697_v61  ;;  %v9565_v36 = vpack.c.bf16 %v6375_v16, %v6374_v5  ;;  %v6382_v61 = vld [vmem:[#allocation8 + $0x3f0] sm:$0xff]  ;;  %v6023_v5 = vld [vmem:[#allocation2 + $0xad] sm:$0xff] }
 0x47b   : > { %v6024_v16 = vld [vmem:[#allocation2 + $0xb5] sm:$0xff] }
 0x47d   : > { %9105 = vmatmul.mubr.f32.gmra.mrb[20].mxu1 %v5698_v20  ;;  %v6383_v20 = vld [vmem:[#allocation8 + $0x3f8] sm:$0xff] }
 0x47e   : > { %9139 = vmatprep.mubr.f32.mxu1 %v6005_v35  ;;  %v9581_v7 = vpack.c.bf16 %v6383_v20, %v6382_v61  ;;  %v6018_v35 = vld [vmem:[#allocation2 + $0x85] sm:$0xff]  ;;  %v6708_v61 = vld [vmem:[#allocation8 + $0x430] sm:$0xff] }
 0x47f   : > { %v6709_v20 = vld [vmem:[#allocation8 + $0x438] sm:$0xff] }
 0x481   : > { %9140 = vmatmul.mubr.f32.vlgmr.msra.gmra.mrb[22].mxu1 %v6006_v43  ;;  %v6703_v43 = vld [vmem:[#allocation8 + $0x408] sm:$0xff] }
 0x482   : > { %9142 = vmatprep.mubr.f32.mxu1 %v6007_v48  ;;  %9556 = vmatpush3.bf16.msra.mxu1 %v9553_v32  ;;  %v9577_v32 = vpack.c.bf16 %v6381_v18, %v6380_v42  ;;  %v6020_v48 = vld [vmem:[#allocation2 + $0x95] sm:$0xff]  ;;  %v6706_v42 = vld [vmem:[#allocation8 + $0x420] sm:$0xff] }
 0x483   : > { %9558 = vmatprep.subr.bf16.mxu1 %v9557_v51  ;;  %v6707_v18 = vld [vmem:[#allocation8 + $0x428] sm:$0xff] }
 0x485   : > { %9143 = vmatmul.mubr.f32.gmra.mrb[24].mxu1 %v6008_v49  ;;  %v6022_v49 = vld [vmem:[#allocation2 + $0xa5] sm:$0xff] }
 0x486   : > { %9145 = vmatprep.mubr.f32.mxu1 %v6009_v21  ;;  %9560 = vmatpush3.bf16.msra.mxu1 %v9557_v51  ;;  %v6702_v51 = vld [vmem:[#allocation8 + $0x400] sm:$0xff]  ;;  %v6025_v21 = vld [vmem:[#allocation2 + $0xbd] sm:$0xff] }
 0x487   : > { %9562 = vmatprep.subr.bf16.mxu1 %v9561_v38  ;;  %v9585_v47 = vpack.c.bf16 %v6703_v43, %v6702_v51  ;;  %v6710_v51 = vld [vmem:[#allocation8 + $0x440] sm:$0xff]  ;;  %v6711_v43 = vld [vmem:[#allocation8 + $0x448] sm:$0xff] }
 0x489   : > { %9146 = vmatmul.mubr.f32.gmra.mrb[26].mxu1 %v6010_v44  ;;  %v6027_v44 = vld [vmem:[#allocation2 + $0xcd] sm:$0xff] }
 0x48a   : > { %9148 = vmatprep.mubr.f32.mxu1 %v6011_v12  ;;  %9564 = vmatpush3.bf16.msra.mxu1 %v9561_v38  ;;  %v6021_v38 = vld [vmem:[#allocation2 + $0x9d] sm:$0xff]  ;;  %v6030_v12 = vld [vmem:[#allocation2 + $0xe5] sm:$0xff] }
 0x48b   : > { %9566 = vmatprep.subr.bf16.mxu1 %v9565_v36 }
 0x48d   : > { %9149 = vmatmul.mubr.f32.gmra.mrb[0].mxu1 %v6012_v54  ;;  %v6032_v54 = vld [vmem:[#allocation2 + $0xf5] sm:$0xff] }
 0x48e   : > { %9151 = vmatprep.mubr.f32.mxu1 %v6013_v13  ;;  %9568 = vmatpush3.bf16.msra.mxu1 %v9565_v36  ;;  %v6026_v36 = vld [vmem:[#allocation2 + $0xc5] sm:$0xff] }
 0x48f   : > { %9570 = vmatprep.subr.bf16.mxu1 %v9569_v9  ;;  %v6339_v13 = vld [vmem:[#allocation2 + $0x1e] sm:$0xff] }
 0x491   : > { %9152 = vmatmul.mubr.f32.gmra.mrb[2].mxu1 %v6014_v8  ;;  %v6340_v8 = vld [vmem:[#allocation2 + $0x26] sm:$0xff] }
 0x492   : > { %9154 = vmatprep.mubr.f32.mxu1 %v6015_v10  ;;  %9572 = vmatpush3.bf16.msra.mxu1 %v9569_v9  ;;  %v6031_v9 = vld [vmem:[#allocation2 + $0xed] sm:$0xff] }
 0x493   : > { %9574 = vmatprep.subr.bf16.mxu1 %v9573_v34  ;;  %v6341_v10 = vld [vmem:[#allocation2 + $0x2e] sm:$0xff] }
 0x495   : > { %9155 = vmatmul.mubr.f32.gmra.mrb[4].mxu1 %v6016_v4  ;;  %v6342_v4 = vld [vmem:[#allocation2 + $0x36] sm:$0xff] }
 0x496   : > { %9157 = vmatprep.mubr.f32.mxu1 %v6017_v2  ;;  %9576 = vmatpush3.bf16.msra.mxu1 %v9573_v34  ;;  %v9589_v34 = vpack.c.bf16 %v6705_v0, %v6704_v17  ;;  %v6343_v2 = vld [vmem:[#allocation2 + $0x3e] sm:$0xff] }
 0x497   : > { %9578 = vmatprep.subr.bf16.mxu1 %v9577_v32  ;;  %v6351_v17 = vld [vmem:[#allocation2 + $0x7e] sm:$0xff] }
 0x499   : > { %9158 = vmatmul.mubr.f32.gmra.mrb[6].mxu1 %v6018_v35  ;;  %v6344_v35 = vld [vmem:[#allocation2 + $0x46] sm:$0xff] }
 0x49a   : > { %9160 = vmatprep.mubr.f32.mxu1 %v6019_v60  ;;  %9580 = vmatpush3.bf16.msra.mxu1 %v9577_v32  ;;  %v9593_v32 = vpack.c.bf16 %v6707_v18, %v6706_v42  ;;  %v6345_v60 = vld [vmem:[#allocation2 + $0x4e] sm:$0xff]  ;;  %v6355_v42 = vld [vmem:[#allocation2 + $0x9e] sm:$0xff]  ;;  %v6356_v18 = vld [vmem:[#allocation2 + $0xa6] sm:$0xff] }
 0x49b   : > { %9582 = vmatprep.subr.bf16.mxu1 %v9581_v7 }
 0x49d   : > { %9161 = vmatmul.mubr.f32.gmra.mrb[8].mxu1 %v6020_v48  ;;  %v6346_v48 = vld [vmem:[#allocation2 + $0x56] sm:$0xff] }
 0x49e   : > { %9163 = vmatprep.mubr.f32.mxu1 %v6021_v38  ;;  %9584 = vmatpush3.bf16.msra.mxu1 %v9581_v7  ;;  %v9597_v7 = vpack.c.bf16 %v6709_v20, %v6708_v61  ;;  %v6712_v38 = vld [vmem:[#allocation8 + $0x450] sm:$0xff]  ;;  %v6360_v61 = vld [vmem:[#allocation2 + $0xc6] sm:$0xff]  ;;  %v6361_v20 = vld [vmem:[#allocation2 + $0xce] sm:$0xff] }
 0x49f   : > { %9586 = vmatprep.subr.bf16.mxu1 %v9585_v47 }
 0x4a1   : > { %9164 = vmatmul.mubr.f32.gmra.mrb[10].mxu1 %v6022_v49  ;;  %v6713_v49 = vld [vmem:[#allocation8 + $0x458] sm:$0xff] }
 0x4a2   : > { %9166 = vmatprep.mubr.f32.mxu1 %v6023_v5  ;;  %v6347_v5 = vld [vmem:[#allocation2 + $0x5e] sm:$0xff] }
 0x4a5   : > { %9167 = vmatmul.mubr.f32.gmra.mrb[12].mxu1 %v6024_v16  ;;  %v9605_v16 = vpack.c.bf16 %v6713_v49, %v6712_v38 }
 0x4a6   : > { %9169 = vmatprep.mubr.f32.mxu1 %v6025_v21  ;;  %v6348_v21 = vld [vmem:[#allocation2 + $0x66] sm:$0xff] }
 0x4a9   : > { %9170 = vmatmul.mubr.f32.gmra.mrb[14].mxu1 %v6026_v36  ;;  %v6714_v36 = vld [vmem:[#allocation8 + $0x460] sm:$0xff] }
 0x4aa   : > { %9172 = vmatprep.mubr.f32.mxu1 %v6027_v44  ;;  %v6715_v44 = vld [vmem:[#allocation8 + $0x468] sm:$0xff] }
 0x4ad   : > { %9173 = vmatmul.mubr.f32.gmra.mrb[16].mxu1 %v6028_v41  ;;  %v6349_v41 = vld [vmem:[#allocation2 + $0x6e] sm:$0xff] }
 0x4ae   : > { %9175 = vmatprep.mubr.f32.mxu1 %v6029_v6  ;;  %v9609_v6 = vpack.c.bf16 %v6715_v44, %v6714_v36 }
 0x4b1   : > { %9176 = vmatmul.mubr.f32.gmra.mrb[18].mxu1 %v6030_v12  ;;  %v6350_v12 = vld [vmem:[#allocation2 + $0x76] sm:$0xff] }
 0x4b2   : > { %9178 = vmatprep.mubr.f32.mxu1 %v6031_v9  ;;  %v6716_v9 = vld [vmem:[#allocation8 + $0x470] sm:$0xff] }
 0x4b5   : > { %9179 = vmatmul.mubr.f32.gmra.mrb[20].mxu1 %v6032_v54  ;;  %v6717_v54 = vld [vmem:[#allocation8 + $0x478] sm:$0xff] }
 0x4b6   : > { %9213 = vmatprep.mubr.f32.mxu1 %v6339_v13  ;;  %v9613_v0 = vpack.c.bf16 %v6717_v54, %v6716_v9  ;;  %v6352_v13 = vld [vmem:[#allocation2 + $0x86] sm:$0xff] }
 0x4b9   : > { %9214 = vmatmul.mubr.f32.vlgmr.msra.gmra.mrb[22].mxu1 %v6340_v8  ;;  %v6354_v8 = vld [vmem:[#allocation2 + $0x96] sm:$0xff] }
 0x4ba   : > { %9216 = vmatprep.mubr.f32.mxu1 %v6341_v10  ;;  %9588 = vmatpush3.bf16.msra.mxu1 %v9585_v47  ;;  %v9601_v47 = vpack.c.bf16 %v6711_v43, %v6710_v51  ;;  %v6357_v10 = vld [vmem:[#allocation2 + $0xae] sm:$0xff]  ;;  %v6366_v43 = vld [vmem:[#allocation2 + $0xf6] sm:$0xff] }
 0x4bb   : > { %9590 = vmatprep.subr.bf16.mxu1 %v9589_v34  ;;  %v6365_v51 = vld [vmem:[#allocation2 + $0xee] sm:$0xff] }
 0x4bd   : > { %9217 = vmatmul.mubr.f32.gmra.mrb[24].mxu1 %v6342_v4  ;;  %v6359_v4 = vld [vmem:[#allocation2 + $0xbe] sm:$0xff] }
 0x4be   : > { %9219 = vmatprep.mubr.f32.mxu1 %v6343_v2  ;;  %9592 = vmatpush3.bf16.msra.mxu1 %v9589_v34  ;;  %v6353_v34 = vld [vmem:[#allocation2 + $0x8e] sm:$0xff]  ;;  %v6362_v2 = vld [vmem:[#allocation2 + $0xd6] sm:$0xff] }
 0x4bf   : > { %9594 = vmatprep.subr.bf16.mxu1 %v9593_v32 }
 0x4c1   : > { %9220 = vmatmul.mubr.f32.gmra.mrb[26].mxu1 %v6344_v35  ;;  %v6364_v35 = vld [vmem:[#allocation2 + $0xe6] sm:$0xff] }
 0x4c2   : > { %9222 = vmatprep.mubr.f32.mxu1 %v6345_v60  ;;  %9596 = vmatpush3.bf16.msra.mxu1 %v9593_v32  ;;  %v6358_v32 = vld [vmem:[#allocation2 + $0xb6] sm:$0xff] }
 0x4c3   : > { %9598 = vmatprep.subr.bf16.mxu1 %v9597_v7 }
 0x4c5   : > { %9223 = vmatmul.mubr.f32.gmra.mrb[0].mxu1 %v6346_v48 }
 0x4c6   : > { %9225 = vmatprep.mubr.f32.mxu1 %v6347_v5  ;;  %9600 = vmatpush3.bf16.msra.mxu1 %v9597_v7  ;;  %v6363_v7 = vld [vmem:[#allocation2 + $0xde] sm:$0xff] }
 0x4c7   : > { %9602 = vmatprep.subr.bf16.mxu1 %v9601_v47 }
 0x4c9   : > { %9226 = vmatmul.mubr.f32.gmra.mrb[2].mxu1 %v6348_v21 }
 0x4ca   : > { %9228 = vmatprep.mubr.f32.mxu1 %v6349_v41  ;;  %9604 = vmatpush3.bf16.msra.mxu1 %v9601_v47 }
 0x4cb   : > { %9606 = vmatprep.subr.bf16.mxu1 %v9605_v16 }
 0x4cd   : > { %9229 = vmatmul.mubr.f32.gmra.mrb[4].mxu1 %v6350_v12 }
 0x4ce   : > { %9231 = vmatprep.mubr.f32.mxu1 %v6351_v17  ;;  %9608 = vmatpush3.bf16.msra.mxu1 %v9605_v16 }
 0x4cf   : > { %9610 = vmatprep.subr.bf16.mxu1 %v9609_v6 }
 0x4d1   : > { %9232 = vmatmul.mubr.f32.gmra.mrb[6].mxu1 %v6352_v13 }
 0x4d2   : > { %9234 = vmatprep.mubr.f32.mxu1 %v6353_v34  ;;  %9612 = vmatpush3.bf16.msra.mxu1 %v9609_v6 }
 0x4d3   : > { %9614 = vmatprep.subr.bf16.mxu1 %v9613_v0 }
 0x4d5   : > { %9235 = vmatmul.mubr.f32.gmra.mrb[8].mxu1 %v6354_v8 }
 0x4d6   : > { %9237 = vmatprep.mubr.f32.mxu1 %v6355_v42  ;;  %9616 = vmatpush3.bf16.msra.mxu1 %v9613_v0 }
 0x4d9   : > { %9238 = vmatmul.mubr.f32.gmra.mrb[10].mxu1 %v6356_v18 }
 0x4da   : > { %9240 = vmatprep.mubr.f32.mxu1 %v6357_v10 }
 0x4dd   : > { %9241 = vmatmul.mubr.f32.gmra.mrb[12].mxu1 %v6358_v32 }
 0x4de   : > { %9243 = vmatprep.mubr.f32.mxu1 %v6359_v4 }
 0x4e1   : > { %9244 = vmatmul.mubr.f32.gmra.mrb[14].mxu1 %v6360_v61 }
 0x4e2   : > { %9246 = vmatprep.mubr.f32.mxu1 %v6361_v20 }
 0x4e5   : > { %9247 = vmatmul.mubr.f32.gmra.mrb[16].mxu1 %v6362_v2 }
 0x4e6   : > { %9249 = vmatprep.mubr.f32.mxu1 %v6363_v7 }
 0x4e9   : > { %9250 = vmatmul.mubr.f32.gmra.mrb[18].mxu1 %v6364_v35 }
 0x4ea   : > { %9252 = vmatprep.mubr.f32.mxu1 %v6365_v51 }
 0x4ed   : > { %9253 = vmatmul.mubr.f32.gmra.mrb[20].mxu1 %v6366_v43 }
 0x4ee   : > { %9287 = vmatprep.mubr.f32.mxu1 %v11323_v53  ;;  %v6699_v53 = vld [vmem:[#allocation2 + $0xef] sm:$0xff] }
 0x4f1   : > { %9288 = vmatmul.mubr.f32.vlgmr.msra.gmra.mrb[22].mxu1 %v11326_v56  ;;  %v6700_v56 = vld [vmem:[#allocation2 + $0xf7] sm:$0xff] }
 0x4f2   : > { %9290 = vmatprep.mubr.f32.mxu1 %v11329_v59 }
 0x4f5   : > { %9291 = vmatmul.mubr.f32.gmra.mrb[24].mxu1 %v11332_v63  ;;  %v11459_v63 = vld [vmem:[#allocation9] ss:$0 sm:$0xff] }
 0x4f6   : > { %9293 = vmatprep.mubr.f32.mxu1 %v11335_v31 }
 0x4f9   : > { %9294 = vmatmul.mubr.f32.gmra.mrb[26].mxu1 %v11338_v33 }
 0x4fa   : > { %9296 = vmatprep.mubr.f32.mxu1 %v11341_v40  ;;  %v11462_v40 = vld [vmem:[#allocation11] ss:$0 sm:$0xff] }
 0x4fd   : > { %9297 = vmatmul.mubr.f32.gmra.mrb[0].mxu1 %v11344_v37 }
 0x4fe   : > { %9299 = vmatprep.mubr.f32.mxu1 %v11347_v46 }
 0x501   : > { %9300 = vmatmul.mubr.f32.gmra.mrb[2].mxu1 %v11350_v11 }
 0x502   : > { %9302 = vmatprep.mubr.f32.mxu1 %v11353_v14 }
 0x505   : > { %9303 = vmatmul.mubr.f32.gmra.mrb[4].mxu1 %v11356_v15 }
 0x506   : > { %9305 = vmatprep.mubr.f32.mxu1 %v11359_v19 }
 0x509   : > { %9306 = vmatmul.mubr.f32.gmra.mrb[6].mxu1 %v11362_v22 }
 0x50a   : > { %9308 = vmatprep.mubr.f32.mxu1 %v11365_v23 }
 0x50d   : > { %9309 = vmatmul.mubr.f32.gmra.mrb[8].mxu1 %v11368_v24 }
 0x50e   : > { %9311 = vmatprep.mubr.f32.mxu1 %v11371_v25 }
 0x511   : > { %9312 = vmatmul.mubr.f32.gmra.mrb[10].mxu1 %v11374_v26 }
 0x512   : > { %9314 = vmatprep.mubr.f32.mxu1 %v11377_v27 }
 0x515   : > { %9315 = vmatmul.mubr.f32.gmra.mrb[12].mxu1 %v11380_v28 }
 0x516   : > { %9317 = vmatprep.mubr.f32.mxu1 %v11383_v29 }
 0x519   : > { %9318 = vmatmul.mubr.f32.gmra.mrb[14].mxu1 %v11386_v30 }
 0x51a   : > { %9320 = vmatprep.mubr.f32.mxu1 %v11391_v50 }
 0x51d   : > { %9321 = vmatmul.mubr.f32.gmra.mrb[16].mxu1 %v11398_v57 }
 0x51e   : > { %9323 = vmatprep.mubr.f32.mxu1 %v11403_v62 }
 0x521   : > { %9324 = vmatmul.mubr.f32.gmra.mrb[18].mxu1 %v11408_v3 }
 0x522   : > { %9326 = vmatprep.mubr.f32.mxu1 %v6699_v53 }
 0x525   : > { %9327 = vmatmul.mubr.f32.gmra.mrb[20].mxu1 %v6700_v56 }
 0x5c4   : > { %v9289_v59 = vpop.f32.mrb[22].mxu1 }
 0x5c5   : > { %v9635_v31 = vadd.f32 %v9289_v59, %v11388_v45  ;;  %v6784_v33 = vpop.f32.mrb[23].mxu1 }
 0x5c6   : > { %v9638_v37 = vadd.f32 %v6784_v33, %v11393_v52 }
 0x5c7   : > { %v7015_v46 = vmul.f32 %v9635_v31, %v11459_v63 }
 0x5c8   : > { %v7014_v11 = vmul.f32 %v9638_v37, %v11459_v63  ;;  %v9292_v14 = vpop.f32.mrb[24].mxu1 }
 0x5c9   : > { %v7050_v15 = vadd.f32 %v11462_v40, %v7015_v46  ;;  %v9641_v19 = vadd.f32 %v9292_v14, %v11396_v55  ;;  %v6794_v22 = vpop.f32.mrb[25].mxu1 }
 0x5ca   : > { %v7049_v23 = vadd.f32 %v11462_v40, %v7014_v11  ;;  %v9644_v24 = vadd.f32 %v6794_v22, %v11400_v58 }
 0x5cb   : > { %v7078_v25 = vmax.f32 %v7050_v15, 0.0  ;;  %v7017_v26 = vmul.f32 %v9641_v19, %v11459_v63 }
 0x5cc   : > { %v7077_v27 = vmax.f32 %v7049_v23, 0.0  ;;  %v7016_v28 = vmul.f32 %v9644_v24, %v11459_v63  ;;  %v9295_v29 = vpop.f32.mrb[26].mxu1 }
 0x5cd   : > { %7106 = vst [vmem:[#allocation3 + $0x8] sm:$0xff] %v7078_v25  ;;  %v7052_v30 = vadd.f32 %v11462_v40, %v7017_v26  ;;  %v9647_v45 = vadd.f32 %v9295_v29, %v11406_v1  ;;  %v6804_v50 = vpop.f32.mrb[27].mxu1 }
 0x5ce   : > { %7105 = vst [vmem:[#allocation3] sm:$0xff] %v7077_v27  ;;  %v7051_v52 = vadd.f32 %v11462_v40, %v7016_v28  ;;  %v9650_v55 = vadd.f32 %v6804_v50, %v11410_v39 }
 0x5cf   : > { %v7080_v57 = vmax.f32 %v7052_v30, 0.0  ;;  %v7019_v58 = vmul.f32 %v9647_v45, %v11459_v63 }
 0x5d0   : > { %v7079_v62 = vmax.f32 %v7051_v52, 0.0  ;;  %v7018_v3 = vmul.f32 %v9650_v55, %v11459_v63  ;;  %v9298_v60 = vpop.f32.mrb[0].mxu1 }
 0x5d1   : > { %7108 = vst [vmem:[#allocation3 + $0x18] sm:$0xff] %v7080_v57  ;;  %v7054_v47 = vadd.f32 %v11462_v40, %v7019_v58  ;;  %v7021_v48 = vmul.f32 %v9298_v60, %v11459_v63  ;;  %v6814_v1 = vpop.f32.mrb[1].mxu1 }
 0x5d2   : > { %7107 = vst [vmem:[#allocation3 + $0x10] sm:$0xff] %v7079_v62  ;;  %v7053_v38 = vadd.f32 %v11462_v40, %v7018_v3  ;;  %v7020_v49 = vmul.f32 %v11459_v63, %v6814_v1 }
 0x5d3   : > { %v7082_v39 = vmax.f32 %v7054_v47, 0.0  ;;  %v7056_v5 = vadd.f32 %v11462_v40, %v7021_v48 }
 0x5d4   : > { %v7081_v16 = vmax.f32 %v7053_v38, 0.0  ;;  %v7055_v21 = vadd.f32 %v11462_v40, %v7020_v49  ;;  %v9301_v36 = vpop.f32.mrb[2].mxu1 }
 0x5d5   : > { %7110 = vst [vmem:[#allocation3 + $0x28] sm:$0xff] %v7082_v39  ;;  %v7023_v44 = vmul.f32 %v9301_v36, %v11459_v63  ;;  %v7084_v41 = vmax.f32 %v7056_v5, 0.0  ;;  %v6824_v12 = vpop.f32.mrb[3].mxu1  ;;  %v7134_v9 = vld [vmem:[#allocation3 + $0x1] ss:$2 sm:$0x3f] }
 0x5d6   : > { %7109 = vst [vmem:[#allocation3 + $0x20] sm:$0xff] %v7081_v16  ;;  %v7083_v6 = vmax.f32 %v7055_v21, 0.0  ;;  %v7136_v54 = vld [vmem:[#allocation3 + $0x2] ss:$2 sm:$0x3f]  ;;  %v7022_v0 = vmul.f32 %v11459_v63, %v6824_v12 }
 0x5d7   : > { %v7058_v17 = vadd.f32 %v11462_v40, %v7023_v44  ;;  %7112 = vst [vmem:[#allocation3 + $0x38] sm:$0xff] %v7084_v41  ;;  %v7141_v10 = vmax.f32 %v7134_v9, %v7136_v54 }
 0x5d8   : > { %7111 = vst [vmem:[#allocation3 + $0x30] sm:$0xff] %v7083_v6  ;;  %v9304_v13 = vpop.f32.mrb[4].mxu1  ;;  %v7057_v42 = vadd.f32 %v11462_v40, %v7022_v0 }
 0x5d9   : > { %v7138_v34 = vld [vmem:[#allocation3 + $0xf] ss:$2 sm:$0x3f]  ;;  %v7140_v8 = vld [vmem:[#allocation3 + $0x10] ss:$2 sm:$0x3f]  ;;  %v7025_v18 = vmul.f32 %v9304_v13, %v11459_v63 }
 0x5da   : > { %v7142_v32 = vmax.f32 %v7138_v34, %v7140_v8  ;;  %v7086_v4 = vmax.f32 %v7058_v17, 0.0  ;;  %v6834_v61 = vpop.f32.mrb[5].mxu1  ;;  %v7085_v20 = vmax.f32 %v7057_v42, 0.0 }
 0x5db   : > { %v7060_v2 = vadd.f32 %v11462_v40, %v7025_v18  ;;  %v7024_v7 = vmul.f32 %v11459_v63, %v6834_v61 }
 0x5dc   : > { %v7143_v35 = vmax.f32 %v7141_v10, %v7142_v32  ;;  %7114 = vst [vmem:[#allocation3 + $0x48] sm:$0xff] %v7086_v4  ;;  %v9307_v51 = vpop.f32.mrb[6].mxu1  ;;  %7113 = vst [vmem:[#allocation3 + $0x40] sm:$0xff] %v7085_v20 }
 0x5dd   : > { %v7146_v43 = vld [vmem:[#allocation3 + $0x1d] ss:$2 sm:$0x3f]  ;;  %v7148_v53 = vld [vmem:[#allocation3 + $0x1e] ss:$2 sm:$0x3f]  ;;  %v7059_v56 = vadd.f32 %v11462_v40, %v7024_v7  ;;  %v7027_v59 = vmul.f32 %v9307_v51, %v11459_v63 }
 0x5de   : > { %7144 = vst [vmem:[%s11494_s18] sm:$0x3f] %v7143_v35  ;;  %v7088_v31 = vmax.f32 %v7060_v2, 0.0  ;;  %v6844_v33 = vpop.f32.mrb[7].mxu1  ;;  %v7153_v15 = vmax.f32 %v7146_v43, %v7148_v53 }
 0x5df   : > { %v7150_v37 = vld [vmem:[#allocation3 + $0x2b] ss:$2 sm:$0x3f]  ;;  %v7152_v46 = vld [vmem:[#allocation3 + $0x2c] ss:$2 sm:$0x3f]  ;;  %v7062_v11 = vadd.f32 %v11462_v40, %v7027_v59  ;;  %v7026_v14 = vmul.f32 %v11459_v63, %v6844_v33 }
 0x5e0   : > { %v7154_v19 = vmax.f32 %v7150_v37, %v7152_v46  ;;  %7116 = vst [vmem:[#allocation3 + $0x58] sm:$0xff] %v7088_v31  ;;  %v7087_v22 = vmax.f32 %v7059_v56, 0.0  ;;  %v9310_v23 = vpop.f32.mrb[8].mxu1 }
 0x5e1   : > { %v7090_v24 = vmax.f32 %v7062_v11, 0.0  ;;  %v7061_v25 = vadd.f32 %v11462_v40, %v7026_v14  ;;  %v7029_v26 = vmul.f32 %v9310_v23, %v11459_v63  ;;  %v6854_v27 = vpop.f32.mrb[9].mxu1 }
 0x5e2   : > { %v7155_v28 = vmax.f32 %v7153_v15, %v7154_v19  ;;  %7115 = vst [vmem:[#allocation3 + $0x50] sm:$0xff] %v7087_v22  ;;  %v7028_v29 = vmul.f32 %v11459_v63, %v6854_v27 }
 0x5e3   : > { %7118 = vst [vmem:[#allocation3 + $0x68] sm:$0xff] %v7090_v24  ;;  %v7089_v30 = vmax.f32 %v7061_v25, 0.0  ;;  %v7064_v45 = vadd.f32 %v11462_v40, %v7029_v26  ;;  %v7158_v3 = vld [vmem:[#allocation3 + $0x39] ss:$2 sm:$0x3f] }
 0x5e4   : > { %7156 = vst [vmem:[%s11494_s18 + $0x6] sm:$0x3f] %v7155_v28  ;;  %v7063_v50 = vadd.f32 %v11462_v40, %v7028_v29  ;;  %v9313_v55 = vpop.f32.mrb[10].mxu1  ;;  %v7160_v60 = vld [vmem:[#allocation3 + $0x3a] ss:$2 sm:$0x3f] }
 0x5e5   : > { %7117 = vst [vmem:[#allocation3 + $0x60] sm:$0xff] %v7089_v30  ;;  %v7092_v52 = vmax.f32 %v7064_v45, 0.0  ;;  %v7031_v58 = vmul.f32 %v9313_v55, %v11459_v63  ;;  %v6864_v62 = vpop.f32.mrb[11].mxu1  ;;  %v7165_v16 = vmax.f32 %v7158_v3, %v7160_v60 }
 0x5e6   : > { %v7091_v57 = vmax.f32 %v7063_v50, 0.0  ;;  %v7030_v47 = vmul.f32 %v11459_v63, %v6864_v62 }
 0x5e7   : > { %7120 = vst [vmem:[#allocation3 + $0x78] sm:$0xff] %v7092_v52  ;;  %v7066_v48 = vadd.f32 %v11462_v40, %v7031_v58 }
 0x5e8   : > { %7119 = vst [vmem:[#allocation3 + $0x70] sm:$0xff] %v7091_v57  ;;  %v9316_v1 = vpop.f32.mrb[12].mxu1  ;;  %v7065_v39 = vadd.f32 %v11462_v40, %v7030_v47 }
 0x5e9   : > { %v7162_v38 = vld [vmem:[#allocation3 + $0x47] ss:$2 sm:$0x3f]  ;;  %v7164_v49 = vld [vmem:[#allocation3 + $0x48] ss:$2 sm:$0x3f]  ;;  %v7033_v5 = vmul.f32 %v9316_v1, %v11459_v63 }
 0x5ea   : > { %v7166_v21 = vmax.f32 %v7162_v38, %v7164_v49  ;;  %v7094_v36 = vmax.f32 %v7066_v48, 0.0  ;;  %v6874_v44 = vpop.f32.mrb[13].mxu1  ;;  %v7170_v41 = vld [vmem:[#allocation3 + $0x55] ss:$2 sm:$0x3f]  ;;  %v7093_v6 = vmax.f32 %v7065_v39, 0.0 }
 0x5eb   : > { %v7068_v12 = vadd.f32 %v11462_v40, %v7033_v5  ;;  %v7032_v9 = vmul.f32 %v11459_v63, %v6874_v44 }
 0x5ec   : > { %v7167_v54 = vmax.f32 %v7165_v16, %v7166_v21  ;;  %v7172_v17 = vld [vmem:[#allocation3 + $0x56] ss:$2 sm:$0x3f]  ;;  %v7174_v0 = vld [vmem:[#allocation3 + $0x63] ss:$2 sm:$0x3f] }
 0x5ed   : > { %7122 = vst [vmem:[#allocation3 + $0x88] sm:$0xff] %v7094_v36  ;;  %v7176_v13 = vld [vmem:[#allocation3 + $0x64] ss:$2 sm:$0x3f]  ;;  %v7177_v34 = vmax.f32 %v7170_v41, %v7172_v17  ;;  %7121 = vst [vmem:[#allocation3 + $0x80] sm:$0xff] %v7093_v6  ;;  %v7096_v8 = vmax.f32 %v7068_v12, 0.0  ;;  %v7067_v42 = vadd.f32 %v11462_v40, %v7032_v9 }
 0x5ee   : > { %v9319_v18 = vpop.f32.mrb[14].mxu1  ;;  %7168 = vst [vmem:[%s11494_s18 + $0xc] sm:$0x3f] %v7167_v54  ;;  %v7178_v10 = vmax.f32 %v7174_v0, %v7176_v13 }
 0x5ef   : > { %v7035_v32 = vmul.f32 %v9319_v18, %v11459_v63  ;;  %v6884_v4 = vpop.f32.mrb[15].mxu1  ;;  %7124 = vst [vmem:[#allocation3 + $0x98] sm:$0xff] %v7096_v8  ;;  %v7095_v2 = vmax.f32 %v7067_v42, 0.0  ;;  %v7182_v51 = vld [vmem:[#allocation3 + $0x71] ss:$2 sm:$0x3f] }
 0x5f0   : > { %v7034_v61 = vmul.f32 %v11459_v63, %v6884_v4  ;;  %v7179_v20 = vmax.f32 %v7177_v34, %v7178_v10  ;;  %v9322_v35 = vpop.f32.mrb[16].mxu1  ;;  %v7184_v59 = vld [vmem:[#allocation3 + $0x72] ss:$2 sm:$0x3f] }
 0x5f1   : > { %v7070_v7 = vadd.f32 %v11462_v40, %v7035_v32  ;;  %v7037_v53 = vmul.f32 %v9322_v35, %v11459_v63  ;;  %v6894_v56 = vpop.f32.mrb[17].mxu1  ;;  %7123 = vst [vmem:[#allocation3 + $0x90] sm:$0xff] %v7095_v2  ;;  %v7189_v19 = vmax.f32 %v7182_v51, %v7184_v59 }
 0x5f2   : > { %v7069_v43 = vadd.f32 %v11462_v40, %v7034_v61  ;;  %7180 = vst [vmem:[%s11494_s18 + $0x12] sm:$0x3f] %v7179_v20  ;;  %v7036_v33 = vmul.f32 %v11459_v63, %v6894_v56 }
 0x5f3   : > { %v7098_v31 = vmax.f32 %v7070_v7, 0.0  ;;  %v7072_v46 = vadd.f32 %v11462_v40, %v7037_v53 }
 0x5f4   : > { %v7097_v37 = vmax.f32 %v7069_v43, 0.0  ;;  %v7186_v11 = vld [vmem:[#allocation3 + $0x7f] ss:$2 sm:$0x3f]  ;;  %v7071_v15 = vadd.f32 %v11462_v40, %v7036_v33  ;;  %v9325_v24 = vpop.f32.mrb[18].mxu1 }
 0x5f5   : > { %v7188_v14 = vld [vmem:[#allocation3 + $0x80] ss:$2 sm:$0x3f]  ;;  %7126 = vst [vmem:[#allocation3 + $0xa8] sm:$0xff] %v7098_v31  ;;  %v7100_v23 = vmax.f32 %v7072_v46, 0.0  ;;  %v7039_v26 = vmul.f32 %v9325_v24, %v11459_v63  ;;  %v6904_v27 = vpop.f32.mrb[19].mxu1 }
 0x5f6   : > { %v7190_v22 = vmax.f32 %v7186_v11, %v7188_v14  ;;  %7125 = vst [vmem:[#allocation3 + $0xa0] sm:$0xff] %v7097_v37  ;;  %v7099_v25 = vmax.f32 %v7071_v15, 0.0  ;;  %v7038_v29 = vmul.f32 %v11459_v63, %v6904_v27 }
 0x5f7   : > { %7128 = vst [vmem:[#allocation3 + $0xb8] sm:$0xff] %v7100_v23  ;;  %v7074_v30 = vadd.f32 %v11462_v40, %v7039_v26 }
 0x5f8   : > { %v7191_v28 = vmax.f32 %v7189_v19, %v7190_v22  ;;  %7127 = vst [vmem:[#allocation3 + $0xb0] sm:$0xff] %v7099_v25  ;;  %v9328_v45 = vpop.f32.mrb[20].mxu1  ;;  %v7194_v50 = vld [vmem:[#allocation3 + $0x8d] ss:$2 sm:$0x3f]  ;;  %v7073_v52 = vadd.f32 %v11462_v40, %v7038_v29 }
 0x5f9   : > { %v7041_v55 = vmul.f32 %v9328_v45, %v11459_v63  ;;  %v7196_v57 = vld [vmem:[#allocation3 + $0x8e] ss:$2 sm:$0x3f]  ;;  %v7102_v58 = vmax.f32 %v7074_v30, 0.0  ;;  %v6914_v62 = vpop.f32.mrb[21].mxu1 }
 0x5fa   : > { %7192 = vst [vmem:[%s11494_s18 + $0x18] sm:$0x3f] %v7191_v28  ;;  %v7101_v3 = vmax.f32 %v7073_v52, 0.0  ;;  %v7040_v47 = vmul.f32 %v11459_v63, %v6914_v62  ;;  %v7201_v38 = vmax.f32 %v7194_v50, %v7196_v57 }
 0x5fb   : > { %v7076_v60 = vadd.f32 %v11462_v40, %v7041_v55  ;;  %7130 = vst [vmem:[#allocation3 + $0xc8] sm:$0xff] %v7102_v58 }
 0x5fc   : > { %7129 = vst [vmem:[#allocation3 + $0xc0] sm:$0xff] %v7101_v3  ;;  %v7075_v5 = vadd.f32 %v11462_v40, %v7040_v47 }
 0x5fd   : > { %v7198_v48 = vld [vmem:[#allocation3 + $0x9b] ss:$2 sm:$0x3f]  ;;  %v7200_v1 = vld [vmem:[#allocation3 + $0x9c] ss:$2 sm:$0x3f] }
 0x5fe   : > { %v7202_v49 = vmax.f32 %v7198_v48, %v7200_v1  ;;  %v7104_v39 = vmax.f32 %v7076_v60, 0.0  ;;  %v7103_v21 = vmax.f32 %v7075_v5, 0.0 }
 0x5ff   : > { %v7206_v36 = vld [vmem:[#allocation3 + $0xa9] ss:$2 sm:$0x3f]  ;;  %v7208_v44 = vld [vmem:[#allocation3 + $0xaa] ss:$2 sm:$0x3f] }
 0x600   : > { %v7203_v16 = vmax.f32 %v7201_v38, %v7202_v49  ;;  %7132 = vst [vmem:[#allocation3 + $0xd8] sm:$0xff] %v7104_v39  ;;  %7131 = vst [vmem:[#allocation3 + $0xd0] sm:$0xff] %v7103_v21  ;;  %v7213_v6 = vmax.f32 %v7206_v36, %v7208_v44 }
 0x602   : > { %7204 = vst [vmem:[%s11494_s18 + $0x1e] sm:$0x3f] %v7203_v16 }
 0x603   : > { %v7210_v41 = vld [vmem:[#allocation3 + $0xb7] ss:$2 sm:$0x3f]  ;;  %v7212_v63 = vld [vmem:[#allocation3 + $0xb8] ss:$2 sm:$0x3f] }
 0x604   : > { %v7214_v12 = vmax.f32 %v7210_v41, %v7212_v63  ;;  %v7218_v54 = vld [vmem:[#allocation3 + $0xc5] ss:$2 sm:$0x3f] }
 0x606   : > { %v7215_v9 = vmax.f32 %v7213_v6, %v7214_v12 }
 0x607   : > { %v7220_v17 = vld [vmem:[#allocation3 + $0xc6] ss:$2 sm:$0x3f]  ;;  %v7222_v0 = vld [vmem:[#allocation3 + $0xd3] ss:$2 sm:$0x3f] }
 0x608   : > { %7216 = vst [vmem:[%s11494_s18 + $0x24] sm:$0x3f] %v7215_v9  ;;  %v7224_v13 = vld [vmem:[#allocation3 + $0xd4] ss:$2 sm:$0x3f]  ;;  %v7225_v34 = vmax.f32 %v7218_v54, %v7220_v17 }
 0x609   : > { %v7226_v40 = vmax.f32 %v7222_v0, %v7224_v13 }
 0x60b   : > { %v7227_v8 = vmax.f32 %v7225_v34, %v7226_v40 }
 0x60d   : > { %7228 = vst [vmem:[%s11494_s18 + $0x2a] sm:$0x3f] %v7227_v8 }
 0x60e PF: > { %s19_s21 = sadd.s32 1, %s10317_s21  }
 0x60f   : > { %p16_p6 = scmp.ge.s32.totalorder %s19_s21, 4  }
 0x611   :  { %18 = sbr.rel (!%p16_p6) target bundleno = 3 (0x3), region = 143 }
 0x618   :  { %7250 = vsyncpa [#allocation5], 1 }
 0x619   :  { %7252 = vsyncpa [#allocation5 + $0x1], 1 }
 0x61a   :  { %7253 = vsyncpa [#allocation7], 1 }
 0x61b   :  { %7254 = vsyncpa [#allocation10], 1 }

</bundles_post_ra>
